<compile_context>
chip_gen: v7x
topology: tpu7x:2x2x1
jax: 0.10.0
libtpu: 0.0.40
codegen_flags: <defaults>
</compile_context>

<pallas_src>
import functools

import jax
import jax.numpy as jnp
from jax import lax
from jax.experimental import pallas as pl
from jax.experimental.pallas import tpu as pltpu


def _round_up(x, m):
    return (x + m - 1) // m * m


# --------------------------------------------------------------------------- #
# Pallas kernels.
# --------------------------------------------------------------------------- #
def _gemm_bias_act_kernel(*refs, act, has_res):
    # refs: patches (TM,K), weights (K,Cpad), bias (1,Cpad), [residual (TM,Cpad)], out (TM,Cpad)
    if has_res:
        p_ref, w_ref, b_ref, r_ref, o_ref = refs
    else:
        p_ref, w_ref, b_ref, o_ref = refs
        r_ref = None
    y = jnp.dot(p_ref[...], w_ref[...], preferred_element_type=jnp.float32)
    y = y + b_ref[...]
    if has_res:
        y = y + r_ref[...]
    if act == "relu":
        y = jnp.maximum(y, 0.0)
    o_ref[...] = y.astype(o_ref.dtype)


def _spa_gate_kernel(p_ref, x_ref, w_ref, o_ref):
    # p_ref: (TM, K) im2col of cat(mean_c, max_c); w_ref: (K, 128) lane-replicated
    # 1-channel 7x7 kernel -> every lane of `logit` holds the same value, so the
    # gating is a pure elementwise multiply (no cross-lane extraction needed).
    logit = jnp.dot(p_ref[...], w_ref[...], preferred_element_type=jnp.float32)
    o_ref[...] = x_ref[...] * jax.nn.sigmoid(logit)


def _ca_mlp_kernel(a_ref, m_ref, w1_ref, w2_ref, o_ref):
    # Fused ChannelAttention MLP: sigmoid(fc2(relu(fc1(avg))) + fc2(relu(fc1(max)))).
    h_a = jnp.maximum(
        jnp.dot(a_ref[...], w1_ref[...], preferred_element_type=jnp.float32), 0.0)
    h_m = jnp.maximum(
        jnp.dot(m_ref[...], w1_ref[...], preferred_element_type=jnp.float32), 0.0)
    att = (jnp.dot(h_a, w2_ref[...], preferred_element_type=jnp.float32)
           + jnp.dot(h_m, w2_ref[...], preferred_element_type=jnp.float32))
    o_ref[...] = jax.nn.sigmoid(att)


# --------------------------------------------------------------------------- #
# im2col (layout plumbing in XLA; all FLOPs run inside the Pallas GEMMs).
# --------------------------------------------------------------------------- #
def _im2col(x_nhwc, KH, KW, stride, padding, dilation, H_out, W_out):
    N, H, W, Cin = x_nhwc.shape
    ph, pw = padding
    dh, dw = dilation
    xp = jnp.pad(x_nhwc.astype(jnp.float32), ((0, 0), (ph, ph), (pw, pw), (0, 0)))
    cols = []
    for kh in range(KH):
        for kw in range(KW):
            h0, w0 = kh * dh, kw * dw
            patch = lax.slice(
                xp,
                (0, h0, w0, 0),
                (N, h0 + stride * (H_out - 1) + 1,
                 w0 + stride * (W_out - 1) + 1, Cin),
                (1, stride, stride, 1))
            cols.append(patch.reshape(N * H_out * W_out, Cin))
    return cols[0] if len(cols) == 1 else jnp.concatenate(cols, axis=1)


# --------------------------------------------------------------------------- #
# Fused conv2d (+BN bias / residual / ReLU epilogue).  NHWC in -> NHWC out.
# --------------------------------------------------------------------------- #
def conv2d_fused(x_nhwc, w_oihw, scale, bias, *, stride=1, padding=(0, 0),
                 dilation=(1, 1), act=None, residual=None, tm=512):
    N, H, W, Cin = x_nhwc.shape
    Cout, Cin_w, KH, KW = w_oihw.shape
    assert Cin == Cin_w, (Cin, Cin_w)
    ph, pw = padding
    dh, dw = dilation
    H_out = (H + 2 * ph - dh * (KH - 1) - 1) // stride + 1
    W_out = (W + 2 * pw - dw * (KW - 1) - 1) // stride + 1

    patches = _im2col(x_nhwc, KH, KW, stride, (ph, pw), (dh, dw), H_out, W_out)
    M, K = patches.shape

    # Weight -> (K, Cout) with BN scale folded in; only bias-add left for epilogue.
    w2 = jnp.transpose(w_oihw, (2, 3, 1, 0)).reshape(K, Cout).astype(jnp.float32)
    w2 = w2 * scale.astype(jnp.float32)[None, :]

    # Lane-dense output: pad Cout up to a multiple of 128; slice back afterwards.
    Cpad = _round_up(Cout, 128)
    if Cpad != Cout:
        w2 = jnp.pad(w2, ((0, 0), (0, Cpad - Cout)))
    b2 = jnp.pad(bias.astype(jnp.float32), (0, Cpad - Cout)).reshape(1, Cpad)

    # Tile flattened output rows; pad M to a multiple of the tile.
    TM = min(tm, _round_up(M, 8))
    Mpad = _round_up(M, TM)
    if Mpad != M:
        patches = jnp.pad(patches, ((0, Mpad - M), (0, 0)))

    args = [patches, w2, b2]
    in_specs = [
        pl.BlockSpec((TM, K), lambda i: (i, 0)),       # row tile of patches
        pl.BlockSpec((K, Cpad), lambda i: (0, 0)),     # weights (VMEM-resident)
        pl.BlockSpec((1, Cpad), lambda i: (0, 0)),     # fused BN bias
    ]
    has_res = residual is not None
    if has_res:
        r = residual.astype(jnp.float32).reshape(M, Cout)
        r = jnp.pad(r, ((0, Mpad - M), (0, Cpad - Cout)))
        args.append(r)
        in_specs.append(pl.BlockSpec((TM, Cpad), lambda i: (i, 0)))

    out = pl.pallas_call(
        functools.partial(_gemm_bias_act_kernel, act=act, has_res=has_res),
        out_shape=jax.ShapeDtypeStruct((Mpad, Cpad), jnp.float32),
        grid_spec=pltpu.PrefetchScalarGridSpec(
            num_scalar_prefetch=0,
            grid=(Mpad // TM,),
            in_specs=in_specs,
            out_specs=pl.BlockSpec((TM, Cpad), lambda i: (i, 0)),
        ),
        compiler_params=pltpu.CompilerParams(
            dimension_semantics=("parallel",),
            vmem_limit_bytes=32 * 1024 * 1024,
        ),
    )(*args)

    return out[:M, :Cout].reshape(N, H_out, W_out, Cout)


def _bn_affine(p, eps=1e-5):
    scale = p["gamma"] / jnp.sqrt(p["var"] + eps)
    bias = p["beta"] - p["mean"] * scale
    return scale, bias


def basic_conv2d(x_nhwc, p, *, stride=1, padding=(0, 0), dilation=(1, 1),
                 eps=1e-5, act=None, residual=None):
    """BasicConv2d.forward: BN(conv(x)) (no ReLU), optional fused residual/act."""
    scale, bias = _bn_affine(p, eps)
    return conv2d_fused(x_nhwc, p["w"], scale, bias, stride=stride,
                        padding=padding, dilation=dilation, act=act,
                        residual=residual)


def basic_conv2d_multi(x_nhwc, plist, *, stride=1, padding=(0, 0),
                       dilation=(1, 1), eps=1e-5):
    """Several BasicConv2d's with identical geometry on the SAME input -> one GEMM."""
    w = jnp.concatenate([p["w"] for p in plist], axis=0)
    scales, biases = zip(*[_bn_affine(p, eps) for p in plist])
    y = conv2d_fused(x_nhwc, w, jnp.concatenate(scales), jnp.concatenate(biases),
                     stride=stride, padding=padding, dilation=dilation)
    outs, off = [], 0
    for p in plist:
        c = p["w"].shape[0]
        outs.append(y[..., off:off + c])
        off += c
    return outs


# --------------------------------------------------------------------------- #
# SpatialAttention: fused conv + sigmoid + gating kernel.
# --------------------------------------------------------------------------- #
def spatial_attention(x_nhwc, w_spa, *, tm=512):
    N, H, W, C = x_nhwc.shape
    KH, KW = w_spa.shape[2], w_spa.shape[3]
    pad = (KH // 2, KW // 2)

    avg = jnp.mean(x_nhwc, axis=3, keepdims=True)
    mx = jnp.max(x_nhwc, axis=3, keepdims=True)
    sa = jnp.concatenate([avg, mx], axis=3)                       # (N,H,W,2)

    patches = _im2col(sa, KH, KW, 1, pad, (1, 1), H, W)           # (M, KH*KW*2)
    M, K = patches.shape

    w_col = jnp.transpose(w_spa, (2, 3, 1, 0)).reshape(K, 1).astype(jnp.float32)
    Wrep = 128
    w2 = jnp.tile(w_col, (1, Wrep))                               # lane-replicated

    Cpad = _round_up(C, 128)
    xf = jnp.pad(x_nhwc.astype(jnp.float32).reshape(M, C),
                 ((0, 0), (0, Cpad - C)))

    TM = min(tm, _round_up(M, 8))
    Mpad = _round_up(M, TM)
    if Mpad != M:
        patches = jnp.pad(patches, ((0, Mpad - M), (0, 0)))
        xf = jnp.pad(xf, ((0, Mpad - M), (0, 0)))

    out = pl.pallas_call(
        _spa_gate_kernel,
        out_shape=jax.ShapeDtypeStruct((Mpad, Cpad), jnp.float32),
        grid_spec=pltpu.PrefetchScalarGridSpec(
            num_scalar_prefetch=0,
            grid=(Mpad // TM,),
            in_specs=[pl.BlockSpec((TM, K), lambda i: (i, 0)),
                      pl.BlockSpec((TM, Cpad), lambda i: (i, 0)),
                      pl.BlockSpec((K, Wrep), lambda i: (0, 0))],
            out_specs=pl.BlockSpec((TM, Cpad), lambda i: (i, 0)),
        ),
        compiler_params=pltpu.CompilerParams(
            dimension_semantics=("parallel",),
            vmem_limit_bytes=32 * 1024 * 1024,
        ),
    )(patches, xf, w2)

    return out[:M, :C].reshape(N, H, W, C)


# --------------------------------------------------------------------------- #
# ChannelAttention: fused fc1 -> ReLU -> fc2 (avg & max paths) + add + sigmoid.
# --------------------------------------------------------------------------- #
def channel_attention(x_nhwc, w_fc1, w_fc2):
    N, H, W, C = x_nhwc.shape
    Cmid = w_fc1.shape[0]
    Cout = w_fc2.shape[0]
    CmidP = _round_up(Cmid, 128)
    CoutP = _round_up(Cout, 128)
    Np = _round_up(N, 8)

    avg_p = jnp.mean(x_nhwc, axis=(1, 2))                          # (N, C)
    max_p = jnp.max(x_nhwc, axis=(1, 2))                           # (N, C)
    a = jnp.pad(avg_p.astype(jnp.float32), ((0, Np - N), (0, 0)))
    m = jnp.pad(max_p.astype(jnp.float32), ((0, Np - N), (0, 0)))

    w1 = w_fc1.reshape(Cmid, C).T.astype(jnp.float32)              # (C, Cmid)
    w1 = jnp.pad(w1, ((0, 0), (0, CmidP - Cmid)))
    w2 = w_fc2.reshape(Cout, Cmid).T.astype(jnp.float32)           # (Cmid, Cout)
    w2 = jnp.pad(w2, ((0, CmidP - Cmid), (0, CoutP - Cout)))

    att = pl.pallas_call(
        _ca_mlp_kernel,
        out_shape=jax.ShapeDtypeStruct((Np, CoutP), jnp.float32),
        grid_spec=pltpu.PrefetchScalarGridSpec(
            num_scalar_prefetch=0,
            grid=(1,),
            in_specs=[pl.BlockSpec((Np, C), lambda i: (0, 0)),
                      pl.BlockSpec((Np, C), lambda i: (0, 0)),
                      pl.BlockSpec((C, CmidP), lambda i: (0, 0)),
                      pl.BlockSpec((CmidP, CoutP), lambda i: (0, 0))],
            out_specs=pl.BlockSpec((Np, CoutP), lambda i: (0, 0)),
        ),
        compiler_params=pltpu.CompilerParams(
            dimension_semantics=("arbitrary",),
            vmem_limit_bytes=32 * 1024 * 1024,
        ),
    )(a, m, w1, w2)

    gate = att[:N, :Cout]
    return x_nhwc * gate[:, None, None, :]


# --------------------------------------------------------------------------- #
# HAGCA_2 forward (NCHW in / NCHW out; NHWC internally).
# --------------------------------------------------------------------------- #
def hagca2_forward(params, x_nchw):
    x = jnp.transpose(x_nchw, (0, 2, 3, 1)).astype(jnp.float32)    # NHWC

    # SpatialAttention (conv + sigmoid gate fused in-kernel).
    x_spa = spatial_attention(x, params["spa_w"])

    # branch0 with the `x_11 + x_spa` residual fused into the GEMM epilogue.
    x_11_spa = basic_conv2d(x_spa, params["branch0"], residual=x_spa)
    x0 = channel_attention(x_11_spa, params["cha_fc1"], params["cha_fc2"])

    b1, b2 = params["branch1"], params["branch2"]
    # branch1[0] and branch2[0] are both 1x1 convs on x: one merged GEMM.
    x1, x2 = basic_conv2d_multi(x, [b1[0], b2[0]])
    x1 = basic_conv2d(x1, b1[1], padding=(0, 1))
    x1 = basic_conv2d(x1, b1[2], padding=(1, 0))
    x1 = basic_conv2d(x1, b1[3], padding=(3, 3), dilation=(3, 3))
    x2 = basic_conv2d(x2, b2[1], padding=(0, 2))
    x2 = basic_conv2d(x2, b2[2], padding=(2, 0))
    x2 = basic_conv2d(x2, b2[3], padding=(5, 5), dilation=(5, 5))

    # conv_cat with the `+ x0` residual and the final ReLU fused in the epilogue.
    out = basic_conv2d(jnp.concatenate([x0, x1, x2], axis=3), params["conv_cat"],
                       padding=(1, 1), residual=x0, act="relu")
    return jnp.transpose(out, (0, 3, 1, 2))                        # back to NCHW


# --------------------------------------------------------------------------- #
# Pure-JAX reference (NCHW, mirrors the PyTorch module exactly).
# --------------------------------------------------------------------------- #
def _ref_conv(x, w, stride=1, padding=(0, 0), dilation=(1, 1)):
    return lax.conv_general_dilated(
        x, w, (stride, stride),
        [(padding[0], padding[0]), (padding[1], padding[1])],
        rhs_dilation=(dilation[0], dilation[1]),
        dimension_numbers=("NCHW", "OIHW", "NCHW"))


def _ref_basic(x, p, stride=1, padding=(0, 0), dilation=(1, 1), eps=1e-5):
    y = _ref_conv(x, p["w"], stride, padding, dilation)
    scale = p["gamma"] / jnp.sqrt(p["var"] + eps)
    bias = p["beta"] - p["mean"] * scale
    return y * scale[None, :, None, None] + bias[None, :, None, None]


def hagca2_reference(params, x):
    avg = jnp.mean(x, axis=1, keepdims=True)
    mx = jnp.max(x, axis=1, keepdims=True)
    sa = _ref_conv(jnp.concatenate([avg, mx], axis=1), params["spa_w"],
                   padding=(3, 3))
    x_spa = x * jax.nn.sigmoid(sa)

    x_11 = _ref_basic(x_spa, params["branch0"])
    x_11_spa = x_11 + x_spa

    avg_p = jnp.mean(x_11_spa, axis=(2, 3), keepdims=True)
    max_p = jnp.max(x_11_spa, axis=(2, 3), keepdims=True)

    def fc(v):
        h = jax.nn.relu(_ref_conv(v, params["cha_fc1"]))
        return _ref_conv(h, params["cha_fc2"])

    att = fc(avg_p) + fc(max_p)
    x0 = x_11_spa * jax.nn.sigmoid(att)

    b1 = params["branch1"]
    x1 = _ref_basic(x, b1[0])
    x1 = _ref_basic(x1, b1[1], padding=(0, 1))
    x1 = _ref_basic(x1, b1[2], padding=(1, 0))
    x1 = _ref_basic(x1, b1[3], padding=(3, 3), dilation=(3, 3))

    b2 = params["branch2"]
    x2 = _ref_basic(x, b2[0])
    x2 = _ref_basic(x2, b2[1], padding=(0, 2))
    x2 = _ref_basic(x2, b2[2], padding=(2, 0))
    x2 = _ref_basic(x2, b2[3], padding=(5, 5), dilation=(5, 5))

    x_cat = _ref_basic(jnp.concatenate([x0, x1, x2], axis=1),
                       params["conv_cat"], padding=(1, 1))
    return jax.nn.relu(x_cat + x0)


# --------------------------------------------------------------------------- #
# Parameter construction helpers.
# --------------------------------------------------------------------------- #
def _init_basic(key, cin, cout, kh, kw):
    k1, k2, k3, k4, k5 = jax.random.split(key, 5)
    return dict(
        w=0.1 * jax.random.normal(k1, (cout, cin, kh, kw), jnp.float32),
        gamma=1.0 + 0.1 * jax.random.normal(k2, (cout,), jnp.float32),
        beta=0.1 * jax.random.normal(k3, (cout,), jnp.float32),
        mean=0.1 * jax.random.normal(k4, (cout,), jnp.float32),
        var=0.5 + jnp.abs(jax.random.normal(k5, (cout,), jnp.float32)),
    )


if __name__ == "__main__":
    # HAGCA_2 requires in_channel == out_channel (x_11 + x_spa, fc2 on fc1 output).
    N, H, W = 2, 16, 16
    in_ch = out_ch = 8

    key = jax.random.PRNGKey(0)
    keys = jax.random.split(key, 16)

    x = jax.random.normal(keys[0], (N, in_ch, H, W), jnp.float32)
    params = {
        "spa_w": 0.1 * jax.random.normal(keys[1], (1, 2, 7, 7), jnp.float32),
        "cha_fc1": 0.1 * jax.random.normal(keys[2], (out_ch, in_ch, 1, 1), jnp.float32),
        "cha_fc2": 0.1 * jax.random.normal(keys[3], (out_ch, in_ch, 1, 1), jnp.float32),
        "branch0": _init_basic(keys[4], in_ch, out_ch, 1, 1),
        "branch1": [
            _init_basic(keys[5], in_ch, out_ch, 1, 1),
            _init_basic(keys[6], out_ch, out_ch, 1, 3),
            _init_basic(keys[7], out_ch, out_ch, 3, 1),
            _init_basic(keys[8], out_ch, out_ch, 3, 3),
        ],
        "branch2": [
            _init_basic(keys[9], in_ch, out_ch, 1, 1),
            _init_basic(keys[10], out_ch, out_ch, 1, 5),
            _init_basic(keys[11], out_ch, out_ch, 5, 1),
            _init_basic(keys[12], out_ch, out_ch, 3, 3),
        ],
        "conv_cat": _init_basic(keys[13], 3 * out_ch, out_ch, 3, 3),
    }

    fwd = jax.jit(hagca2_forward)
    out = jax.block_until_ready(fwd(params, x))

    ref = jax.block_until_ready(hagca2_reference(params, x))
    assert out.shape == (N, out_ch, H, W), out.shape
    assert jnp.allclose(out, ref, atol=2e-3, rtol=2e-3), "mismatch vs reference"

    print("KERNEL_OK")
</pallas_src>

<mosaic_0001>
module attributes {stable_mosaic.version = 11 : i64} {
  func.func @_spa_gate_kernel(%arg0: i32, %arg1: memref<512x98xf32, #tpu.memory_space<vmem>>, %arg2: memref<512x128xf32, #tpu.memory_space<vmem>>, %arg3: memref<98x128xf32, #tpu.memory_space<vmem>>, %arg4: memref<512x128xf32, #tpu.memory_space<vmem>>) attributes {dimension_semantics = [#tpu.dimension_semantics<parallel>], iteration_bounds = array<i64: 1>, scalar_prefetch = 0 : i64, scratch_operands = 0 : i64, tpu.core_type = #tpu.core_type<tc>, window_params = [{transform_indices = @transform_0, window_bounds = array<i64: 512, 98>}, {transform_indices = @transform_1, window_bounds = array<i64: 512, 128>}, {pipeline_mode = #tpu.pipeline_mode<synchronous>, transform_indices = @transform_2, window_bounds = array<i64: 98, 128>}, {transform_indices = @transform_3, window_bounds = array<i64: 512, 128>}]} {
    %c0 = arith.constant 0 : index
    %c0_0 = arith.constant 0 : index
    %0 = vector.load %arg1[%c0, %c0_0] : memref<512x98xf32, #tpu.memory_space<vmem>>, vector<512x98xf32>
    %c0_1 = arith.constant 0 : index
    %c0_2 = arith.constant 0 : index
    %1 = vector.load %arg3[%c0_1, %c0_2] : memref<98x128xf32, #tpu.memory_space<vmem>>, vector<98x128xf32>
    %cst = arith.constant dense<0.000000e+00> : vector<512x128xf32>
    %2 = tpu.matmul %0, %1, %cst {dimension_numbers = #tpu.dot_dimension_numbers<[1], [0], [0], [1], [0, 0, 1, 1], [], []>} : vector<512x98xf32>, vector<98x128xf32>, vector<512x128xf32> -> vector<512x128xf32>
    %c0_3 = arith.constant 0 : index
    %c0_4 = arith.constant 0 : index
    %3 = vector.load %arg2[%c0_3, %c0_4] : memref<512x128xf32, #tpu.memory_space<vmem>>, vector<512x128xf32>
    %4 = arith.negf %2 : vector<512x128xf32>
    %5 = math.exp %4 : vector<512x128xf32>
    %cst_5 = arith.constant 1.000000e+00 : f32
    %6 = vector.broadcast %cst_5 : f32 to vector<512x128xf32>
    %7 = arith.addf %6, %5 : vector<512x128xf32>
    %8 = arith.divf %6, %7 : vector<512x128xf32>
    %9 = arith.mulf %3, %8 : vector<512x128xf32>
    %c0_6 = arith.constant 0 : index
    %c0_7 = arith.constant 0 : index
    %10 = vector.load %arg4[%c0_6, %c0_7] : memref<512x128xf32, #tpu.memory_space<vmem>>, vector<512x128xf32>
    tpu.vector_store %arg4[%c0_6, %c0_7], %9 {strides = array<i32>} : memref<512x128xf32, #tpu.memory_space<vmem>>, vector<512x128xf32>,
    return
  }
  func.func @transform_0(%arg0: i32) -> (i32, i32) {
    %c0_i32 = arith.constant 0 : i32
    %c0_i32_0 = arith.constant 0 : i32
    return %arg0, %c0_i32 : i32, i32
  }
  func.func @transform_1(%arg0: i32) -> (i32, i32) {
    %c0_i32 = arith.constant 0 : i32
    %c0_i32_0 = arith.constant 0 : i32
    return %arg0, %c0_i32 : i32, i32
  }
  func.func @transform_2(%arg0: i32) -> (i32, i32) {
    %c0_i32 = arith.constant 0 : i32
    %c0_i32_0 = arith.constant 0 : i32
    %c0_i32_1 = arith.constant 0 : i32
    return %c0_i32, %c0_i32_0 : i32, i32
  }
  func.func @transform_3(%arg0: i32) -> (i32, i32) {
    %c0_i32 = arith.constant 0 : i32
    %c0_i32_0 = arith.constant 0 : i32
    return %arg0, %c0_i32 : i32, i32
  }
}

module attributes {stable_mosaic.version = 11 : i64} {
  func.func @_gemm_bias_act_kernel(%arg0: i32, %arg1: memref<512x8xf32, #tpu.memory_space<vmem>>, %arg2: memref<8x128xf32, #tpu.memory_space<vmem>>, %arg3: memref<1x128xf32, #tpu.memory_space<vmem>>, %arg4: memref<512x128xf32, #tpu.memory_space<vmem>>, %arg5: memref<512x128xf32, #tpu.memory_space<vmem>>) attributes {dimension_semantics = [#tpu.dimension_semantics<parallel>], iteration_bounds = array<i64: 1>, scalar_prefetch = 0 : i64, scratch_operands = 0 : i64, tpu.core_type = #tpu.core_type<tc>, window_params = [{transform_indices = @transform_0, window_bounds = array<i64: 512, 8>}, {pipeline_mode = #tpu.pipeline_mode<synchronous>, transform_indices = @transform_1, window_bounds = array<i64: 8, 128>}, {pipeline_mode = #tpu.pipeline_mode<synchronous>, transform_indices = @transform_2, window_bounds = array<i64: 1, 128>}, {transform_indices = @transform_3, window_bounds = array<i64: 512, 128>}, {transform_indices = @transform_4, window_bounds = array<i64: 512, 128>}]} {
    %c0 = arith.constant 0 : index
    %c0_0 = arith.constant 0 : index
    %0 = vector.load %arg1[%c0, %c0_0] : memref<512x8xf32, #tpu.memory_space<vmem>>, vector<512x8xf32>
    %c0_1 = arith.constant 0 : index
    %c0_2 = arith.constant 0 : index
    %1 = vector.load %arg2[%c0_1, %c0_2] : memref<8x128xf32, #tpu.memory_space<vmem>>, vector<8x128xf32>
    %cst = arith.constant dense<0.000000e+00> : vector<512x128xf32>
    %2 = tpu.matmul %0, %1, %cst {dimension_numbers = #tpu.dot_dimension_numbers<[1], [0], [0], [1], [0, 0, 1, 1], [], []>} : vector<512x8xf32>, vector<8x128xf32>, vector<512x128xf32> -> vector<512x128xf32>
    %c0_3 = arith.constant 0 : index
    %c0_4 = arith.constant 0 : index
    %3 = vector.load %arg3[%c0_3, %c0_4] : memref<1x128xf32, #tpu.memory_space<vmem>>, vector<1x128xf32>
    %4 = vector.broadcast %3 : vector<1x128xf32> to vector<512x128xf32>
    %5 = arith.addf %2, %4 : vector<512x128xf32>
    %c0_5 = arith.constant 0 : index
    %c0_6 = arith.constant 0 : index
    %6 = vector.load %arg4[%c0_5, %c0_6] : memref<512x128xf32, #tpu.memory_space<vmem>>, vector<512x128xf32>
    %7 = arith.addf %5, %6 : vector<512x128xf32>
    %c0_7 = arith.constant 0 : index
    %c0_8 = arith.constant 0 : index
    %8 = vector.load %arg5[%c0_7, %c0_8] : memref<512x128xf32, #tpu.memory_space<vmem>>, vector<512x128xf32>
    tpu.vector_store %arg5[%c0_7, %c0_8], %7 {strides = array<i32>} : memref<512x128xf32, #tpu.memory_space<vmem>>, vector<512x128xf32>,
    return
  }
  func.func @transform_0(%arg0: i32) -> (i32, i32) {
    %c0_i32 = arith.constant 0 : i32
    %c0_i32_0 = arith.constant 0 : i32
    return %arg0, %c0_i32 : i32, i32
  }
  func.func @transform_1(%arg0: i32) -> (i32, i32) {
    %c0_i32 = arith.constant 0 : i32
    %c0_i32_0 = arith.constant 0 : i32
    %c0_i32_1 = arith.constant 0 : i32
    return %c0_i32, %c0_i32_0 : i32, i32
  }
  func.func @transform_2(%arg0: i32) -> (i32, i32) {
    %c0_i32 = arith.constant 0 : i32
    %c0_i32_0 = arith.constant 0 : i32
    %c0_i32_1 = arith.constant 0 : i32
    return %c0_i32, %c0_i32_0 : i32, i32
  }
  func.func @transform_3(%arg0: i32) -> (i32, i32) {
    %c0_i32 = arith.constant 0 : i32
    %c0_i32_0 = arith.constant 0 : i32
    return %arg0, %c0_i32 : i32, i32
  }
  func.func @transform_4(%arg0: i32) -> (i32, i32) {
    %c0_i32 = arith.constant 0 : i32
    %c0_i32_0 = arith.constant 0 : i32
    return %arg0, %c0_i32 : i32, i32
  }
}

module attributes {stable_mosaic.version = 11 : i64} {
  func.func @_ca_mlp_kernel(%arg0: i32, %arg1: memref<8x8xf32, #tpu.memory_space<vmem>>, %arg2: memref<8x8xf32, #tpu.memory_space<vmem>>, %arg3: memref<8x128xf32, #tpu.memory_space<vmem>>, %arg4: memref<128x128xf32, #tpu.memory_space<vmem>>, %arg5: memref<8x128xf32, #tpu.memory_space<vmem>>) attributes {dimension_semantics = [#tpu.dimension_semantics<arbitrary>], iteration_bounds = array<i64: 1>, scalar_prefetch = 0 : i64, scratch_operands = 0 : i64, tpu.core_type = #tpu.core_type<tc>, window_params = [{pipeline_mode = #tpu.pipeline_mode<synchronous>, transform_indices = @transform_0, window_bounds = array<i64: 8, 8>}, {pipeline_mode = #tpu.pipeline_mode<synchronous>, transform_indices = @transform_1, window_bounds = array<i64: 8, 8>}, {pipeline_mode = #tpu.pipeline_mode<synchronous>, transform_indices = @transform_2, window_bounds = array<i64: 8, 128>}, {pipeline_mode = #tpu.pipeline_mode<synchronous>, transform_indices = @transform_3, window_bounds = array<i64: 128, 128>}, {pipeline_mode = #tpu.pipeline_mode<synchronous>, transform_indices = @transform_4, window_bounds = array<i64: 8, 128>}]} {
    %c0 = arith.constant 0 : index
    %c0_0 = arith.constant 0 : index
    %0 = vector.load %arg1[%c0, %c0_0] : memref<8x8xf32, #tpu.memory_space<vmem>>, vector<8x8xf32>
    %c0_1 = arith.constant 0 : index
    %c0_2 = arith.constant 0 : index
    %1 = vector.load %arg3[%c0_1, %c0_2] : memref<8x128xf32, #tpu.memory_space<vmem>>, vector<8x128xf32>
    %cst = arith.constant dense<0.000000e+00> : vector<8x128xf32>
    %2 = tpu.matmul %0, %1, %cst {dimension_numbers = #tpu.dot_dimension_numbers<[1], [0], [0], [1], [0, 0, 1, 1], [], []>} : vector<8x8xf32>, vector<8x128xf32>, vector<8x128xf32> -> vector<8x128xf32>
    %cst_3 = arith.constant 0.000000e+00 : f32
    %3 = vector.broadcast %cst_3 : f32 to vector<8x128xf32>
    %4 = arith.maximumf %2, %3 : vector<8x128xf32>
    %c0_4 = arith.constant 0 : index
    %c0_5 = arith.constant 0 : index
    %5 = vector.load %arg2[%c0_4, %c0_5] : memref<8x8xf32, #tpu.memory_space<vmem>>, vector<8x8xf32>
    %c0_6 = arith.constant 0 : index
    %c0_7 = arith.constant 0 : index
    %6 = vector.load %arg3[%c0_6, %c0_7] : memref<8x128xf32, #tpu.memory_space<vmem>>, vector<8x128xf32>
    %cst_8 = arith.constant dense<0.000000e+00> : vector<8x128xf32>
    %7 = tpu.matmul %5, %6, %cst_8 {dimension_numbers = #tpu.dot_dimension_numbers<[1], [0], [0], [1], [0, 0, 1, 1], [], []>} : vector<8x8xf32>, vector<8x128xf32>, vector<8x128xf32> -> vector<8x128xf32>
    %cst_9 = arith.constant 0.000000e+00 : f32
    %8 = vector.broadcast %cst_9 : f32 to vector<8x128xf32>
    %9 = arith.maximumf %7, %8 : vector<8x128xf32>
    %c0_10 = arith.constant 0 : index
    %c0_11 = arith.constant 0 : index
    %10 = vector.load %arg4[%c0_10, %c0_11] : memref<128x128xf32, #tpu.memory_space<vmem>>, vector<128x128xf32>
    %cst_12 = arith.constant dense<0.000000e+00> : vector<8x128xf32>
    %11 = tpu.matmul %4, %10, %cst_12 {dimension_numbers = #tpu.dot_dimension_numbers<[1], [0], [0], [1], [0, 0, 1, 1], [], []>} : vector<8x128xf32>, vector<128x128xf32>, vector<8x128xf32> -> vector<8x128xf32>
    %c0_13 = arith.constant 0 : index
    %c0_14 = arith.constant 0 : index
    %12 = vector.load %arg4[%c0_13, %c0_14] : memref<128x128xf32, #tpu.memory_space<vmem>>, vector<128x128xf32>
    %cst_15 = arith.constant dense<0.000000e+00> : vector<8x128xf32>
    %13 = tpu.matmul %9, %12, %cst_15 {dimension_numbers = #tpu.dot_dimension_numbers<[1], [0], [0], [1], [0, 0, 1, 1], [], []>} : vector<8x128xf32>, vector<128x128xf32>, vector<8x128xf32> -> vector<8x128xf32>
    %14 = arith.addf %11, %13 : vector<8x128xf32>
    %15 = arith.negf %14 : vector<8x128xf32>
    %16 = math.exp %15 : vector<8x128xf32>
    %cst_16 = arith.constant 1.000000e+00 : f32
    %17 = vector.broadcast %cst_16 : f32 to vector<8x128xf32>
    %18 = arith.addf %17, %16 : vector<8x128xf32>
    %19 = arith.divf %17, %18 : vector<8x128xf32>
    %c0_17 = arith.constant 0 : index
    %c0_18 = arith.constant 0 : index
    %20 = vector.load %arg5[%c0_17, %c0_18] : memref<8x128xf32, #tpu.memory_space<vmem>>, vector<8x128xf32>
    tpu.vector_store %arg5[%c0_17, %c0_18], %19 {strides = array<i32>} : memref<8x128xf32, #tpu.memory_space<vmem>>, vector<8x128xf32>,
    return
  }
  func.func @transform_0(%arg0: i32) -> (i32, i32) {
    %c0_i32 = arith.constant 0 : i32
    %c0_i32_0 = arith.constant 0 : i32
    %c0_i32_1 = arith.constant 0 : i32
    return %c0_i32, %c0_i32_0 : i32, i32
  }
  func.func @transform_1(%arg0: i32) -> (i32, i32) {
    %c0_i32 = arith.constant 0 : i32
    %c0_i32_0 = arith.constant 0 : i32
    %c0_i32_1 = arith.constant 0 : i32
    return %c0_i32, %c0_i32_0 : i32, i32
  }
  func.func @transform_2(%arg0: i32) -> (i32, i32) {
    %c0_i32 = arith.constant 0 : i32
    %c0_i32_0 = arith.constant 0 : i32
    %c0_i32_1 = arith.constant 0 : i32
    return %c0_i32, %c0_i32_0 : i32, i32
  }
  func.func @transform_3(%arg0: i32) -> (i32, i32) {
    %c0_i32 = arith.constant 0 : i32
    %c0_i32_0 = arith.constant 0 : i32
    %c0_i32_1 = arith.constant 0 : i32
    return %c0_i32, %c0_i32_0 : i32, i32
  }
  func.func @transform_4(%arg0: i32) -> (i32, i32) {
    %c0_i32 = arith.constant 0 : i32
    %c0_i32_0 = arith.constant 0 : i32
    %c0_i32_1 = arith.constant 0 : i32
    return %c0_i32, %c0_i32_0 : i32, i32
  }
}

module attributes {stable_mosaic.version = 11 : i64} {
  func.func @_gemm_bias_act_kernel(%arg0: i32, %arg1: memref<512x8xf32, #tpu.memory_space<vmem>>, %arg2: memref<8x128xf32, #tpu.memory_space<vmem>>, %arg3: memref<1x128xf32, #tpu.memory_space<vmem>>, %arg4: memref<512x128xf32, #tpu.memory_space<vmem>>) attributes {dimension_semantics = [#tpu.dimension_semantics<parallel>], iteration_bounds = array<i64: 1>, scalar_prefetch = 0 : i64, scratch_operands = 0 : i64, tpu.core_type = #tpu.core_type<tc>, window_params = [{transform_indices = @transform_0, window_bounds = array<i64: 512, 8>}, {pipeline_mode = #tpu.pipeline_mode<synchronous>, transform_indices = @transform_1, window_bounds = array<i64: 8, 128>}, {pipeline_mode = #tpu.pipeline_mode<synchronous>, transform_indices = @transform_2, window_bounds = array<i64: 1, 128>}, {transform_indices = @transform_3, window_bounds = array<i64: 512, 128>}]} {
    %c0 = arith.constant 0 : index
    %c0_0 = arith.constant 0 : index
    %0 = vector.load %arg1[%c0, %c0_0] : memref<512x8xf32, #tpu.memory_space<vmem>>, vector<512x8xf32>
    %c0_1 = arith.constant 0 : index
    %c0_2 = arith.constant 0 : index
    %1 = vector.load %arg2[%c0_1, %c0_2] : memref<8x128xf32, #tpu.memory_space<vmem>>, vector<8x128xf32>
    %cst = arith.constant dense<0.000000e+00> : vector<512x128xf32>
    %2 = tpu.matmul %0, %1, %cst {dimension_numbers = #tpu.dot_dimension_numbers<[1], [0], [0], [1], [0, 0, 1, 1], [], []>} : vector<512x8xf32>, vector<8x128xf32>, vector<512x128xf32> -> vector<512x128xf32>
    %c0_3 = arith.constant 0 : index
    %c0_4 = arith.constant 0 : index
    %3 = vector.load %arg3[%c0_3, %c0_4] : memref<1x128xf32, #tpu.memory_space<vmem>>, vector<1x128xf32>
    %4 = vector.broadcast %3 : vector<1x128xf32> to vector<512x128xf32>
    %5 = arith.addf %2, %4 : vector<512x128xf32>
    %c0_5 = arith.constant 0 : index
    %c0_6 = arith.constant 0 : index
    %6 = vector.load %arg4[%c0_5, %c0_6] : memref<512x128xf32, #tpu.memory_space<vmem>>, vector<512x128xf32>
    tpu.vector_store %arg4[%c0_5, %c0_6], %5 {strides = array<i32>} : memref<512x128xf32, #tpu.memory_space<vmem>>, vector<512x128xf32>,
    return
  }
  func.func @transform_0(%arg0: i32) -> (i32, i32) {
    %c0_i32 = arith.constant 0 : i32
    %c0_i32_0 = arith.constant 0 : i32
    return %arg0, %c0_i32 : i32, i32
  }
  func.func @transform_1(%arg0: i32) -> (i32, i32) {
    %c0_i32 = arith.constant 0 : i32
    %c0_i32_0 = arith.constant 0 : i32
    %c0_i32_1 = arith.constant 0 : i32
    return %c0_i32, %c0_i32_0 : i32, i32
  }
  func.func @transform_2(%arg0: i32) -> (i32, i32) {
    %c0_i32 = arith.constant 0 : i32
    %c0_i32_0 = arith.constant 0 : i32
    %c0_i32_1 = arith.constant 0 : i32
    return %c0_i32, %c0_i32_0 : i32, i32
  }
  func.func @transform_3(%arg0: i32) -> (i32, i32) {
    %c0_i32 = arith.constant 0 : i32
    %c0_i32_0 = arith.constant 0 : i32
    return %arg0, %c0_i32 : i32, i32
  }
}

module attributes {stable_mosaic.version = 11 : i64} {
  func.func @_gemm_bias_act_kernel(%arg0: i32, %arg1: memref<512x24xf32, #tpu.memory_space<vmem>>, %arg2: memref<24x128xf32, #tpu.memory_space<vmem>>, %arg3: memref<1x128xf32, #tpu.memory_space<vmem>>, %arg4: memref<512x128xf32, #tpu.memory_space<vmem>>) attributes {dimension_semantics = [#tpu.dimension_semantics<parallel>], iteration_bounds = array<i64: 1>, scalar_prefetch = 0 : i64, scratch_operands = 0 : i64, tpu.core_type = #tpu.core_type<tc>, window_params = [{transform_indices = @transform_0, window_bounds = array<i64: 512, 24>}, {pipeline_mode = #tpu.pipeline_mode<synchronous>, transform_indices = @transform_1, window_bounds = array<i64: 24, 128>}, {pipeline_mode = #tpu.pipeline_mode<synchronous>, transform_indices = @transform_2, window_bounds = array<i64: 1, 128>}, {transform_indices = @transform_3, window_bounds = array<i64: 512, 128>}]} {
    %c0 = arith.constant 0 : index
    %c0_0 = arith.constant 0 : index
    %0 = vector.load %arg1[%c0, %c0_0] : memref<512x24xf32, #tpu.memory_space<vmem>>, vector<512x24xf32>
    %c0_1 = arith.constant 0 : index
    %c0_2 = arith.constant 0 : index
    %1 = vector.load %arg2[%c0_1, %c0_2] : memref<24x128xf32, #tpu.memory_space<vmem>>, vector<24x128xf32>
    %cst = arith.constant dense<0.000000e+00> : vector<512x128xf32>
    %2 = tpu.matmul %0, %1, %cst {dimension_numbers = #tpu.dot_dimension_numbers<[1], [0], [0], [1], [0, 0, 1, 1], [], []>} : vector<512x24xf32>, vector<24x128xf32>, vector<512x128xf32> -> vector<512x128xf32>
    %c0_3 = arith.constant 0 : index
    %c0_4 = arith.constant 0 : index
    %3 = vector.load %arg3[%c0_3, %c0_4] : memref<1x128xf32, #tpu.memory_space<vmem>>, vector<1x128xf32>
    %4 = vector.broadcast %3 : vector<1x128xf32> to vector<512x128xf32>
    %5 = arith.addf %2, %4 : vector<512x128xf32>
    %c0_5 = arith.constant 0 : index
    %c0_6 = arith.constant 0 : index
    %6 = vector.load %arg4[%c0_5, %c0_6] : memref<512x128xf32, #tpu.memory_space<vmem>>, vector<512x128xf32>
    tpu.vector_store %arg4[%c0_5, %c0_6], %5 {strides = array<i32>} : memref<512x128xf32, #tpu.memory_space<vmem>>, vector<512x128xf32>,
    return
  }
  func.func @transform_0(%arg0: i32) -> (i32, i32) {
    %c0_i32 = arith.constant 0 : i32
    %c0_i32_0 = arith.constant 0 : i32
    return %arg0, %c0_i32 : i32, i32
  }
  func.func @transform_1(%arg0: i32) -> (i32, i32) {
    %c0_i32 = arith.constant 0 : i32
    %c0_i32_0 = arith.constant 0 : i32
    %c0_i32_1 = arith.constant 0 : i32
    return %c0_i32, %c0_i32_0 : i32, i32
  }
  func.func @transform_2(%arg0: i32) -> (i32, i32) {
    %c0_i32 = arith.constant 0 : i32
    %c0_i32_0 = arith.constant 0 : i32
    %c0_i32_1 = arith.constant 0 : i32
    return %c0_i32, %c0_i32_0 : i32, i32
  }
  func.func @transform_3(%arg0: i32) -> (i32, i32) {
    %c0_i32 = arith.constant 0 : i32
    %c0_i32_0 = arith.constant 0 : i32
    return %arg0, %c0_i32 : i32, i32
  }
}

module attributes {stable_mosaic.version = 11 : i64} {
  func.func @_gemm_bias_act_kernel(%arg0: i32, %arg1: memref<512x72xf32, #tpu.memory_space<vmem>>, %arg2: memref<72x128xf32, #tpu.memory_space<vmem>>, %arg3: memref<1x128xf32, #tpu.memory_space<vmem>>, %arg4: memref<512x128xf32, #tpu.memory_space<vmem>>) attributes {dimension_semantics = [#tpu.dimension_semantics<parallel>], iteration_bounds = array<i64: 1>, scalar_prefetch = 0 : i64, scratch_operands = 0 : i64, tpu.core_type = #tpu.core_type<tc>, window_params = [{transform_indices = @transform_0, window_bounds = array<i64: 512, 72>}, {pipeline_mode = #tpu.pipeline_mode<synchronous>, transform_indices = @transform_1, window_bounds = array<i64: 72, 128>}, {pipeline_mode = #tpu.pipeline_mode<synchronous>, transform_indices = @transform_2, window_bounds = array<i64: 1, 128>}, {transform_indices = @transform_3, window_bounds = array<i64: 512, 128>}]} {
    %c0 = arith.constant 0 : index
    %c0_0 = arith.constant 0 : index
    %0 = vector.load %arg1[%c0, %c0_0] : memref<512x72xf32, #tpu.memory_space<vmem>>, vector<512x72xf32>
    %c0_1 = arith.constant 0 : index
    %c0_2 = arith.constant 0 : index
    %1 = vector.load %arg2[%c0_1, %c0_2] : memref<72x128xf32, #tpu.memory_space<vmem>>, vector<72x128xf32>
    %cst = arith.constant dense<0.000000e+00> : vector<512x128xf32>
    %2 = tpu.matmul %0, %1, %cst {dimension_numbers = #tpu.dot_dimension_numbers<[1], [0], [0], [1], [0, 0, 1, 1], [], []>} : vector<512x72xf32>, vector<72x128xf32>, vector<512x128xf32> -> vector<512x128xf32>
    %c0_3 = arith.constant 0 : index
    %c0_4 = arith.constant 0 : index
    %3 = vector.load %arg3[%c0_3, %c0_4] : memref<1x128xf32, #tpu.memory_space<vmem>>, vector<1x128xf32>
    %4 = vector.broadcast %3 : vector<1x128xf32> to vector<512x128xf32>
    %5 = arith.addf %2, %4 : vector<512x128xf32>
    %c0_5 = arith.constant 0 : index
    %c0_6 = arith.constant 0 : index
    %6 = vector.load %arg4[%c0_5, %c0_6] : memref<512x128xf32, #tpu.memory_space<vmem>>, vector<512x128xf32>
    tpu.vector_store %arg4[%c0_5, %c0_6], %5 {strides = array<i32>} : memref<512x128xf32, #tpu.memory_space<vmem>>, vector<512x128xf32>,
    return
  }
  func.func @transform_0(%arg0: i32) -> (i32, i32) {
    %c0_i32 = arith.constant 0 : i32
    %c0_i32_0 = arith.constant 0 : i32
    return %arg0, %c0_i32 : i32, i32
  }
  func.func @transform_1(%arg0: i32) -> (i32, i32) {
    %c0_i32 = arith.constant 0 : i32
    %c0_i32_0 = arith.constant 0 : i32
    %c0_i32_1 = arith.constant 0 : i32
    return %c0_i32, %c0_i32_0 : i32, i32
  }
  func.func @transform_2(%arg0: i32) -> (i32, i32) {
    %c0_i32 = arith.constant 0 : i32
    %c0_i32_0 = arith.constant 0 : i32
    %c0_i32_1 = arith.constant 0 : i32
    return %c0_i32, %c0_i32_0 : i32, i32
  }
  func.func @transform_3(%arg0: i32) -> (i32, i32) {
    %c0_i32 = arith.constant 0 : i32
    %c0_i32_0 = arith.constant 0 : i32
    return %arg0, %c0_i32 : i32, i32
  }
}

module attributes {stable_mosaic.version = 11 : i64} {
  func.func @_gemm_bias_act_kernel(%arg0: i32, %arg1: memref<512x40xf32, #tpu.memory_space<vmem>>, %arg2: memref<40x128xf32, #tpu.memory_space<vmem>>, %arg3: memref<1x128xf32, #tpu.memory_space<vmem>>, %arg4: memref<512x128xf32, #tpu.memory_space<vmem>>) attributes {dimension_semantics = [#tpu.dimension_semantics<parallel>], iteration_bounds = array<i64: 1>, scalar_prefetch = 0 : i64, scratch_operands = 0 : i64, tpu.core_type = #tpu.core_type<tc>, window_params = [{transform_indices = @transform_0, window_bounds = array<i64: 512, 40>}, {pipeline_mode = #tpu.pipeline_mode<synchronous>, transform_indices = @transform_1, window_bounds = array<i64: 40, 128>}, {pipeline_mode = #tpu.pipeline_mode<synchronous>, transform_indices = @transform_2, window_bounds = array<i64: 1, 128>}, {transform_indices = @transform_3, window_bounds = array<i64: 512, 128>}]} {
    %c0 = arith.constant 0 : index
    %c0_0 = arith.constant 0 : index
    %0 = vector.load %arg1[%c0, %c0_0] : memref<512x40xf32, #tpu.memory_space<vmem>>, vector<512x40xf32>
    %c0_1 = arith.constant 0 : index
    %c0_2 = arith.constant 0 : index
    %1 = vector.load %arg2[%c0_1, %c0_2] : memref<40x128xf32, #tpu.memory_space<vmem>>, vector<40x128xf32>
    %cst = arith.constant dense<0.000000e+00> : vector<512x128xf32>
    %2 = tpu.matmul %0, %1, %cst {dimension_numbers = #tpu.dot_dimension_numbers<[1], [0], [0], [1], [0, 0, 1, 1], [], []>} : vector<512x40xf32>, vector<40x128xf32>, vector<512x128xf32> -> vector<512x128xf32>
    %c0_3 = arith.constant 0 : index
    %c0_4 = arith.constant 0 : index
    %3 = vector.load %arg3[%c0_3, %c0_4] : memref<1x128xf32, #tpu.memory_space<vmem>>, vector<1x128xf32>
    %4 = vector.broadcast %3 : vector<1x128xf32> to vector<512x128xf32>
    %5 = arith.addf %2, %4 : vector<512x128xf32>
    %c0_5 = arith.constant 0 : index
    %c0_6 = arith.constant 0 : index
    %6 = vector.load %arg4[%c0_5, %c0_6] : memref<512x128xf32, #tpu.memory_space<vmem>>, vector<512x128xf32>
    tpu.vector_store %arg4[%c0_5, %c0_6], %5 {strides = array<i32>} : memref<512x128xf32, #tpu.memory_space<vmem>>, vector<512x128xf32>,
    return
  }
  func.func @transform_0(%arg0: i32) -> (i32, i32) {
    %c0_i32 = arith.constant 0 : i32
    %c0_i32_0 = arith.constant 0 : i32
    return %arg0, %c0_i32 : i32, i32
  }
  func.func @transform_1(%arg0: i32) -> (i32, i32) {
    %c0_i32 = arith.constant 0 : i32
    %c0_i32_0 = arith.constant 0 : i32
    %c0_i32_1 = arith.constant 0 : i32
    return %c0_i32, %c0_i32_0 : i32, i32
  }
  func.func @transform_2(%arg0: i32) -> (i32, i32) {
    %c0_i32 = arith.constant 0 : i32
    %c0_i32_0 = arith.constant 0 : i32
    %c0_i32_1 = arith.constant 0 : i32
    return %c0_i32, %c0_i32_0 : i32, i32
  }
  func.func @transform_3(%arg0: i32) -> (i32, i32) {
    %c0_i32 = arith.constant 0 : i32
    %c0_i32_0 = arith.constant 0 : i32
    return %arg0, %c0_i32 : i32, i32
  }
}

module attributes {stable_mosaic.version = 11 : i64} {
  func.func @_gemm_bias_act_kernel(%arg0: i32, %arg1: memref<512x216xf32, #tpu.memory_space<vmem>>, %arg2: memref<216x128xf32, #tpu.memory_space<vmem>>, %arg3: memref<1x128xf32, #tpu.memory_space<vmem>>, %arg4: memref<512x128xf32, #tpu.memory_space<vmem>>, %arg5: memref<512x128xf32, #tpu.memory_space<vmem>>) attributes {dimension_semantics = [#tpu.dimension_semantics<parallel>], iteration_bounds = array<i64: 1>, scalar_prefetch = 0 : i64, scratch_operands = 0 : i64, tpu.core_type = #tpu.core_type<tc>, window_params = [{transform_indices = @transform_0, window_bounds = array<i64: 512, 216>}, {pipeline_mode = #tpu.pipeline_mode<synchronous>, transform_indices = @transform_1, window_bounds = array<i64: 216, 128>}, {pipeline_mode = #tpu.pipeline_mode<synchronous>, transform_indices = @transform_2, window_bounds = array<i64: 1, 128>}, {transform_indices = @transform_3, window_bounds = array<i64: 512, 128>}, {transform_indices = @transform_4, window_bounds = array<i64: 512, 128>}]} {
    %c0 = arith.constant 0 : index
    %c0_0 = arith.constant 0 : index
    %0 = vector.load %arg1[%c0, %c0_0] : memref<512x216xf32, #tpu.memory_space<vmem>>, vector<512x216xf32>
    %c0_1 = arith.constant 0 : index
    %c0_2 = arith.constant 0 : index
    %1 = vector.load %arg2[%c0_1, %c0_2] : memref<216x128xf32, #tpu.memory_space<vmem>>, vector<216x128xf32>
    %cst = arith.constant dense<0.000000e+00> : vector<512x128xf32>
    %2 = tpu.matmul %0, %1, %cst {dimension_numbers = #tpu.dot_dimension_numbers<[1], [0], [0], [1], [0, 0, 1, 1], [], []>} : vector<512x216xf32>, vector<216x128xf32>, vector<512x128xf32> -> vector<512x128xf32>
    %c0_3 = arith.constant 0 : index
    %c0_4 = arith.constant 0 : index
    %3 = vector.load %arg3[%c0_3, %c0_4] : memref<1x128xf32, #tpu.memory_space<vmem>>, vector<1x128xf32>
    %4 = vector.broadcast %3 : vector<1x128xf32> to vector<512x128xf32>
    %5 = arith.addf %2, %4 : vector<512x128xf32>
    %c0_5 = arith.constant 0 : index
    %c0_6 = arith.constant 0 : index
    %6 = vector.load %arg4[%c0_5, %c0_6] : memref<512x128xf32, #tpu.memory_space<vmem>>, vector<512x128xf32>
    %7 = arith.addf %5, %6 : vector<512x128xf32>
    %cst_7 = arith.constant 0.000000e+00 : f32
    %8 = vector.broadcast %cst_7 : f32 to vector<512x128xf32>
    %9 = arith.maximumf %7, %8 : vector<512x128xf32>
    %c0_8 = arith.constant 0 : index
    %c0_9 = arith.constant 0 : index
    %10 = vector.load %arg5[%c0_8, %c0_9] : memref<512x128xf32, #tpu.memory_space<vmem>>, vector<512x128xf32>
    tpu.vector_store %arg5[%c0_8, %c0_9], %9 {strides = array<i32>} : memref<512x128xf32, #tpu.memory_space<vmem>>, vector<512x128xf32>,
    return
  }
  func.func @transform_0(%arg0: i32) -> (i32, i32) {
    %c0_i32 = arith.constant 0 : i32
    %c0_i32_0 = arith.constant 0 : i32
    return %arg0, %c0_i32 : i32, i32
  }
  func.func @transform_1(%arg0: i32) -> (i32, i32) {
    %c0_i32 = arith.constant 0 : i32
    %c0_i32_0 = arith.constant 0 : i32
    %c0_i32_1 = arith.constant 0 : i32
    return %c0_i32, %c0_i32_0 : i32, i32
  }
  func.func @transform_2(%arg0: i32) -> (i32, i32) {
    %c0_i32 = arith.constant 0 : i32
    %c0_i32_0 = arith.constant 0 : i32
    %c0_i32_1 = arith.constant 0 : i32
    return %c0_i32, %c0_i32_0 : i32, i32
  }
  func.func @transform_3(%arg0: i32) -> (i32, i32) {
    %c0_i32 = arith.constant 0 : i32
    %c0_i32_0 = arith.constant 0 : i32
    return %arg0, %c0_i32 : i32, i32
  }
  func.func @transform_4(%arg0: i32) -> (i32, i32) {
    %c0_i32 = arith.constant 0 : i32
    %c0_i32_0 = arith.constant 0 : i32
    return %arg0, %c0_i32 : i32, i32
  }
}

</mosaic_0001>

<bundles_post_ra>
// kernel: mul.57
= control target key start
LH: loop header
LB: loop body
LE: loop exit
PB: predicated region body
PF: predicated region fallthrough
CT: control target
= control target key end

     0   :  { %s474_s0 = inlined_call_operand.vmem [shape: f32[2,8], index: 0, kind: input, shape index: {}]   ;;  %s475_s1 = inlined_call_operand.vmem [shape: f32[2,16,16,8], index: 1, kind: output, shape index: {}]  }
   0x1   :  { %v211_v0 = vld [vmem:[%s474_s0] ss:$0 sm:$0xff]  ;;  %v216_v1 = vld [vmem:[%s474_s0 + $0x1] ss:$0 sm:$0xff] }
   0x2   :  { %5 = vst [vmem:[%s475_s1] sm:$0xff] %v211_v0  ;;  %135 = vst [vmem:[%s475_s1 + $0x100] sm:$0xff] %v216_v1 }
   0x3   :  { %136 = vst [vmem:[%s475_s1 + $0x10] sm:$0xff] %v211_v0  ;;  %137 = vst [vmem:[%s475_s1 + $0x110] sm:$0xff] %v216_v1 }
   0x4   :  { %138 = vst [vmem:[%s475_s1 + $0x20] sm:$0xff] %v211_v0  ;;  %139 = vst [vmem:[%s475_s1 + $0x120] sm:$0xff] %v216_v1 }
   0x5   :  { %140 = vst [vmem:[%s475_s1 + $0x30] sm:$0xff] %v211_v0  ;;  %141 = vst [vmem:[%s475_s1 + $0x130] sm:$0xff] %v216_v1 }
   0x6   :  { %142 = vst [vmem:[%s475_s1 + $0x40] sm:$0xff] %v211_v0  ;;  %143 = vst [vmem:[%s475_s1 + $0x140] sm:$0xff] %v216_v1 }
   0x7   :  { %144 = vst [vmem:[%s475_s1 + $0x50] sm:$0xff] %v211_v0  ;;  %145 = vst [vmem:[%s475_s1 + $0x150] sm:$0xff] %v216_v1 }
   0x8   :  { %146 = vst [vmem:[%s475_s1 + $0x60] sm:$0xff] %v211_v0  ;;  %147 = vst [vmem:[%s475_s1 + $0x160] sm:$0xff] %v216_v1 }
   0x9   :  { %148 = vst [vmem:[%s475_s1 + $0x70] sm:$0xff] %v211_v0  ;;  %149 = vst [vmem:[%s475_s1 + $0x170] sm:$0xff] %v216_v1 }
   0xa   :  { %150 = vst [vmem:[%s475_s1 + $0x80] sm:$0xff] %v211_v0  ;;  %151 = vst [vmem:[%s475_s1 + $0x180] sm:$0xff] %v216_v1 }
   0xb   :  { %152 = vst [vmem:[%s475_s1 + $0x90] sm:$0xff] %v211_v0  ;;  %153 = vst [vmem:[%s475_s1 + $0x190] sm:$0xff] %v216_v1 }
   0xc   :  { %154 = vst [vmem:[%s475_s1 + $0xa0] sm:$0xff] %v211_v0  ;;  %155 = vst [vmem:[%s475_s1 + $0x1a0] sm:$0xff] %v216_v1 }
   0xd   :  { %156 = vst [vmem:[%s475_s1 + $0xb0] sm:$0xff] %v211_v0  ;;  %157 = vst [vmem:[%s475_s1 + $0x1b0] sm:$0xff] %v216_v1 }
   0xe   :  { %158 = vst [vmem:[%s475_s1 + $0xc0] sm:$0xff] %v211_v0  ;;  %159 = vst [vmem:[%s475_s1 + $0x1c0] sm:$0xff] %v216_v1 }
   0xf   :  { %160 = vst [vmem:[%s475_s1 + $0xd0] sm:$0xff] %v211_v0  ;;  %161 = vst [vmem:[%s475_s1 + $0x1d0] sm:$0xff] %v216_v1 }
  0x10   :  { %162 = vst [vmem:[%s475_s1 + $0xe0] sm:$0xff] %v211_v0  ;;  %163 = vst [vmem:[%s475_s1 + $0x1e0] sm:$0xff] %v216_v1 }
  0x11   :  { %164 = vst [vmem:[%s475_s1 + $0xf0] sm:$0xff] %v211_v0  ;;  %165 = vst [vmem:[%s475_s1 + $0x1f0] sm:$0xff] %v216_v1 }
  0x12   :  { %166 = vst [vmem:[%s475_s1 + $0x8] sm:$0xff] %v211_v0  ;;  %167 = vst [vmem:[%s475_s1 + $0x108] sm:$0xff] %v216_v1 }
  0x13   :  { %168 = vst [vmem:[%s475_s1 + $0x18] sm:$0xff] %v211_v0  ;;  %169 = vst [vmem:[%s475_s1 + $0x118] sm:$0xff] %v216_v1 }
  0x14   :  { %170 = vst [vmem:[%s475_s1 + $0x28] sm:$0xff] %v211_v0  ;;  %171 = vst [vmem:[%s475_s1 + $0x128] sm:$0xff] %v216_v1 }
  0x15   :  { %172 = vst [vmem:[%s475_s1 + $0x38] sm:$0xff] %v211_v0  ;;  %173 = vst [vmem:[%s475_s1 + $0x138] sm:$0xff] %v216_v1 }
  0x16   :  { %174 = vst [vmem:[%s475_s1 + $0x48] sm:$0xff] %v211_v0  ;;  %175 = vst [vmem:[%s475_s1 + $0x148] sm:$0xff] %v216_v1 }
  0x17   :  { %176 = vst [vmem:[%s475_s1 + $0x58] sm:$0xff] %v211_v0  ;;  %177 = vst [vmem:[%s475_s1 + $0x158] sm:$0xff] %v216_v1 }
  0x18   :  { %178 = vst [vmem:[%s475_s1 + $0x68] sm:$0xff] %v211_v0  ;;  %179 = vst [vmem:[%s475_s1 + $0x168] sm:$0xff] %v216_v1 }
  0x19   :  { %180 = vst [vmem:[%s475_s1 + $0x78] sm:$0xff] %v211_v0  ;;  %181 = vst [vmem:[%s475_s1 + $0x178] sm:$0xff] %v216_v1 }
  0x1a   :  { %182 = vst [vmem:[%s475_s1 + $0x88] sm:$0xff] %v211_v0  ;;  %183 = vst [vmem:[%s475_s1 + $0x188] sm:$0xff] %v216_v1 }
  0x1b   :  { %184 = vst [vmem:[%s475_s1 + $0x98] sm:$0xff] %v211_v0  ;;  %185 = vst [vmem:[%s475_s1 + $0x198] sm:$0xff] %v216_v1 }
  0x1c   :  { %186 = vst [vmem:[%s475_s1 + $0xa8] sm:$0xff] %v211_v0  ;;  %187 = vst [vmem:[%s475_s1 + $0x1a8] sm:$0xff] %v216_v1 }
  0x1d   :  { %188 = vst [vmem:[%s475_s1 + $0xb8] sm:$0xff] %v211_v0  ;;  %189 = vst [vmem:[%s475_s1 + $0x1b8] sm:$0xff] %v216_v1 }
  0x1e   :  { %190 = vst [vmem:[%s475_s1 + $0xc8] sm:$0xff] %v211_v0  ;;  %191 = vst [vmem:[%s475_s1 + $0x1c8] sm:$0xff] %v216_v1 }
  0x1f   :  { %192 = vst [vmem:[%s475_s1 + $0xd8] sm:$0xff] %v211_v0  ;;  %193 = vst [vmem:[%s475_s1 + $0x1d8] sm:$0xff] %v216_v1 }
  0x20   :  { %194 = vst [vmem:[%s475_s1 + $0xe8] sm:$0xff] %v211_v0  ;;  %195 = vst [vmem:[%s475_s1 + $0x1e8] sm:$0xff] %v216_v1 }
  0x21   :  { %196 = vst [vmem:[%s475_s1 + $0xf8] sm:$0xff] %v211_v0  ;;  %197 = vst [vmem:[%s475_s1 + $0x1f8] sm:$0xff] %v216_v1 }

// kernel: hagca2_forward.13
= control target key start
LH: loop header
LB: loop body
LE: loop exit
PB: predicated region body
PF: predicated region fallthrough
CT: control target
= control target key end

     0   :  { %v513_v0 = vmov 0.0   ;;  %vm19_vm0 = vcmask 64512   ;;  %vm514_vm1 = vmmov 0   ;;  %v515_v9 = vmov 0.0|0.0   ;;  %s605_s2 = inlined_call_operand.vmem [shape: f32[8,128], index: 2, kind: input, shape index: {}]   ;;  %s606_s0 = inlined_call_operand.vmem [shape: f32[8,8], index: 0, kind: input, shape index: {}]   ;;  %s607_s1 = inlined_call_operand.vmem [shape: f32[8,8], index: 1, kind: input, shape index: {}]   ;;  %s608_s3 = inlined_call_operand.vmem [shape: f32[128,128], index: 3, kind: input, shape index: {}]   ;;  %s609_s4 = inlined_call_operand.vmem [shape: f32[8,128], index: 4, kind: output, shape index: {}]  }
   0x1   :  { %377 = vmatprep.subr.mxu0 %v513_v0  ;;  %382 = vmatprep.subr.mxu1 %v513_v0  ;;  %v18_v1 = vld [vmem:[%s605_s2] sm:$0xff]  ;;  %v170_v5 = vld [vmem:[%s608_s3 + $0x8] sm:$0xff]  ;;  %v171_v7 = vld [vmem:[%s608_s3 + $0x10] sm:$0xff] }
   0x2   :  { %v17_v2 = vld [vmem:[%s606_s0] sm:$0xff]  ;;  %378 = vmatpush3.msra.mxu0 %v18_v1  ;;  %379 = vmatprep.mubr.msk.f32.mxu0 %vm514_vm1, %v513_v0  ;;  %v172_v8 = vld [vmem:[%s608_s3 + $0x18] sm:$0xff]  ;;  %v174_v12 = vld [vmem:[%s608_s3 + $0x28] sm:$0xff] }
   0x3   :  { %v94_v3 = vld [vmem:[%s607_s1] sm:$0xff]  ;;  %383 = vmatpush3.msra.mxu1 %v18_v1  ;;  %384 = vmatprep.mubr.msk.f32.mxu1 %vm514_vm1, %v513_v0  ;;  %v461_v10 = vpack.c.bf16 %v172_v8, %v171_v7  ;;  %v175_v14 = vld [vmem:[%s608_s3 + $0x30] sm:$0xff]  ;;  %v176_v15 = vld [vmem:[%s608_s3 + $0x38] sm:$0xff] }
   0x4   :  { %v169_v4 = vld [vmem:[%s608_s3] sm:$0xff]  ;;  %380 = vmatmul.mubr.msk.f32.vlgmr.msra.gmra.mrb[0].mxu0 %vm19_vm0, %v17_v2  ;;  %385 = vmatmul.mubr.msk.f32.vlgmr.msra.gmra.mrb[0].mxu1 %vm19_vm0, %v94_v3  ;;  %v467_v16 = vpack.c.bf16 %v176_v15, %v175_v14  ;;  %v178_v18 = vld [vmem:[%s608_s3 + $0x48] sm:$0xff]  ;;  %v179_v20 = vld [vmem:[%s608_s3 + $0x50] sm:$0xff] }
   0x5   :  { %v458_v6 = vpack.c.bf16 %v170_v5, %v169_v4  ;;  %457 = vmatprep.subr.bf16.mxu1 %v515_v9  ;;  %481 = vmatprep.subr.bf16.mxu0 %v515_v9  ;;  %v173_v11 = vld [vmem:[%s608_s3 + $0x20] sm:$0xff]  ;;  %v180_v21 = vld [vmem:[%s608_s3 + $0x58] sm:$0xff]  ;;  %v182_v24 = vld [vmem:[%s608_s3 + $0x68] sm:$0xff] }
   0x6   :  { %419 = vmatprep.mubr.msk.f32.mxu1 %vm514_vm1, %v513_v0  ;;  %454 = vmatprep.mubr.msk.f32.mxu0 %vm514_vm1, %v513_v0  ;;  %v464_v13 = vpack.c.bf16 %v174_v12, %v173_v11  ;;  %v177_v17 = vld [vmem:[%s608_s3 + $0x40] sm:$0xff]  ;;  %v473_v22 = vpack.c.bf16 %v180_v21, %v179_v20  ;;  %v183_v26 = vld [vmem:[%s608_s3 + $0x70] sm:$0xff]  ;;  %v184_v27 = vld [vmem:[%s608_s3 + $0x78] sm:$0xff] }
   0x7   :  { %459 = vmatpush3.bf16.msra.mxu1 %v458_v6  ;;  %483 = vmatpush3.bf16.msra.mxu0 %v458_v6  ;;  %v470_v19 = vpack.c.bf16 %v178_v18, %v177_v17  ;;  %v181_v23 = vld [vmem:[%s608_s3 + $0x60] sm:$0xff]  ;;  %v479_v28 = vpack.c.bf16 %v184_v27, %v183_v26 }
   0x8   :  { %460 = vmatprep.subr.bf16.mxu1 %v515_v9  ;;  %484 = vmatprep.subr.bf16.mxu0 %v515_v9  ;;  %v476_v25 = vpack.c.bf16 %v182_v24, %v181_v23 }
   0xb   :  { %462 = vmatpush3.bf16.msra.mxu1 %v461_v10  ;;  %486 = vmatpush3.bf16.msra.mxu0 %v461_v10 }
   0xc   :  { %463 = vmatprep.subr.bf16.mxu1 %v515_v9  ;;  %487 = vmatprep.subr.bf16.mxu0 %v515_v9 }
   0xf   :  { %465 = vmatpush3.bf16.msra.mxu1 %v464_v13  ;;  %489 = vmatpush3.bf16.msra.mxu0 %v464_v13 }
  0x10   :  { %466 = vmatprep.subr.bf16.mxu1 %v515_v9  ;;  %490 = vmatprep.subr.bf16.mxu0 %v515_v9 }
  0x13   :  { %468 = vmatpush3.bf16.msra.mxu1 %v467_v16  ;;  %492 = vmatpush3.bf16.msra.mxu0 %v467_v16 }
  0x14   :  { %469 = vmatprep.subr.bf16.mxu1 %v515_v9  ;;  %493 = vmatprep.subr.bf16.mxu0 %v515_v9 }
  0x17   :  { %471 = vmatpush3.bf16.msra.mxu1 %v470_v19  ;;  %495 = vmatpush3.bf16.msra.mxu0 %v470_v19 }
  0x18   :  { %472 = vmatprep.subr.bf16.mxu1 %v515_v9  ;;  %496 = vmatprep.subr.bf16.mxu0 %v515_v9 }
  0x1b   :  { %474 = vmatpush3.bf16.msra.mxu1 %v473_v22  ;;  %498 = vmatpush3.bf16.msra.mxu0 %v473_v22 }
  0x1c   :  { %475 = vmatprep.subr.bf16.mxu1 %v515_v9  ;;  %499 = vmatprep.subr.bf16.mxu0 %v515_v9 }
  0x1f   :  { %477 = vmatpush3.bf16.msra.mxu1 %v476_v25  ;;  %501 = vmatpush3.bf16.msra.mxu0 %v476_v25 }
  0x20   :  { %478 = vmatprep.subr.bf16.mxu1 %v515_v9  ;;  %502 = vmatprep.subr.bf16.mxu0 %v515_v9 }
  0x23   :  { %480 = vmatpush3.bf16.msra.mxu1 %v479_v28  ;;  %504 = vmatpush3.bf16.msra.mxu0 %v479_v28 }
  0xd7   :  { %v89_v29 = vpop.f32.mrb[0].mxu0  ;;  %v164_v30 = vpop.f32.mrb[0].mxu1 }
  0xd8   :  { %v93_v31 = vmax.f32 %v89_v29, 0.0  ;;  %v168_v32 = vmax.f32 %v164_v30, 0.0  ;;  %v381_v33 = vpop.f32.mrb[1].mxu0  ;;  %v386_v34 = vpop.f32.mrb[1].mxu1 }
  0xda   :  { %420 = vmatmul.mubr.f32.vlgmr.msra.gmra.mrb[2].mxu1 %v168_v32  ;;  %455 = vmatmul.mubr.f32.vlgmr.msra.gmra.mrb[2].mxu0 %v93_v31 }
 0x1ad   :  { %v251_v35 = vpop.f32.mrb[2].mxu1  ;;  %v321_v36 = vpop.f32.mrb[2].mxu0 }
 0x1ae   :  { %v322_v37 = vadd.f32 %v321_v36, %v251_v35  ;;  %v421_v38 = vpop.f32.mrb[3].mxu1  ;;  %v456_v39 = vpop.f32.mrb[3].mxu0 }
 0x1b0   :  { %v338_v40 = vmul.f32 -1.442695, %v322_v37 }
 0x1b2   :  { %509 = vpow2.f32 %v338_v40 }
 0x1bc   :  { %v510_v41 = vpop.eup %509 }
 0x1bd   :  { %v328_v42 = vadd.f32 1.0, %v510_v41 }
 0x1bf   :  { %511 = vrcp.f32 %v328_v42 }
 0x1c9   :  { %v512_v43 = vpop.eup %511 }
 0x1ca   :  { %331 = vst [vmem:[%s609_s4] sm:$0xff] %v512_v43 }

// kernel: hagca2_forward.12
= control target key start
LH: loop header
LB: loop body
LE: loop exit
PB: predicated region body
PF: predicated region fallthrough
CT: control target
= control target key end

     0   :  { %vm89_vm0 = vcmask 64512   ;;  %s1830_s1 = inlined_call_operand.vmem [shape: f32[8,128], index: 1, kind: input, shape index: {}]   ;;  %s1831_s0 = inlined_call_operand.vmem [shape: f32[512,8], index: 0, kind: input, shape index: {}]   ;;  %s1832_s2 = inlined_call_operand.vmem [shape: f32[1,128], index: 2, kind: input, shape index: {}]   ;;  %s1833_s3 = inlined_call_operand.vmem [shape: f32[512,128], index: 3, kind: input, shape index: {}]   ;;  %s1834_s4 = inlined_call_operand.vmem [shape: f32[512,128], index: 4, kind: output, shape index: {}]  }
   0x1   :  { %v81_v0 = vld [vmem:[%s1830_s1] sm:$0xff]  ;;  %v18_v3 = vld [vmem:[%s1831_s0 + $0x8] sm:$0xff]  ;;  %v19_v5 = vld [vmem:[%s1831_s0 + $0x10] sm:$0xff] }
   0x2   :  { %v17_v1 = vld [vmem:[%s1831_s0] sm:$0xff]  ;;  %993 = vmatprep.subr.mxu0 %v81_v0  ;;  %1091 = vmatprep.subr.mxu1 %v81_v0  ;;  %v50_v4 = vld [vmem:[%s1831_s0 + $0x108] sm:$0xff]  ;;  %v51_v6 = vld [vmem:[%s1831_s0 + $0x110] sm:$0xff] }
   0x3   :  { %v49_v2 = vld [vmem:[%s1831_s0 + $0x100] sm:$0xff]  ;;  %994 = vmatpush3.msra.mxu0 %v81_v0  ;;  %1092 = vmatpush3.msra.mxu1 %v81_v0  ;;  %v20_v7 = vld [vmem:[%s1831_s0 + $0x18] sm:$0xff]  ;;  %v22_v11 = vld [vmem:[%s1831_s0 + $0x28] sm:$0xff] }
   0x4   :  { %995 = vmatprep.mubr.msk.f32.mxu0 %vm89_vm0, %v17_v1  ;;  %1043 = vmatprep.mubr.msk.f32.mxu1 %vm89_vm0, %v49_v2  ;;  %v52_v8 = vld [vmem:[%s1831_s0 + $0x118] sm:$0xff]  ;;  %v21_v9 = vld [vmem:[%s1831_s0 + $0x20] sm:$0xff]  ;;  %v54_v12 = vld [vmem:[%s1831_s0 + $0x128] sm:$0xff] }
   0x5   :  { %996 = vmatmul.mubr.msk.f32.vlgmr.msra.gmra.mrb[0].mxu0 %vm89_vm0, %v18_v3  ;;  %1044 = vmatmul.mubr.msk.f32.vlgmr.msra.gmra.mrb[0].mxu1 %vm89_vm0, %v50_v4  ;;  %v53_v10 = vld [vmem:[%s1831_s0 + $0x120] sm:$0xff]  ;;  %v23_v13 = vld [vmem:[%s1831_s0 + $0x30] sm:$0xff]  ;;  %v24_v15 = vld [vmem:[%s1831_s0 + $0x38] sm:$0xff] }
   0x6   :  { %998 = vmatprep.mubr.msk.f32.mxu0 %vm89_vm0, %v19_v5  ;;  %1046 = vmatprep.mubr.msk.f32.mxu1 %vm89_vm0, %v51_v6  ;;  %v55_v14 = vld [vmem:[%s1831_s0 + $0x130] sm:$0xff]  ;;  %v56_v16 = vld [vmem:[%s1831_s0 + $0x138] sm:$0xff]  ;;  %v25_v17 = vld [vmem:[%s1831_s0 + $0x40] sm:$0xff] }
   0x7   :  { %v57_v18 = vld [vmem:[%s1831_s0 + $0x140] sm:$0xff]  ;;  %v26_v19 = vld [vmem:[%s1831_s0 + $0x48] sm:$0xff]  ;;  %v27_v21 = vld [vmem:[%s1831_s0 + $0x50] sm:$0xff] }
   0x8   :  { %v58_v20 = vld [vmem:[%s1831_s0 + $0x148] sm:$0xff]  ;;  %v59_v22 = vld [vmem:[%s1831_s0 + $0x150] sm:$0xff]  ;;  %v28_v23 = vld [vmem:[%s1831_s0 + $0x58] sm:$0xff] }
   0x9   :  { %999 = vmatmul.mubr.msk.f32.gmra.mrb[2].mxu0 %vm89_vm0, %v20_v7  ;;  %1047 = vmatmul.mubr.msk.f32.gmra.mrb[2].mxu1 %vm89_vm0, %v52_v8  ;;  %v60_v24 = vld [vmem:[%s1831_s0 + $0x158] sm:$0xff]  ;;  %v29_v25 = vld [vmem:[%s1831_s0 + $0x60] sm:$0xff]  ;;  %v30_v27 = vld [vmem:[%s1831_s0 + $0x68] sm:$0xff] }
   0xa   :  { %1001 = vmatprep.mubr.msk.f32.mxu0 %vm89_vm0, %v21_v9  ;;  %1049 = vmatprep.mubr.msk.f32.mxu1 %vm89_vm0, %v53_v10  ;;  %v61_v26 = vld [vmem:[%s1831_s0 + $0x160] sm:$0xff]  ;;  %v62_v28 = vld [vmem:[%s1831_s0 + $0x168] sm:$0xff]  ;;  %v31_v29 = vld [vmem:[%s1831_s0 + $0x70] sm:$0xff] }
   0xb   :  { %v63_v30 = vld [vmem:[%s1831_s0 + $0x170] sm:$0xff]  ;;  %v32_v31 = vld [vmem:[%s1831_s0 + $0x78] sm:$0xff]  ;;  %v33_v33 = vld [vmem:[%s1831_s0 + $0x80] sm:$0xff] }
   0xc   :  { %v64_v32 = vld [vmem:[%s1831_s0 + $0x178] sm:$0xff]  ;;  %v65_v34 = vld [vmem:[%s1831_s0 + $0x180] sm:$0xff]  ;;  %v34_v35 = vld [vmem:[%s1831_s0 + $0x88] sm:$0xff] }
   0xd   :  { %1002 = vmatmul.mubr.msk.f32.gmra.mrb[4].mxu0 %vm89_vm0, %v22_v11  ;;  %1050 = vmatmul.mubr.msk.f32.gmra.mrb[4].mxu1 %vm89_vm0, %v54_v12  ;;  %v66_v36 = vld [vmem:[%s1831_s0 + $0x188] sm:$0xff]  ;;  %v35_v37 = vld [vmem:[%s1831_s0 + $0x90] sm:$0xff]  ;;  %v36_v39 = vld [vmem:[%s1831_s0 + $0x98] sm:$0xff] }
   0xe   :  { %1004 = vmatprep.mubr.msk.f32.mxu0 %vm89_vm0, %v23_v13  ;;  %1052 = vmatprep.mubr.msk.f32.mxu1 %vm89_vm0, %v55_v14  ;;  %v67_v38 = vld [vmem:[%s1831_s0 + $0x190] sm:$0xff]  ;;  %v68_v40 = vld [vmem:[%s1831_s0 + $0x198] sm:$0xff]  ;;  %v37_v41 = vld [vmem:[%s1831_s0 + $0xa0] sm:$0xff] }
   0xf   :  { %v69_v42 = vld [vmem:[%s1831_s0 + $0x1a0] sm:$0xff]  ;;  %v38_v43 = vld [vmem:[%s1831_s0 + $0xa8] sm:$0xff]  ;;  %v39_v45 = vld [vmem:[%s1831_s0 + $0xb0] sm:$0xff] }
  0x10   :  { %v70_v44 = vld [vmem:[%s1831_s0 + $0x1a8] sm:$0xff]  ;;  %v71_v46 = vld [vmem:[%s1831_s0 + $0x1b0] sm:$0xff]  ;;  %v40_v47 = vld [vmem:[%s1831_s0 + $0xb8] sm:$0xff] }
  0x11   :  { %1005 = vmatmul.mubr.msk.f32.gmra.mrb[6].mxu0 %vm89_vm0, %v24_v15  ;;  %1053 = vmatmul.mubr.msk.f32.gmra.mrb[6].mxu1 %vm89_vm0, %v56_v16  ;;  %v72_v48 = vld [vmem:[%s1831_s0 + $0x1b8] sm:$0xff]  ;;  %v41_v49 = vld [vmem:[%s1831_s0 + $0xc0] sm:$0xff]  ;;  %v42_v51 = vld [vmem:[%s1831_s0 + $0xc8] sm:$0xff] }
  0x12   :  { %1007 = vmatprep.mubr.msk.f32.mxu0 %vm89_vm0, %v25_v17  ;;  %1055 = vmatprep.mubr.msk.f32.mxu1 %vm89_vm0, %v57_v18  ;;  %v73_v50 = vld [vmem:[%s1831_s0 + $0x1c0] sm:$0xff]  ;;  %v74_v52 = vld [vmem:[%s1831_s0 + $0x1c8] sm:$0xff]  ;;  %v43_v53 = vld [vmem:[%s1831_s0 + $0xd0] sm:$0xff] }
  0x13   :  { %v75_v54 = vld [vmem:[%s1831_s0 + $0x1d0] sm:$0xff]  ;;  %v44_v55 = vld [vmem:[%s1831_s0 + $0xd8] sm:$0xff]  ;;  %v45_v57 = vld [vmem:[%s1831_s0 + $0xe0] sm:$0xff] }
  0x14   :  { %v76_v56 = vld [vmem:[%s1831_s0 + $0x1d8] sm:$0xff]  ;;  %v77_v58 = vld [vmem:[%s1831_s0 + $0x1e0] sm:$0xff]  ;;  %v46_v59 = vld [vmem:[%s1831_s0 + $0xe8] sm:$0xff] }
  0x15   :  { %1008 = vmatmul.mubr.msk.f32.gmra.mrb[8].mxu0 %vm89_vm0, %v26_v19  ;;  %1056 = vmatmul.mubr.msk.f32.gmra.mrb[8].mxu1 %vm89_vm0, %v58_v20  ;;  %v78_v60 = vld [vmem:[%s1831_s0 + $0x1e8] sm:$0xff]  ;;  %v47_v61 = vld [vmem:[%s1831_s0 + $0xf0] sm:$0xff]  ;;  %v48_v63 = vld [vmem:[%s1831_s0 + $0xf8] sm:$0xff] }
  0x16   :  { %1010 = vmatprep.mubr.msk.f32.mxu0 %vm89_vm0, %v27_v21  ;;  %1058 = vmatprep.mubr.msk.f32.mxu1 %vm89_vm0, %v59_v22  ;;  %v79_v62 = vld [vmem:[%s1831_s0 + $0x1f0] sm:$0xff]  ;;  %v80_v0 = vld [vmem:[%s1831_s0 + $0x1f8] sm:$0xff]  ;;  %v1380_v1 = vld [vmem:[%s1832_s2] ss:$0 sm:$0xff] }
  0x17   :  { %v668_v3 = vld [vmem:[%s1833_s3 + $0x8] sm:$0xff]  ;;  %v667_v9 = vld [vmem:[%s1833_s3] sm:$0xff]  ;;  %v670_v19 = vld [vmem:[%s1833_s3 + $0x18] sm:$0xff] }
  0x18   :  { %v700_v5 = vld [vmem:[%s1833_s3 + $0x108] sm:$0xff]  ;;  %v699_v11 = vld [vmem:[%s1833_s3 + $0x100] sm:$0xff]  ;;  %v702_v21 = vld [vmem:[%s1833_s3 + $0x118] sm:$0xff] }
  0x19   :  { %1011 = vmatmul.mubr.msk.f32.gmra.mrb[10].mxu0 %vm89_vm0, %v28_v23  ;;  %1059 = vmatmul.mubr.msk.f32.gmra.mrb[10].mxu1 %vm89_vm0, %v60_v24 }
  0x1a   :  { %1013 = vmatprep.mubr.msk.f32.mxu0 %vm89_vm0, %v29_v25  ;;  %1061 = vmatprep.mubr.msk.f32.mxu1 %vm89_vm0, %v61_v26  ;;  %v669_v25 = vld [vmem:[%s1833_s3 + $0x10] sm:$0xff] }
  0x1d   :  { %1014 = vmatmul.mubr.msk.f32.gmra.mrb[12].mxu0 %vm89_vm0, %v30_v27  ;;  %1062 = vmatmul.mubr.msk.f32.gmra.mrb[12].mxu1 %vm89_vm0, %v62_v28  ;;  %v701_v27 = vld [vmem:[%s1833_s3 + $0x110] sm:$0xff] }
  0x1e   :  { %1016 = vmatprep.mubr.msk.f32.mxu0 %vm89_vm0, %v31_v29  ;;  %1064 = vmatprep.mubr.msk.f32.mxu1 %vm89_vm0, %v63_v30 }
  0x21   :  { %1017 = vmatmul.mubr.msk.f32.gmra.mrb[14].mxu0 %vm89_vm0, %v32_v31  ;;  %1065 = vmatmul.mubr.msk.f32.gmra.mrb[14].mxu1 %vm89_vm0, %v64_v32 }
  0x22   :  { %1019 = vmatprep.mubr.msk.f32.mxu0 %vm89_vm0, %v33_v33  ;;  %1067 = vmatprep.mubr.msk.f32.mxu1 %vm89_vm0, %v65_v34 }
  0x25   :  { %1020 = vmatmul.mubr.msk.f32.gmra.mrb[16].mxu0 %vm89_vm0, %v34_v35  ;;  %1068 = vmatmul.mubr.msk.f32.gmra.mrb[16].mxu1 %vm89_vm0, %v66_v36  ;;  %v672_v35 = vld [vmem:[%s1833_s3 + $0x28] sm:$0xff] }
  0x26   :  { %1022 = vmatprep.mubr.msk.f32.mxu0 %vm89_vm0, %v35_v37  ;;  %1070 = vmatprep.mubr.msk.f32.mxu1 %vm89_vm0, %v67_v38  ;;  %v704_v37 = vld [vmem:[%s1833_s3 + $0x128] sm:$0xff] }
  0x29   :  { %1023 = vmatmul.mubr.msk.f32.gmra.mrb[18].mxu0 %vm89_vm0, %v36_v39  ;;  %1071 = vmatmul.mubr.msk.f32.gmra.mrb[18].mxu1 %vm89_vm0, %v68_v40 }
  0x2a   :  { %1025 = vmatprep.mubr.msk.f32.mxu0 %vm89_vm0, %v37_v41  ;;  %1073 = vmatprep.mubr.msk.f32.mxu1 %vm89_vm0, %v69_v42  ;;  %v671_v41 = vld [vmem:[%s1833_s3 + $0x20] sm:$0xff] }
  0x2d   :  { %1026 = vmatmul.mubr.msk.f32.gmra.mrb[20].mxu0 %vm89_vm0, %v38_v43  ;;  %1074 = vmatmul.mubr.msk.f32.gmra.mrb[20].mxu1 %vm89_vm0, %v70_v44  ;;  %v703_v43 = vld [vmem:[%s1833_s3 + $0x120] sm:$0xff] }
  0x2e   :  { %1028 = vmatprep.mubr.msk.f32.mxu0 %vm89_vm0, %v39_v45  ;;  %1076 = vmatprep.mubr.msk.f32.mxu1 %vm89_vm0, %v71_v46 }
  0x31   :  { %1029 = vmatmul.mubr.msk.f32.gmra.mrb[22].mxu0 %vm89_vm0, %v40_v47  ;;  %1077 = vmatmul.mubr.msk.f32.gmra.mrb[22].mxu1 %vm89_vm0, %v72_v48 }
  0x32   :  { %1031 = vmatprep.mubr.msk.f32.mxu0 %vm89_vm0, %v41_v49  ;;  %1079 = vmatprep.mubr.msk.f32.mxu1 %vm89_vm0, %v73_v50 }
  0x35   :  { %1032 = vmatmul.mubr.msk.f32.gmra.mrb[24].mxu0 %vm89_vm0, %v42_v51  ;;  %1080 = vmatmul.mubr.msk.f32.gmra.mrb[24].mxu1 %vm89_vm0, %v74_v52  ;;  %v674_v51 = vld [vmem:[%s1833_s3 + $0x38] sm:$0xff] }
  0x36   :  { %1034 = vmatprep.mubr.msk.f32.mxu0 %vm89_vm0, %v43_v53  ;;  %1082 = vmatprep.mubr.msk.f32.mxu1 %vm89_vm0, %v75_v54  ;;  %v706_v53 = vld [vmem:[%s1833_s3 + $0x138] sm:$0xff] }
  0x39   :  { %1035 = vmatmul.mubr.msk.f32.gmra.mrb[26].mxu0 %vm89_vm0, %v44_v55  ;;  %1083 = vmatmul.mubr.msk.f32.gmra.mrb[26].mxu1 %vm89_vm0, %v76_v56 }
  0x3a   :  { %1037 = vmatprep.mubr.msk.f32.mxu0 %vm89_vm0, %v45_v57  ;;  %1085 = vmatprep.mubr.msk.f32.mxu1 %vm89_vm0, %v77_v58  ;;  %v673_v57 = vld [vmem:[%s1833_s3 + $0x30] sm:$0xff] }
  0x3d   :  { %1038 = vmatmul.mubr.msk.f32.gmra.mrb[28].mxu0 %vm89_vm0, %v46_v59  ;;  %1086 = vmatmul.mubr.msk.f32.gmra.mrb[28].mxu1 %vm89_vm0, %v78_v60  ;;  %v705_v59 = vld [vmem:[%s1833_s3 + $0x130] sm:$0xff] }
  0x3e   :  { %1040 = vmatprep.mubr.msk.f32.mxu0 %vm89_vm0, %v47_v61  ;;  %1088 = vmatprep.mubr.msk.f32.mxu1 %vm89_vm0, %v79_v62 }
  0x41   :  { %1041 = vmatmul.mubr.msk.f32.gmra.mrb[30].mxu0 %vm89_vm0, %v48_v63  ;;  %1089 = vmatmul.mubr.msk.f32.gmra.mrb[30].mxu1 %vm89_vm0, %v80_v0 }
  0xd8   :  { %v997_v2 = vpop.f32.mrb[0].mxu0  ;;  %v1045_v4 = vpop.f32.mrb[0].mxu1 }
  0xd9   :  { %v354_v6 = vadd.f32 %v997_v2, %v1380_v1  ;;  %v514_v7 = vadd.f32 %v1045_v4, %v1380_v1  ;;  %v348_v8 = vpop.f32.mrb[1].mxu0  ;;  %v508_v10 = vpop.f32.mrb[1].mxu1  ;;  %v676_v4 = vld [vmem:[%s1833_s3 + $0x48] sm:$0xff] }
  0xda   :  { %v349_v12 = vadd.f32 %v1380_v1, %v348_v8  ;;  %v509_v13 = vadd.f32 %v1380_v1, %v508_v10  ;;  %v675_v10 = vld [vmem:[%s1833_s3 + $0x40] sm:$0xff] }
  0xdb   :  { %v732_v14 = vadd.f32 %v668_v3, %v354_v6  ;;  %v764_v15 = vadd.f32 %v700_v5, %v514_v7  ;;  %v708_v6 = vld [vmem:[%s1833_s3 + $0x148] sm:$0xff] }
  0xdc   :  { %v731_v16 = vadd.f32 %v667_v9, %v349_v12  ;;  %v763_v17 = vadd.f32 %v699_v11, %v509_v13  ;;  %v1000_v18 = vpop.f32.mrb[2].mxu0  ;;  %v1048_v20 = vpop.f32.mrb[2].mxu1  ;;  %v707_v12 = vld [vmem:[%s1833_s3 + $0x140] sm:$0xff] }
  0xdd   :  { %796 = vst [vmem:[%s1834_s4 + $0x8] sm:$0xff] %v732_v14  ;;  %828 = vst [vmem:[%s1834_s4 + $0x108] sm:$0xff] %v764_v15  ;;  %v364_v22 = vadd.f32 %v1000_v18, %v1380_v1  ;;  %v524_v23 = vadd.f32 %v1048_v20, %v1380_v1  ;;  %v358_v24 = vpop.f32.mrb[3].mxu0  ;;  %v518_v26 = vpop.f32.mrb[3].mxu1  ;;  %v678_v20 = vld [vmem:[%s1833_s3 + $0x58] sm:$0xff] }
  0xde   :  { %795 = vst [vmem:[%s1834_s4] sm:$0xff] %v731_v16  ;;  %827 = vst [vmem:[%s1834_s4 + $0x100] sm:$0xff] %v763_v17  ;;  %v359_v28 = vadd.f32 %v1380_v1, %v358_v24  ;;  %v519_v29 = vadd.f32 %v1380_v1, %v518_v26  ;;  %v677_v26 = vld [vmem:[%s1833_s3 + $0x50] sm:$0xff] }
  0xdf   :  { %v734_v30 = vadd.f32 %v670_v19, %v364_v22  ;;  %v766_v31 = vadd.f32 %v702_v21, %v524_v23  ;;  %v710_v22 = vld [vmem:[%s1833_s3 + $0x158] sm:$0xff] }
  0xe0   :  { %v733_v32 = vadd.f32 %v669_v25, %v359_v28  ;;  %v765_v33 = vadd.f32 %v701_v27, %v519_v29  ;;  %v1003_v34 = vpop.f32.mrb[4].mxu0  ;;  %v1051_v36 = vpop.f32.mrb[4].mxu1  ;;  %v709_v28 = vld [vmem:[%s1833_s3 + $0x150] sm:$0xff] }
  0xe1   :  { %798 = vst [vmem:[%s1834_s4 + $0x18] sm:$0xff] %v734_v30  ;;  %830 = vst [vmem:[%s1834_s4 + $0x118] sm:$0xff] %v766_v31  ;;  %v374_v38 = vadd.f32 %v1003_v34, %v1380_v1  ;;  %v534_v39 = vadd.f32 %v1051_v36, %v1380_v1  ;;  %v368_v40 = vpop.f32.mrb[5].mxu0  ;;  %v528_v42 = vpop.f32.mrb[5].mxu1  ;;  %v680_v36 = vld [vmem:[%s1833_s3 + $0x68] sm:$0xff] }
  0xe2   :  { %797 = vst [vmem:[%s1834_s4 + $0x10] sm:$0xff] %v733_v32  ;;  %829 = vst [vmem:[%s1834_s4 + $0x110] sm:$0xff] %v765_v33  ;;  %v369_v44 = vadd.f32 %v1380_v1, %v368_v40  ;;  %v529_v45 = vadd.f32 %v1380_v1, %v528_v42  ;;  %v679_v42 = vld [vmem:[%s1833_s3 + $0x60] sm:$0xff] }
  0xe3   :  { %v736_v46 = vadd.f32 %v672_v35, %v374_v38  ;;  %v768_v47 = vadd.f32 %v704_v37, %v534_v39  ;;  %v712_v38 = vld [vmem:[%s1833_s3 + $0x168] sm:$0xff] }
  0xe4   :  { %v735_v48 = vadd.f32 %v671_v41, %v369_v44  ;;  %v767_v49 = vadd.f32 %v703_v43, %v529_v45  ;;  %v1006_v50 = vpop.f32.mrb[6].mxu0  ;;  %v1054_v52 = vpop.f32.mrb[6].mxu1  ;;  %v711_v44 = vld [vmem:[%s1833_s3 + $0x160] sm:$0xff] }
  0xe5   :  { %800 = vst [vmem:[%s1834_s4 + $0x28] sm:$0xff] %v736_v46  ;;  %832 = vst [vmem:[%s1834_s4 + $0x128] sm:$0xff] %v768_v47  ;;  %v384_v54 = vadd.f32 %v1006_v50, %v1380_v1  ;;  %v544_v55 = vadd.f32 %v1054_v52, %v1380_v1  ;;  %v378_v56 = vpop.f32.mrb[7].mxu0  ;;  %v538_v58 = vpop.f32.mrb[7].mxu1  ;;  %v682_v52 = vld [vmem:[%s1833_s3 + $0x78] sm:$0xff] }
  0xe6   :  { %799 = vst [vmem:[%s1834_s4 + $0x20] sm:$0xff] %v735_v48  ;;  %831 = vst [vmem:[%s1834_s4 + $0x120] sm:$0xff] %v767_v49  ;;  %v379_v60 = vadd.f32 %v1380_v1, %v378_v56  ;;  %v539_v61 = vadd.f32 %v1380_v1, %v538_v58  ;;  %v681_v58 = vld [vmem:[%s1833_s3 + $0x70] sm:$0xff] }
  0xe7   :  { %v738_v62 = vadd.f32 %v674_v51, %v384_v54  ;;  %v770_v63 = vadd.f32 %v706_v53, %v544_v55  ;;  %v714_v54 = vld [vmem:[%s1833_s3 + $0x178] sm:$0xff] }
  0xe8   :  { %v737_v0 = vadd.f32 %v673_v57, %v379_v60  ;;  %v769_v2 = vadd.f32 %v705_v59, %v539_v61  ;;  %v1009_v3 = vpop.f32.mrb[8].mxu0  ;;  %v1057_v5 = vpop.f32.mrb[8].mxu1  ;;  %v713_v60 = vld [vmem:[%s1833_s3 + $0x170] sm:$0xff] }
  0xe9   :  { %802 = vst [vmem:[%s1834_s4 + $0x38] sm:$0xff] %v738_v62  ;;  %834 = vst [vmem:[%s1834_s4 + $0x138] sm:$0xff] %v770_v63  ;;  %v394_v7 = vadd.f32 %v1009_v3, %v1380_v1  ;;  %v554_v8 = vadd.f32 %v1057_v5, %v1380_v1  ;;  %v388_v9 = vpop.f32.mrb[9].mxu0  ;;  %v548_v11 = vpop.f32.mrb[9].mxu1  ;;  %v684_v5 = vld [vmem:[%s1833_s3 + $0x88] sm:$0xff] }
  0xea   :  { %801 = vst [vmem:[%s1834_s4 + $0x30] sm:$0xff] %v737_v0  ;;  %833 = vst [vmem:[%s1834_s4 + $0x130] sm:$0xff] %v769_v2  ;;  %v389_v13 = vadd.f32 %v1380_v1, %v388_v9  ;;  %v549_v14 = vadd.f32 %v1380_v1, %v548_v11  ;;  %v683_v11 = vld [vmem:[%s1833_s3 + $0x80] sm:$0xff] }
  0xeb   :  { %v740_v15 = vadd.f32 %v676_v4, %v394_v7  ;;  %v772_v16 = vadd.f32 %v708_v6, %v554_v8  ;;  %v716_v7 = vld [vmem:[%s1833_s3 + $0x188] sm:$0xff] }
  0xec   :  { %v739_v17 = vadd.f32 %v675_v10, %v389_v13  ;;  %v771_v18 = vadd.f32 %v707_v12, %v549_v14  ;;  %v1012_v19 = vpop.f32.mrb[10].mxu0  ;;  %v1060_v21 = vpop.f32.mrb[10].mxu1  ;;  %v715_v13 = vld [vmem:[%s1833_s3 + $0x180] sm:$0xff] }
  0xed   :  { %804 = vst [vmem:[%s1834_s4 + $0x48] sm:$0xff] %v740_v15  ;;  %836 = vst [vmem:[%s1834_s4 + $0x148] sm:$0xff] %v772_v16  ;;  %v404_v23 = vadd.f32 %v1012_v19, %v1380_v1  ;;  %v564_v24 = vadd.f32 %v1060_v21, %v1380_v1  ;;  %v398_v25 = vpop.f32.mrb[11].mxu0  ;;  %v558_v27 = vpop.f32.mrb[11].mxu1  ;;  %v686_v21 = vld [vmem:[%s1833_s3 + $0x98] sm:$0xff] }
  0xee   :  { %803 = vst [vmem:[%s1834_s4 + $0x40] sm:$0xff] %v739_v17  ;;  %835 = vst [vmem:[%s1834_s4 + $0x140] sm:$0xff] %v771_v18  ;;  %v399_v29 = vadd.f32 %v1380_v1, %v398_v25  ;;  %v559_v30 = vadd.f32 %v1380_v1, %v558_v27  ;;  %v685_v27 = vld [vmem:[%s1833_s3 + $0x90] sm:$0xff] }
  0xef   :  { %v742_v31 = vadd.f32 %v678_v20, %v404_v23  ;;  %v774_v32 = vadd.f32 %v710_v22, %v564_v24  ;;  %v718_v23 = vld [vmem:[%s1833_s3 + $0x198] sm:$0xff] }
  0xf0   :  { %v741_v33 = vadd.f32 %v677_v26, %v399_v29  ;;  %v773_v34 = vadd.f32 %v709_v28, %v559_v30  ;;  %v1015_v35 = vpop.f32.mrb[12].mxu0  ;;  %v1063_v37 = vpop.f32.mrb[12].mxu1  ;;  %v717_v29 = vld [vmem:[%s1833_s3 + $0x190] sm:$0xff] }
  0xf1   :  { %806 = vst [vmem:[%s1834_s4 + $0x58] sm:$0xff] %v742_v31  ;;  %838 = vst [vmem:[%s1834_s4 + $0x158] sm:$0xff] %v774_v32  ;;  %v414_v39 = vadd.f32 %v1015_v35, %v1380_v1  ;;  %v574_v40 = vadd.f32 %v1063_v37, %v1380_v1  ;;  %v408_v41 = vpop.f32.mrb[13].mxu0  ;;  %v568_v43 = vpop.f32.mrb[13].mxu1  ;;  %v688_v37 = vld [vmem:[%s1833_s3 + $0xa8] sm:$0xff] }
  0xf2   :  { %805 = vst [vmem:[%s1834_s4 + $0x50] sm:$0xff] %v741_v33  ;;  %837 = vst [vmem:[%s1834_s4 + $0x150] sm:$0xff] %v773_v34  ;;  %v409_v45 = vadd.f32 %v1380_v1, %v408_v41  ;;  %v569_v46 = vadd.f32 %v1380_v1, %v568_v43  ;;  %v687_v43 = vld [vmem:[%s1833_s3 + $0xa0] sm:$0xff] }
  0xf3   :  { %v744_v47 = vadd.f32 %v680_v36, %v414_v39  ;;  %v776_v48 = vadd.f32 %v712_v38, %v574_v40  ;;  %v720_v39 = vld [vmem:[%s1833_s3 + $0x1a8] sm:$0xff] }
  0xf4   :  { %v743_v49 = vadd.f32 %v679_v42, %v409_v45  ;;  %v775_v50 = vadd.f32 %v711_v44, %v569_v46  ;;  %v1018_v51 = vpop.f32.mrb[14].mxu0  ;;  %v1066_v53 = vpop.f32.mrb[14].mxu1  ;;  %v719_v45 = vld [vmem:[%s1833_s3 + $0x1a0] sm:$0xff] }
  0xf5   :  { %808 = vst [vmem:[%s1834_s4 + $0x68] sm:$0xff] %v744_v47  ;;  %840 = vst [vmem:[%s1834_s4 + $0x168] sm:$0xff] %v776_v48  ;;  %v424_v55 = vadd.f32 %v1018_v51, %v1380_v1  ;;  %v584_v56 = vadd.f32 %v1066_v53, %v1380_v1  ;;  %v418_v57 = vpop.f32.mrb[15].mxu0  ;;  %v578_v59 = vpop.f32.mrb[15].mxu1  ;;  %v690_v53 = vld [vmem:[%s1833_s3 + $0xb8] sm:$0xff] }
  0xf6   :  { %807 = vst [vmem:[%s1834_s4 + $0x60] sm:$0xff] %v743_v49  ;;  %839 = vst [vmem:[%s1834_s4 + $0x160] sm:$0xff] %v775_v50  ;;  %v419_v61 = vadd.f32 %v1380_v1, %v418_v57  ;;  %v579_v62 = vadd.f32 %v1380_v1, %v578_v59  ;;  %v689_v59 = vld [vmem:[%s1833_s3 + $0xb0] sm:$0xff] }
  0xf7   :  { %v746_v63 = vadd.f32 %v682_v52, %v424_v55  ;;  %v778_v0 = vadd.f32 %v714_v54, %v584_v56  ;;  %v722_v55 = vld [vmem:[%s1833_s3 + $0x1b8] sm:$0xff] }
  0xf8   :  { %v745_v2 = vadd.f32 %v681_v58, %v419_v61  ;;  %v777_v3 = vadd.f32 %v713_v60, %v579_v62  ;;  %v1021_v4 = vpop.f32.mrb[16].mxu0  ;;  %v1069_v6 = vpop.f32.mrb[16].mxu1  ;;  %v721_v61 = vld [vmem:[%s1833_s3 + $0x1b0] sm:$0xff] }
  0xf9   :  { %810 = vst [vmem:[%s1834_s4 + $0x78] sm:$0xff] %v746_v63  ;;  %842 = vst [vmem:[%s1834_s4 + $0x178] sm:$0xff] %v778_v0  ;;  %v434_v8 = vadd.f32 %v1021_v4, %v1380_v1  ;;  %v594_v9 = vadd.f32 %v1069_v6, %v1380_v1  ;;  %v428_v10 = vpop.f32.mrb[17].mxu0  ;;  %v588_v12 = vpop.f32.mrb[17].mxu1  ;;  %v692_v6 = vld [vmem:[%s1833_s3 + $0xc8] sm:$0xff] }
  0xfa   :  { %809 = vst [vmem:[%s1834_s4 + $0x70] sm:$0xff] %v745_v2  ;;  %841 = vst [vmem:[%s1834_s4 + $0x170] sm:$0xff] %v777_v3  ;;  %v429_v14 = vadd.f32 %v1380_v1, %v428_v10  ;;  %v589_v15 = vadd.f32 %v1380_v1, %v588_v12  ;;  %v691_v12 = vld [vmem:[%s1833_s3 + $0xc0] sm:$0xff] }
  0xfb   :  { %v748_v16 = vadd.f32 %v684_v5, %v434_v8  ;;  %v780_v17 = vadd.f32 %v716_v7, %v594_v9  ;;  %v724_v8 = vld [vmem:[%s1833_s3 + $0x1c8] sm:$0xff] }
  0xfc   :  { %v747_v18 = vadd.f32 %v683_v11, %v429_v14  ;;  %v779_v19 = vadd.f32 %v715_v13, %v589_v15  ;;  %v1024_v20 = vpop.f32.mrb[18].mxu0  ;;  %v1072_v22 = vpop.f32.mrb[18].mxu1  ;;  %v723_v14 = vld [vmem:[%s1833_s3 + $0x1c0] sm:$0xff] }
  0xfd   :  { %812 = vst [vmem:[%s1834_s4 + $0x88] sm:$0xff] %v748_v16  ;;  %844 = vst [vmem:[%s1834_s4 + $0x188] sm:$0xff] %v780_v17  ;;  %v444_v24 = vadd.f32 %v1024_v20, %v1380_v1  ;;  %v604_v25 = vadd.f32 %v1072_v22, %v1380_v1  ;;  %v438_v26 = vpop.f32.mrb[19].mxu0  ;;  %v598_v28 = vpop.f32.mrb[19].mxu1  ;;  %v694_v22 = vld [vmem:[%s1833_s3 + $0xd8] sm:$0xff] }
  0xfe   :  { %811 = vst [vmem:[%s1834_s4 + $0x80] sm:$0xff] %v747_v18  ;;  %843 = vst [vmem:[%s1834_s4 + $0x180] sm:$0xff] %v779_v19  ;;  %v439_v30 = vadd.f32 %v1380_v1, %v438_v26  ;;  %v599_v31 = vadd.f32 %v1380_v1, %v598_v28  ;;  %v693_v28 = vld [vmem:[%s1833_s3 + $0xd0] sm:$0xff] }
  0xff   :  { %v750_v32 = vadd.f32 %v686_v21, %v444_v24  ;;  %v782_v33 = vadd.f32 %v718_v23, %v604_v25  ;;  %v726_v24 = vld [vmem:[%s1833_s3 + $0x1d8] sm:$0xff] }
 0x100   :  { %v749_v34 = vadd.f32 %v685_v27, %v439_v30  ;;  %v781_v35 = vadd.f32 %v717_v29, %v599_v31  ;;  %v1027_v36 = vpop.f32.mrb[20].mxu0  ;;  %v1075_v38 = vpop.f32.mrb[20].mxu1  ;;  %v725_v30 = vld [vmem:[%s1833_s3 + $0x1d0] sm:$0xff] }
 0x101   :  { %814 = vst [vmem:[%s1834_s4 + $0x98] sm:$0xff] %v750_v32  ;;  %846 = vst [vmem:[%s1834_s4 + $0x198] sm:$0xff] %v782_v33  ;;  %v454_v40 = vadd.f32 %v1027_v36, %v1380_v1  ;;  %v614_v41 = vadd.f32 %v1075_v38, %v1380_v1  ;;  %v448_v42 = vpop.f32.mrb[21].mxu0  ;;  %v608_v44 = vpop.f32.mrb[21].mxu1  ;;  %v696_v38 = vld [vmem:[%s1833_s3 + $0xe8] sm:$0xff] }
 0x102   :  { %813 = vst [vmem:[%s1834_s4 + $0x90] sm:$0xff] %v749_v34  ;;  %845 = vst [vmem:[%s1834_s4 + $0x190] sm:$0xff] %v781_v35  ;;  %v449_v46 = vadd.f32 %v1380_v1, %v448_v42  ;;  %v609_v47 = vadd.f32 %v1380_v1, %v608_v44  ;;  %v695_v44 = vld [vmem:[%s1833_s3 + $0xe0] sm:$0xff] }
 0x103   :  { %v752_v48 = vadd.f32 %v688_v37, %v454_v40  ;;  %v784_v49 = vadd.f32 %v720_v39, %v614_v41  ;;  %v728_v40 = vld [vmem:[%s1833_s3 + $0x1e8] sm:$0xff] }
 0x104   :  { %v751_v50 = vadd.f32 %v687_v43, %v449_v46  ;;  %v783_v51 = vadd.f32 %v719_v45, %v609_v47  ;;  %v1030_v52 = vpop.f32.mrb[22].mxu0  ;;  %v1078_v54 = vpop.f32.mrb[22].mxu1  ;;  %v727_v46 = vld [vmem:[%s1833_s3 + $0x1e0] sm:$0xff] }
 0x105   :  { %816 = vst [vmem:[%s1834_s4 + $0xa8] sm:$0xff] %v752_v48  ;;  %848 = vst [vmem:[%s1834_s4 + $0x1a8] sm:$0xff] %v784_v49  ;;  %v464_v56 = vadd.f32 %v1030_v52, %v1380_v1  ;;  %v624_v57 = vadd.f32 %v1078_v54, %v1380_v1  ;;  %v458_v58 = vpop.f32.mrb[23].mxu0  ;;  %v618_v60 = vpop.f32.mrb[23].mxu1  ;;  %v698_v54 = vld [vmem:[%s1833_s3 + $0xf8] sm:$0xff] }
 0x106   :  { %815 = vst [vmem:[%s1834_s4 + $0xa0] sm:$0xff] %v751_v50  ;;  %847 = vst [vmem:[%s1834_s4 + $0x1a0] sm:$0xff] %v783_v51  ;;  %v459_v62 = vadd.f32 %v1380_v1, %v458_v58  ;;  %v619_v63 = vadd.f32 %v1380_v1, %v618_v60  ;;  %v697_v60 = vld [vmem:[%s1833_s3 + $0xf0] sm:$0xff] }
 0x107   :  { %v754_v0 = vadd.f32 %v690_v53, %v464_v56  ;;  %v786_v2 = vadd.f32 %v722_v55, %v624_v57  ;;  %v730_v56 = vld [vmem:[%s1833_s3 + $0x1f8] sm:$0xff] }
 0x108   :  { %v753_v3 = vadd.f32 %v689_v59, %v459_v62  ;;  %v785_v4 = vadd.f32 %v721_v61, %v619_v63  ;;  %v1033_v5 = vpop.f32.mrb[24].mxu0  ;;  %v1081_v7 = vpop.f32.mrb[24].mxu1  ;;  %v729_v62 = vld [vmem:[%s1833_s3 + $0x1f0] sm:$0xff] }
 0x109   :  { %818 = vst [vmem:[%s1834_s4 + $0xb8] sm:$0xff] %v754_v0  ;;  %850 = vst [vmem:[%s1834_s4 + $0x1b8] sm:$0xff] %v786_v2  ;;  %v474_v9 = vadd.f32 %v1033_v5, %v1380_v1  ;;  %v634_v10 = vadd.f32 %v1081_v7, %v1380_v1  ;;  %v468_v11 = vpop.f32.mrb[25].mxu0  ;;  %v628_v13 = vpop.f32.mrb[25].mxu1 }
 0x10a   :  { %817 = vst [vmem:[%s1834_s4 + $0xb0] sm:$0xff] %v753_v3  ;;  %849 = vst [vmem:[%s1834_s4 + $0x1b0] sm:$0xff] %v785_v4  ;;  %v469_v15 = vadd.f32 %v1380_v1, %v468_v11  ;;  %v629_v16 = vadd.f32 %v1380_v1, %v628_v13 }
 0x10b   :  { %v756_v17 = vadd.f32 %v692_v6, %v474_v9  ;;  %v788_v18 = vadd.f32 %v724_v8, %v634_v10 }
 0x10c   :  { %v755_v19 = vadd.f32 %v691_v12, %v469_v15  ;;  %v787_v20 = vadd.f32 %v723_v14, %v629_v16  ;;  %v1036_v21 = vpop.f32.mrb[26].mxu0  ;;  %v1084_v23 = vpop.f32.mrb[26].mxu1 }
 0x10d   :  { %820 = vst [vmem:[%s1834_s4 + $0xc8] sm:$0xff] %v756_v17  ;;  %852 = vst [vmem:[%s1834_s4 + $0x1c8] sm:$0xff] %v788_v18  ;;  %v484_v25 = vadd.f32 %v1036_v21, %v1380_v1  ;;  %v644_v26 = vadd.f32 %v1084_v23, %v1380_v1  ;;  %v478_v27 = vpop.f32.mrb[27].mxu0  ;;  %v638_v29 = vpop.f32.mrb[27].mxu1 }
 0x10e   :  { %819 = vst [vmem:[%s1834_s4 + $0xc0] sm:$0xff] %v755_v19  ;;  %851 = vst [vmem:[%s1834_s4 + $0x1c0] sm:$0xff] %v787_v20  ;;  %v479_v31 = vadd.f32 %v1380_v1, %v478_v27  ;;  %v639_v32 = vadd.f32 %v1380_v1, %v638_v29 }
 0x10f   :  { %v758_v33 = vadd.f32 %v694_v22, %v484_v25  ;;  %v790_v34 = vadd.f32 %v726_v24, %v644_v26 }
 0x110   :  { %v757_v35 = vadd.f32 %v693_v28, %v479_v31  ;;  %v789_v36 = vadd.f32 %v725_v30, %v639_v32  ;;  %v1039_v37 = vpop.f32.mrb[28].mxu0  ;;  %v1087_v39 = vpop.f32.mrb[28].mxu1 }
 0x111   :  { %822 = vst [vmem:[%s1834_s4 + $0xd8] sm:$0xff] %v758_v33  ;;  %854 = vst [vmem:[%s1834_s4 + $0x1d8] sm:$0xff] %v790_v34  ;;  %v494_v41 = vadd.f32 %v1039_v37, %v1380_v1  ;;  %v654_v42 = vadd.f32 %v1087_v39, %v1380_v1  ;;  %v488_v43 = vpop.f32.mrb[29].mxu0  ;;  %v648_v45 = vpop.f32.mrb[29].mxu1 }
 0x112   :  { %821 = vst [vmem:[%s1834_s4 + $0xd0] sm:$0xff] %v757_v35  ;;  %853 = vst [vmem:[%s1834_s4 + $0x1d0] sm:$0xff] %v789_v36  ;;  %v489_v47 = vadd.f32 %v1380_v1, %v488_v43  ;;  %v649_v48 = vadd.f32 %v1380_v1, %v648_v45 }
 0x113   :  { %v760_v49 = vadd.f32 %v696_v38, %v494_v41  ;;  %v792_v50 = vadd.f32 %v728_v40, %v654_v42 }
 0x114   :  { %v759_v51 = vadd.f32 %v695_v44, %v489_v47  ;;  %v791_v52 = vadd.f32 %v727_v46, %v649_v48  ;;  %v1042_v53 = vpop.f32.mrb[30].mxu0  ;;  %v1090_v55 = vpop.f32.mrb[30].mxu1 }
 0x115   :  { %824 = vst [vmem:[%s1834_s4 + $0xe8] sm:$0xff] %v760_v49  ;;  %856 = vst [vmem:[%s1834_s4 + $0x1e8] sm:$0xff] %v792_v50  ;;  %v504_v57 = vadd.f32 %v1042_v53, %v1380_v1  ;;  %v664_v58 = vadd.f32 %v1090_v55, %v1380_v1  ;;  %v498_v59 = vpop.f32.mrb[31].mxu0  ;;  %v658_v61 = vpop.f32.mrb[31].mxu1 }
 0x116   :  { %823 = vst [vmem:[%s1834_s4 + $0xe0] sm:$0xff] %v759_v51  ;;  %855 = vst [vmem:[%s1834_s4 + $0x1e0] sm:$0xff] %v791_v52  ;;  %v499_v63 = vadd.f32 %v1380_v1, %v498_v59  ;;  %v659_v0 = vadd.f32 %v1380_v1, %v658_v61 }
 0x117   :  { %v762_v2 = vadd.f32 %v698_v54, %v504_v57  ;;  %v794_v3 = vadd.f32 %v730_v56, %v664_v58 }
 0x118   :  { %v761_v4 = vadd.f32 %v697_v60, %v499_v63  ;;  %v793_v5 = vadd.f32 %v729_v62, %v659_v0 }
 0x119   :  { %826 = vst [vmem:[%s1834_s4 + $0xf8] sm:$0xff] %v762_v2  ;;  %858 = vst [vmem:[%s1834_s4 + $0x1f8] sm:$0xff] %v794_v3 }
 0x11a   :  { %825 = vst [vmem:[%s1834_s4 + $0xf0] sm:$0xff] %v761_v4  ;;  %857 = vst [vmem:[%s1834_s4 + $0x1f0] sm:$0xff] %v793_v5 }

// kernel: hagca2_forward.11
= control target key start
LH: loop header
LB: loop body
LE: loop exit
PB: predicated region body
PF: predicated region fallthrough
CT: control target
= control target key end

     0   :  { %vm91_vm0 = vcmask 801792   ;;  %vm284_vm1 = vcmask 1041408   ;;  %s2715_s2 = inlined_call_operand.vmem [shape: f32[98,128], index: 2, kind: input, shape index: {}]   ;;  %s2716_s0 = inlined_call_operand.vmem [shape: f32[512,98], index: 0, kind: input, shape index: {}]   ;;  %s2717_s1 = inlined_call_operand.vmem [shape: f32[512,128], index: 1, kind: input, shape index: {}]   ;;  %s2718_s3 = inlined_call_operand.vmem [shape: f32[512,128], index: 3, kind: output, shape index: {}]  }
   0x1   :  { %v78_v0 = vld [vmem:[%s2715_s2] sm:$0xff]  ;;  %v79_v1 = vld [vmem:[%s2715_s2 + $0x8] sm:$0xff]  ;;  %v80_v2 = vld [vmem:[%s2715_s2 + $0x10] sm:$0xff] }
   0x2   :  { %v1581_v3 = vpack.c.bf16 %v79_v1, %v78_v0  ;;  %v81_v4 = vld [vmem:[%s2715_s2 + $0x18] sm:$0xff]  ;;  %v82_v6 = vld [vmem:[%s2715_s2 + $0x20] sm:$0xff]  ;;  %v83_v7 = vld [vmem:[%s2715_s2 + $0x28] sm:$0xff] }
   0x3   :  { %v1585_v5 = vpack.c.bf16 %v81_v4, %v80_v2  ;;  %v14_v8 = vld [vmem:[%s2716_s0] sm:$0xff]  ;;  %v1589_v10 = vpack.c.bf16 %v83_v7, %v82_v6  ;;  %v84_v11 = vld [vmem:[%s2715_s2 + $0x30] sm:$0xff]  ;;  %v85_v12 = vld [vmem:[%s2715_s2 + $0x38] sm:$0xff] }
   0x4   :  { %1582 = vmatprep.subr.bf16.mxu0 %v1581_v3  ;;  %1605 = vmatprep.subr.bf16.mxu1 %v1581_v3  ;;  %v46_v9 = vld [vmem:[%s2716_s0 + $0x100] sm:$0xff]  ;;  %v1593_v13 = vpack.c.bf16 %v85_v12, %v84_v11  ;;  %v87_v15 = vld [vmem:[%s2715_s2 + $0x48] sm:$0xff]  ;;  %v88_v17 = vld [vmem:[%s2715_s2 + $0x50] sm:$0xff] }
   0x5   :  { %1584 = vmatpush3.bf16.msra.mxu0 %v1581_v3  ;;  %1612 = vmatpush3.bf16.msra.mxu1 %v1581_v3  ;;  %v86_v14 = vld [vmem:[%s2715_s2 + $0x40] sm:$0xff]  ;;  %v89_v18 = vld [vmem:[%s2715_s2 + $0x58] sm:$0xff]  ;;  %v15_v21 = vld [vmem:[%s2716_s0 + $0x8] sm:$0xff] }
   0x6   :  { %1586 = vmatprep.subr.bf16.mxu0 %v1585_v5  ;;  %1606 = vmatprep.subr.bf16.mxu1 %v1585_v5  ;;  %v1597_v16 = vpack.c.bf16 %v87_v15, %v86_v14  ;;  %v1601_v19 = vpack.c.bf16 %v89_v18, %v88_v17  ;;  %v90_v20 = vld [vmem:[%s2715_s2 + $0x60] sm:$0x3]  ;;  %v47_v22 = vld [vmem:[%s2716_s0 + $0x108] sm:$0xff]  ;;  %v16_v23 = vld [vmem:[%s2716_s0 + $0x10] sm:$0xff] }
   0x7   :  { %1485 = vmatprep.mubr.msk.f32.mxu0 %vm91_vm0, %v14_v8  ;;  %1533 = vmatprep.mubr.msk.f32.mxu1 %vm91_vm0, %v46_v9  ;;  %v48_v24 = vld [vmem:[%s2716_s0 + $0x110] sm:$0xff]  ;;  %v17_v25 = vld [vmem:[%s2716_s0 + $0x18] sm:$0xff]  ;;  %v18_v27 = vld [vmem:[%s2716_s0 + $0x20] sm:$0xff] }
   0x8   :  { %v49_v26 = vld [vmem:[%s2716_s0 + $0x118] sm:$0xff]  ;;  %v50_v28 = vld [vmem:[%s2716_s0 + $0x120] sm:$0xff]  ;;  %v19_v29 = vld [vmem:[%s2716_s0 + $0x28] sm:$0xff] }
   0x9   :  { %1588 = vmatpush3.bf16.msra.mxu0 %v1585_v5  ;;  %1613 = vmatpush3.bf16.msra.mxu1 %v1585_v5  ;;  %v51_v30 = vld [vmem:[%s2716_s0 + $0x128] sm:$0xff]  ;;  %v20_v31 = vld [vmem:[%s2716_s0 + $0x30] sm:$0xff]  ;;  %v21_v33 = vld [vmem:[%s2716_s0 + $0x38] sm:$0xff] }
   0xa   :  { %1590 = vmatprep.subr.bf16.mxu0 %v1589_v10  ;;  %1607 = vmatprep.subr.bf16.mxu1 %v1589_v10  ;;  %v52_v32 = vld [vmem:[%s2716_s0 + $0x130] sm:$0xff]  ;;  %v53_v34 = vld [vmem:[%s2716_s0 + $0x138] sm:$0xff]  ;;  %v22_v35 = vld [vmem:[%s2716_s0 + $0x40] sm:$0xff] }
   0xb   :  { %v54_v36 = vld [vmem:[%s2716_s0 + $0x140] sm:$0xff]  ;;  %v23_v37 = vld [vmem:[%s2716_s0 + $0x48] sm:$0xff]  ;;  %v24_v39 = vld [vmem:[%s2716_s0 + $0x50] sm:$0xff] }
   0xc   :  { %v55_v38 = vld [vmem:[%s2716_s0 + $0x148] sm:$0xff]  ;;  %v56_v40 = vld [vmem:[%s2716_s0 + $0x150] sm:$0xff]  ;;  %v25_v41 = vld [vmem:[%s2716_s0 + $0x58] sm:$0xff] }
   0xd   :  { %1592 = vmatpush3.bf16.msra.mxu0 %v1589_v10  ;;  %1614 = vmatpush3.bf16.msra.mxu1 %v1589_v10  ;;  %v57_v42 = vld [vmem:[%s2716_s0 + $0x158] sm:$0xff]  ;;  %v26_v43 = vld [vmem:[%s2716_s0 + $0x60] sm:$0xff]  ;;  %v27_v45 = vld [vmem:[%s2716_s0 + $0x68] sm:$0xff] }
   0xe   :  { %1594 = vmatprep.subr.bf16.mxu0 %v1593_v13  ;;  %1608 = vmatprep.subr.bf16.mxu1 %v1593_v13  ;;  %v58_v44 = vld [vmem:[%s2716_s0 + $0x160] sm:$0xff]  ;;  %v59_v46 = vld [vmem:[%s2716_s0 + $0x168] sm:$0xff]  ;;  %v28_v47 = vld [vmem:[%s2716_s0 + $0x70] sm:$0xff] }
   0xf   :  { %v60_v48 = vld [vmem:[%s2716_s0 + $0x170] sm:$0xff]  ;;  %v29_v49 = vld [vmem:[%s2716_s0 + $0x78] sm:$0xff]  ;;  %v30_v51 = vld [vmem:[%s2716_s0 + $0x80] sm:$0xff] }
  0x10   :  { %v61_v50 = vld [vmem:[%s2716_s0 + $0x178] sm:$0xff]  ;;  %v62_v52 = vld [vmem:[%s2716_s0 + $0x180] sm:$0xff]  ;;  %v31_v53 = vld [vmem:[%s2716_s0 + $0x88] sm:$0xff] }
  0x11   :  { %1596 = vmatpush3.bf16.msra.mxu0 %v1593_v13  ;;  %1615 = vmatpush3.bf16.msra.mxu1 %v1593_v13  ;;  %v63_v54 = vld [vmem:[%s2716_s0 + $0x188] sm:$0xff]  ;;  %v32_v55 = vld [vmem:[%s2716_s0 + $0x90] sm:$0xff]  ;;  %v33_v57 = vld [vmem:[%s2716_s0 + $0x98] sm:$0xff] }
  0x12   :  { %1598 = vmatprep.subr.bf16.mxu0 %v1597_v16  ;;  %1609 = vmatprep.subr.bf16.mxu1 %v1597_v16  ;;  %v64_v56 = vld [vmem:[%s2716_s0 + $0x190] sm:$0xff]  ;;  %v65_v58 = vld [vmem:[%s2716_s0 + $0x198] sm:$0xff]  ;;  %v34_v59 = vld [vmem:[%s2716_s0 + $0xa0] sm:$0xff] }
  0x13   :  { %v66_v60 = vld [vmem:[%s2716_s0 + $0x1a0] sm:$0xff]  ;;  %v35_v61 = vld [vmem:[%s2716_s0 + $0xa8] sm:$0xff]  ;;  %v36_v63 = vld [vmem:[%s2716_s0 + $0xb0] sm:$0xff] }
  0x14   :  { %v67_v62 = vld [vmem:[%s2716_s0 + $0x1a8] sm:$0xff]  ;;  %v68_v0 = vld [vmem:[%s2716_s0 + $0x1b0] sm:$0xff]  ;;  %v37_v1 = vld [vmem:[%s2716_s0 + $0xb8] sm:$0xff] }
  0x15   :  { %1600 = vmatpush3.bf16.msra.mxu0 %v1597_v16  ;;  %1616 = vmatpush3.bf16.msra.mxu1 %v1597_v16  ;;  %v69_v2 = vld [vmem:[%s2716_s0 + $0x1b8] sm:$0xff]  ;;  %v38_v3 = vld [vmem:[%s2716_s0 + $0xc0] sm:$0xff]  ;;  %v39_v5 = vld [vmem:[%s2716_s0 + $0xc8] sm:$0xff] }
  0x16   :  { %1602 = vmatprep.subr.bf16.mxu0 %v1601_v19  ;;  %1610 = vmatprep.subr.bf16.mxu1 %v1601_v19  ;;  %v70_v4 = vld [vmem:[%s2716_s0 + $0x1c0] sm:$0xff]  ;;  %v71_v6 = vld [vmem:[%s2716_s0 + $0x1c8] sm:$0xff]  ;;  %v40_v7 = vld [vmem:[%s2716_s0 + $0xd0] sm:$0xff] }
  0x17   :  { %v72_v8 = vld [vmem:[%s2716_s0 + $0x1d0] sm:$0xff]  ;;  %v41_v9 = vld [vmem:[%s2716_s0 + $0xd8] sm:$0xff]  ;;  %v42_v11 = vld [vmem:[%s2716_s0 + $0xe0] sm:$0xff] }
  0x18   :  { %v73_v10 = vld [vmem:[%s2716_s0 + $0x1d8] sm:$0xff]  ;;  %v74_v12 = vld [vmem:[%s2716_s0 + $0x1e0] sm:$0xff]  ;;  %v43_v13 = vld [vmem:[%s2716_s0 + $0xe8] sm:$0xff] }
  0x19   :  { %1604 = vmatpush3.bf16.msra.mxu0 %v1601_v19  ;;  %1617 = vmatpush3.bf16.msra.mxu1 %v1601_v19  ;;  %v75_v14 = vld [vmem:[%s2716_s0 + $0x1e8] sm:$0xff]  ;;  %v44_v15 = vld [vmem:[%s2716_s0 + $0xf0] sm:$0xff]  ;;  %v45_v17 = vld [vmem:[%s2716_s0 + $0xf8] sm:$0xff] }
  0x1a   :  { %1483 = vmatprep.subr.msk.mxu0 %vm284_vm1, %v90_v20  ;;  %1611 = vmatprep.subr.msk.mxu1 %vm284_vm1, %v90_v20  ;;  %v76_v16 = vld [vmem:[%s2716_s0 + $0x1f0] sm:$0xff]  ;;  %v77_v18 = vld [vmem:[%s2716_s0 + $0x1f8] sm:$0xff] }
  0x1d   :  { %1484 = vmatpush3.msk.msra.mxu0 %vm284_vm1, %v90_v20  ;;  %1618 = vmatpush3.msk.msra.mxu1 %vm284_vm1, %v90_v20 }
  0x1e   :  { %1486 = vmatmul.mubr.msk.f32.vlgmr.msra.gmra.mrb[0].mxu0 %vm91_vm0, %v15_v21  ;;  %1534 = vmatmul.mubr.msk.f32.vlgmr.msra.gmra.mrb[0].mxu1 %vm91_vm0, %v47_v22 }
  0x1f   :  { %1488 = vmatprep.mubr.msk.f32.mxu0 %vm91_vm0, %v16_v23  ;;  %1536 = vmatprep.mubr.msk.f32.mxu1 %vm91_vm0, %v48_v24 }
  0x22   :  { %1489 = vmatmul.mubr.msk.f32.gmra.mrb[2].mxu0 %vm91_vm0, %v17_v25  ;;  %1537 = vmatmul.mubr.msk.f32.gmra.mrb[2].mxu1 %vm91_vm0, %v49_v26 }
  0x23   :  { %1491 = vmatprep.mubr.msk.f32.mxu0 %vm91_vm0, %v18_v27  ;;  %1539 = vmatprep.mubr.msk.f32.mxu1 %vm91_vm0, %v50_v28 }
  0x26   :  { %1492 = vmatmul.mubr.msk.f32.gmra.mrb[4].mxu0 %vm91_vm0, %v19_v29  ;;  %1540 = vmatmul.mubr.msk.f32.gmra.mrb[4].mxu1 %vm91_vm0, %v51_v30 }
  0x27   :  { %1494 = vmatprep.mubr.msk.f32.mxu0 %vm91_vm0, %v20_v31  ;;  %1542 = vmatprep.mubr.msk.f32.mxu1 %vm91_vm0, %v52_v32 }
  0x2a   :  { %1495 = vmatmul.mubr.msk.f32.gmra.mrb[6].mxu0 %vm91_vm0, %v21_v33  ;;  %1543 = vmatmul.mubr.msk.f32.gmra.mrb[6].mxu1 %vm91_vm0, %v53_v34 }
  0x2b   :  { %1497 = vmatprep.mubr.msk.f32.mxu0 %vm91_vm0, %v22_v35  ;;  %1545 = vmatprep.mubr.msk.f32.mxu1 %vm91_vm0, %v54_v36 }
  0x2e   :  { %1498 = vmatmul.mubr.msk.f32.gmra.mrb[8].mxu0 %vm91_vm0, %v23_v37  ;;  %1546 = vmatmul.mubr.msk.f32.gmra.mrb[8].mxu1 %vm91_vm0, %v55_v38 }
  0x2f   :  { %1500 = vmatprep.mubr.msk.f32.mxu0 %vm91_vm0, %v24_v39  ;;  %1548 = vmatprep.mubr.msk.f32.mxu1 %vm91_vm0, %v56_v40 }
  0x32   :  { %1501 = vmatmul.mubr.msk.f32.gmra.mrb[10].mxu0 %vm91_vm0, %v25_v41  ;;  %1549 = vmatmul.mubr.msk.f32.gmra.mrb[10].mxu1 %vm91_vm0, %v57_v42 }
  0x33   :  { %1503 = vmatprep.mubr.msk.f32.mxu0 %vm91_vm0, %v26_v43  ;;  %1551 = vmatprep.mubr.msk.f32.mxu1 %vm91_vm0, %v58_v44 }
  0x36   :  { %1504 = vmatmul.mubr.msk.f32.gmra.mrb[12].mxu0 %vm91_vm0, %v27_v45  ;;  %1552 = vmatmul.mubr.msk.f32.gmra.mrb[12].mxu1 %vm91_vm0, %v59_v46 }
  0x37   :  { %1506 = vmatprep.mubr.msk.f32.mxu0 %vm91_vm0, %v28_v47  ;;  %1554 = vmatprep.mubr.msk.f32.mxu1 %vm91_vm0, %v60_v48 }
  0x3a   :  { %1507 = vmatmul.mubr.msk.f32.gmra.mrb[14].mxu0 %vm91_vm0, %v29_v49  ;;  %1555 = vmatmul.mubr.msk.f32.gmra.mrb[14].mxu1 %vm91_vm0, %v61_v50 }
  0x3b   :  { %1509 = vmatprep.mubr.msk.f32.mxu0 %vm91_vm0, %v30_v51  ;;  %1557 = vmatprep.mubr.msk.f32.mxu1 %vm91_vm0, %v62_v52 }
  0x3e   :  { %1510 = vmatmul.mubr.msk.f32.gmra.mrb[16].mxu0 %vm91_vm0, %v31_v53  ;;  %1558 = vmatmul.mubr.msk.f32.gmra.mrb[16].mxu1 %vm91_vm0, %v63_v54 }
  0x3f   :  { %1512 = vmatprep.mubr.msk.f32.mxu0 %vm91_vm0, %v32_v55  ;;  %1560 = vmatprep.mubr.msk.f32.mxu1 %vm91_vm0, %v64_v56 }
  0x42   :  { %1513 = vmatmul.mubr.msk.f32.gmra.mrb[18].mxu0 %vm91_vm0, %v33_v57  ;;  %1561 = vmatmul.mubr.msk.f32.gmra.mrb[18].mxu1 %vm91_vm0, %v65_v58 }
  0x43   :  { %1515 = vmatprep.mubr.msk.f32.mxu0 %vm91_vm0, %v34_v59  ;;  %1563 = vmatprep.mubr.msk.f32.mxu1 %vm91_vm0, %v66_v60 }
  0x46   :  { %1516 = vmatmul.mubr.msk.f32.gmra.mrb[20].mxu0 %vm91_vm0, %v35_v61  ;;  %1564 = vmatmul.mubr.msk.f32.gmra.mrb[20].mxu1 %vm91_vm0, %v67_v62 }
  0x47   :  { %1518 = vmatprep.mubr.msk.f32.mxu0 %vm91_vm0, %v36_v63  ;;  %1566 = vmatprep.mubr.msk.f32.mxu1 %vm91_vm0, %v68_v0 }
  0x4a   :  { %1519 = vmatmul.mubr.msk.f32.gmra.mrb[22].mxu0 %vm91_vm0, %v37_v1  ;;  %1567 = vmatmul.mubr.msk.f32.gmra.mrb[22].mxu1 %vm91_vm0, %v69_v2 }
  0x4b   :  { %1521 = vmatprep.mubr.msk.f32.mxu0 %vm91_vm0, %v38_v3  ;;  %1569 = vmatprep.mubr.msk.f32.mxu1 %vm91_vm0, %v70_v4 }
  0x4e   :  { %1522 = vmatmul.mubr.msk.f32.gmra.mrb[24].mxu0 %vm91_vm0, %v39_v5  ;;  %1570 = vmatmul.mubr.msk.f32.gmra.mrb[24].mxu1 %vm91_vm0, %v71_v6 }
  0x4f   :  { %1524 = vmatprep.mubr.msk.f32.mxu0 %vm91_vm0, %v40_v7  ;;  %1572 = vmatprep.mubr.msk.f32.mxu1 %vm91_vm0, %v72_v8 }
  0x52   :  { %1525 = vmatmul.mubr.msk.f32.gmra.mrb[26].mxu0 %vm91_vm0, %v41_v9  ;;  %1573 = vmatmul.mubr.msk.f32.gmra.mrb[26].mxu1 %vm91_vm0, %v73_v10 }
  0x53   :  { %1527 = vmatprep.mubr.msk.f32.mxu0 %vm91_vm0, %v42_v11  ;;  %1575 = vmatprep.mubr.msk.f32.mxu1 %vm91_vm0, %v74_v12 }
  0x56   :  { %1528 = vmatmul.mubr.msk.f32.gmra.mrb[28].mxu0 %vm91_vm0, %v43_v13  ;;  %1576 = vmatmul.mubr.msk.f32.gmra.mrb[28].mxu1 %vm91_vm0, %v75_v14  ;;  %v674_v14 = vld [vmem:[%s2717_s1 + $0x8] sm:$0xff] }
  0x57   :  { %1530 = vmatprep.mubr.msk.f32.mxu0 %vm91_vm0, %v44_v15  ;;  %1578 = vmatprep.mubr.msk.f32.mxu1 %vm91_vm0, %v76_v16 }
  0x5a   :  { %1531 = vmatmul.mubr.msk.f32.gmra.mrb[30].mxu0 %vm91_vm0, %v45_v17  ;;  %1579 = vmatmul.mubr.msk.f32.gmra.mrb[30].mxu1 %vm91_vm0, %v77_v18 }
  0xf1   :  { %v1487_v19 = vpop.f32.mrb[0].mxu0  ;;  %v1535_v20 = vpop.f32.mrb[0].mxu1 }
  0xf2   :  { %v1319_v21 = vmul.f32 -1.442695, %v1487_v19  ;;  %v1351_v22 = vmul.f32 -1.442695, %v1535_v20  ;;  %v354_v23 = vpop.f32.mrb[1].mxu0  ;;  %v514_v24 = vpop.f32.mrb[1].mxu1 }
  0xf3   :  { %v1318_v25 = vmul.f32 -1.442695, %v354_v23  ;;  %v1350_v26 = vmul.f32 -1.442695, %v514_v24  ;;  %v706_v19 = vld [vmem:[%s2717_s1 + $0x108] sm:$0xff]  ;;  %v673_v24 = vld [vmem:[%s2717_s1] sm:$0xff] }
  0xf4   :  { %1619 = vpow2.f32 %v1319_v21 }
  0xf5   :  { %1621 = vpow2.f32 %v1351_v22  ;;  %v1490_v27 = vpop.f32.mrb[2].mxu0  ;;  %v1538_v28 = vpop.f32.mrb[2].mxu1 }
  0xf6   :  { %1623 = vpow2.f32 %v1318_v25  ;;  %v1321_v29 = vmul.f32 -1.442695, %v1490_v27  ;;  %v1353_v30 = vmul.f32 -1.442695, %v1538_v28  ;;  %v364_v31 = vpop.f32.mrb[3].mxu0  ;;  %v524_v32 = vpop.f32.mrb[3].mxu1 }
  0xf7   :  { %1625 = vpow2.f32 %v1350_v26  ;;  %v1320_v33 = vmul.f32 -1.442695, %v364_v31  ;;  %v1352_v34 = vmul.f32 -1.442695, %v524_v32 }
  0xf8   :  { %1627 = vpow2.f32 %v1321_v29 }
  0xf9   :  { %1629 = vpow2.f32 %v1353_v30  ;;  %v1493_v35 = vpop.f32.mrb[4].mxu0  ;;  %v1541_v36 = vpop.f32.mrb[4].mxu1  ;;  %v705_v30 = vld [vmem:[%s2717_s1 + $0x100] sm:$0xff] }
  0xfa   :  { %1631 = vpow2.f32 %v1320_v33  ;;  %v1323_v37 = vmul.f32 -1.442695, %v1493_v35  ;;  %v1355_v38 = vmul.f32 -1.442695, %v1541_v36  ;;  %v374_v39 = vpop.f32.mrb[5].mxu0  ;;  %v534_v40 = vpop.f32.mrb[5].mxu1 }
  0xfb   :  { %1633 = vpow2.f32 %v1352_v34  ;;  %v1322_v41 = vmul.f32 -1.442695, %v374_v39  ;;  %v1354_v42 = vmul.f32 -1.442695, %v534_v40  ;;  %v676_v34 = vld [vmem:[%s2717_s1 + $0x18] sm:$0xff] }
  0xfc   :  { %1635 = vpow2.f32 %v1323_v37  ;;  %v708_v40 = vld [vmem:[%s2717_s1 + $0x118] sm:$0xff] }
  0xfd   :  { %1637 = vpow2.f32 %v1355_v38  ;;  %v1496_v43 = vpop.f32.mrb[6].mxu0  ;;  %v1544_v44 = vpop.f32.mrb[6].mxu1 }
  0xfe   :  { %v1620_v45 = vpop.eup %1619  ;;  %1639 = vpow2.f32 %v1322_v41  ;;  %v1325_v46 = vmul.f32 -1.442695, %v1496_v43  ;;  %v384_v47 = vpop.f32.mrb[7].mxu0  ;;  %v1357_v21 = vmul.f32 -1.442695, %v1544_v44 }
  0xff   :  { %v544_v48 = vpop.f32.mrb[7].mxu1  ;;  %v1622_v49 = vpop.eup %1621  ;;  %v930_v50 = vadd.f32 1.0, %v1620_v45  ;;  %1641 = vpow2.f32 %v1354_v42  ;;  %v1324_v26 = vmul.f32 -1.442695, %v384_v47 }
 0x100   :  { %v1624_v51 = vpop.eup %1623  ;;  %v962_v52 = vadd.f32 1.0, %v1622_v49  ;;  %1643 = vpow2.f32 %v1325_v46  ;;  %v1356_v31 = vmul.f32 -1.442695, %v544_v48  ;;  %v675_v46 = vld [vmem:[%s2717_s1 + $0x10] sm:$0xff] }
 0x101   :  { %v1626_v53 = vpop.eup %1625  ;;  %1645 = vrcp.f32 %v930_v50  ;;  %v929_v54 = vadd.f32 1.0, %v1624_v51  ;;  %v1499_v55 = vpop.f32.mrb[8].mxu0  ;;  %v707_v50 = vld [vmem:[%s2717_s1 + $0x110] sm:$0xff] }
 0x102   :  { %v2190_v56 = vpop.f32.mrb[8].mxu1  ;;  %v1628_v57 = vpop.eup %1627  ;;  %1647 = vrcp.f32 %v962_v52  ;;  %v961_v58 = vadd.f32 1.0, %v1626_v53  ;;  %v1327_v35 = vmul.f32 -1.442695, %v1499_v55 }
 0x103   :  { %v2192_v59 = vpop.f32.mrb[9].mxu0  ;;  %v1630_v60 = vpop.eup %1629  ;;  %1649 = vrcp.f32 %v929_v54  ;;  %v932_v61 = vadd.f32 1.0, %v1628_v57  ;;  %v1359_v41 = vmul.f32 -1.442695, %v2190_v56  ;;  %v678_v54 = vld [vmem:[%s2717_s1 + $0x28] sm:$0xff] }
 0x104   :  { %v2194_v62 = vpop.f32.mrb[9].mxu1  ;;  %v1632_v63 = vpop.eup %1631  ;;  %1651 = vrcp.f32 %v961_v58  ;;  %v964_v0 = vadd.f32 1.0, %v1630_v60  ;;  %v1326_v47 = vmul.f32 -1.442695, %v2192_v59  ;;  %v710_v60 = vld [vmem:[%s2717_s1 + $0x128] sm:$0xff] }
 0x105   :  { %v1634_v1 = vpop.eup %1633  ;;  %1653 = vrcp.f32 %v932_v61  ;;  %v931_v2 = vadd.f32 1.0, %v1632_v63  ;;  %v2196_v3 = vpop.f32.mrb[10].mxu0  ;;  %v1358_v51 = vmul.f32 -1.442695, %v2194_v62 }
 0x106   :  { %v2198_v4 = vpop.f32.mrb[10].mxu1  ;;  %v1636_v5 = vpop.eup %1635  ;;  %1655 = vrcp.f32 %v964_v0  ;;  %v963_v6 = vadd.f32 1.0, %v1634_v1  ;;  %v1329_v55 = vmul.f32 -1.442695, %v2196_v3 }
 0x107   :  { %v2200_v7 = vpop.f32.mrb[11].mxu0  ;;  %v1638_v8 = vpop.eup %1637  ;;  %1657 = vrcp.f32 %v931_v2  ;;  %v934_v9 = vadd.f32 1.0, %v1636_v5  ;;  %v1361_v61 = vmul.f32 -1.442695, %v2198_v4  ;;  %v677_v2 = vld [vmem:[%s2717_s1 + $0x20] sm:$0xff] }
 0x108   :  { %v2202_v10 = vpop.f32.mrb[11].mxu1  ;;  %v1640_v11 = vpop.eup %1639  ;;  %1659 = vrcp.f32 %v963_v6  ;;  %v966_v12 = vadd.f32 1.0, %v1638_v8  ;;  %v1328_v3 = vmul.f32 -1.442695, %v2200_v7  ;;  %v709_v6 = vld [vmem:[%s2717_s1 + $0x120] sm:$0xff]  ;;  %v680_v7 = vld [vmem:[%s2717_s1 + $0x38] sm:$0xff] }
 0x109   :  { %v1642_v13 = vpop.eup %1641  ;;  %1661 = vrcp.f32 %v934_v9  ;;  %v933_v15 = vadd.f32 1.0, %v1640_v11  ;;  %v2207_v16 = vpop.f32.mrb[12].mxu0  ;;  %v1360_v8 = vmul.f32 -1.442695, %v2202_v10 }
 0x10a   :  { %v2209_v17 = vpop.f32.mrb[12].mxu1  ;;  %v1644_v18 = vpop.eup %1643  ;;  %1663 = vrcp.f32 %v966_v12  ;;  %v965_v20 = vadd.f32 1.0, %v1642_v13  ;;  %v1331_v12 = vmul.f32 -1.442695, %v2207_v16 }
 0x10b   :  { %v2214_v22 = vpop.f32.mrb[13].mxu0  ;;  %v1646_v23 = vpop.eup %1645  ;;  %1665 = vrcp.f32 %v933_v15  ;;  %v936_v25 = vadd.f32 1.0, %v1644_v18  ;;  %v1363_v18 = vmul.f32 -1.442695, %v2209_v17 }
 0x10c   :  { %v2219_v27 = vpop.f32.mrb[13].mxu1  ;;  %v1648_v28 = vpop.eup %1647  ;;  %v1122_v29 = vmul.f32 %v1646_v23, %v674_v14  ;;  %1667 = vrcp.f32 %v965_v20 }
 0x10d   :  { %v1650_v32 = vpop.eup %1649  ;;  %v1154_v33 = vmul.f32 %v1648_v28, %v706_v19  ;;  %1669 = vrcp.f32 %v936_v25  ;;  %v2227_v36 = vpop.f32.mrb[14].mxu0 }
 0x10e   :  { %v2229_v37 = vpop.f32.mrb[14].mxu1  ;;  %v1652_v38 = vpop.eup %1651  ;;  %1186 = vst [vmem:[%s2718_s3 + $0x8] sm:$0xff] %v1122_v29  ;;  %v1121_v39 = vmul.f32 %v1650_v32, %v673_v24  ;;  %1671 = vpow2.f32 %v1357_v21 }
 0x10f   :  { %v2238_v42 = vpop.f32.mrb[15].mxu0  ;;  %v2240_v43 = vpop.f32.mrb[15].mxu1  ;;  %1218 = vst [vmem:[%s2718_s3 + $0x108] sm:$0xff] %v1154_v33  ;;  %v1153_v45 = vmul.f32 %v1652_v38, %v705_v30  ;;  %1673 = vpow2.f32 %v1324_v26 }
 0x110   :  { %v1654_v44 = vpop.eup %1653  ;;  %1185 = vst [vmem:[%s2718_s3] sm:$0xff] %v1121_v39  ;;  %1675 = vpow2.f32 %v1356_v31 }
 0x111   :  { %v1656_v48 = vpop.eup %1655  ;;  %v1124_v49 = vmul.f32 %v1654_v44, %v676_v34  ;;  %1217 = vst [vmem:[%s2718_s3 + $0x100] sm:$0xff] %v1153_v45  ;;  %1677 = vpow2.f32 %v1327_v35  ;;  %v2263_v56 = vpop.f32.mrb[16].mxu0 }
 0x112   :  { %v1658_v52 = vpop.eup %1657  ;;  %v1156_v53 = vmul.f32 %v1656_v48, %v708_v40  ;;  %v2265_v57 = vpop.f32.mrb[16].mxu1  ;;  %1679 = vpow2.f32 %v1359_v41 }
 0x113   :  { %v1660_v58 = vpop.eup %1659  ;;  %1188 = vst [vmem:[%s2718_s3 + $0x18] sm:$0xff] %v1124_v49  ;;  %v1123_v59 = vmul.f32 %v1658_v52, %v675_v46  ;;  %v2274_v62 = vpop.f32.mrb[17].mxu0  ;;  %1681 = vpow2.f32 %v1326_v47 }
 0x114   :  { %v2276_v63 = vpop.f32.mrb[17].mxu1  ;;  %v1662_v0 = vpop.eup %1661  ;;  %1220 = vst [vmem:[%s2718_s3 + $0x118] sm:$0xff] %v1156_v53  ;;  %v1155_v1 = vmul.f32 %v1660_v58, %v707_v50  ;;  %1683 = vpow2.f32 %v1358_v51 }
 0x115   :  { %v1664_v5 = vpop.eup %1663  ;;  %1187 = vst [vmem:[%s2718_s3 + $0x10] sm:$0xff] %v1123_v59  ;;  %v1126_v4 = vmul.f32 %v1662_v0, %v678_v54  ;;  %1685 = vpow2.f32 %v1329_v55  ;;  %v2299_v13 = vpop.f32.mrb[18].mxu0 }
 0x116   :  { %v1666_v9 = vpop.eup %1665  ;;  %1219 = vst [vmem:[%s2718_s3 + $0x110] sm:$0xff] %v1155_v1  ;;  %v1158_v11 = vmul.f32 %v1664_v5, %v710_v60  ;;  %v2301_v14 = vpop.f32.mrb[18].mxu1  ;;  %1687 = vpow2.f32 %v1361_v61  ;;  %v712_v1 = vld [vmem:[%s2717_s1 + $0x138] sm:$0xff] }
 0x117   :  { %v1668_v15 = vpop.eup %1667  ;;  %1190 = vst [vmem:[%s2718_s3 + $0x28] sm:$0xff] %v1126_v4  ;;  %v1125_v10 = vmul.f32 %v1666_v9, %v677_v2  ;;  %v2307_v19 = vpop.f32.mrb[19].mxu0  ;;  %1689 = vpow2.f32 %v1328_v3  ;;  %v679_v4 = vld [vmem:[%s2717_s1 + $0x30] sm:$0xff] }
 0x118   :  { %v2309_v20 = vpop.f32.mrb[19].mxu1  ;;  %v1670_v21 = vpop.eup %1669  ;;  %1222 = vst [vmem:[%s2718_s3 + $0x128] sm:$0xff] %v1158_v11  ;;  %v1157_v16 = vmul.f32 %v1668_v15, %v709_v6  ;;  %1691 = vpow2.f32 %v1360_v8  ;;  %v1330_v8 = vmul.f32 -1.442695, %v2214_v22  ;;  %v711_v11 = vld [vmem:[%s2717_s1 + $0x130] sm:$0xff] }
 0x119   :  { %v1672_v23 = vpop.eup %1671  ;;  %1189 = vst [vmem:[%s2718_s3 + $0x20] sm:$0xff] %v1125_v10  ;;  %v1128_v24 = vmul.f32 %v1670_v21, %v680_v7  ;;  %1693 = vpow2.f32 %v1331_v12  ;;  %v2320_v26 = vpop.f32.mrb[20].mxu0  ;;  %v1362_v12 = vmul.f32 -1.442695, %v2219_v27  ;;  %v1333_v22 = vmul.f32 -1.442695, %v2227_v36 }
 0x11a   :  { %v1674_v25 = vpop.eup %1673  ;;  %1221 = vst [vmem:[%s2718_s3 + $0x120] sm:$0xff] %v1157_v16  ;;  %v968_v17 = vadd.f32 1.0, %v1672_v23  ;;  %v2322_v28 = vpop.f32.mrb[20].mxu1  ;;  %1695 = vpow2.f32 %v1363_v18  ;;  %v682_v16 = vld [vmem:[%s2717_s1 + $0x48] sm:$0xff]  ;;  %v681_v36 = vld [vmem:[%s2717_s1 + $0x40] sm:$0xff] }
 0x11b   :  { %v1676_v29 = vpop.eup %1675  ;;  %1192 = vst [vmem:[%s2718_s3 + $0x38] sm:$0xff] %v1128_v24  ;;  %v935_v30 = vadd.f32 1.0, %v1674_v25  ;;  %v2327_v31 = vpop.f32.mrb[21].mxu0  ;;  %v714_v27 = vld [vmem:[%s2717_s1 + $0x148] sm:$0xff] }
 0x11c   :  { %v1678_v32 = vpop.eup %1677  ;;  %1697 = vrcp.f32 %v968_v17  ;;  %v967_v33 = vadd.f32 1.0, %v1676_v29  ;;  %v2329_v34 = vpop.f32.mrb[21].mxu1  ;;  %v1365_v29 = vmul.f32 -1.442695, %v2229_v37  ;;  %v713_v37 = vld [vmem:[%s2717_s1 + $0x140] sm:$0xff] }
 0x11d   :  { %v1680_v35 = vpop.eup %1679  ;;  %1699 = vrcp.f32 %v935_v30  ;;  %v938_v38 = vadd.f32 1.0, %v1678_v32  ;;  %v2331_v41 = vpop.f32.mrb[22].mxu0 }
 0x11e   :  { %v1682_v39 = vpop.eup %1681  ;;  %1701 = vrcp.f32 %v967_v33  ;;  %v970_v40 = vadd.f32 1.0, %v1680_v35  ;;  %v2333_v44 = vpop.f32.mrb[22].mxu1  ;;  %v1332_v33 = vmul.f32 -1.442695, %v2238_v42 }
 0x11f   :  { %v1684_v45 = vpop.eup %1683  ;;  %1703 = vrcp.f32 %v938_v38  ;;  %v937_v46 = vadd.f32 1.0, %v1682_v39  ;;  %v2335_v47 = vpop.f32.mrb[23].mxu0  ;;  %v1364_v39 = vmul.f32 -1.442695, %v2240_v43 }
 0x120   :  { %v1686_v48 = vpop.eup %1685  ;;  %1705 = vrcp.f32 %v970_v40  ;;  %v969_v49 = vadd.f32 1.0, %v1684_v45  ;;  %v2337_v50 = vpop.f32.mrb[23].mxu1 }
 0x121   :  { %v1688_v51 = vpop.eup %1687  ;;  %1707 = vrcp.f32 %v937_v46  ;;  %v940_v52 = vadd.f32 1.0, %v1686_v48  ;;  %v2339_v55 = vpop.f32.mrb[24].mxu0  ;;  %v684_v48 = vld [vmem:[%s2717_s1 + $0x58] sm:$0xff] }
 0x122   :  { %v1690_v53 = vpop.eup %1689  ;;  %1709 = vrcp.f32 %v969_v49  ;;  %v972_v54 = vadd.f32 1.0, %v1688_v51  ;;  %v2341_v58 = vpop.f32.mrb[24].mxu1  ;;  %v1335_v49 = vmul.f32 -1.442695, %v2263_v56 }
 0x123   :  { %v1692_v59 = vpop.eup %1691  ;;  %1711 = vrcp.f32 %v940_v52  ;;  %v939_v60 = vadd.f32 1.0, %v1690_v53  ;;  %v2343_v61 = vpop.f32.mrb[25].mxu0 }
 0x124   :  { %v1694_v0 = vpop.eup %1693  ;;  %1713 = vrcp.f32 %v972_v54  ;;  %v971_v2 = vadd.f32 1.0, %v1692_v59  ;;  %v2348_v3 = vpop.f32.mrb[25].mxu1  ;;  %v716_v54 = vld [vmem:[%s2717_s1 + $0x158] sm:$0xff]  ;;  %v1367_v59 = vmul.f32 -1.442695, %v2265_v57  ;;  %v715_v57 = vld [vmem:[%s2717_s1 + $0x150] sm:$0xff] }
 0x125   :  { %v1696_v5 = vpop.eup %1695  ;;  %1715 = vrcp.f32 %v939_v60  ;;  %v942_v6 = vadd.f32 1.0, %v1694_v0  ;;  %v2358_v15 = vpop.f32.mrb[26].mxu0  ;;  %v683_v0 = vld [vmem:[%s2717_s1 + $0x50] sm:$0xff] }
 0x126   :  { %v1698_v9 = vpop.eup %1697  ;;  %1717 = vrcp.f32 %v971_v2  ;;  %v974_v7 = vadd.f32 1.0, %v1696_v5  ;;  %v2360_v10 = vpop.f32.mrb[26].mxu1 }
 0x127   :  { %v1700_v18 = vpop.eup %1699  ;;  %v1160_v21 = vmul.f32 %v1698_v9, %v712_v1  ;;  %1719 = vrcp.f32 %v942_v6  ;;  %v2366_v23 = vpop.f32.mrb[27].mxu0  ;;  %v1334_v1 = vmul.f32 -1.442695, %v2274_v62 }
 0x128   :  { %v2368_v24 = vpop.f32.mrb[27].mxu1  ;;  %v1702_v25 = vpop.eup %1701  ;;  %v1127_v17 = vmul.f32 %v1700_v18, %v679_v4  ;;  %1721 = vrcp.f32 %v974_v7  ;;  %v1366_v4 = vmul.f32 -1.442695, %v2276_v63  ;;  %v1337_v7 = vmul.f32 -1.442695, %v2299_v13 }
 0x129   :  { %v1704_v30 = vpop.eup %1703  ;;  %1224 = vst [vmem:[%s2718_s3 + $0x138] sm:$0xff] %v1160_v21  ;;  %v1159_v32 = vmul.f32 %v1702_v25, %v711_v11  ;;  %1723 = vpow2.f32 %v1330_v8  ;;  %v2388_v40 = vpop.f32.mrb[28].mxu0  ;;  %v686_v11 = vld [vmem:[%s2717_s1 + $0x68] sm:$0xff] }
 0x12a   :  { %v1706_v35 = vpop.eup %1705  ;;  %1191 = vst [vmem:[%s2718_s3 + $0x30] sm:$0xff] %v1127_v17  ;;  %v1130_v38 = vmul.f32 %v1704_v30, %v682_v16  ;;  %1725 = vpow2.f32 %v1362_v12  ;;  %v2390_v45 = vpop.f32.mrb[28].mxu1  ;;  %v718_v16 = vld [vmem:[%s2717_s1 + $0x168] sm:$0xff]  ;;  %v1336_v17 = vmul.f32 -1.442695, %v2307_v19 }
 0x12b   :  { %v1708_v46 = vpop.eup %1707  ;;  %1223 = vst [vmem:[%s2718_s3 + $0x130] sm:$0xff] %v1159_v32  ;;  %v1162_v42 = vmul.f32 %v1706_v35, %v714_v27  ;;  %1727 = vpow2.f32 %v1333_v22  ;;  %v2399_v51 = vpop.f32.mrb[29].mxu0  ;;  %v1369_v22 = vmul.f32 -1.442695, %v2301_v14 }
 0x12c   :  { %v2401_v43 = vpop.f32.mrb[29].mxu1  ;;  %v1710_v52 = vpop.eup %1709  ;;  %1194 = vst [vmem:[%s2718_s3 + $0x48] sm:$0xff] %v1130_v38  ;;  %v1129_v53 = vmul.f32 %v1708_v46, %v681_v36  ;;  %1729 = vpow2.f32 %v1365_v29 }
 0x12d   :  { %v1712_v60 = vpop.eup %1711  ;;  %1226 = vst [vmem:[%s2718_s3 + $0x148] sm:$0xff] %v1162_v42  ;;  %v1161_v56 = vmul.f32 %v1710_v52, %v713_v37  ;;  %1731 = vpow2.f32 %v1332_v33  ;;  %v2424_v6 = vpop.f32.mrb[30].mxu0 }
 0x12e   :  { %v1714_v2 = vpop.eup %1713  ;;  %1193 = vst [vmem:[%s2718_s3 + $0x40] sm:$0xff] %v1129_v53  ;;  %v1132_v5 = vmul.f32 %v1712_v60, %v684_v48  ;;  %1733 = vpow2.f32 %v1364_v39  ;;  %v2426_v8 = vpop.f32.mrb[30].mxu1 }
 0x12f   :  { %v1716_v9 = vpop.eup %1715  ;;  %1225 = vst [vmem:[%s2718_s3 + $0x140] sm:$0xff] %v1161_v56  ;;  %v1164_v62 = vmul.f32 %v1714_v2, %v716_v54  ;;  %1735 = vpow2.f32 %v1335_v49  ;;  %v2435_v12 = vpop.f32.mrb[31].mxu0 }
 0x130   :  { %v2437_v63 = vpop.f32.mrb[31].mxu1  ;;  %v1718_v18 = vpop.eup %1717  ;;  %1196 = vst [vmem:[%s2718_s3 + $0x58] sm:$0xff] %v1132_v5  ;;  %v1131_v21 = vmul.f32 %v1716_v9, %v683_v0  ;;  %1737 = vpow2.f32 %v1367_v59  ;;  %v685_v5 = vld [vmem:[%s2717_s1 + $0x60] sm:$0xff] }
 0x131   :  { %v1720_v25 = vpop.eup %1719  ;;  %1228 = vst [vmem:[%s2718_s3 + $0x158] sm:$0xff] %v1164_v62  ;;  %v1163_v13 = vmul.f32 %v1718_v18, %v715_v57  ;;  %1739 = vpow2.f32 %v1334_v1  ;;  %v717_v9 = vld [vmem:[%s2717_s1 + $0x160] sm:$0xff]  ;;  %v688_v18 = vld [vmem:[%s2717_s1 + $0x78] sm:$0xff] }
 0x132   :  { %v1722_v27 = vpop.eup %1721  ;;  %1195 = vst [vmem:[%s2718_s3 + $0x50] sm:$0xff] %v1131_v21  ;;  %v1134_v29 = vmul.f32 %v1720_v25, %v686_v11  ;;  %1741 = vpow2.f32 %v1366_v4  ;;  %v1368_v11 = vmul.f32 -1.442695, %v2309_v20 }
 0x133   :  { %v1724_v30 = vpop.eup %1723  ;;  %1227 = vst [vmem:[%s2718_s3 + $0x150] sm:$0xff] %v1163_v13  ;;  %v1166_v14 = vmul.f32 %v1722_v27, %v718_v16  ;;  %1743 = vpow2.f32 %v1337_v7  ;;  %v1339_v16 = vmul.f32 -1.442695, %v2320_v26  ;;  %v720_v13 = vld [vmem:[%s2717_s1 + $0x178] sm:$0xff] }
 0x134   :  { %v1726_v32 = vpop.eup %1725  ;;  %1198 = vst [vmem:[%s2718_s3 + $0x68] sm:$0xff] %v1134_v29  ;;  %v941_v19 = vadd.f32 1.0, %v1724_v30  ;;  %1745 = vpow2.f32 %v1369_v22  ;;  %v687_v29 = vld [vmem:[%s2717_s1 + $0x70] sm:$0xff]  ;;  %v1338_v30 = vmul.f32 -1.442695, %v2327_v31  ;;  %v690_v31 = vld [vmem:[%s2717_s1 + $0x88] sm:$0xff] }
 0x135   :  { %v1728_v36 = vpop.eup %1727  ;;  %1230 = vst [vmem:[%s2718_s3 + $0x168] sm:$0xff] %v1166_v14  ;;  %v973_v33 = vadd.f32 1.0, %v1726_v32  ;;  %1747 = vpow2.f32 %v1336_v17  ;;  %v1371_v17 = vmul.f32 -1.442695, %v2322_v28  ;;  %v719_v32 = vld [vmem:[%s2717_s1 + $0x170] sm:$0xff] }
 0x136   :  { %v1730_v35 = vpop.eup %1729  ;;  %1749 = vrcp.f32 %v941_v19  ;;  %v944_v38 = vadd.f32 1.0, %v1728_v36  ;;  %v1370_v28 = vmul.f32 -1.442695, %v2329_v34  ;;  %v722_v34 = vld [vmem:[%s2717_s1 + $0x188] sm:$0xff] }
 0x137   :  { %v1732_v37 = vpop.eup %1731  ;;  %1751 = vrcp.f32 %v973_v33  ;;  %v976_v39 = vadd.f32 1.0, %v1730_v35  ;;  %v1341_v33 = vmul.f32 -1.442695, %v2331_v41  ;;  %v689_v41 = vld [vmem:[%s2717_s1 + $0x80] sm:$0xff] }
 0x138   :  { %v1734_v46 = vpop.eup %1733  ;;  %1753 = vrcp.f32 %v944_v38  ;;  %v943_v42 = vadd.f32 1.0, %v1732_v37  ;;  %v1373_v37 = vmul.f32 -1.442695, %v2333_v44  ;;  %v721_v44 = vld [vmem:[%s2717_s1 + $0x180] sm:$0xff] }
 0x139   :  { %v1736_v48 = vpop.eup %1735  ;;  %1755 = vrcp.f32 %v976_v39  ;;  %v975_v49 = vadd.f32 1.0, %v1734_v46 }
 0x13a   :  { %v1738_v52 = vpop.eup %1737  ;;  %1757 = vrcp.f32 %v943_v42  ;;  %v946_v53 = vadd.f32 1.0, %v1736_v48  ;;  %v1340_v42 = vmul.f32 -1.442695, %v2335_v47  ;;  %v692_v47 = vld [vmem:[%s2717_s1 + $0x98] sm:$0xff] }
 0x13b   :  { %v1740_v54 = vpop.eup %1739  ;;  %1759 = vrcp.f32 %v975_v49  ;;  %v978_v59 = vadd.f32 1.0, %v1738_v52  ;;  %v1372_v52 = vmul.f32 -1.442695, %v2337_v50  ;;  %v724_v50 = vld [vmem:[%s2717_s1 + $0x198] sm:$0xff] }
 0x13c   :  { %v1742_v60 = vpop.eup %1741  ;;  %1761 = vrcp.f32 %v946_v53  ;;  %v945_v56 = vadd.f32 1.0, %v1740_v54 }
 0x13d   :  { %v1744_v0 = vpop.eup %1743  ;;  %1763 = vrcp.f32 %v978_v59  ;;  %v977_v1 = vadd.f32 1.0, %v1742_v60  ;;  %v1343_v59 = vmul.f32 -1.442695, %v2339_v55  ;;  %v691_v55 = vld [vmem:[%s2717_s1 + $0x90] sm:$0xff] }
 0x13e   :  { %v1746_v2 = vpop.eup %1745  ;;  %1765 = vrcp.f32 %v945_v56  ;;  %v948_v57 = vadd.f32 1.0, %v1744_v0  ;;  %v1375_v0 = vmul.f32 -1.442695, %v2341_v58  ;;  %v1374_v58 = vmul.f32 -1.442695, %v2348_v3 }
 0x13f   :  { %v1748_v4 = vpop.eup %1747  ;;  %1767 = vrcp.f32 %v977_v1  ;;  %v980_v62 = vadd.f32 1.0, %v1746_v2 }
 0x140   :  { %v1750_v7 = vpop.eup %1749  ;;  %1769 = vrcp.f32 %v948_v57  ;;  %v947_v21 = vadd.f32 1.0, %v1748_v4 }
 0x141   :  { %v1752_v22 = vpop.eup %1751  ;;  %v1133_v25 = vmul.f32 %v1750_v7, %v685_v5  ;;  %1771 = vrcp.f32 %v980_v62  ;;  %v1342_v5 = vmul.f32 -1.442695, %v2343_v61 }
 0x142   :  { %v1754_v27 = vpop.eup %1753  ;;  %v1165_v20 = vmul.f32 %v1752_v22, %v717_v9  ;;  %1773 = vrcp.f32 %v947_v21 }
 0x143   :  { %v1756_v14 = vpop.eup %1755  ;;  %1197 = vst [vmem:[%s2718_s3 + $0x60] sm:$0xff] %v1133_v25  ;;  %v1136_v26 = vmul.f32 %v1754_v27, %v688_v18  ;;  %1775 = vpow2.f32 %v1368_v11 }
 0x144   :  { %v1758_v19 = vpop.eup %1757  ;;  %1229 = vst [vmem:[%s2718_s3 + $0x160] sm:$0xff] %v1165_v20  ;;  %v1168_v36 = vmul.f32 %v1756_v14, %v720_v13  ;;  %1777 = vpow2.f32 %v1339_v16 }
 0x145   :  { %v1760_v35 = vpop.eup %1759  ;;  %1200 = vst [vmem:[%s2718_s3 + $0x78] sm:$0xff] %v1136_v26  ;;  %v1135_v38 = vmul.f32 %v1758_v19, %v687_v29  ;;  %1779 = vpow2.f32 %v1371_v17 }
 0x146   :  { %v1762_v39 = vpop.eup %1761  ;;  %1232 = vst [vmem:[%s2718_s3 + $0x178] sm:$0xff] %v1168_v36  ;;  %v1167_v46 = vmul.f32 %v1760_v35, %v719_v32  ;;  %1781 = vpow2.f32 %v1338_v30  ;;  %v723_v35 = vld [vmem:[%s2717_s1 + $0x190] sm:$0xff] }
 0x147   :  { %v1764_v48 = vpop.eup %1763  ;;  %1199 = vst [vmem:[%s2718_s3 + $0x70] sm:$0xff] %v1135_v38  ;;  %v1138_v49 = vmul.f32 %v1762_v39, %v690_v31  ;;  %1783 = vpow2.f32 %v1370_v28 }
 0x148   :  { %v1766_v53 = vpop.eup %1765  ;;  %1231 = vst [vmem:[%s2718_s3 + $0x170] sm:$0xff] %v1167_v46  ;;  %v1170_v54 = vmul.f32 %v1764_v48, %v722_v34  ;;  %1785 = vpow2.f32 %v1341_v33  ;;  %v1345_v46 = vmul.f32 -1.442695, %v2358_v15 }
 0x149   :  { %v1768_v60 = vpop.eup %1767  ;;  %1202 = vst [vmem:[%s2718_s3 + $0x88] sm:$0xff] %v1138_v49  ;;  %v1137_v56 = vmul.f32 %v1766_v53, %v689_v41  ;;  %1787 = vpow2.f32 %v1373_v37  ;;  %v694_v37 = vld [vmem:[%s2717_s1 + $0xa8] sm:$0xff]  ;;  %v1377_v49 = vmul.f32 -1.442695, %v2360_v10  ;;  %v693_v53 = vld [vmem:[%s2717_s1 + $0xa0] sm:$0xff] }
 0x14a   :  { %v1770_v1 = vpop.eup %1769  ;;  %1234 = vst [vmem:[%s2718_s3 + $0x188] sm:$0xff] %v1170_v54  ;;  %v1169_v2 = vmul.f32 %v1768_v60, %v721_v44  ;;  %1789 = vpow2.f32 %v1340_v42  ;;  %v726_v42 = vld [vmem:[%s2717_s1 + $0x1a8] sm:$0xff]  ;;  %v1344_v54 = vmul.f32 -1.442695, %v2366_v23  ;;  %v1376_v60 = vmul.f32 -1.442695, %v2368_v24 }
 0x14b   :  { %v1772_v57 = vpop.eup %1771  ;;  %1201 = vst [vmem:[%s2718_s3 + $0x80] sm:$0xff] %v1137_v56  ;;  %v1140_v4 = vmul.f32 %v1770_v1, %v692_v47  ;;  %1791 = vpow2.f32 %v1372_v52  ;;  %v1347_v23 = vmul.f32 -1.442695, %v2388_v40  ;;  %v728_v24 = vld [vmem:[%s2717_s1 + $0x1b8] sm:$0xff]  ;;  %v695_v40 = vld [vmem:[%s2717_s1 + $0xb0] sm:$0xff] }
 0x14c   :  { %v1774_v9 = vpop.eup %1773  ;;  %1233 = vst [vmem:[%s2718_s3 + $0x180] sm:$0xff] %v1169_v2  ;;  %v1172_v62 = vmul.f32 %v1772_v57, %v724_v50  ;;  %1793 = vpow2.f32 %v1343_v59  ;;  %v725_v59 = vld [vmem:[%s2717_s1 + $0x1a0] sm:$0xff]  ;;  %v696_v50 = vld [vmem:[%s2717_s1 + $0xb8] sm:$0xff]  ;;  %v1379_v2 = vmul.f32 -1.442695, %v2390_v45  ;;  %v727_v45 = vld [vmem:[%s2717_s1 + $0x1b0] sm:$0xff] }
 0x14d   :  { %v1776_v11 = vpop.eup %1775  ;;  %1204 = vst [vmem:[%s2718_s3 + $0x98] sm:$0xff] %v1140_v4  ;;  %v1139_v61 = vmul.f32 %v1774_v9, %v691_v55  ;;  %1795 = vpow2.f32 %v1375_v0  ;;  %v1346_v57 = vmul.f32 -1.442695, %v2399_v51  ;;  %v1378_v9 = vmul.f32 -1.442695, %v2401_v43  ;;  %v698_v51 = vld [vmem:[%s2717_s1 + $0xc8] sm:$0xff] }
 0x14e   :  { %v1778_v7 = vpop.eup %1777  ;;  %1236 = vst [vmem:[%s2718_s3 + $0x198] sm:$0xff] %v1172_v62  ;;  %v979_v3 = vadd.f32 1.0, %v1776_v11  ;;  %1797 = vpow2.f32 %v1342_v5  ;;  %v730_v43 = vld [vmem:[%s2717_s1 + $0x1c8] sm:$0xff] }
 0x14f   :  { %v1780_v18 = vpop.eup %1779  ;;  %1203 = vst [vmem:[%s2718_s3 + $0x90] sm:$0xff] %v1139_v61  ;;  %v950_v21 = vadd.f32 1.0, %v1778_v7  ;;  %1799 = vpow2.f32 %v1374_v58  ;;  %v1349_v61 = vmul.f32 -1.442695, %v2424_v6  ;;  %v697_v6 = vld [vmem:[%s2717_s1 + $0xc0] sm:$0xff] }
 0x150   :  { %v1782_v16 = vpop.eup %1781  ;;  %1801 = vrcp.f32 %v979_v3  ;;  %v982_v22 = vadd.f32 1.0, %v1780_v18  ;;  %v1381_v18 = vmul.f32 -1.442695, %v2426_v8  ;;  %v729_v8 = vld [vmem:[%s2717_s1 + $0x1c0] sm:$0xff] }
 0x151   :  { %v1784_v25 = vpop.eup %1783  ;;  %1803 = vrcp.f32 %v950_v21  ;;  %v949_v13 = vadd.f32 1.0, %v1782_v16 }
 0x152   :  { %v1786_v17 = vpop.eup %1785  ;;  %1805 = vrcp.f32 %v982_v22  ;;  %v981_v27 = vadd.f32 1.0, %v1784_v25  ;;  %v1348_v22 = vmul.f32 -1.442695, %v2435_v12 }
 0x153   :  { %v1788_v20 = vpop.eup %1787  ;;  %1807 = vrcp.f32 %v949_v13  ;;  %v952_v29 = vadd.f32 1.0, %v1786_v17  ;;  %v1380_v17 = vmul.f32 -1.442695, %v2437_v63 }
 0x154   :  { %v1790_v30 = vpop.eup %1789  ;;  %1809 = vrcp.f32 %v981_v27  ;;  %v984_v14 = vadd.f32 1.0, %v1788_v20 }
 0x155   :  { %v1792_v26 = vpop.eup %1791  ;;  %1811 = vrcp.f32 %v952_v29  ;;  %v951_v32 = vadd.f32 1.0, %v1790_v30 }
 0x156   :  { %v1794_v28 = vpop.eup %1793  ;;  %1813 = vrcp.f32 %v984_v14  ;;  %v983_v19 = vadd.f32 1.0, %v1792_v26 }
 0x157   :  { %v1796_v36 = vpop.eup %1795  ;;  %1815 = vrcp.f32 %v951_v32  ;;  %v954_v31 = vadd.f32 1.0, %v1794_v28 }
 0x158   :  { %v1798_v33 = vpop.eup %1797  ;;  %1817 = vrcp.f32 %v983_v19  ;;  %v986_v38 = vadd.f32 1.0, %v1796_v36 }
 0x159   :  { %v1800_v34 = vpop.eup %1799  ;;  %1819 = vrcp.f32 %v954_v31  ;;  %v953_v39 = vadd.f32 1.0, %v1798_v33 }
 0x15a   :  { %v1802_v41 = vpop.eup %1801  ;;  %1821 = vrcp.f32 %v986_v38  ;;  %v985_v48 = vadd.f32 1.0, %v1800_v34 }
 0x15b   :  { %v1804_v44 = vpop.eup %1803  ;;  %v1171_v52 = vmul.f32 %v1802_v41, %v723_v35  ;;  %1823 = vrcp.f32 %v953_v39 }
 0x15c   :  { %v1806_v47 = vpop.eup %1805  ;;  %v1142_v15 = vmul.f32 %v1804_v44, %v694_v37  ;;  %1825 = vrcp.f32 %v985_v48 }
 0x15d   :  { %v1808_v56 = vpop.eup %1807  ;;  %1235 = vst [vmem:[%s2718_s3 + $0x190] sm:$0xff] %v1171_v52  ;;  %v1174_v10 = vmul.f32 %v1806_v47, %v726_v42  ;;  %1827 = vpow2.f32 %v1345_v46 }
 0x15e   :  { %v1810_v0 = vpop.eup %1809  ;;  %1206 = vst [vmem:[%s2718_s3 + $0xa8] sm:$0xff] %v1142_v15  ;;  %v1141_v1 = vmul.f32 %v1808_v56, %v693_v53  ;;  %1829 = vpow2.f32 %v1377_v49  ;;  %v732_v15 = vld [vmem:[%s2717_s1 + $0x1d8] sm:$0xff]  ;;  %v699_v56 = vld [vmem:[%s2717_s1 + $0xd0] sm:$0xff] }
 0x15f   :  { %v1812_v55 = vpop.eup %1811  ;;  %1238 = vst [vmem:[%s2718_s3 + $0x1a8] sm:$0xff] %v1174_v10  ;;  %v1173_v5 = vmul.f32 %v1810_v0, %v725_v59  ;;  %1831 = vpow2.f32 %v1344_v54  ;;  %v700_v54 = vld [vmem:[%s2717_s1 + $0xd8] sm:$0xff] }
 0x160   :  { %v1814_v4 = vpop.eup %1813  ;;  %1205 = vst [vmem:[%s2718_s3 + $0xa0] sm:$0xff] %v1141_v1  ;;  %v1144_v58 = vmul.f32 %v1812_v55, %v696_v50  ;;  %1833 = vpow2.f32 %v1376_v60 }
 0x161   :  { %v1816_v62 = vpop.eup %1815  ;;  %1237 = vst [vmem:[%s2718_s3 + $0x1a0] sm:$0xff] %v1173_v5  ;;  %v1176_v11 = vmul.f32 %v1814_v4, %v728_v24  ;;  %1835 = vpow2.f32 %v1347_v23  ;;  %v731_v23 = vld [vmem:[%s2717_s1 + $0x1d0] sm:$0xff]  ;;  %v702_v24 = vld [vmem:[%s2717_s1 + $0xe8] sm:$0xff]  ;;  %v701_v4 = vld [vmem:[%s2717_s1 + $0xe0] sm:$0xff] }
 0x162   :  { %v1818_v7 = vpop.eup %1817  ;;  %1208 = vst [vmem:[%s2718_s3 + $0xb8] sm:$0xff] %v1144_v58  ;;  %v1143_v3 = vmul.f32 %v1816_v62, %v695_v40  ;;  %1837 = vpow2.f32 %v1379_v2  ;;  %v734_v5 = vld [vmem:[%s2717_s1 + $0x1e8] sm:$0xff] }
 0x163   :  { %v1820_v21 = vpop.eup %1819  ;;  %1240 = vst [vmem:[%s2718_s3 + $0x1b8] sm:$0xff] %v1176_v11  ;;  %v1175_v16 = vmul.f32 %v1818_v7, %v727_v45  ;;  %1839 = vpow2.f32 %v1346_v57 }
 0x164   :  { %v1822_v25 = vpop.eup %1821  ;;  %1207 = vst [vmem:[%s2718_s3 + $0xb0] sm:$0xff] %v1143_v3  ;;  %v1146_v13 = vmul.f32 %v1820_v21, %v698_v51  ;;  %1841 = vpow2.f32 %v1378_v9  ;;  %v733_v9 = vld [vmem:[%s2717_s1 + $0x1e0] sm:$0xff]  ;;  %v704_v51 = vld [vmem:[%s2717_s1 + $0xf8] sm:$0xff]  ;;  %v703_v21 = vld [vmem:[%s2717_s1 + $0xf0] sm:$0xff] }
 0x165   :  { %v1824_v27 = vpop.eup %1823  ;;  %1239 = vst [vmem:[%s2718_s3 + $0x1b0] sm:$0xff] %v1175_v16  ;;  %v1178_v20 = vmul.f32 %v1822_v25, %v730_v43  ;;  %1843 = vpow2.f32 %v1349_v61  ;;  %v736_v3 = vld [vmem:[%s2717_s1 + $0x1f8] sm:$0xff] }
 0x166   :  { %v1826_v12 = vpop.eup %1825  ;;  %1210 = vst [vmem:[%s2718_s3 + $0xc8] sm:$0xff] %v1146_v13  ;;  %v1145_v29 = vmul.f32 %v1824_v27, %v697_v6  ;;  %1845 = vpow2.f32 %v1381_v18 }
 0x167   :  { %v1828_v30 = vpop.eup %1827  ;;  %1242 = vst [vmem:[%s2718_s3 + $0x1c8] sm:$0xff] %v1178_v20  ;;  %v1177_v63 = vmul.f32 %v1826_v12, %v729_v8  ;;  %1847 = vpow2.f32 %v1348_v22  ;;  %v735_v22 = vld [vmem:[%s2717_s1 + $0x1f0] sm:$0xff] }
 0x168   :  { %v1830_v14 = vpop.eup %1829  ;;  %1209 = vst [vmem:[%s2718_s3 + $0xc0] sm:$0xff] %v1145_v29  ;;  %v956_v26 = vadd.f32 1.0, %v1828_v30  ;;  %1849 = vpow2.f32 %v1380_v17 }
 0x169   :  { %v1832_v32 = vpop.eup %1831  ;;  %1241 = vst [vmem:[%s2718_s3 + $0x1c0] sm:$0xff] %v1177_v63  ;;  %v988_v28 = vadd.f32 1.0, %v1830_v14 }
 0x16a   :  { %v1834_v19 = vpop.eup %1833  ;;  %1851 = vrcp.f32 %v956_v26  ;;  %v955_v36 = vadd.f32 1.0, %v1832_v32 }
 0x16b   :  { %v1836_v31 = vpop.eup %1835  ;;  %1853 = vrcp.f32 %v988_v28  ;;  %v987_v33 = vadd.f32 1.0, %v1834_v19 }
 0x16c   :  { %v1838_v35 = vpop.eup %1837  ;;  %1855 = vrcp.f32 %v955_v36  ;;  %v958_v38 = vadd.f32 1.0, %v1836_v31 }
 0x16d   :  { %v1840_v34 = vpop.eup %1839  ;;  %1857 = vrcp.f32 %v987_v33  ;;  %v990_v37 = vadd.f32 1.0, %v1838_v35 }
 0x16e   :  { %v1842_v39 = vpop.eup %1841  ;;  %1859 = vrcp.f32 %v958_v38  ;;  %v957_v46 = vadd.f32 1.0, %v1840_v34 }
 0x16f   :  { %v1844_v41 = vpop.eup %1843  ;;  %1861 = vrcp.f32 %v990_v37  ;;  %v989_v42 = vadd.f32 1.0, %v1842_v39 }
 0x170   :  { %v1846_v48 = vpop.eup %1845  ;;  %1863 = vrcp.f32 %v957_v46  ;;  %v960_v49 = vadd.f32 1.0, %v1844_v41 }
 0x171   :  { %v1848_v44 = vpop.eup %1847  ;;  %1865 = vrcp.f32 %v989_v42  ;;  %v992_v52 = vadd.f32 1.0, %v1846_v48 }
 0x172   :  { %v1850_v53 = vpop.eup %1849  ;;  %1867 = vrcp.f32 %v960_v49  ;;  %v959_v47 = vadd.f32 1.0, %v1848_v44 }
 0x173   :  { %1869 = vrcp.f32 %v992_v52  ;;  %v991_v59 = vadd.f32 1.0, %v1850_v53 }
 0x174   :  { %v1852_v60 = vpop.eup %1851  ;;  %1871 = vrcp.f32 %v959_v47 }
 0x175   :  { %v1854_v10 = vpop.eup %1853  ;;  %v1148_v50 = vmul.f32 %v1852_v60, %v700_v54  ;;  %1873 = vrcp.f32 %v991_v59 }
 0x176   :  { %v1856_v0 = vpop.eup %1855  ;;  %v1180_v1 = vmul.f32 %v1854_v10, %v732_v15 }
 0x177   :  { %v1858_v2 = vpop.eup %1857  ;;  %1212 = vst [vmem:[%s2718_s3 + $0xd8] sm:$0xff] %v1148_v50  ;;  %v1147_v55 = vmul.f32 %v1856_v0, %v699_v56 }
 0x178   :  { %v1860_v40 = vpop.eup %1859  ;;  %1244 = vst [vmem:[%s2718_s3 + $0x1d8] sm:$0xff] %v1180_v1  ;;  %v1179_v57 = vmul.f32 %v1858_v2, %v731_v23 }
 0x179   :  { %v1862_v58 = vpop.eup %1861  ;;  %1211 = vst [vmem:[%s2718_s3 + $0xd0] sm:$0xff] %v1147_v55  ;;  %v1150_v45 = vmul.f32 %v1860_v40, %v702_v24 }
 0x17a   :  { %v1864_v62 = vpop.eup %1863  ;;  %1243 = vst [vmem:[%s2718_s3 + $0x1d0] sm:$0xff] %v1179_v57  ;;  %v1182_v11 = vmul.f32 %v1862_v58, %v734_v5 }
 0x17b   :  { %v1866_v61 = vpop.eup %1865  ;;  %1214 = vst [vmem:[%s2718_s3 + $0xe8] sm:$0xff] %v1150_v45  ;;  %v1149_v7 = vmul.f32 %v1864_v62, %v701_v4 }
 0x17c   :  { %v1868_v43 = vpop.eup %1867  ;;  %1246 = vst [vmem:[%s2718_s3 + $0x1e8] sm:$0xff] %v1182_v11  ;;  %v1181_v18 = vmul.f32 %v1866_v61, %v733_v9 }
 0x17d   :  { %v1870_v16 = vpop.eup %1869  ;;  %1213 = vst [vmem:[%s2718_s3 + $0xe0] sm:$0xff] %v1149_v7  ;;  %v1152_v6 = vmul.f32 %v1868_v43, %v704_v51 }
 0x17e   :  { %v1872_v25 = vpop.eup %1871  ;;  %1245 = vst [vmem:[%s2718_s3 + $0x1e0] sm:$0xff] %v1181_v18  ;;  %v1184_v13 = vmul.f32 %v1870_v16, %v736_v3 }
 0x17f   :  { %v1874_v8 = vpop.eup %1873  ;;  %1216 = vst [vmem:[%s2718_s3 + $0xf8] sm:$0xff] %v1152_v6  ;;  %v1151_v17 = vmul.f32 %v1872_v25, %v703_v21 }
 0x180   :  { %1248 = vst [vmem:[%s2718_s3 + $0x1f8] sm:$0xff] %v1184_v13  ;;  %v1183_v27 = vmul.f32 %v1874_v8, %v735_v22 }
 0x181   :  { %1215 = vst [vmem:[%s2718_s3 + $0xf0] sm:$0xff] %v1151_v17 }
 0x182   :  { %1247 = vst [vmem:[%s2718_s3 + $0x1f0] sm:$0xff] %v1183_v27 }

// kernel: hagca2_forward.14
= control target key start
LH: loop header
LB: loop body
LE: loop exit
PB: predicated region body
PF: predicated region fallthrough
CT: control target
= control target key end

     0   :  { %vm86_vm0 = vcmask 64512   ;;  %s1502_s1 = inlined_call_operand.vmem [shape: f32[8,128], index: 1, kind: input, shape index: {}]   ;;  %s1503_s0 = inlined_call_operand.vmem [shape: f32[512,8], index: 0, kind: input, shape index: {}]   ;;  %s1504_s2 = inlined_call_operand.vmem [shape: f32[1,128], index: 2, kind: input, shape index: {}]   ;;  %s1505_s3 = inlined_call_operand.vmem [shape: f32[512,128], index: 3, kind: output, shape index: {}]  }
   0x1   :  { %v78_v0 = vld [vmem:[%s1502_s1] sm:$0xff]  ;;  %v15_v3 = vld [vmem:[%s1503_s0 + $0x8] sm:$0xff]  ;;  %v16_v5 = vld [vmem:[%s1503_s0 + $0x10] sm:$0xff] }
   0x2   :  { %v14_v1 = vld [vmem:[%s1503_s0] sm:$0xff]  ;;  %862 = vmatprep.subr.mxu0 %v78_v0  ;;  %960 = vmatprep.subr.mxu1 %v78_v0  ;;  %v47_v4 = vld [vmem:[%s1503_s0 + $0x108] sm:$0xff]  ;;  %v48_v6 = vld [vmem:[%s1503_s0 + $0x110] sm:$0xff] }
   0x3   :  { %v46_v2 = vld [vmem:[%s1503_s0 + $0x100] sm:$0xff]  ;;  %863 = vmatpush3.msra.mxu0 %v78_v0  ;;  %961 = vmatpush3.msra.mxu1 %v78_v0  ;;  %v17_v7 = vld [vmem:[%s1503_s0 + $0x18] sm:$0xff]  ;;  %v19_v11 = vld [vmem:[%s1503_s0 + $0x28] sm:$0xff] }
   0x4   :  { %864 = vmatprep.mubr.msk.f32.mxu0 %vm86_vm0, %v14_v1  ;;  %912 = vmatprep.mubr.msk.f32.mxu1 %vm86_vm0, %v46_v2  ;;  %v49_v8 = vld [vmem:[%s1503_s0 + $0x118] sm:$0xff]  ;;  %v18_v9 = vld [vmem:[%s1503_s0 + $0x20] sm:$0xff]  ;;  %v51_v12 = vld [vmem:[%s1503_s0 + $0x128] sm:$0xff] }
   0x5   :  { %865 = vmatmul.mubr.msk.f32.vlgmr.msra.gmra.mrb[0].mxu0 %vm86_vm0, %v15_v3  ;;  %913 = vmatmul.mubr.msk.f32.vlgmr.msra.gmra.mrb[0].mxu1 %vm86_vm0, %v47_v4  ;;  %v50_v10 = vld [vmem:[%s1503_s0 + $0x120] sm:$0xff]  ;;  %v20_v13 = vld [vmem:[%s1503_s0 + $0x30] sm:$0xff]  ;;  %v21_v15 = vld [vmem:[%s1503_s0 + $0x38] sm:$0xff] }
   0x6   :  { %867 = vmatprep.mubr.msk.f32.mxu0 %vm86_vm0, %v16_v5  ;;  %915 = vmatprep.mubr.msk.f32.mxu1 %vm86_vm0, %v48_v6  ;;  %v52_v14 = vld [vmem:[%s1503_s0 + $0x130] sm:$0xff]  ;;  %v53_v16 = vld [vmem:[%s1503_s0 + $0x138] sm:$0xff]  ;;  %v22_v17 = vld [vmem:[%s1503_s0 + $0x40] sm:$0xff] }
   0x7   :  { %v54_v18 = vld [vmem:[%s1503_s0 + $0x140] sm:$0xff]  ;;  %v23_v19 = vld [vmem:[%s1503_s0 + $0x48] sm:$0xff]  ;;  %v24_v21 = vld [vmem:[%s1503_s0 + $0x50] sm:$0xff] }
   0x8   :  { %v55_v20 = vld [vmem:[%s1503_s0 + $0x148] sm:$0xff]  ;;  %v56_v22 = vld [vmem:[%s1503_s0 + $0x150] sm:$0xff]  ;;  %v25_v23 = vld [vmem:[%s1503_s0 + $0x58] sm:$0xff] }
   0x9   :  { %868 = vmatmul.mubr.msk.f32.gmra.mrb[2].mxu0 %vm86_vm0, %v17_v7  ;;  %916 = vmatmul.mubr.msk.f32.gmra.mrb[2].mxu1 %vm86_vm0, %v49_v8  ;;  %v57_v24 = vld [vmem:[%s1503_s0 + $0x158] sm:$0xff]  ;;  %v26_v25 = vld [vmem:[%s1503_s0 + $0x60] sm:$0xff]  ;;  %v27_v27 = vld [vmem:[%s1503_s0 + $0x68] sm:$0xff] }
   0xa   :  { %870 = vmatprep.mubr.msk.f32.mxu0 %vm86_vm0, %v18_v9  ;;  %918 = vmatprep.mubr.msk.f32.mxu1 %vm86_vm0, %v50_v10  ;;  %v58_v26 = vld [vmem:[%s1503_s0 + $0x160] sm:$0xff]  ;;  %v59_v28 = vld [vmem:[%s1503_s0 + $0x168] sm:$0xff]  ;;  %v28_v29 = vld [vmem:[%s1503_s0 + $0x70] sm:$0xff] }
   0xb   :  { %v60_v30 = vld [vmem:[%s1503_s0 + $0x170] sm:$0xff]  ;;  %v29_v31 = vld [vmem:[%s1503_s0 + $0x78] sm:$0xff]  ;;  %v30_v33 = vld [vmem:[%s1503_s0 + $0x80] sm:$0xff] }
   0xc   :  { %v61_v32 = vld [vmem:[%s1503_s0 + $0x178] sm:$0xff]  ;;  %v62_v34 = vld [vmem:[%s1503_s0 + $0x180] sm:$0xff]  ;;  %v31_v35 = vld [vmem:[%s1503_s0 + $0x88] sm:$0xff] }
   0xd   :  { %871 = vmatmul.mubr.msk.f32.gmra.mrb[4].mxu0 %vm86_vm0, %v19_v11  ;;  %919 = vmatmul.mubr.msk.f32.gmra.mrb[4].mxu1 %vm86_vm0, %v51_v12  ;;  %v63_v36 = vld [vmem:[%s1503_s0 + $0x188] sm:$0xff]  ;;  %v32_v37 = vld [vmem:[%s1503_s0 + $0x90] sm:$0xff]  ;;  %v33_v39 = vld [vmem:[%s1503_s0 + $0x98] sm:$0xff] }
   0xe   :  { %873 = vmatprep.mubr.msk.f32.mxu0 %vm86_vm0, %v20_v13  ;;  %921 = vmatprep.mubr.msk.f32.mxu1 %vm86_vm0, %v52_v14  ;;  %v64_v38 = vld [vmem:[%s1503_s0 + $0x190] sm:$0xff]  ;;  %v65_v40 = vld [vmem:[%s1503_s0 + $0x198] sm:$0xff]  ;;  %v34_v41 = vld [vmem:[%s1503_s0 + $0xa0] sm:$0xff] }
   0xf   :  { %v66_v42 = vld [vmem:[%s1503_s0 + $0x1a0] sm:$0xff]  ;;  %v35_v43 = vld [vmem:[%s1503_s0 + $0xa8] sm:$0xff]  ;;  %v36_v45 = vld [vmem:[%s1503_s0 + $0xb0] sm:$0xff] }
  0x10   :  { %v67_v44 = vld [vmem:[%s1503_s0 + $0x1a8] sm:$0xff]  ;;  %v68_v46 = vld [vmem:[%s1503_s0 + $0x1b0] sm:$0xff]  ;;  %v37_v47 = vld [vmem:[%s1503_s0 + $0xb8] sm:$0xff] }
  0x11   :  { %874 = vmatmul.mubr.msk.f32.gmra.mrb[6].mxu0 %vm86_vm0, %v21_v15  ;;  %922 = vmatmul.mubr.msk.f32.gmra.mrb[6].mxu1 %vm86_vm0, %v53_v16  ;;  %v69_v48 = vld [vmem:[%s1503_s0 + $0x1b8] sm:$0xff]  ;;  %v38_v49 = vld [vmem:[%s1503_s0 + $0xc0] sm:$0xff]  ;;  %v39_v51 = vld [vmem:[%s1503_s0 + $0xc8] sm:$0xff] }
  0x12   :  { %876 = vmatprep.mubr.msk.f32.mxu0 %vm86_vm0, %v22_v17  ;;  %924 = vmatprep.mubr.msk.f32.mxu1 %vm86_vm0, %v54_v18  ;;  %v70_v50 = vld [vmem:[%s1503_s0 + $0x1c0] sm:$0xff]  ;;  %v71_v52 = vld [vmem:[%s1503_s0 + $0x1c8] sm:$0xff]  ;;  %v40_v53 = vld [vmem:[%s1503_s0 + $0xd0] sm:$0xff] }
  0x13   :  { %v72_v54 = vld [vmem:[%s1503_s0 + $0x1d0] sm:$0xff]  ;;  %v41_v55 = vld [vmem:[%s1503_s0 + $0xd8] sm:$0xff]  ;;  %v42_v57 = vld [vmem:[%s1503_s0 + $0xe0] sm:$0xff] }
  0x14   :  { %v73_v56 = vld [vmem:[%s1503_s0 + $0x1d8] sm:$0xff]  ;;  %v74_v58 = vld [vmem:[%s1503_s0 + $0x1e0] sm:$0xff]  ;;  %v43_v59 = vld [vmem:[%s1503_s0 + $0xe8] sm:$0xff] }
  0x15   :  { %877 = vmatmul.mubr.msk.f32.gmra.mrb[8].mxu0 %vm86_vm0, %v23_v19  ;;  %925 = vmatmul.mubr.msk.f32.gmra.mrb[8].mxu1 %vm86_vm0, %v55_v20  ;;  %v75_v60 = vld [vmem:[%s1503_s0 + $0x1e8] sm:$0xff]  ;;  %v44_v61 = vld [vmem:[%s1503_s0 + $0xf0] sm:$0xff]  ;;  %v45_v63 = vld [vmem:[%s1503_s0 + $0xf8] sm:$0xff] }
  0x16   :  { %879 = vmatprep.mubr.msk.f32.mxu0 %vm86_vm0, %v24_v21  ;;  %927 = vmatprep.mubr.msk.f32.mxu1 %vm86_vm0, %v56_v22  ;;  %v76_v62 = vld [vmem:[%s1503_s0 + $0x1f0] sm:$0xff]  ;;  %v77_v0 = vld [vmem:[%s1503_s0 + $0x1f8] sm:$0xff]  ;;  %v1244_v1 = vld [vmem:[%s1504_s2] ss:$0 sm:$0xff] }
  0x19   :  { %880 = vmatmul.mubr.msk.f32.gmra.mrb[10].mxu0 %vm86_vm0, %v25_v23  ;;  %928 = vmatmul.mubr.msk.f32.gmra.mrb[10].mxu1 %vm86_vm0, %v57_v24 }
  0x1a   :  { %882 = vmatprep.mubr.msk.f32.mxu0 %vm86_vm0, %v26_v25  ;;  %930 = vmatprep.mubr.msk.f32.mxu1 %vm86_vm0, %v58_v26 }
  0x1d   :  { %883 = vmatmul.mubr.msk.f32.gmra.mrb[12].mxu0 %vm86_vm0, %v27_v27  ;;  %931 = vmatmul.mubr.msk.f32.gmra.mrb[12].mxu1 %vm86_vm0, %v59_v28 }
  0x1e   :  { %885 = vmatprep.mubr.msk.f32.mxu0 %vm86_vm0, %v28_v29  ;;  %933 = vmatprep.mubr.msk.f32.mxu1 %vm86_vm0, %v60_v30 }
  0x21   :  { %886 = vmatmul.mubr.msk.f32.gmra.mrb[14].mxu0 %vm86_vm0, %v29_v31  ;;  %934 = vmatmul.mubr.msk.f32.gmra.mrb[14].mxu1 %vm86_vm0, %v61_v32 }
  0x22   :  { %888 = vmatprep.mubr.msk.f32.mxu0 %vm86_vm0, %v30_v33  ;;  %936 = vmatprep.mubr.msk.f32.mxu1 %vm86_vm0, %v62_v34 }
  0x25   :  { %889 = vmatmul.mubr.msk.f32.gmra.mrb[16].mxu0 %vm86_vm0, %v31_v35  ;;  %937 = vmatmul.mubr.msk.f32.gmra.mrb[16].mxu1 %vm86_vm0, %v63_v36 }
  0x26   :  { %891 = vmatprep.mubr.msk.f32.mxu0 %vm86_vm0, %v32_v37  ;;  %939 = vmatprep.mubr.msk.f32.mxu1 %vm86_vm0, %v64_v38 }
  0x29   :  { %892 = vmatmul.mubr.msk.f32.gmra.mrb[18].mxu0 %vm86_vm0, %v33_v39  ;;  %940 = vmatmul.mubr.msk.f32.gmra.mrb[18].mxu1 %vm86_vm0, %v65_v40 }
  0x2a   :  { %894 = vmatprep.mubr.msk.f32.mxu0 %vm86_vm0, %v34_v41  ;;  %942 = vmatprep.mubr.msk.f32.mxu1 %vm86_vm0, %v66_v42 }
  0x2d   :  { %895 = vmatmul.mubr.msk.f32.gmra.mrb[20].mxu0 %vm86_vm0, %v35_v43  ;;  %943 = vmatmul.mubr.msk.f32.gmra.mrb[20].mxu1 %vm86_vm0, %v67_v44 }
  0x2e   :  { %897 = vmatprep.mubr.msk.f32.mxu0 %vm86_vm0, %v36_v45  ;;  %945 = vmatprep.mubr.msk.f32.mxu1 %vm86_vm0, %v68_v46 }
  0x31   :  { %898 = vmatmul.mubr.msk.f32.gmra.mrb[22].mxu0 %vm86_vm0, %v37_v47  ;;  %946 = vmatmul.mubr.msk.f32.gmra.mrb[22].mxu1 %vm86_vm0, %v69_v48 }
  0x32   :  { %900 = vmatprep.mubr.msk.f32.mxu0 %vm86_vm0, %v38_v49  ;;  %948 = vmatprep.mubr.msk.f32.mxu1 %vm86_vm0, %v70_v50 }
  0x35   :  { %901 = vmatmul.mubr.msk.f32.gmra.mrb[24].mxu0 %vm86_vm0, %v39_v51  ;;  %949 = vmatmul.mubr.msk.f32.gmra.mrb[24].mxu1 %vm86_vm0, %v71_v52 }
  0x36   :  { %903 = vmatprep.mubr.msk.f32.mxu0 %vm86_vm0, %v40_v53  ;;  %951 = vmatprep.mubr.msk.f32.mxu1 %vm86_vm0, %v72_v54 }
  0x39   :  { %904 = vmatmul.mubr.msk.f32.gmra.mrb[26].mxu0 %vm86_vm0, %v41_v55  ;;  %952 = vmatmul.mubr.msk.f32.gmra.mrb[26].mxu1 %vm86_vm0, %v73_v56 }
  0x3a   :  { %906 = vmatprep.mubr.msk.f32.mxu0 %vm86_vm0, %v42_v57  ;;  %954 = vmatprep.mubr.msk.f32.mxu1 %vm86_vm0, %v74_v58 }
  0x3d   :  { %907 = vmatmul.mubr.msk.f32.gmra.mrb[28].mxu0 %vm86_vm0, %v43_v59  ;;  %955 = vmatmul.mubr.msk.f32.gmra.mrb[28].mxu1 %vm86_vm0, %v75_v60 }
  0x3e   :  { %909 = vmatprep.mubr.msk.f32.mxu0 %vm86_vm0, %v44_v61  ;;  %957 = vmatprep.mubr.msk.f32.mxu1 %vm86_vm0, %v76_v62 }
  0x41   :  { %910 = vmatmul.mubr.msk.f32.gmra.mrb[30].mxu0 %vm86_vm0, %v45_v63  ;;  %958 = vmatmul.mubr.msk.f32.gmra.mrb[30].mxu1 %vm86_vm0, %v77_v0 }
  0xd8   :  { %v866_v2 = vpop.f32.mrb[0].mxu0  ;;  %v914_v3 = vpop.f32.mrb[0].mxu1 }
  0xd9   :  { %v351_v4 = vadd.f32 %v866_v2, %v1244_v1  ;;  %v511_v5 = vadd.f32 %v914_v3, %v1244_v1  ;;  %v345_v6 = vpop.f32.mrb[1].mxu0  ;;  %v505_v7 = vpop.f32.mrb[1].mxu1 }
  0xda   :  { %v346_v8 = vadd.f32 %v1244_v1, %v345_v6  ;;  %v506_v9 = vadd.f32 %v1244_v1, %v505_v7 }
  0xdb   :  { %665 = vst [vmem:[%s1505_s3 + $0x8] sm:$0xff] %v351_v4  ;;  %697 = vst [vmem:[%s1505_s3 + $0x108] sm:$0xff] %v511_v5 }
  0xdc   :  { %664 = vst [vmem:[%s1505_s3] sm:$0xff] %v346_v8  ;;  %696 = vst [vmem:[%s1505_s3 + $0x100] sm:$0xff] %v506_v9  ;;  %v869_v10 = vpop.f32.mrb[2].mxu0  ;;  %v917_v11 = vpop.f32.mrb[2].mxu1 }
  0xdd   :  { %v361_v12 = vadd.f32 %v869_v10, %v1244_v1  ;;  %v521_v13 = vadd.f32 %v917_v11, %v1244_v1  ;;  %v355_v14 = vpop.f32.mrb[3].mxu0  ;;  %v515_v15 = vpop.f32.mrb[3].mxu1 }
  0xde   :  { %v356_v16 = vadd.f32 %v1244_v1, %v355_v14  ;;  %v516_v17 = vadd.f32 %v1244_v1, %v515_v15 }
  0xdf   :  { %667 = vst [vmem:[%s1505_s3 + $0x18] sm:$0xff] %v361_v12  ;;  %699 = vst [vmem:[%s1505_s3 + $0x118] sm:$0xff] %v521_v13 }
  0xe0   :  { %666 = vst [vmem:[%s1505_s3 + $0x10] sm:$0xff] %v356_v16  ;;  %698 = vst [vmem:[%s1505_s3 + $0x110] sm:$0xff] %v516_v17  ;;  %v872_v18 = vpop.f32.mrb[4].mxu0  ;;  %v920_v19 = vpop.f32.mrb[4].mxu1 }
  0xe1   :  { %v371_v20 = vadd.f32 %v872_v18, %v1244_v1  ;;  %v531_v21 = vadd.f32 %v920_v19, %v1244_v1  ;;  %v365_v22 = vpop.f32.mrb[5].mxu0  ;;  %v525_v23 = vpop.f32.mrb[5].mxu1 }
  0xe2   :  { %v366_v24 = vadd.f32 %v1244_v1, %v365_v22  ;;  %v526_v25 = vadd.f32 %v1244_v1, %v525_v23 }
  0xe3   :  { %669 = vst [vmem:[%s1505_s3 + $0x28] sm:$0xff] %v371_v20  ;;  %701 = vst [vmem:[%s1505_s3 + $0x128] sm:$0xff] %v531_v21 }
  0xe4   :  { %668 = vst [vmem:[%s1505_s3 + $0x20] sm:$0xff] %v366_v24  ;;  %700 = vst [vmem:[%s1505_s3 + $0x120] sm:$0xff] %v526_v25  ;;  %v875_v26 = vpop.f32.mrb[6].mxu0  ;;  %v923_v27 = vpop.f32.mrb[6].mxu1 }
  0xe5   :  { %v381_v28 = vadd.f32 %v875_v26, %v1244_v1  ;;  %v541_v29 = vadd.f32 %v923_v27, %v1244_v1  ;;  %v375_v30 = vpop.f32.mrb[7].mxu0  ;;  %v535_v31 = vpop.f32.mrb[7].mxu1 }
  0xe6   :  { %v376_v32 = vadd.f32 %v1244_v1, %v375_v30  ;;  %v536_v33 = vadd.f32 %v1244_v1, %v535_v31 }
  0xe7   :  { %671 = vst [vmem:[%s1505_s3 + $0x38] sm:$0xff] %v381_v28  ;;  %703 = vst [vmem:[%s1505_s3 + $0x138] sm:$0xff] %v541_v29 }
  0xe8   :  { %670 = vst [vmem:[%s1505_s3 + $0x30] sm:$0xff] %v376_v32  ;;  %702 = vst [vmem:[%s1505_s3 + $0x130] sm:$0xff] %v536_v33  ;;  %v878_v34 = vpop.f32.mrb[8].mxu0  ;;  %v926_v35 = vpop.f32.mrb[8].mxu1 }
  0xe9   :  { %v391_v36 = vadd.f32 %v878_v34, %v1244_v1  ;;  %v551_v37 = vadd.f32 %v926_v35, %v1244_v1  ;;  %v385_v38 = vpop.f32.mrb[9].mxu0  ;;  %v545_v39 = vpop.f32.mrb[9].mxu1 }
  0xea   :  { %v386_v40 = vadd.f32 %v1244_v1, %v385_v38  ;;  %v546_v41 = vadd.f32 %v1244_v1, %v545_v39 }
  0xeb   :  { %673 = vst [vmem:[%s1505_s3 + $0x48] sm:$0xff] %v391_v36  ;;  %705 = vst [vmem:[%s1505_s3 + $0x148] sm:$0xff] %v551_v37 }
  0xec   :  { %672 = vst [vmem:[%s1505_s3 + $0x40] sm:$0xff] %v386_v40  ;;  %704 = vst [vmem:[%s1505_s3 + $0x140] sm:$0xff] %v546_v41  ;;  %v881_v42 = vpop.f32.mrb[10].mxu0  ;;  %v929_v43 = vpop.f32.mrb[10].mxu1 }
  0xed   :  { %v401_v44 = vadd.f32 %v881_v42, %v1244_v1  ;;  %v561_v45 = vadd.f32 %v929_v43, %v1244_v1  ;;  %v395_v46 = vpop.f32.mrb[11].mxu0  ;;  %v555_v47 = vpop.f32.mrb[11].mxu1 }
  0xee   :  { %v396_v48 = vadd.f32 %v1244_v1, %v395_v46  ;;  %v556_v49 = vadd.f32 %v1244_v1, %v555_v47 }
  0xef   :  { %675 = vst [vmem:[%s1505_s3 + $0x58] sm:$0xff] %v401_v44  ;;  %707 = vst [vmem:[%s1505_s3 + $0x158] sm:$0xff] %v561_v45 }
  0xf0   :  { %674 = vst [vmem:[%s1505_s3 + $0x50] sm:$0xff] %v396_v48  ;;  %706 = vst [vmem:[%s1505_s3 + $0x150] sm:$0xff] %v556_v49  ;;  %v884_v50 = vpop.f32.mrb[12].mxu0  ;;  %v932_v51 = vpop.f32.mrb[12].mxu1 }
  0xf1   :  { %v411_v52 = vadd.f32 %v884_v50, %v1244_v1  ;;  %v571_v53 = vadd.f32 %v932_v51, %v1244_v1  ;;  %v405_v54 = vpop.f32.mrb[13].mxu0  ;;  %v565_v55 = vpop.f32.mrb[13].mxu1 }
  0xf2   :  { %v406_v56 = vadd.f32 %v1244_v1, %v405_v54  ;;  %v566_v57 = vadd.f32 %v1244_v1, %v565_v55 }
  0xf3   :  { %677 = vst [vmem:[%s1505_s3 + $0x68] sm:$0xff] %v411_v52  ;;  %709 = vst [vmem:[%s1505_s3 + $0x168] sm:$0xff] %v571_v53 }
  0xf4   :  { %676 = vst [vmem:[%s1505_s3 + $0x60] sm:$0xff] %v406_v56  ;;  %708 = vst [vmem:[%s1505_s3 + $0x160] sm:$0xff] %v566_v57  ;;  %v887_v58 = vpop.f32.mrb[14].mxu0  ;;  %v935_v59 = vpop.f32.mrb[14].mxu1 }
  0xf5   :  { %v421_v60 = vadd.f32 %v887_v58, %v1244_v1  ;;  %v581_v61 = vadd.f32 %v935_v59, %v1244_v1  ;;  %v415_v62 = vpop.f32.mrb[15].mxu0  ;;  %v575_v63 = vpop.f32.mrb[15].mxu1 }
  0xf6   :  { %v416_v0 = vadd.f32 %v1244_v1, %v415_v62  ;;  %v576_v2 = vadd.f32 %v1244_v1, %v575_v63 }
  0xf7   :  { %679 = vst [vmem:[%s1505_s3 + $0x78] sm:$0xff] %v421_v60  ;;  %711 = vst [vmem:[%s1505_s3 + $0x178] sm:$0xff] %v581_v61 }
  0xf8   :  { %678 = vst [vmem:[%s1505_s3 + $0x70] sm:$0xff] %v416_v0  ;;  %710 = vst [vmem:[%s1505_s3 + $0x170] sm:$0xff] %v576_v2  ;;  %v890_v3 = vpop.f32.mrb[16].mxu0  ;;  %v938_v4 = vpop.f32.mrb[16].mxu1 }
  0xf9   :  { %v431_v5 = vadd.f32 %v890_v3, %v1244_v1  ;;  %v591_v6 = vadd.f32 %v938_v4, %v1244_v1  ;;  %v425_v7 = vpop.f32.mrb[17].mxu0  ;;  %v585_v8 = vpop.f32.mrb[17].mxu1 }
  0xfa   :  { %v426_v9 = vadd.f32 %v1244_v1, %v425_v7  ;;  %v586_v10 = vadd.f32 %v1244_v1, %v585_v8 }
  0xfb   :  { %681 = vst [vmem:[%s1505_s3 + $0x88] sm:$0xff] %v431_v5  ;;  %713 = vst [vmem:[%s1505_s3 + $0x188] sm:$0xff] %v591_v6 }
  0xfc   :  { %680 = vst [vmem:[%s1505_s3 + $0x80] sm:$0xff] %v426_v9  ;;  %712 = vst [vmem:[%s1505_s3 + $0x180] sm:$0xff] %v586_v10  ;;  %v893_v11 = vpop.f32.mrb[18].mxu0  ;;  %v941_v12 = vpop.f32.mrb[18].mxu1 }
  0xfd   :  { %v441_v13 = vadd.f32 %v893_v11, %v1244_v1  ;;  %v601_v14 = vadd.f32 %v941_v12, %v1244_v1  ;;  %v435_v15 = vpop.f32.mrb[19].mxu0  ;;  %v595_v16 = vpop.f32.mrb[19].mxu1 }
  0xfe   :  { %v436_v17 = vadd.f32 %v1244_v1, %v435_v15  ;;  %v596_v18 = vadd.f32 %v1244_v1, %v595_v16 }
  0xff   :  { %683 = vst [vmem:[%s1505_s3 + $0x98] sm:$0xff] %v441_v13  ;;  %715 = vst [vmem:[%s1505_s3 + $0x198] sm:$0xff] %v601_v14 }
 0x100   :  { %682 = vst [vmem:[%s1505_s3 + $0x90] sm:$0xff] %v436_v17  ;;  %714 = vst [vmem:[%s1505_s3 + $0x190] sm:$0xff] %v596_v18  ;;  %v896_v19 = vpop.f32.mrb[20].mxu0  ;;  %v944_v20 = vpop.f32.mrb[20].mxu1 }
 0x101   :  { %v451_v21 = vadd.f32 %v896_v19, %v1244_v1  ;;  %v611_v22 = vadd.f32 %v944_v20, %v1244_v1  ;;  %v445_v23 = vpop.f32.mrb[21].mxu0  ;;  %v605_v24 = vpop.f32.mrb[21].mxu1 }
 0x102   :  { %v446_v25 = vadd.f32 %v1244_v1, %v445_v23  ;;  %v606_v26 = vadd.f32 %v1244_v1, %v605_v24 }
 0x103   :  { %685 = vst [vmem:[%s1505_s3 + $0xa8] sm:$0xff] %v451_v21  ;;  %717 = vst [vmem:[%s1505_s3 + $0x1a8] sm:$0xff] %v611_v22 }
 0x104   :  { %684 = vst [vmem:[%s1505_s3 + $0xa0] sm:$0xff] %v446_v25  ;;  %716 = vst [vmem:[%s1505_s3 + $0x1a0] sm:$0xff] %v606_v26  ;;  %v899_v27 = vpop.f32.mrb[22].mxu0  ;;  %v947_v28 = vpop.f32.mrb[22].mxu1 }
 0x105   :  { %v461_v29 = vadd.f32 %v899_v27, %v1244_v1  ;;  %v621_v30 = vadd.f32 %v947_v28, %v1244_v1  ;;  %v455_v31 = vpop.f32.mrb[23].mxu0  ;;  %v615_v32 = vpop.f32.mrb[23].mxu1 }
 0x106   :  { %v456_v33 = vadd.f32 %v1244_v1, %v455_v31  ;;  %v616_v34 = vadd.f32 %v1244_v1, %v615_v32 }
 0x107   :  { %687 = vst [vmem:[%s1505_s3 + $0xb8] sm:$0xff] %v461_v29  ;;  %719 = vst [vmem:[%s1505_s3 + $0x1b8] sm:$0xff] %v621_v30 }
 0x108   :  { %686 = vst [vmem:[%s1505_s3 + $0xb0] sm:$0xff] %v456_v33  ;;  %718 = vst [vmem:[%s1505_s3 + $0x1b0] sm:$0xff] %v616_v34  ;;  %v902_v35 = vpop.f32.mrb[24].mxu0  ;;  %v950_v36 = vpop.f32.mrb[24].mxu1 }
 0x109   :  { %v471_v37 = vadd.f32 %v902_v35, %v1244_v1  ;;  %v631_v38 = vadd.f32 %v950_v36, %v1244_v1  ;;  %v465_v39 = vpop.f32.mrb[25].mxu0  ;;  %v625_v40 = vpop.f32.mrb[25].mxu1 }
 0x10a   :  { %v466_v41 = vadd.f32 %v1244_v1, %v465_v39  ;;  %v626_v42 = vadd.f32 %v1244_v1, %v625_v40 }
 0x10b   :  { %689 = vst [vmem:[%s1505_s3 + $0xc8] sm:$0xff] %v471_v37  ;;  %721 = vst [vmem:[%s1505_s3 + $0x1c8] sm:$0xff] %v631_v38 }
 0x10c   :  { %688 = vst [vmem:[%s1505_s3 + $0xc0] sm:$0xff] %v466_v41  ;;  %720 = vst [vmem:[%s1505_s3 + $0x1c0] sm:$0xff] %v626_v42  ;;  %v905_v43 = vpop.f32.mrb[26].mxu0  ;;  %v953_v44 = vpop.f32.mrb[26].mxu1 }
 0x10d   :  { %v481_v45 = vadd.f32 %v905_v43, %v1244_v1  ;;  %v641_v46 = vadd.f32 %v953_v44, %v1244_v1  ;;  %v475_v47 = vpop.f32.mrb[27].mxu0  ;;  %v635_v48 = vpop.f32.mrb[27].mxu1 }
 0x10e   :  { %v476_v49 = vadd.f32 %v1244_v1, %v475_v47  ;;  %v636_v50 = vadd.f32 %v1244_v1, %v635_v48 }
 0x10f   :  { %691 = vst [vmem:[%s1505_s3 + $0xd8] sm:$0xff] %v481_v45  ;;  %723 = vst [vmem:[%s1505_s3 + $0x1d8] sm:$0xff] %v641_v46 }
 0x110   :  { %690 = vst [vmem:[%s1505_s3 + $0xd0] sm:$0xff] %v476_v49  ;;  %722 = vst [vmem:[%s1505_s3 + $0x1d0] sm:$0xff] %v636_v50  ;;  %v908_v51 = vpop.f32.mrb[28].mxu0  ;;  %v956_v52 = vpop.f32.mrb[28].mxu1 }
 0x111   :  { %v491_v53 = vadd.f32 %v908_v51, %v1244_v1  ;;  %v651_v54 = vadd.f32 %v956_v52, %v1244_v1  ;;  %v485_v55 = vpop.f32.mrb[29].mxu0  ;;  %v645_v56 = vpop.f32.mrb[29].mxu1 }
 0x112   :  { %v486_v57 = vadd.f32 %v1244_v1, %v485_v55  ;;  %v646_v58 = vadd.f32 %v1244_v1, %v645_v56 }
 0x113   :  { %693 = vst [vmem:[%s1505_s3 + $0xe8] sm:$0xff] %v491_v53  ;;  %725 = vst [vmem:[%s1505_s3 + $0x1e8] sm:$0xff] %v651_v54 }
 0x114   :  { %692 = vst [vmem:[%s1505_s3 + $0xe0] sm:$0xff] %v486_v57  ;;  %724 = vst [vmem:[%s1505_s3 + $0x1e0] sm:$0xff] %v646_v58  ;;  %v911_v59 = vpop.f32.mrb[30].mxu0  ;;  %v959_v60 = vpop.f32.mrb[30].mxu1 }
 0x115   :  { %v501_v61 = vadd.f32 %v911_v59, %v1244_v1  ;;  %v661_v62 = vadd.f32 %v959_v60, %v1244_v1  ;;  %v495_v63 = vpop.f32.mrb[31].mxu0  ;;  %v655_v0 = vpop.f32.mrb[31].mxu1 }
 0x116   :  { %v496_v2 = vadd.f32 %v1244_v1, %v495_v63  ;;  %v656_v3 = vadd.f32 %v1244_v1, %v655_v0 }
 0x117   :  { %695 = vst [vmem:[%s1505_s3 + $0xf8] sm:$0xff] %v501_v61  ;;  %727 = vst [vmem:[%s1505_s3 + $0x1f8] sm:$0xff] %v661_v62 }
 0x118   :  { %694 = vst [vmem:[%s1505_s3 + $0xf0] sm:$0xff] %v496_v2  ;;  %726 = vst [vmem:[%s1505_s3 + $0x1f0] sm:$0xff] %v656_v3 }

// kernel: hagca2_forward.15
= control target key start
LH: loop header
LB: loop body
LE: loop exit
PB: predicated region body
PF: predicated region fallthrough
CT: control target
= control target key end

     0   :  { %vm88_vm0 = vcmask 195584   ;;  %s1522_s1 = inlined_call_operand.vmem [shape: f32[24,128], index: 1, kind: input, shape index: {}]   ;;  %s1523_s0 = inlined_call_operand.vmem [shape: f32[512,24], index: 0, kind: input, shape index: {}]   ;;  %s1524_s2 = inlined_call_operand.vmem [shape: f32[1,128], index: 2, kind: input, shape index: {}]   ;;  %s1525_s3 = inlined_call_operand.vmem [shape: f32[512,128], index: 3, kind: output, shape index: {}]  }
   0x1   :  { %v78_v0 = vld [vmem:[%s1522_s1] sm:$0xff]  ;;  %v79_v1 = vld [vmem:[%s1522_s1 + $0x8] sm:$0xff]  ;;  %v80_v5 = vld [vmem:[%s1522_s1 + $0x10] sm:$0xff] }
   0x2   :  { %v968_v2 = vpack.c.bf16 %v79_v1, %v78_v0  ;;  %v14_v3 = vld [vmem:[%s1523_s0] sm:$0xff]  ;;  %v15_v6 = vld [vmem:[%s1523_s0 + $0x8] sm:$0xff]  ;;  %v16_v8 = vld [vmem:[%s1523_s0 + $0x10] sm:$0xff] }
   0x3   :  { %v46_v4 = vld [vmem:[%s1523_s0 + $0x100] sm:$0xff]  ;;  %872 = vmatprep.mubr.msk.f32.mxu0 %vm88_vm0, %v14_v3  ;;  %v47_v7 = vld [vmem:[%s1523_s0 + $0x108] sm:$0xff]  ;;  %v48_v9 = vld [vmem:[%s1523_s0 + $0x110] sm:$0xff] }
   0x4   :  { %920 = vmatprep.mubr.msk.f32.mxu1 %vm88_vm0, %v46_v4  ;;  %969 = vmatprep.subr.bf16.mxu0 %v968_v2  ;;  %v17_v10 = vld [vmem:[%s1523_s0 + $0x18] sm:$0xff]  ;;  %v18_v12 = vld [vmem:[%s1523_s0 + $0x20] sm:$0xff]  ;;  %v19_v14 = vld [vmem:[%s1523_s0 + $0x28] sm:$0xff] }
   0x5   :  { %972 = vmatprep.subr.bf16.mxu1 %v968_v2  ;;  %971 = vmatpush3.bf16.msra.mxu0 %v968_v2  ;;  %v49_v11 = vld [vmem:[%s1523_s0 + $0x118] sm:$0xff]  ;;  %v50_v13 = vld [vmem:[%s1523_s0 + $0x120] sm:$0xff]  ;;  %v51_v15 = vld [vmem:[%s1523_s0 + $0x128] sm:$0xff] }
   0x6   :  { %974 = vmatpush3.bf16.msra.mxu1 %v968_v2  ;;  %870 = vmatprep.subr.mxu0 %v80_v5  ;;  %v20_v16 = vld [vmem:[%s1523_s0 + $0x30] sm:$0xff]  ;;  %v21_v18 = vld [vmem:[%s1523_s0 + $0x38] sm:$0xff]  ;;  %v22_v20 = vld [vmem:[%s1523_s0 + $0x40] sm:$0xff] }
   0x7   :  { %973 = vmatprep.subr.mxu1 %v80_v5  ;;  %v52_v17 = vld [vmem:[%s1523_s0 + $0x130] sm:$0xff]  ;;  %v53_v19 = vld [vmem:[%s1523_s0 + $0x138] sm:$0xff]  ;;  %v54_v21 = vld [vmem:[%s1523_s0 + $0x140] sm:$0xff] }
   0x8   :  { %v23_v22 = vld [vmem:[%s1523_s0 + $0x48] sm:$0xff]  ;;  %v24_v24 = vld [vmem:[%s1523_s0 + $0x50] sm:$0xff]  ;;  %v25_v26 = vld [vmem:[%s1523_s0 + $0x58] sm:$0xff] }
   0x9   :  { %871 = vmatpush3.msra.mxu0 %v80_v5  ;;  %v55_v23 = vld [vmem:[%s1523_s0 + $0x148] sm:$0xff]  ;;  %v56_v25 = vld [vmem:[%s1523_s0 + $0x150] sm:$0xff]  ;;  %v57_v27 = vld [vmem:[%s1523_s0 + $0x158] sm:$0xff] }
   0xa   :  { %975 = vmatpush3.msra.mxu1 %v80_v5  ;;  %873 = vmatmul.mubr.msk.f32.vlgmr.msra.gmra.mrb[0].mxu0 %vm88_vm0, %v15_v6  ;;  %v26_v28 = vld [vmem:[%s1523_s0 + $0x60] sm:$0xff]  ;;  %v27_v30 = vld [vmem:[%s1523_s0 + $0x68] sm:$0xff]  ;;  %v28_v32 = vld [vmem:[%s1523_s0 + $0x70] sm:$0xff] }
   0xb   :  { %921 = vmatmul.mubr.msk.f32.vlgmr.msra.gmra.mrb[0].mxu1 %vm88_vm0, %v47_v7  ;;  %875 = vmatprep.mubr.msk.f32.mxu0 %vm88_vm0, %v16_v8  ;;  %v58_v29 = vld [vmem:[%s1523_s0 + $0x160] sm:$0xff]  ;;  %v59_v31 = vld [vmem:[%s1523_s0 + $0x168] sm:$0xff]  ;;  %v60_v33 = vld [vmem:[%s1523_s0 + $0x170] sm:$0xff] }
   0xc   :  { %923 = vmatprep.mubr.msk.f32.mxu1 %vm88_vm0, %v48_v9  ;;  %v29_v34 = vld [vmem:[%s1523_s0 + $0x78] sm:$0xff]  ;;  %v30_v36 = vld [vmem:[%s1523_s0 + $0x80] sm:$0xff]  ;;  %v31_v38 = vld [vmem:[%s1523_s0 + $0x88] sm:$0xff] }
   0xd   :  { %v61_v35 = vld [vmem:[%s1523_s0 + $0x178] sm:$0xff]  ;;  %v62_v37 = vld [vmem:[%s1523_s0 + $0x180] sm:$0xff]  ;;  %v63_v39 = vld [vmem:[%s1523_s0 + $0x188] sm:$0xff] }
   0xe   :  { %876 = vmatmul.mubr.msk.f32.gmra.mrb[2].mxu0 %vm88_vm0, %v17_v10  ;;  %v32_v40 = vld [vmem:[%s1523_s0 + $0x90] sm:$0xff]  ;;  %v33_v42 = vld [vmem:[%s1523_s0 + $0x98] sm:$0xff]  ;;  %v34_v44 = vld [vmem:[%s1523_s0 + $0xa0] sm:$0xff] }
   0xf   :  { %924 = vmatmul.mubr.msk.f32.gmra.mrb[2].mxu1 %vm88_vm0, %v49_v11  ;;  %878 = vmatprep.mubr.msk.f32.mxu0 %vm88_vm0, %v18_v12  ;;  %v64_v41 = vld [vmem:[%s1523_s0 + $0x190] sm:$0xff]  ;;  %v65_v43 = vld [vmem:[%s1523_s0 + $0x198] sm:$0xff]  ;;  %v66_v45 = vld [vmem:[%s1523_s0 + $0x1a0] sm:$0xff] }
  0x10   :  { %926 = vmatprep.mubr.msk.f32.mxu1 %vm88_vm0, %v50_v13  ;;  %v35_v46 = vld [vmem:[%s1523_s0 + $0xa8] sm:$0xff]  ;;  %v36_v48 = vld [vmem:[%s1523_s0 + $0xb0] sm:$0xff]  ;;  %v37_v50 = vld [vmem:[%s1523_s0 + $0xb8] sm:$0xff] }
  0x11   :  { %v67_v47 = vld [vmem:[%s1523_s0 + $0x1a8] sm:$0xff]  ;;  %v68_v49 = vld [vmem:[%s1523_s0 + $0x1b0] sm:$0xff]  ;;  %v69_v51 = vld [vmem:[%s1523_s0 + $0x1b8] sm:$0xff] }
  0x12   :  { %879 = vmatmul.mubr.msk.f32.gmra.mrb[4].mxu0 %vm88_vm0, %v19_v14  ;;  %v38_v52 = vld [vmem:[%s1523_s0 + $0xc0] sm:$0xff]  ;;  %v39_v54 = vld [vmem:[%s1523_s0 + $0xc8] sm:$0xff]  ;;  %v40_v56 = vld [vmem:[%s1523_s0 + $0xd0] sm:$0xff] }
  0x13   :  { %927 = vmatmul.mubr.msk.f32.gmra.mrb[4].mxu1 %vm88_vm0, %v51_v15  ;;  %881 = vmatprep.mubr.msk.f32.mxu0 %vm88_vm0, %v20_v16  ;;  %v70_v53 = vld [vmem:[%s1523_s0 + $0x1c0] sm:$0xff]  ;;  %v71_v55 = vld [vmem:[%s1523_s0 + $0x1c8] sm:$0xff]  ;;  %v72_v57 = vld [vmem:[%s1523_s0 + $0x1d0] sm:$0xff] }
  0x14   :  { %929 = vmatprep.mubr.msk.f32.mxu1 %vm88_vm0, %v52_v17  ;;  %v41_v58 = vld [vmem:[%s1523_s0 + $0xd8] sm:$0xff]  ;;  %v42_v60 = vld [vmem:[%s1523_s0 + $0xe0] sm:$0xff]  ;;  %v43_v62 = vld [vmem:[%s1523_s0 + $0xe8] sm:$0xff] }
  0x15   :  { %v73_v59 = vld [vmem:[%s1523_s0 + $0x1d8] sm:$0xff]  ;;  %v74_v61 = vld [vmem:[%s1523_s0 + $0x1e0] sm:$0xff]  ;;  %v75_v63 = vld [vmem:[%s1523_s0 + $0x1e8] sm:$0xff] }
  0x16   :  { %882 = vmatmul.mubr.msk.f32.gmra.mrb[6].mxu0 %vm88_vm0, %v21_v18  ;;  %v44_v0 = vld [vmem:[%s1523_s0 + $0xf0] sm:$0xff]  ;;  %v45_v2 = vld [vmem:[%s1523_s0 + $0xf8] sm:$0xff]  ;;  %v1264_v4 = vld [vmem:[%s1524_s2] ss:$0 sm:$0xff] }
  0x17   :  { %930 = vmatmul.mubr.msk.f32.gmra.mrb[6].mxu1 %vm88_vm0, %v53_v19  ;;  %884 = vmatprep.mubr.msk.f32.mxu0 %vm88_vm0, %v22_v20  ;;  %v76_v1 = vld [vmem:[%s1523_s0 + $0x1f0] sm:$0xff]  ;;  %v77_v3 = vld [vmem:[%s1523_s0 + $0x1f8] sm:$0xff] }
  0x18   :  { %932 = vmatprep.mubr.msk.f32.mxu1 %vm88_vm0, %v54_v21 }
  0x1a   :  { %885 = vmatmul.mubr.msk.f32.gmra.mrb[8].mxu0 %vm88_vm0, %v23_v22 }
  0x1b   :  { %933 = vmatmul.mubr.msk.f32.gmra.mrb[8].mxu1 %vm88_vm0, %v55_v23  ;;  %887 = vmatprep.mubr.msk.f32.mxu0 %vm88_vm0, %v24_v24 }
  0x1c   :  { %935 = vmatprep.mubr.msk.f32.mxu1 %vm88_vm0, %v56_v25 }
  0x1e   :  { %888 = vmatmul.mubr.msk.f32.gmra.mrb[10].mxu0 %vm88_vm0, %v25_v26 }
  0x1f   :  { %936 = vmatmul.mubr.msk.f32.gmra.mrb[10].mxu1 %vm88_vm0, %v57_v27  ;;  %890 = vmatprep.mubr.msk.f32.mxu0 %vm88_vm0, %v26_v28 }
  0x20   :  { %938 = vmatprep.mubr.msk.f32.mxu1 %vm88_vm0, %v58_v29 }
  0x22   :  { %891 = vmatmul.mubr.msk.f32.gmra.mrb[12].mxu0 %vm88_vm0, %v27_v30 }
  0x23   :  { %939 = vmatmul.mubr.msk.f32.gmra.mrb[12].mxu1 %vm88_vm0, %v59_v31  ;;  %893 = vmatprep.mubr.msk.f32.mxu0 %vm88_vm0, %v28_v32 }
  0x24   :  { %941 = vmatprep.mubr.msk.f32.mxu1 %vm88_vm0, %v60_v33 }
  0x26   :  { %894 = vmatmul.mubr.msk.f32.gmra.mrb[14].mxu0 %vm88_vm0, %v29_v34 }
  0x27   :  { %942 = vmatmul.mubr.msk.f32.gmra.mrb[14].mxu1 %vm88_vm0, %v61_v35  ;;  %896 = vmatprep.mubr.msk.f32.mxu0 %vm88_vm0, %v30_v36 }
  0x28   :  { %944 = vmatprep.mubr.msk.f32.mxu1 %vm88_vm0, %v62_v37 }
  0x2a   :  { %897 = vmatmul.mubr.msk.f32.gmra.mrb[16].mxu0 %vm88_vm0, %v31_v38 }
  0x2b   :  { %945 = vmatmul.mubr.msk.f32.gmra.mrb[16].mxu1 %vm88_vm0, %v63_v39  ;;  %899 = vmatprep.mubr.msk.f32.mxu0 %vm88_vm0, %v32_v40 }
  0x2c   :  { %947 = vmatprep.mubr.msk.f32.mxu1 %vm88_vm0, %v64_v41 }
  0x2e   :  { %900 = vmatmul.mubr.msk.f32.gmra.mrb[18].mxu0 %vm88_vm0, %v33_v42 }
  0x2f   :  { %948 = vmatmul.mubr.msk.f32.gmra.mrb[18].mxu1 %vm88_vm0, %v65_v43  ;;  %902 = vmatprep.mubr.msk.f32.mxu0 %vm88_vm0, %v34_v44 }
  0x30   :  { %950 = vmatprep.mubr.msk.f32.mxu1 %vm88_vm0, %v66_v45 }
  0x32   :  { %903 = vmatmul.mubr.msk.f32.gmra.mrb[20].mxu0 %vm88_vm0, %v35_v46 }
  0x33   :  { %951 = vmatmul.mubr.msk.f32.gmra.mrb[20].mxu1 %vm88_vm0, %v67_v47  ;;  %905 = vmatprep.mubr.msk.f32.mxu0 %vm88_vm0, %v36_v48 }
  0x34   :  { %953 = vmatprep.mubr.msk.f32.mxu1 %vm88_vm0, %v68_v49 }
  0x36   :  { %906 = vmatmul.mubr.msk.f32.gmra.mrb[22].mxu0 %vm88_vm0, %v37_v50 }
  0x37   :  { %954 = vmatmul.mubr.msk.f32.gmra.mrb[22].mxu1 %vm88_vm0, %v69_v51  ;;  %908 = vmatprep.mubr.msk.f32.mxu0 %vm88_vm0, %v38_v52 }
  0x38   :  { %956 = vmatprep.mubr.msk.f32.mxu1 %vm88_vm0, %v70_v53 }
  0x3a   :  { %909 = vmatmul.mubr.msk.f32.gmra.mrb[24].mxu0 %vm88_vm0, %v39_v54 }
  0x3b   :  { %957 = vmatmul.mubr.msk.f32.gmra.mrb[24].mxu1 %vm88_vm0, %v71_v55  ;;  %911 = vmatprep.mubr.msk.f32.mxu0 %vm88_vm0, %v40_v56 }
  0x3c   :  { %959 = vmatprep.mubr.msk.f32.mxu1 %vm88_vm0, %v72_v57 }
  0x3e   :  { %912 = vmatmul.mubr.msk.f32.gmra.mrb[26].mxu0 %vm88_vm0, %v41_v58 }
  0x3f   :  { %960 = vmatmul.mubr.msk.f32.gmra.mrb[26].mxu1 %vm88_vm0, %v73_v59  ;;  %914 = vmatprep.mubr.msk.f32.mxu0 %vm88_vm0, %v42_v60 }
  0x40   :  { %962 = vmatprep.mubr.msk.f32.mxu1 %vm88_vm0, %v74_v61 }
  0x42   :  { %915 = vmatmul.mubr.msk.f32.gmra.mrb[28].mxu0 %vm88_vm0, %v43_v62 }
  0x43   :  { %963 = vmatmul.mubr.msk.f32.gmra.mrb[28].mxu1 %vm88_vm0, %v75_v63  ;;  %917 = vmatprep.mubr.msk.f32.mxu0 %vm88_vm0, %v44_v0 }
  0x44   :  { %965 = vmatprep.mubr.msk.f32.mxu1 %vm88_vm0, %v76_v1 }
  0x46   :  { %918 = vmatmul.mubr.msk.f32.gmra.mrb[30].mxu0 %vm88_vm0, %v45_v2 }
  0x47   :  { %966 = vmatmul.mubr.msk.f32.gmra.mrb[30].mxu1 %vm88_vm0, %v77_v3 }
  0xdd   :  { %v874_v5 = vpop.f32.mrb[0].mxu0 }
  0xde   :  { %v922_v6 = vpop.f32.mrb[0].mxu1  ;;  %v353_v7 = vadd.f32 %v874_v5, %v1264_v4  ;;  %v347_v9 = vpop.f32.mrb[1].mxu0 }
  0xdf   :  { %v513_v8 = vadd.f32 %v922_v6, %v1264_v4  ;;  %v507_v10 = vpop.f32.mrb[1].mxu1  ;;  %v348_v11 = vadd.f32 %v1264_v4, %v347_v9 }
  0xe0   :  { %v508_v12 = vadd.f32 %v1264_v4, %v507_v10  ;;  %667 = vst [vmem:[%s1525_s3 + $0x8] sm:$0xff] %v353_v7 }
  0xe1   :  { %699 = vst [vmem:[%s1525_s3 + $0x108] sm:$0xff] %v513_v8  ;;  %666 = vst [vmem:[%s1525_s3] sm:$0xff] %v348_v11  ;;  %v877_v13 = vpop.f32.mrb[2].mxu0 }
  0xe2   :  { %698 = vst [vmem:[%s1525_s3 + $0x100] sm:$0xff] %v508_v12  ;;  %v925_v14 = vpop.f32.mrb[2].mxu1  ;;  %v363_v15 = vadd.f32 %v877_v13, %v1264_v4  ;;  %v357_v17 = vpop.f32.mrb[3].mxu0 }
  0xe3   :  { %v523_v16 = vadd.f32 %v925_v14, %v1264_v4  ;;  %v517_v18 = vpop.f32.mrb[3].mxu1  ;;  %v358_v19 = vadd.f32 %v1264_v4, %v357_v17 }
  0xe4   :  { %v518_v20 = vadd.f32 %v1264_v4, %v517_v18  ;;  %669 = vst [vmem:[%s1525_s3 + $0x18] sm:$0xff] %v363_v15 }
  0xe5   :  { %701 = vst [vmem:[%s1525_s3 + $0x118] sm:$0xff] %v523_v16  ;;  %668 = vst [vmem:[%s1525_s3 + $0x10] sm:$0xff] %v358_v19  ;;  %v880_v21 = vpop.f32.mrb[4].mxu0 }
  0xe6   :  { %700 = vst [vmem:[%s1525_s3 + $0x110] sm:$0xff] %v518_v20  ;;  %v928_v22 = vpop.f32.mrb[4].mxu1  ;;  %v373_v23 = vadd.f32 %v880_v21, %v1264_v4  ;;  %v367_v25 = vpop.f32.mrb[5].mxu0 }
  0xe7   :  { %v533_v24 = vadd.f32 %v928_v22, %v1264_v4  ;;  %v527_v26 = vpop.f32.mrb[5].mxu1  ;;  %v368_v27 = vadd.f32 %v1264_v4, %v367_v25 }
  0xe8   :  { %v528_v28 = vadd.f32 %v1264_v4, %v527_v26  ;;  %671 = vst [vmem:[%s1525_s3 + $0x28] sm:$0xff] %v373_v23 }
  0xe9   :  { %703 = vst [vmem:[%s1525_s3 + $0x128] sm:$0xff] %v533_v24  ;;  %670 = vst [vmem:[%s1525_s3 + $0x20] sm:$0xff] %v368_v27  ;;  %v883_v29 = vpop.f32.mrb[6].mxu0 }
  0xea   :  { %702 = vst [vmem:[%s1525_s3 + $0x120] sm:$0xff] %v528_v28  ;;  %v931_v30 = vpop.f32.mrb[6].mxu1  ;;  %v383_v31 = vadd.f32 %v883_v29, %v1264_v4  ;;  %v377_v33 = vpop.f32.mrb[7].mxu0 }
  0xeb   :  { %v543_v32 = vadd.f32 %v931_v30, %v1264_v4  ;;  %v537_v34 = vpop.f32.mrb[7].mxu1  ;;  %v378_v35 = vadd.f32 %v1264_v4, %v377_v33 }
  0xec   :  { %v538_v36 = vadd.f32 %v1264_v4, %v537_v34  ;;  %673 = vst [vmem:[%s1525_s3 + $0x38] sm:$0xff] %v383_v31 }
  0xed   :  { %705 = vst [vmem:[%s1525_s3 + $0x138] sm:$0xff] %v543_v32  ;;  %672 = vst [vmem:[%s1525_s3 + $0x30] sm:$0xff] %v378_v35  ;;  %v886_v37 = vpop.f32.mrb[8].mxu0 }
  0xee   :  { %704 = vst [vmem:[%s1525_s3 + $0x130] sm:$0xff] %v538_v36  ;;  %v934_v38 = vpop.f32.mrb[8].mxu1  ;;  %v393_v39 = vadd.f32 %v886_v37, %v1264_v4  ;;  %v387_v41 = vpop.f32.mrb[9].mxu0 }
  0xef   :  { %v553_v40 = vadd.f32 %v934_v38, %v1264_v4  ;;  %v547_v42 = vpop.f32.mrb[9].mxu1  ;;  %v388_v43 = vadd.f32 %v1264_v4, %v387_v41 }
  0xf0   :  { %v548_v44 = vadd.f32 %v1264_v4, %v547_v42  ;;  %675 = vst [vmem:[%s1525_s3 + $0x48] sm:$0xff] %v393_v39 }
  0xf1   :  { %707 = vst [vmem:[%s1525_s3 + $0x148] sm:$0xff] %v553_v40  ;;  %674 = vst [vmem:[%s1525_s3 + $0x40] sm:$0xff] %v388_v43  ;;  %v889_v45 = vpop.f32.mrb[10].mxu0 }
  0xf2   :  { %706 = vst [vmem:[%s1525_s3 + $0x140] sm:$0xff] %v548_v44  ;;  %v937_v46 = vpop.f32.mrb[10].mxu1  ;;  %v403_v47 = vadd.f32 %v889_v45, %v1264_v4  ;;  %v397_v49 = vpop.f32.mrb[11].mxu0 }
  0xf3   :  { %v563_v48 = vadd.f32 %v937_v46, %v1264_v4  ;;  %v557_v50 = vpop.f32.mrb[11].mxu1  ;;  %v398_v51 = vadd.f32 %v1264_v4, %v397_v49 }
  0xf4   :  { %v558_v52 = vadd.f32 %v1264_v4, %v557_v50  ;;  %677 = vst [vmem:[%s1525_s3 + $0x58] sm:$0xff] %v403_v47 }
  0xf5   :  { %709 = vst [vmem:[%s1525_s3 + $0x158] sm:$0xff] %v563_v48  ;;  %676 = vst [vmem:[%s1525_s3 + $0x50] sm:$0xff] %v398_v51  ;;  %v892_v53 = vpop.f32.mrb[12].mxu0 }
  0xf6   :  { %708 = vst [vmem:[%s1525_s3 + $0x150] sm:$0xff] %v558_v52  ;;  %v940_v54 = vpop.f32.mrb[12].mxu1  ;;  %v413_v55 = vadd.f32 %v892_v53, %v1264_v4  ;;  %v407_v57 = vpop.f32.mrb[13].mxu0 }
  0xf7   :  { %v573_v56 = vadd.f32 %v940_v54, %v1264_v4  ;;  %v567_v58 = vpop.f32.mrb[13].mxu1  ;;  %v408_v59 = vadd.f32 %v1264_v4, %v407_v57 }
  0xf8   :  { %v568_v60 = vadd.f32 %v1264_v4, %v567_v58  ;;  %679 = vst [vmem:[%s1525_s3 + $0x68] sm:$0xff] %v413_v55 }
  0xf9   :  { %711 = vst [vmem:[%s1525_s3 + $0x168] sm:$0xff] %v573_v56  ;;  %678 = vst [vmem:[%s1525_s3 + $0x60] sm:$0xff] %v408_v59  ;;  %v895_v61 = vpop.f32.mrb[14].mxu0 }
  0xfa   :  { %710 = vst [vmem:[%s1525_s3 + $0x160] sm:$0xff] %v568_v60  ;;  %v943_v62 = vpop.f32.mrb[14].mxu1  ;;  %v423_v63 = vadd.f32 %v895_v61, %v1264_v4  ;;  %v417_v1 = vpop.f32.mrb[15].mxu0 }
  0xfb   :  { %v583_v0 = vadd.f32 %v943_v62, %v1264_v4  ;;  %v577_v2 = vpop.f32.mrb[15].mxu1  ;;  %v418_v3 = vadd.f32 %v1264_v4, %v417_v1 }
  0xfc   :  { %v578_v5 = vadd.f32 %v1264_v4, %v577_v2  ;;  %681 = vst [vmem:[%s1525_s3 + $0x78] sm:$0xff] %v423_v63 }
  0xfd   :  { %713 = vst [vmem:[%s1525_s3 + $0x178] sm:$0xff] %v583_v0  ;;  %680 = vst [vmem:[%s1525_s3 + $0x70] sm:$0xff] %v418_v3  ;;  %v898_v6 = vpop.f32.mrb[16].mxu0 }
  0xfe   :  { %712 = vst [vmem:[%s1525_s3 + $0x170] sm:$0xff] %v578_v5  ;;  %v946_v7 = vpop.f32.mrb[16].mxu1  ;;  %v433_v8 = vadd.f32 %v898_v6, %v1264_v4  ;;  %v427_v10 = vpop.f32.mrb[17].mxu0 }
  0xff   :  { %v593_v9 = vadd.f32 %v946_v7, %v1264_v4  ;;  %v587_v11 = vpop.f32.mrb[17].mxu1  ;;  %v428_v12 = vadd.f32 %v1264_v4, %v427_v10 }
 0x100   :  { %v588_v13 = vadd.f32 %v1264_v4, %v587_v11  ;;  %683 = vst [vmem:[%s1525_s3 + $0x88] sm:$0xff] %v433_v8 }
 0x101   :  { %715 = vst [vmem:[%s1525_s3 + $0x188] sm:$0xff] %v593_v9  ;;  %682 = vst [vmem:[%s1525_s3 + $0x80] sm:$0xff] %v428_v12  ;;  %v901_v14 = vpop.f32.mrb[18].mxu0 }
 0x102   :  { %714 = vst [vmem:[%s1525_s3 + $0x180] sm:$0xff] %v588_v13  ;;  %v949_v15 = vpop.f32.mrb[18].mxu1  ;;  %v443_v16 = vadd.f32 %v901_v14, %v1264_v4  ;;  %v437_v18 = vpop.f32.mrb[19].mxu0 }
 0x103   :  { %v603_v17 = vadd.f32 %v949_v15, %v1264_v4  ;;  %v597_v19 = vpop.f32.mrb[19].mxu1  ;;  %v438_v20 = vadd.f32 %v1264_v4, %v437_v18 }
 0x104   :  { %v598_v21 = vadd.f32 %v1264_v4, %v597_v19  ;;  %685 = vst [vmem:[%s1525_s3 + $0x98] sm:$0xff] %v443_v16 }
 0x105   :  { %717 = vst [vmem:[%s1525_s3 + $0x198] sm:$0xff] %v603_v17  ;;  %684 = vst [vmem:[%s1525_s3 + $0x90] sm:$0xff] %v438_v20  ;;  %v904_v22 = vpop.f32.mrb[20].mxu0 }
 0x106   :  { %716 = vst [vmem:[%s1525_s3 + $0x190] sm:$0xff] %v598_v21  ;;  %v952_v23 = vpop.f32.mrb[20].mxu1  ;;  %v453_v24 = vadd.f32 %v904_v22, %v1264_v4  ;;  %v447_v26 = vpop.f32.mrb[21].mxu0 }
 0x107   :  { %v613_v25 = vadd.f32 %v952_v23, %v1264_v4  ;;  %v607_v27 = vpop.f32.mrb[21].mxu1  ;;  %v448_v28 = vadd.f32 %v1264_v4, %v447_v26 }
 0x108   :  { %v608_v29 = vadd.f32 %v1264_v4, %v607_v27  ;;  %687 = vst [vmem:[%s1525_s3 + $0xa8] sm:$0xff] %v453_v24 }
 0x109   :  { %719 = vst [vmem:[%s1525_s3 + $0x1a8] sm:$0xff] %v613_v25  ;;  %686 = vst [vmem:[%s1525_s3 + $0xa0] sm:$0xff] %v448_v28  ;;  %v907_v30 = vpop.f32.mrb[22].mxu0 }
 0x10a   :  { %718 = vst [vmem:[%s1525_s3 + $0x1a0] sm:$0xff] %v608_v29  ;;  %v955_v31 = vpop.f32.mrb[22].mxu1  ;;  %v463_v32 = vadd.f32 %v907_v30, %v1264_v4  ;;  %v457_v34 = vpop.f32.mrb[23].mxu0 }
 0x10b   :  { %v623_v33 = vadd.f32 %v955_v31, %v1264_v4  ;;  %v617_v35 = vpop.f32.mrb[23].mxu1  ;;  %v458_v36 = vadd.f32 %v1264_v4, %v457_v34 }
 0x10c   :  { %v618_v37 = vadd.f32 %v1264_v4, %v617_v35  ;;  %689 = vst [vmem:[%s1525_s3 + $0xb8] sm:$0xff] %v463_v32 }
 0x10d   :  { %721 = vst [vmem:[%s1525_s3 + $0x1b8] sm:$0xff] %v623_v33  ;;  %688 = vst [vmem:[%s1525_s3 + $0xb0] sm:$0xff] %v458_v36  ;;  %v910_v38 = vpop.f32.mrb[24].mxu0 }
 0x10e   :  { %720 = vst [vmem:[%s1525_s3 + $0x1b0] sm:$0xff] %v618_v37  ;;  %v958_v39 = vpop.f32.mrb[24].mxu1  ;;  %v473_v40 = vadd.f32 %v910_v38, %v1264_v4  ;;  %v467_v42 = vpop.f32.mrb[25].mxu0 }
 0x10f   :  { %v633_v41 = vadd.f32 %v958_v39, %v1264_v4  ;;  %v627_v43 = vpop.f32.mrb[25].mxu1  ;;  %v468_v44 = vadd.f32 %v1264_v4, %v467_v42 }
 0x110   :  { %v628_v45 = vadd.f32 %v1264_v4, %v627_v43  ;;  %691 = vst [vmem:[%s1525_s3 + $0xc8] sm:$0xff] %v473_v40 }
 0x111   :  { %723 = vst [vmem:[%s1525_s3 + $0x1c8] sm:$0xff] %v633_v41  ;;  %690 = vst [vmem:[%s1525_s3 + $0xc0] sm:$0xff] %v468_v44  ;;  %v913_v46 = vpop.f32.mrb[26].mxu0 }
 0x112   :  { %722 = vst [vmem:[%s1525_s3 + $0x1c0] sm:$0xff] %v628_v45  ;;  %v961_v47 = vpop.f32.mrb[26].mxu1  ;;  %v483_v48 = vadd.f32 %v913_v46, %v1264_v4  ;;  %v477_v50 = vpop.f32.mrb[27].mxu0 }
 0x113   :  { %v643_v49 = vadd.f32 %v961_v47, %v1264_v4  ;;  %v637_v51 = vpop.f32.mrb[27].mxu1  ;;  %v478_v52 = vadd.f32 %v1264_v4, %v477_v50 }
 0x114   :  { %v638_v53 = vadd.f32 %v1264_v4, %v637_v51  ;;  %693 = vst [vmem:[%s1525_s3 + $0xd8] sm:$0xff] %v483_v48 }
 0x115   :  { %725 = vst [vmem:[%s1525_s3 + $0x1d8] sm:$0xff] %v643_v49  ;;  %692 = vst [vmem:[%s1525_s3 + $0xd0] sm:$0xff] %v478_v52  ;;  %v916_v54 = vpop.f32.mrb[28].mxu0 }
 0x116   :  { %724 = vst [vmem:[%s1525_s3 + $0x1d0] sm:$0xff] %v638_v53  ;;  %v964_v55 = vpop.f32.mrb[28].mxu1  ;;  %v493_v56 = vadd.f32 %v916_v54, %v1264_v4  ;;  %v487_v58 = vpop.f32.mrb[29].mxu0 }
 0x117   :  { %v653_v57 = vadd.f32 %v964_v55, %v1264_v4  ;;  %v647_v59 = vpop.f32.mrb[29].mxu1  ;;  %v488_v60 = vadd.f32 %v1264_v4, %v487_v58 }
 0x118   :  { %v648_v61 = vadd.f32 %v1264_v4, %v647_v59  ;;  %695 = vst [vmem:[%s1525_s3 + $0xe8] sm:$0xff] %v493_v56 }
 0x119   :  { %727 = vst [vmem:[%s1525_s3 + $0x1e8] sm:$0xff] %v653_v57  ;;  %694 = vst [vmem:[%s1525_s3 + $0xe0] sm:$0xff] %v488_v60  ;;  %v919_v62 = vpop.f32.mrb[30].mxu0 }
 0x11a   :  { %726 = vst [vmem:[%s1525_s3 + $0x1e0] sm:$0xff] %v648_v61  ;;  %v967_v63 = vpop.f32.mrb[30].mxu1  ;;  %v503_v0 = vadd.f32 %v919_v62, %v1264_v4  ;;  %v497_v2 = vpop.f32.mrb[31].mxu0 }
 0x11b   :  { %v663_v1 = vadd.f32 %v967_v63, %v1264_v4  ;;  %v657_v3 = vpop.f32.mrb[31].mxu1  ;;  %v498_v5 = vadd.f32 %v1264_v4, %v497_v2 }
 0x11c   :  { %v658_v6 = vadd.f32 %v1264_v4, %v657_v3  ;;  %697 = vst [vmem:[%s1525_s3 + $0xf8] sm:$0xff] %v503_v0 }
 0x11d   :  { %729 = vst [vmem:[%s1525_s3 + $0x1f8] sm:$0xff] %v663_v1  ;;  %696 = vst [vmem:[%s1525_s3 + $0xf0] sm:$0xff] %v498_v5 }
 0x11e   :  { %728 = vst [vmem:[%s1525_s3 + $0x1f0] sm:$0xff] %v658_v6 }

// kernel: hagca2_forward.17
= control target key start
LH: loop header
LB: loop body
LE: loop exit
PB: predicated region body
PF: predicated region fallthrough
CT: control target
= control target key end

     0   :  { %vm94_vm0 = vcmask 588800   ;;  %s1582_s1 = inlined_call_operand.vmem [shape: f32[72,128], index: 1, kind: input, shape index: {}]   ;;  %s1583_s0 = inlined_call_operand.vmem [shape: f32[512,72], index: 0, kind: input, shape index: {}]   ;;  %s1584_s2 = inlined_call_operand.vmem [shape: f32[1,128], index: 2, kind: input, shape index: {}]   ;;  %s1585_s3 = inlined_call_operand.vmem [shape: f32[512,128], index: 3, kind: output, shape index: {}]  }
   0x1   :  { %v78_v0 = vld [vmem:[%s1582_s1] sm:$0xff]  ;;  %v79_v1 = vld [vmem:[%s1582_s1 + $0x8] sm:$0xff]  ;;  %v80_v2 = vld [vmem:[%s1582_s1 + $0x10] sm:$0xff] }
   0x2   :  { %v992_v3 = vpack.c.bf16 %v79_v1, %v78_v0  ;;  %v81_v4 = vld [vmem:[%s1582_s1 + $0x18] sm:$0xff]  ;;  %v82_v6 = vld [vmem:[%s1582_s1 + $0x20] sm:$0xff]  ;;  %v83_v7 = vld [vmem:[%s1582_s1 + $0x28] sm:$0xff] }
   0x3   :  { %v996_v5 = vpack.c.bf16 %v81_v4, %v80_v2  ;;  %v14_v8 = vld [vmem:[%s1583_s0] sm:$0xff]  ;;  %v1000_v10 = vpack.c.bf16 %v83_v7, %v82_v6  ;;  %v84_v11 = vld [vmem:[%s1582_s1 + $0x30] sm:$0xff]  ;;  %v85_v12 = vld [vmem:[%s1582_s1 + $0x38] sm:$0xff] }
   0x4   :  { %993 = vmatprep.subr.bf16.mxu0 %v992_v3  ;;  %1008 = vmatprep.subr.bf16.mxu1 %v992_v3  ;;  %v46_v9 = vld [vmem:[%s1583_s0 + $0x100] sm:$0xff]  ;;  %v1004_v13 = vpack.c.bf16 %v85_v12, %v84_v11  ;;  %v15_v15 = vld [vmem:[%s1583_s0 + $0x8] sm:$0xff]  ;;  %v16_v17 = vld [vmem:[%s1583_s0 + $0x10] sm:$0xff] }
   0x5   :  { %995 = vmatpush3.bf16.msra.mxu0 %v992_v3  ;;  %1013 = vmatpush3.bf16.msra.mxu1 %v992_v3  ;;  %v86_v14 = vld [vmem:[%s1582_s1 + $0x40] sm:$0xff]  ;;  %v47_v16 = vld [vmem:[%s1583_s0 + $0x108] sm:$0xff]  ;;  %v48_v18 = vld [vmem:[%s1583_s0 + $0x110] sm:$0xff] }
   0x6   :  { %997 = vmatprep.subr.bf16.mxu0 %v996_v5  ;;  %1009 = vmatprep.subr.bf16.mxu1 %v996_v5  ;;  %v17_v19 = vld [vmem:[%s1583_s0 + $0x18] sm:$0xff]  ;;  %v18_v21 = vld [vmem:[%s1583_s0 + $0x20] sm:$0xff]  ;;  %v19_v23 = vld [vmem:[%s1583_s0 + $0x28] sm:$0xff] }
   0x7   :  { %896 = vmatprep.mubr.msk.f32.mxu0 %vm94_vm0, %v14_v8  ;;  %944 = vmatprep.mubr.msk.f32.mxu1 %vm94_vm0, %v46_v9  ;;  %v49_v20 = vld [vmem:[%s1583_s0 + $0x118] sm:$0xff]  ;;  %v50_v22 = vld [vmem:[%s1583_s0 + $0x120] sm:$0xff]  ;;  %v51_v24 = vld [vmem:[%s1583_s0 + $0x128] sm:$0xff] }
   0x8   :  { %v20_v25 = vld [vmem:[%s1583_s0 + $0x30] sm:$0xff]  ;;  %v21_v27 = vld [vmem:[%s1583_s0 + $0x38] sm:$0xff]  ;;  %v22_v29 = vld [vmem:[%s1583_s0 + $0x40] sm:$0xff] }
   0x9   :  { %999 = vmatpush3.bf16.msra.mxu0 %v996_v5  ;;  %1014 = vmatpush3.bf16.msra.mxu1 %v996_v5  ;;  %v52_v26 = vld [vmem:[%s1583_s0 + $0x130] sm:$0xff]  ;;  %v53_v28 = vld [vmem:[%s1583_s0 + $0x138] sm:$0xff]  ;;  %v54_v30 = vld [vmem:[%s1583_s0 + $0x140] sm:$0xff] }
   0xa   :  { %1001 = vmatprep.subr.bf16.mxu0 %v1000_v10  ;;  %1010 = vmatprep.subr.bf16.mxu1 %v1000_v10  ;;  %v23_v31 = vld [vmem:[%s1583_s0 + $0x48] sm:$0xff]  ;;  %v24_v33 = vld [vmem:[%s1583_s0 + $0x50] sm:$0xff]  ;;  %v25_v35 = vld [vmem:[%s1583_s0 + $0x58] sm:$0xff] }
   0xb   :  { %v55_v32 = vld [vmem:[%s1583_s0 + $0x148] sm:$0xff]  ;;  %v56_v34 = vld [vmem:[%s1583_s0 + $0x150] sm:$0xff]  ;;  %v57_v36 = vld [vmem:[%s1583_s0 + $0x158] sm:$0xff] }
   0xc   :  { %v26_v37 = vld [vmem:[%s1583_s0 + $0x60] sm:$0xff]  ;;  %v27_v39 = vld [vmem:[%s1583_s0 + $0x68] sm:$0xff]  ;;  %v28_v41 = vld [vmem:[%s1583_s0 + $0x70] sm:$0xff] }
   0xd   :  { %1003 = vmatpush3.bf16.msra.mxu0 %v1000_v10  ;;  %1015 = vmatpush3.bf16.msra.mxu1 %v1000_v10  ;;  %v58_v38 = vld [vmem:[%s1583_s0 + $0x160] sm:$0xff]  ;;  %v59_v40 = vld [vmem:[%s1583_s0 + $0x168] sm:$0xff]  ;;  %v60_v42 = vld [vmem:[%s1583_s0 + $0x170] sm:$0xff] }
   0xe   :  { %1005 = vmatprep.subr.bf16.mxu0 %v1004_v13  ;;  %1011 = vmatprep.subr.bf16.mxu1 %v1004_v13  ;;  %v29_v43 = vld [vmem:[%s1583_s0 + $0x78] sm:$0xff]  ;;  %v30_v45 = vld [vmem:[%s1583_s0 + $0x80] sm:$0xff]  ;;  %v31_v47 = vld [vmem:[%s1583_s0 + $0x88] sm:$0xff] }
   0xf   :  { %v61_v44 = vld [vmem:[%s1583_s0 + $0x178] sm:$0xff]  ;;  %v62_v46 = vld [vmem:[%s1583_s0 + $0x180] sm:$0xff]  ;;  %v63_v48 = vld [vmem:[%s1583_s0 + $0x188] sm:$0xff] }
  0x10   :  { %v32_v49 = vld [vmem:[%s1583_s0 + $0x90] sm:$0xff]  ;;  %v33_v51 = vld [vmem:[%s1583_s0 + $0x98] sm:$0xff]  ;;  %v34_v53 = vld [vmem:[%s1583_s0 + $0xa0] sm:$0xff] }
  0x11   :  { %1007 = vmatpush3.bf16.msra.mxu0 %v1004_v13  ;;  %1016 = vmatpush3.bf16.msra.mxu1 %v1004_v13  ;;  %v64_v50 = vld [vmem:[%s1583_s0 + $0x190] sm:$0xff]  ;;  %v65_v52 = vld [vmem:[%s1583_s0 + $0x198] sm:$0xff]  ;;  %v66_v54 = vld [vmem:[%s1583_s0 + $0x1a0] sm:$0xff] }
  0x12   :  { %894 = vmatprep.subr.mxu0 %v86_v14  ;;  %1012 = vmatprep.subr.mxu1 %v86_v14  ;;  %v35_v55 = vld [vmem:[%s1583_s0 + $0xa8] sm:$0xff]  ;;  %v36_v57 = vld [vmem:[%s1583_s0 + $0xb0] sm:$0xff]  ;;  %v37_v59 = vld [vmem:[%s1583_s0 + $0xb8] sm:$0xff] }
  0x13   :  { %v67_v56 = vld [vmem:[%s1583_s0 + $0x1a8] sm:$0xff]  ;;  %v68_v58 = vld [vmem:[%s1583_s0 + $0x1b0] sm:$0xff]  ;;  %v69_v60 = vld [vmem:[%s1583_s0 + $0x1b8] sm:$0xff] }
  0x14   :  { %v38_v61 = vld [vmem:[%s1583_s0 + $0xc0] sm:$0xff]  ;;  %v39_v63 = vld [vmem:[%s1583_s0 + $0xc8] sm:$0xff]  ;;  %v40_v1 = vld [vmem:[%s1583_s0 + $0xd0] sm:$0xff] }
  0x15   :  { %895 = vmatpush3.msra.mxu0 %v86_v14  ;;  %1017 = vmatpush3.msra.mxu1 %v86_v14  ;;  %v70_v62 = vld [vmem:[%s1583_s0 + $0x1c0] sm:$0xff]  ;;  %v71_v0 = vld [vmem:[%s1583_s0 + $0x1c8] sm:$0xff]  ;;  %v72_v2 = vld [vmem:[%s1583_s0 + $0x1d0] sm:$0xff] }
  0x16   :  { %897 = vmatmul.mubr.msk.f32.vlgmr.msra.gmra.mrb[0].mxu0 %vm94_vm0, %v15_v15  ;;  %945 = vmatmul.mubr.msk.f32.vlgmr.msra.gmra.mrb[0].mxu1 %vm94_vm0, %v47_v16  ;;  %v41_v3 = vld [vmem:[%s1583_s0 + $0xd8] sm:$0xff]  ;;  %v42_v5 = vld [vmem:[%s1583_s0 + $0xe0] sm:$0xff]  ;;  %v43_v7 = vld [vmem:[%s1583_s0 + $0xe8] sm:$0xff] }
  0x17   :  { %899 = vmatprep.mubr.msk.f32.mxu0 %vm94_vm0, %v16_v17  ;;  %947 = vmatprep.mubr.msk.f32.mxu1 %vm94_vm0, %v48_v18  ;;  %v73_v4 = vld [vmem:[%s1583_s0 + $0x1d8] sm:$0xff]  ;;  %v74_v6 = vld [vmem:[%s1583_s0 + $0x1e0] sm:$0xff]  ;;  %v75_v8 = vld [vmem:[%s1583_s0 + $0x1e8] sm:$0xff] }
  0x18   :  { %v44_v9 = vld [vmem:[%s1583_s0 + $0xf0] sm:$0xff]  ;;  %v45_v11 = vld [vmem:[%s1583_s0 + $0xf8] sm:$0xff]  ;;  %v1324_v13 = vld [vmem:[%s1584_s2] ss:$0 sm:$0xff] }
  0x19   :  { %v76_v10 = vld [vmem:[%s1583_s0 + $0x1f0] sm:$0xff]  ;;  %v77_v12 = vld [vmem:[%s1583_s0 + $0x1f8] sm:$0xff] }
  0x1a   :  { %900 = vmatmul.mubr.msk.f32.gmra.mrb[2].mxu0 %vm94_vm0, %v17_v19  ;;  %948 = vmatmul.mubr.msk.f32.gmra.mrb[2].mxu1 %vm94_vm0, %v49_v20 }
  0x1b   :  { %902 = vmatprep.mubr.msk.f32.mxu0 %vm94_vm0, %v18_v21  ;;  %950 = vmatprep.mubr.msk.f32.mxu1 %vm94_vm0, %v50_v22 }
  0x1e   :  { %903 = vmatmul.mubr.msk.f32.gmra.mrb[4].mxu0 %vm94_vm0, %v19_v23  ;;  %951 = vmatmul.mubr.msk.f32.gmra.mrb[4].mxu1 %vm94_vm0, %v51_v24 }
  0x1f   :  { %905 = vmatprep.mubr.msk.f32.mxu0 %vm94_vm0, %v20_v25  ;;  %953 = vmatprep.mubr.msk.f32.mxu1 %vm94_vm0, %v52_v26 }
  0x22   :  { %906 = vmatmul.mubr.msk.f32.gmra.mrb[6].mxu0 %vm94_vm0, %v21_v27  ;;  %954 = vmatmul.mubr.msk.f32.gmra.mrb[6].mxu1 %vm94_vm0, %v53_v28 }
  0x23   :  { %908 = vmatprep.mubr.msk.f32.mxu0 %vm94_vm0, %v22_v29  ;;  %956 = vmatprep.mubr.msk.f32.mxu1 %vm94_vm0, %v54_v30 }
  0x26   :  { %909 = vmatmul.mubr.msk.f32.gmra.mrb[8].mxu0 %vm94_vm0, %v23_v31  ;;  %957 = vmatmul.mubr.msk.f32.gmra.mrb[8].mxu1 %vm94_vm0, %v55_v32 }
  0x27   :  { %911 = vmatprep.mubr.msk.f32.mxu0 %vm94_vm0, %v24_v33  ;;  %959 = vmatprep.mubr.msk.f32.mxu1 %vm94_vm0, %v56_v34 }
  0x2a   :  { %912 = vmatmul.mubr.msk.f32.gmra.mrb[10].mxu0 %vm94_vm0, %v25_v35  ;;  %960 = vmatmul.mubr.msk.f32.gmra.mrb[10].mxu1 %vm94_vm0, %v57_v36 }
  0x2b   :  { %914 = vmatprep.mubr.msk.f32.mxu0 %vm94_vm0, %v26_v37  ;;  %962 = vmatprep.mubr.msk.f32.mxu1 %vm94_vm0, %v58_v38 }
  0x2e   :  { %915 = vmatmul.mubr.msk.f32.gmra.mrb[12].mxu0 %vm94_vm0, %v27_v39  ;;  %963 = vmatmul.mubr.msk.f32.gmra.mrb[12].mxu1 %vm94_vm0, %v59_v40 }
  0x2f   :  { %917 = vmatprep.mubr.msk.f32.mxu0 %vm94_vm0, %v28_v41  ;;  %965 = vmatprep.mubr.msk.f32.mxu1 %vm94_vm0, %v60_v42 }
  0x32   :  { %918 = vmatmul.mubr.msk.f32.gmra.mrb[14].mxu0 %vm94_vm0, %v29_v43  ;;  %966 = vmatmul.mubr.msk.f32.gmra.mrb[14].mxu1 %vm94_vm0, %v61_v44 }
  0x33   :  { %920 = vmatprep.mubr.msk.f32.mxu0 %vm94_vm0, %v30_v45  ;;  %968 = vmatprep.mubr.msk.f32.mxu1 %vm94_vm0, %v62_v46 }
  0x36   :  { %921 = vmatmul.mubr.msk.f32.gmra.mrb[16].mxu0 %vm94_vm0, %v31_v47  ;;  %969 = vmatmul.mubr.msk.f32.gmra.mrb[16].mxu1 %vm94_vm0, %v63_v48 }
  0x37   :  { %923 = vmatprep.mubr.msk.f32.mxu0 %vm94_vm0, %v32_v49  ;;  %971 = vmatprep.mubr.msk.f32.mxu1 %vm94_vm0, %v64_v50 }
  0x3a   :  { %924 = vmatmul.mubr.msk.f32.gmra.mrb[18].mxu0 %vm94_vm0, %v33_v51  ;;  %972 = vmatmul.mubr.msk.f32.gmra.mrb[18].mxu1 %vm94_vm0, %v65_v52 }
  0x3b   :  { %926 = vmatprep.mubr.msk.f32.mxu0 %vm94_vm0, %v34_v53  ;;  %974 = vmatprep.mubr.msk.f32.mxu1 %vm94_vm0, %v66_v54 }
  0x3e   :  { %927 = vmatmul.mubr.msk.f32.gmra.mrb[20].mxu0 %vm94_vm0, %v35_v55  ;;  %975 = vmatmul.mubr.msk.f32.gmra.mrb[20].mxu1 %vm94_vm0, %v67_v56 }
  0x3f   :  { %929 = vmatprep.mubr.msk.f32.mxu0 %vm94_vm0, %v36_v57  ;;  %977 = vmatprep.mubr.msk.f32.mxu1 %vm94_vm0, %v68_v58 }
  0x42   :  { %930 = vmatmul.mubr.msk.f32.gmra.mrb[22].mxu0 %vm94_vm0, %v37_v59  ;;  %978 = vmatmul.mubr.msk.f32.gmra.mrb[22].mxu1 %vm94_vm0, %v69_v60 }
  0x43   :  { %932 = vmatprep.mubr.msk.f32.mxu0 %vm94_vm0, %v38_v61  ;;  %980 = vmatprep.mubr.msk.f32.mxu1 %vm94_vm0, %v70_v62 }
  0x46   :  { %933 = vmatmul.mubr.msk.f32.gmra.mrb[24].mxu0 %vm94_vm0, %v39_v63  ;;  %981 = vmatmul.mubr.msk.f32.gmra.mrb[24].mxu1 %vm94_vm0, %v71_v0 }
  0x47   :  { %935 = vmatprep.mubr.msk.f32.mxu0 %vm94_vm0, %v40_v1  ;;  %983 = vmatprep.mubr.msk.f32.mxu1 %vm94_vm0, %v72_v2 }
  0x4a   :  { %936 = vmatmul.mubr.msk.f32.gmra.mrb[26].mxu0 %vm94_vm0, %v41_v3  ;;  %984 = vmatmul.mubr.msk.f32.gmra.mrb[26].mxu1 %vm94_vm0, %v73_v4 }
  0x4b   :  { %938 = vmatprep.mubr.msk.f32.mxu0 %vm94_vm0, %v42_v5  ;;  %986 = vmatprep.mubr.msk.f32.mxu1 %vm94_vm0, %v74_v6 }
  0x4e   :  { %939 = vmatmul.mubr.msk.f32.gmra.mrb[28].mxu0 %vm94_vm0, %v43_v7  ;;  %987 = vmatmul.mubr.msk.f32.gmra.mrb[28].mxu1 %vm94_vm0, %v75_v8 }
  0x4f   :  { %941 = vmatprep.mubr.msk.f32.mxu0 %vm94_vm0, %v44_v9  ;;  %989 = vmatprep.mubr.msk.f32.mxu1 %vm94_vm0, %v76_v10 }
  0x52   :  { %942 = vmatmul.mubr.msk.f32.gmra.mrb[30].mxu0 %vm94_vm0, %v45_v11  ;;  %990 = vmatmul.mubr.msk.f32.gmra.mrb[30].mxu1 %vm94_vm0, %v77_v12 }
  0xe9   :  { %v898_v14 = vpop.f32.mrb[0].mxu0  ;;  %v946_v15 = vpop.f32.mrb[0].mxu1 }
  0xea   :  { %v359_v16 = vadd.f32 %v898_v14, %v1324_v13  ;;  %v519_v17 = vadd.f32 %v946_v15, %v1324_v13  ;;  %v353_v18 = vpop.f32.mrb[1].mxu0  ;;  %v513_v19 = vpop.f32.mrb[1].mxu1 }
  0xeb   :  { %v354_v20 = vadd.f32 %v1324_v13, %v353_v18  ;;  %v514_v21 = vadd.f32 %v1324_v13, %v513_v19 }
  0xec   :  { %673 = vst [vmem:[%s1585_s3 + $0x8] sm:$0xff] %v359_v16  ;;  %705 = vst [vmem:[%s1585_s3 + $0x108] sm:$0xff] %v519_v17 }
  0xed   :  { %672 = vst [vmem:[%s1585_s3] sm:$0xff] %v354_v20  ;;  %704 = vst [vmem:[%s1585_s3 + $0x100] sm:$0xff] %v514_v21  ;;  %v901_v22 = vpop.f32.mrb[2].mxu0  ;;  %v949_v23 = vpop.f32.mrb[2].mxu1 }
  0xee   :  { %v369_v24 = vadd.f32 %v901_v22, %v1324_v13  ;;  %v529_v25 = vadd.f32 %v949_v23, %v1324_v13  ;;  %v363_v26 = vpop.f32.mrb[3].mxu0  ;;  %v523_v27 = vpop.f32.mrb[3].mxu1 }
  0xef   :  { %v364_v28 = vadd.f32 %v1324_v13, %v363_v26  ;;  %v524_v29 = vadd.f32 %v1324_v13, %v523_v27 }
  0xf0   :  { %675 = vst [vmem:[%s1585_s3 + $0x18] sm:$0xff] %v369_v24  ;;  %707 = vst [vmem:[%s1585_s3 + $0x118] sm:$0xff] %v529_v25 }
  0xf1   :  { %674 = vst [vmem:[%s1585_s3 + $0x10] sm:$0xff] %v364_v28  ;;  %706 = vst [vmem:[%s1585_s3 + $0x110] sm:$0xff] %v524_v29  ;;  %v904_v30 = vpop.f32.mrb[4].mxu0  ;;  %v952_v31 = vpop.f32.mrb[4].mxu1 }
  0xf2   :  { %v379_v32 = vadd.f32 %v904_v30, %v1324_v13  ;;  %v539_v33 = vadd.f32 %v952_v31, %v1324_v13  ;;  %v373_v34 = vpop.f32.mrb[5].mxu0  ;;  %v533_v35 = vpop.f32.mrb[5].mxu1 }
  0xf3   :  { %v374_v36 = vadd.f32 %v1324_v13, %v373_v34  ;;  %v534_v37 = vadd.f32 %v1324_v13, %v533_v35 }
  0xf4   :  { %677 = vst [vmem:[%s1585_s3 + $0x28] sm:$0xff] %v379_v32  ;;  %709 = vst [vmem:[%s1585_s3 + $0x128] sm:$0xff] %v539_v33 }
  0xf5   :  { %676 = vst [vmem:[%s1585_s3 + $0x20] sm:$0xff] %v374_v36  ;;  %708 = vst [vmem:[%s1585_s3 + $0x120] sm:$0xff] %v534_v37  ;;  %v907_v38 = vpop.f32.mrb[6].mxu0  ;;  %v955_v39 = vpop.f32.mrb[6].mxu1 }
  0xf6   :  { %v389_v40 = vadd.f32 %v907_v38, %v1324_v13  ;;  %v549_v41 = vadd.f32 %v955_v39, %v1324_v13  ;;  %v383_v42 = vpop.f32.mrb[7].mxu0  ;;  %v543_v43 = vpop.f32.mrb[7].mxu1 }
  0xf7   :  { %v384_v44 = vadd.f32 %v1324_v13, %v383_v42  ;;  %v544_v45 = vadd.f32 %v1324_v13, %v543_v43 }
  0xf8   :  { %679 = vst [vmem:[%s1585_s3 + $0x38] sm:$0xff] %v389_v40  ;;  %711 = vst [vmem:[%s1585_s3 + $0x138] sm:$0xff] %v549_v41 }
  0xf9   :  { %678 = vst [vmem:[%s1585_s3 + $0x30] sm:$0xff] %v384_v44  ;;  %710 = vst [vmem:[%s1585_s3 + $0x130] sm:$0xff] %v544_v45  ;;  %v910_v46 = vpop.f32.mrb[8].mxu0  ;;  %v958_v47 = vpop.f32.mrb[8].mxu1 }
  0xfa   :  { %v399_v48 = vadd.f32 %v910_v46, %v1324_v13  ;;  %v559_v49 = vadd.f32 %v958_v47, %v1324_v13  ;;  %v393_v50 = vpop.f32.mrb[9].mxu0  ;;  %v553_v51 = vpop.f32.mrb[9].mxu1 }
  0xfb   :  { %v394_v52 = vadd.f32 %v1324_v13, %v393_v50  ;;  %v554_v53 = vadd.f32 %v1324_v13, %v553_v51 }
  0xfc   :  { %681 = vst [vmem:[%s1585_s3 + $0x48] sm:$0xff] %v399_v48  ;;  %713 = vst [vmem:[%s1585_s3 + $0x148] sm:$0xff] %v559_v49 }
  0xfd   :  { %680 = vst [vmem:[%s1585_s3 + $0x40] sm:$0xff] %v394_v52  ;;  %712 = vst [vmem:[%s1585_s3 + $0x140] sm:$0xff] %v554_v53  ;;  %v913_v54 = vpop.f32.mrb[10].mxu0  ;;  %v961_v55 = vpop.f32.mrb[10].mxu1 }
  0xfe   :  { %v409_v56 = vadd.f32 %v913_v54, %v1324_v13  ;;  %v569_v57 = vadd.f32 %v961_v55, %v1324_v13  ;;  %v403_v58 = vpop.f32.mrb[11].mxu0  ;;  %v563_v59 = vpop.f32.mrb[11].mxu1 }
  0xff   :  { %v404_v60 = vadd.f32 %v1324_v13, %v403_v58  ;;  %v564_v61 = vadd.f32 %v1324_v13, %v563_v59 }
 0x100   :  { %683 = vst [vmem:[%s1585_s3 + $0x58] sm:$0xff] %v409_v56  ;;  %715 = vst [vmem:[%s1585_s3 + $0x158] sm:$0xff] %v569_v57 }
 0x101   :  { %682 = vst [vmem:[%s1585_s3 + $0x50] sm:$0xff] %v404_v60  ;;  %714 = vst [vmem:[%s1585_s3 + $0x150] sm:$0xff] %v564_v61  ;;  %v916_v62 = vpop.f32.mrb[12].mxu0  ;;  %v964_v63 = vpop.f32.mrb[12].mxu1 }
 0x102   :  { %v419_v0 = vadd.f32 %v916_v62, %v1324_v13  ;;  %v579_v1 = vadd.f32 %v964_v63, %v1324_v13  ;;  %v413_v2 = vpop.f32.mrb[13].mxu0  ;;  %v573_v3 = vpop.f32.mrb[13].mxu1 }
 0x103   :  { %v414_v4 = vadd.f32 %v1324_v13, %v413_v2  ;;  %v574_v5 = vadd.f32 %v1324_v13, %v573_v3 }
 0x104   :  { %685 = vst [vmem:[%s1585_s3 + $0x68] sm:$0xff] %v419_v0  ;;  %717 = vst [vmem:[%s1585_s3 + $0x168] sm:$0xff] %v579_v1 }
 0x105   :  { %684 = vst [vmem:[%s1585_s3 + $0x60] sm:$0xff] %v414_v4  ;;  %716 = vst [vmem:[%s1585_s3 + $0x160] sm:$0xff] %v574_v5  ;;  %v919_v6 = vpop.f32.mrb[14].mxu0  ;;  %v967_v7 = vpop.f32.mrb[14].mxu1 }
 0x106   :  { %v429_v8 = vadd.f32 %v919_v6, %v1324_v13  ;;  %v589_v9 = vadd.f32 %v967_v7, %v1324_v13  ;;  %v423_v10 = vpop.f32.mrb[15].mxu0  ;;  %v583_v11 = vpop.f32.mrb[15].mxu1 }
 0x107   :  { %v424_v12 = vadd.f32 %v1324_v13, %v423_v10  ;;  %v584_v14 = vadd.f32 %v1324_v13, %v583_v11 }
 0x108   :  { %687 = vst [vmem:[%s1585_s3 + $0x78] sm:$0xff] %v429_v8  ;;  %719 = vst [vmem:[%s1585_s3 + $0x178] sm:$0xff] %v589_v9 }
 0x109   :  { %686 = vst [vmem:[%s1585_s3 + $0x70] sm:$0xff] %v424_v12  ;;  %718 = vst [vmem:[%s1585_s3 + $0x170] sm:$0xff] %v584_v14  ;;  %v922_v15 = vpop.f32.mrb[16].mxu0  ;;  %v970_v16 = vpop.f32.mrb[16].mxu1 }
 0x10a   :  { %v439_v17 = vadd.f32 %v922_v15, %v1324_v13  ;;  %v599_v18 = vadd.f32 %v970_v16, %v1324_v13  ;;  %v433_v19 = vpop.f32.mrb[17].mxu0  ;;  %v593_v20 = vpop.f32.mrb[17].mxu1 }
 0x10b   :  { %v434_v21 = vadd.f32 %v1324_v13, %v433_v19  ;;  %v594_v22 = vadd.f32 %v1324_v13, %v593_v20 }
 0x10c   :  { %689 = vst [vmem:[%s1585_s3 + $0x88] sm:$0xff] %v439_v17  ;;  %721 = vst [vmem:[%s1585_s3 + $0x188] sm:$0xff] %v599_v18 }
 0x10d   :  { %688 = vst [vmem:[%s1585_s3 + $0x80] sm:$0xff] %v434_v21  ;;  %720 = vst [vmem:[%s1585_s3 + $0x180] sm:$0xff] %v594_v22  ;;  %v925_v23 = vpop.f32.mrb[18].mxu0  ;;  %v973_v24 = vpop.f32.mrb[18].mxu1 }
 0x10e   :  { %v449_v25 = vadd.f32 %v925_v23, %v1324_v13  ;;  %v609_v26 = vadd.f32 %v973_v24, %v1324_v13  ;;  %v443_v27 = vpop.f32.mrb[19].mxu0  ;;  %v603_v28 = vpop.f32.mrb[19].mxu1 }
 0x10f   :  { %v444_v29 = vadd.f32 %v1324_v13, %v443_v27  ;;  %v604_v30 = vadd.f32 %v1324_v13, %v603_v28 }
 0x110   :  { %691 = vst [vmem:[%s1585_s3 + $0x98] sm:$0xff] %v449_v25  ;;  %723 = vst [vmem:[%s1585_s3 + $0x198] sm:$0xff] %v609_v26 }
 0x111   :  { %690 = vst [vmem:[%s1585_s3 + $0x90] sm:$0xff] %v444_v29  ;;  %722 = vst [vmem:[%s1585_s3 + $0x190] sm:$0xff] %v604_v30  ;;  %v928_v31 = vpop.f32.mrb[20].mxu0  ;;  %v976_v32 = vpop.f32.mrb[20].mxu1 }
 0x112   :  { %v459_v33 = vadd.f32 %v928_v31, %v1324_v13  ;;  %v619_v34 = vadd.f32 %v976_v32, %v1324_v13  ;;  %v453_v35 = vpop.f32.mrb[21].mxu0  ;;  %v613_v36 = vpop.f32.mrb[21].mxu1 }
 0x113   :  { %v454_v37 = vadd.f32 %v1324_v13, %v453_v35  ;;  %v614_v38 = vadd.f32 %v1324_v13, %v613_v36 }
 0x114   :  { %693 = vst [vmem:[%s1585_s3 + $0xa8] sm:$0xff] %v459_v33  ;;  %725 = vst [vmem:[%s1585_s3 + $0x1a8] sm:$0xff] %v619_v34 }
 0x115   :  { %692 = vst [vmem:[%s1585_s3 + $0xa0] sm:$0xff] %v454_v37  ;;  %724 = vst [vmem:[%s1585_s3 + $0x1a0] sm:$0xff] %v614_v38  ;;  %v931_v39 = vpop.f32.mrb[22].mxu0  ;;  %v979_v40 = vpop.f32.mrb[22].mxu1 }
 0x116   :  { %v469_v41 = vadd.f32 %v931_v39, %v1324_v13  ;;  %v629_v42 = vadd.f32 %v979_v40, %v1324_v13  ;;  %v463_v43 = vpop.f32.mrb[23].mxu0  ;;  %v623_v44 = vpop.f32.mrb[23].mxu1 }
 0x117   :  { %v464_v45 = vadd.f32 %v1324_v13, %v463_v43  ;;  %v624_v46 = vadd.f32 %v1324_v13, %v623_v44 }
 0x118   :  { %695 = vst [vmem:[%s1585_s3 + $0xb8] sm:$0xff] %v469_v41  ;;  %727 = vst [vmem:[%s1585_s3 + $0x1b8] sm:$0xff] %v629_v42 }
 0x119   :  { %694 = vst [vmem:[%s1585_s3 + $0xb0] sm:$0xff] %v464_v45  ;;  %726 = vst [vmem:[%s1585_s3 + $0x1b0] sm:$0xff] %v624_v46  ;;  %v934_v47 = vpop.f32.mrb[24].mxu0  ;;  %v982_v48 = vpop.f32.mrb[24].mxu1 }
 0x11a   :  { %v479_v49 = vadd.f32 %v934_v47, %v1324_v13  ;;  %v639_v50 = vadd.f32 %v982_v48, %v1324_v13  ;;  %v473_v51 = vpop.f32.mrb[25].mxu0  ;;  %v633_v52 = vpop.f32.mrb[25].mxu1 }
 0x11b   :  { %v474_v53 = vadd.f32 %v1324_v13, %v473_v51  ;;  %v634_v54 = vadd.f32 %v1324_v13, %v633_v52 }
 0x11c   :  { %697 = vst [vmem:[%s1585_s3 + $0xc8] sm:$0xff] %v479_v49  ;;  %729 = vst [vmem:[%s1585_s3 + $0x1c8] sm:$0xff] %v639_v50 }
 0x11d   :  { %696 = vst [vmem:[%s1585_s3 + $0xc0] sm:$0xff] %v474_v53  ;;  %728 = vst [vmem:[%s1585_s3 + $0x1c0] sm:$0xff] %v634_v54  ;;  %v937_v55 = vpop.f32.mrb[26].mxu0  ;;  %v985_v56 = vpop.f32.mrb[26].mxu1 }
 0x11e   :  { %v489_v57 = vadd.f32 %v937_v55, %v1324_v13  ;;  %v649_v58 = vadd.f32 %v985_v56, %v1324_v13  ;;  %v483_v59 = vpop.f32.mrb[27].mxu0  ;;  %v643_v60 = vpop.f32.mrb[27].mxu1 }
 0x11f   :  { %v484_v61 = vadd.f32 %v1324_v13, %v483_v59  ;;  %v644_v62 = vadd.f32 %v1324_v13, %v643_v60 }
 0x120   :  { %699 = vst [vmem:[%s1585_s3 + $0xd8] sm:$0xff] %v489_v57  ;;  %731 = vst [vmem:[%s1585_s3 + $0x1d8] sm:$0xff] %v649_v58 }
 0x121   :  { %698 = vst [vmem:[%s1585_s3 + $0xd0] sm:$0xff] %v484_v61  ;;  %730 = vst [vmem:[%s1585_s3 + $0x1d0] sm:$0xff] %v644_v62  ;;  %v940_v63 = vpop.f32.mrb[28].mxu0  ;;  %v988_v0 = vpop.f32.mrb[28].mxu1 }
 0x122   :  { %v499_v1 = vadd.f32 %v940_v63, %v1324_v13  ;;  %v659_v2 = vadd.f32 %v988_v0, %v1324_v13  ;;  %v493_v3 = vpop.f32.mrb[29].mxu0  ;;  %v653_v4 = vpop.f32.mrb[29].mxu1 }
 0x123   :  { %v494_v5 = vadd.f32 %v1324_v13, %v493_v3  ;;  %v654_v6 = vadd.f32 %v1324_v13, %v653_v4 }
 0x124   :  { %701 = vst [vmem:[%s1585_s3 + $0xe8] sm:$0xff] %v499_v1  ;;  %733 = vst [vmem:[%s1585_s3 + $0x1e8] sm:$0xff] %v659_v2 }
 0x125   :  { %700 = vst [vmem:[%s1585_s3 + $0xe0] sm:$0xff] %v494_v5  ;;  %732 = vst [vmem:[%s1585_s3 + $0x1e0] sm:$0xff] %v654_v6  ;;  %v943_v7 = vpop.f32.mrb[30].mxu0  ;;  %v991_v8 = vpop.f32.mrb[30].mxu1 }
 0x126   :  { %v509_v9 = vadd.f32 %v943_v7, %v1324_v13  ;;  %v669_v10 = vadd.f32 %v991_v8, %v1324_v13  ;;  %v503_v11 = vpop.f32.mrb[31].mxu0  ;;  %v663_v12 = vpop.f32.mrb[31].mxu1 }
 0x127   :  { %v504_v14 = vadd.f32 %v1324_v13, %v503_v11  ;;  %v664_v15 = vadd.f32 %v1324_v13, %v663_v12 }
 0x128   :  { %703 = vst [vmem:[%s1585_s3 + $0xf8] sm:$0xff] %v509_v9  ;;  %735 = vst [vmem:[%s1585_s3 + $0x1f8] sm:$0xff] %v669_v10 }
 0x129   :  { %702 = vst [vmem:[%s1585_s3 + $0xf0] sm:$0xff] %v504_v14  ;;  %734 = vst [vmem:[%s1585_s3 + $0x1f0] sm:$0xff] %v664_v15 }

// kernel: hagca2_forward.18
= control target key start
LH: loop header
LB: loop body
LE: loop exit
PB: predicated region body
PF: predicated region fallthrough
CT: control target
= control target key end

     0   :  { %vm90_vm0 = vcmask 326656   ;;  %s1542_s1 = inlined_call_operand.vmem [shape: f32[40,128], index: 1, kind: input, shape index: {}]   ;;  %s1543_s0 = inlined_call_operand.vmem [shape: f32[512,40], index: 0, kind: input, shape index: {}]   ;;  %s1544_s2 = inlined_call_operand.vmem [shape: f32[1,128], index: 2, kind: input, shape index: {}]   ;;  %s1545_s3 = inlined_call_operand.vmem [shape: f32[512,128], index: 3, kind: output, shape index: {}]  }
   0x1   :  { %v78_v0 = vld [vmem:[%s1542_s1] sm:$0xff]  ;;  %v79_v1 = vld [vmem:[%s1542_s1 + $0x8] sm:$0xff]  ;;  %v80_v2 = vld [vmem:[%s1542_s1 + $0x10] sm:$0xff] }
   0x2   :  { %v976_v3 = vpack.c.bf16 %v79_v1, %v78_v0  ;;  %v81_v4 = vld [vmem:[%s1542_s1 + $0x18] sm:$0xff]  ;;  %v14_v5 = vld [vmem:[%s1543_s0] sm:$0xff]  ;;  %v15_v9 = vld [vmem:[%s1543_s0 + $0x8] sm:$0xff] }
   0x3   :  { %v980_v6 = vpack.c.bf16 %v81_v4, %v80_v2  ;;  %880 = vmatprep.mubr.msk.f32.mxu0 %vm90_vm0, %v14_v5  ;;  %v46_v7 = vld [vmem:[%s1543_s0 + $0x100] sm:$0xff]  ;;  %v47_v10 = vld [vmem:[%s1543_s0 + $0x108] sm:$0xff]  ;;  %v16_v11 = vld [vmem:[%s1543_s0 + $0x10] sm:$0xff] }
   0x4   :  { %977 = vmatprep.subr.bf16.mxu0 %v976_v3  ;;  %984 = vmatprep.subr.bf16.mxu1 %v976_v3  ;;  %v82_v8 = vld [vmem:[%s1542_s1 + $0x20] sm:$0xff]  ;;  %v48_v12 = vld [vmem:[%s1543_s0 + $0x110] sm:$0xff]  ;;  %v17_v13 = vld [vmem:[%s1543_s0 + $0x18] sm:$0xff] }
   0x5   :  { %979 = vmatpush3.bf16.msra.mxu0 %v976_v3  ;;  %987 = vmatpush3.bf16.msra.mxu1 %v976_v3  ;;  %v49_v14 = vld [vmem:[%s1543_s0 + $0x118] sm:$0xff]  ;;  %v18_v15 = vld [vmem:[%s1543_s0 + $0x20] sm:$0xff]  ;;  %v19_v17 = vld [vmem:[%s1543_s0 + $0x28] sm:$0xff] }
   0x6   :  { %981 = vmatprep.subr.bf16.mxu0 %v980_v6  ;;  %985 = vmatprep.subr.bf16.mxu1 %v980_v6  ;;  %v50_v16 = vld [vmem:[%s1543_s0 + $0x120] sm:$0xff]  ;;  %v51_v18 = vld [vmem:[%s1543_s0 + $0x128] sm:$0xff]  ;;  %v20_v19 = vld [vmem:[%s1543_s0 + $0x30] sm:$0xff] }
   0x7   :  { %928 = vmatprep.mubr.msk.f32.mxu1 %vm90_vm0, %v46_v7  ;;  %v52_v20 = vld [vmem:[%s1543_s0 + $0x130] sm:$0xff]  ;;  %v21_v21 = vld [vmem:[%s1543_s0 + $0x38] sm:$0xff]  ;;  %v22_v23 = vld [vmem:[%s1543_s0 + $0x40] sm:$0xff] }
   0x8   :  { %v53_v22 = vld [vmem:[%s1543_s0 + $0x138] sm:$0xff]  ;;  %v54_v24 = vld [vmem:[%s1543_s0 + $0x140] sm:$0xff]  ;;  %v23_v25 = vld [vmem:[%s1543_s0 + $0x48] sm:$0xff] }
   0x9   :  { %983 = vmatpush3.bf16.msra.mxu0 %v980_v6  ;;  %988 = vmatpush3.bf16.msra.mxu1 %v980_v6  ;;  %v55_v26 = vld [vmem:[%s1543_s0 + $0x148] sm:$0xff]  ;;  %v24_v27 = vld [vmem:[%s1543_s0 + $0x50] sm:$0xff]  ;;  %v25_v29 = vld [vmem:[%s1543_s0 + $0x58] sm:$0xff] }
   0xa   :  { %878 = vmatprep.subr.mxu0 %v82_v8  ;;  %986 = vmatprep.subr.mxu1 %v82_v8  ;;  %v56_v28 = vld [vmem:[%s1543_s0 + $0x150] sm:$0xff]  ;;  %v57_v30 = vld [vmem:[%s1543_s0 + $0x158] sm:$0xff]  ;;  %v26_v31 = vld [vmem:[%s1543_s0 + $0x60] sm:$0xff] }
   0xb   :  { %v58_v32 = vld [vmem:[%s1543_s0 + $0x160] sm:$0xff]  ;;  %v27_v33 = vld [vmem:[%s1543_s0 + $0x68] sm:$0xff]  ;;  %v28_v35 = vld [vmem:[%s1543_s0 + $0x70] sm:$0xff] }
   0xc   :  { %v59_v34 = vld [vmem:[%s1543_s0 + $0x168] sm:$0xff]  ;;  %v60_v36 = vld [vmem:[%s1543_s0 + $0x170] sm:$0xff]  ;;  %v29_v37 = vld [vmem:[%s1543_s0 + $0x78] sm:$0xff] }
   0xd   :  { %879 = vmatpush3.msra.mxu0 %v82_v8  ;;  %989 = vmatpush3.msra.mxu1 %v82_v8  ;;  %v61_v38 = vld [vmem:[%s1543_s0 + $0x178] sm:$0xff]  ;;  %v30_v39 = vld [vmem:[%s1543_s0 + $0x80] sm:$0xff]  ;;  %v31_v41 = vld [vmem:[%s1543_s0 + $0x88] sm:$0xff] }
   0xe   :  { %881 = vmatmul.mubr.msk.f32.vlgmr.msra.gmra.mrb[0].mxu0 %vm90_vm0, %v15_v9  ;;  %929 = vmatmul.mubr.msk.f32.vlgmr.msra.gmra.mrb[0].mxu1 %vm90_vm0, %v47_v10  ;;  %v62_v40 = vld [vmem:[%s1543_s0 + $0x180] sm:$0xff]  ;;  %v63_v42 = vld [vmem:[%s1543_s0 + $0x188] sm:$0xff]  ;;  %v32_v43 = vld [vmem:[%s1543_s0 + $0x90] sm:$0xff] }
   0xf   :  { %883 = vmatprep.mubr.msk.f32.mxu0 %vm90_vm0, %v16_v11  ;;  %931 = vmatprep.mubr.msk.f32.mxu1 %vm90_vm0, %v48_v12  ;;  %v64_v44 = vld [vmem:[%s1543_s0 + $0x190] sm:$0xff]  ;;  %v33_v45 = vld [vmem:[%s1543_s0 + $0x98] sm:$0xff]  ;;  %v34_v47 = vld [vmem:[%s1543_s0 + $0xa0] sm:$0xff] }
  0x10   :  { %v65_v46 = vld [vmem:[%s1543_s0 + $0x198] sm:$0xff]  ;;  %v66_v48 = vld [vmem:[%s1543_s0 + $0x1a0] sm:$0xff]  ;;  %v35_v49 = vld [vmem:[%s1543_s0 + $0xa8] sm:$0xff] }
  0x11   :  { %v67_v50 = vld [vmem:[%s1543_s0 + $0x1a8] sm:$0xff]  ;;  %v36_v51 = vld [vmem:[%s1543_s0 + $0xb0] sm:$0xff]  ;;  %v37_v53 = vld [vmem:[%s1543_s0 + $0xb8] sm:$0xff] }
  0x12   :  { %884 = vmatmul.mubr.msk.f32.gmra.mrb[2].mxu0 %vm90_vm0, %v17_v13  ;;  %932 = vmatmul.mubr.msk.f32.gmra.mrb[2].mxu1 %vm90_vm0, %v49_v14  ;;  %v68_v52 = vld [vmem:[%s1543_s0 + $0x1b0] sm:$0xff]  ;;  %v69_v54 = vld [vmem:[%s1543_s0 + $0x1b8] sm:$0xff]  ;;  %v38_v55 = vld [vmem:[%s1543_s0 + $0xc0] sm:$0xff] }
  0x13   :  { %886 = vmatprep.mubr.msk.f32.mxu0 %vm90_vm0, %v18_v15  ;;  %934 = vmatprep.mubr.msk.f32.mxu1 %vm90_vm0, %v50_v16  ;;  %v70_v56 = vld [vmem:[%s1543_s0 + $0x1c0] sm:$0xff]  ;;  %v39_v57 = vld [vmem:[%s1543_s0 + $0xc8] sm:$0xff]  ;;  %v40_v59 = vld [vmem:[%s1543_s0 + $0xd0] sm:$0xff] }
  0x14   :  { %v71_v58 = vld [vmem:[%s1543_s0 + $0x1c8] sm:$0xff]  ;;  %v72_v60 = vld [vmem:[%s1543_s0 + $0x1d0] sm:$0xff]  ;;  %v41_v61 = vld [vmem:[%s1543_s0 + $0xd8] sm:$0xff] }
  0x15   :  { %v73_v62 = vld [vmem:[%s1543_s0 + $0x1d8] sm:$0xff]  ;;  %v42_v63 = vld [vmem:[%s1543_s0 + $0xe0] sm:$0xff]  ;;  %v43_v1 = vld [vmem:[%s1543_s0 + $0xe8] sm:$0xff] }
  0x16   :  { %887 = vmatmul.mubr.msk.f32.gmra.mrb[4].mxu0 %vm90_vm0, %v19_v17  ;;  %935 = vmatmul.mubr.msk.f32.gmra.mrb[4].mxu1 %vm90_vm0, %v51_v18  ;;  %v74_v0 = vld [vmem:[%s1543_s0 + $0x1e0] sm:$0xff]  ;;  %v75_v2 = vld [vmem:[%s1543_s0 + $0x1e8] sm:$0xff]  ;;  %v44_v3 = vld [vmem:[%s1543_s0 + $0xf0] sm:$0xff] }
  0x17   :  { %889 = vmatprep.mubr.msk.f32.mxu0 %vm90_vm0, %v20_v19  ;;  %937 = vmatprep.mubr.msk.f32.mxu1 %vm90_vm0, %v52_v20  ;;  %v76_v4 = vld [vmem:[%s1543_s0 + $0x1f0] sm:$0xff]  ;;  %v45_v5 = vld [vmem:[%s1543_s0 + $0xf8] sm:$0xff]  ;;  %v1284_v7 = vld [vmem:[%s1544_s2] ss:$0 sm:$0xff] }
  0x18   :  { %v77_v6 = vld [vmem:[%s1543_s0 + $0x1f8] sm:$0xff] }
  0x1a   :  { %890 = vmatmul.mubr.msk.f32.gmra.mrb[6].mxu0 %vm90_vm0, %v21_v21  ;;  %938 = vmatmul.mubr.msk.f32.gmra.mrb[6].mxu1 %vm90_vm0, %v53_v22 }
  0x1b   :  { %892 = vmatprep.mubr.msk.f32.mxu0 %vm90_vm0, %v22_v23  ;;  %940 = vmatprep.mubr.msk.f32.mxu1 %vm90_vm0, %v54_v24 }
  0x1e   :  { %893 = vmatmul.mubr.msk.f32.gmra.mrb[8].mxu0 %vm90_vm0, %v23_v25  ;;  %941 = vmatmul.mubr.msk.f32.gmra.mrb[8].mxu1 %vm90_vm0, %v55_v26 }
  0x1f   :  { %895 = vmatprep.mubr.msk.f32.mxu0 %vm90_vm0, %v24_v27  ;;  %943 = vmatprep.mubr.msk.f32.mxu1 %vm90_vm0, %v56_v28 }
  0x22   :  { %896 = vmatmul.mubr.msk.f32.gmra.mrb[10].mxu0 %vm90_vm0, %v25_v29  ;;  %944 = vmatmul.mubr.msk.f32.gmra.mrb[10].mxu1 %vm90_vm0, %v57_v30 }
  0x23   :  { %898 = vmatprep.mubr.msk.f32.mxu0 %vm90_vm0, %v26_v31  ;;  %946 = vmatprep.mubr.msk.f32.mxu1 %vm90_vm0, %v58_v32 }
  0x26   :  { %899 = vmatmul.mubr.msk.f32.gmra.mrb[12].mxu0 %vm90_vm0, %v27_v33  ;;  %947 = vmatmul.mubr.msk.f32.gmra.mrb[12].mxu1 %vm90_vm0, %v59_v34 }
  0x27   :  { %901 = vmatprep.mubr.msk.f32.mxu0 %vm90_vm0, %v28_v35  ;;  %949 = vmatprep.mubr.msk.f32.mxu1 %vm90_vm0, %v60_v36 }
  0x2a   :  { %902 = vmatmul.mubr.msk.f32.gmra.mrb[14].mxu0 %vm90_vm0, %v29_v37  ;;  %950 = vmatmul.mubr.msk.f32.gmra.mrb[14].mxu1 %vm90_vm0, %v61_v38 }
  0x2b   :  { %904 = vmatprep.mubr.msk.f32.mxu0 %vm90_vm0, %v30_v39  ;;  %952 = vmatprep.mubr.msk.f32.mxu1 %vm90_vm0, %v62_v40 }
  0x2e   :  { %905 = vmatmul.mubr.msk.f32.gmra.mrb[16].mxu0 %vm90_vm0, %v31_v41  ;;  %953 = vmatmul.mubr.msk.f32.gmra.mrb[16].mxu1 %vm90_vm0, %v63_v42 }
  0x2f   :  { %907 = vmatprep.mubr.msk.f32.mxu0 %vm90_vm0, %v32_v43  ;;  %955 = vmatprep.mubr.msk.f32.mxu1 %vm90_vm0, %v64_v44 }
  0x32   :  { %908 = vmatmul.mubr.msk.f32.gmra.mrb[18].mxu0 %vm90_vm0, %v33_v45  ;;  %956 = vmatmul.mubr.msk.f32.gmra.mrb[18].mxu1 %vm90_vm0, %v65_v46 }
  0x33   :  { %910 = vmatprep.mubr.msk.f32.mxu0 %vm90_vm0, %v34_v47  ;;  %958 = vmatprep.mubr.msk.f32.mxu1 %vm90_vm0, %v66_v48 }
  0x36   :  { %911 = vmatmul.mubr.msk.f32.gmra.mrb[20].mxu0 %vm90_vm0, %v35_v49  ;;  %959 = vmatmul.mubr.msk.f32.gmra.mrb[20].mxu1 %vm90_vm0, %v67_v50 }
  0x37   :  { %913 = vmatprep.mubr.msk.f32.mxu0 %vm90_vm0, %v36_v51  ;;  %961 = vmatprep.mubr.msk.f32.mxu1 %vm90_vm0, %v68_v52 }
  0x3a   :  { %914 = vmatmul.mubr.msk.f32.gmra.mrb[22].mxu0 %vm90_vm0, %v37_v53  ;;  %962 = vmatmul.mubr.msk.f32.gmra.mrb[22].mxu1 %vm90_vm0, %v69_v54 }
  0x3b   :  { %916 = vmatprep.mubr.msk.f32.mxu0 %vm90_vm0, %v38_v55  ;;  %964 = vmatprep.mubr.msk.f32.mxu1 %vm90_vm0, %v70_v56 }
  0x3e   :  { %917 = vmatmul.mubr.msk.f32.gmra.mrb[24].mxu0 %vm90_vm0, %v39_v57  ;;  %965 = vmatmul.mubr.msk.f32.gmra.mrb[24].mxu1 %vm90_vm0, %v71_v58 }
  0x3f   :  { %919 = vmatprep.mubr.msk.f32.mxu0 %vm90_vm0, %v40_v59  ;;  %967 = vmatprep.mubr.msk.f32.mxu1 %vm90_vm0, %v72_v60 }
  0x42   :  { %920 = vmatmul.mubr.msk.f32.gmra.mrb[26].mxu0 %vm90_vm0, %v41_v61  ;;  %968 = vmatmul.mubr.msk.f32.gmra.mrb[26].mxu1 %vm90_vm0, %v73_v62 }
  0x43   :  { %922 = vmatprep.mubr.msk.f32.mxu0 %vm90_vm0, %v42_v63  ;;  %970 = vmatprep.mubr.msk.f32.mxu1 %vm90_vm0, %v74_v0 }
  0x46   :  { %923 = vmatmul.mubr.msk.f32.gmra.mrb[28].mxu0 %vm90_vm0, %v43_v1  ;;  %971 = vmatmul.mubr.msk.f32.gmra.mrb[28].mxu1 %vm90_vm0, %v75_v2 }
  0x47   :  { %925 = vmatprep.mubr.msk.f32.mxu0 %vm90_vm0, %v44_v3  ;;  %973 = vmatprep.mubr.msk.f32.mxu1 %vm90_vm0, %v76_v4 }
  0x4a   :  { %926 = vmatmul.mubr.msk.f32.gmra.mrb[30].mxu0 %vm90_vm0, %v45_v5  ;;  %974 = vmatmul.mubr.msk.f32.gmra.mrb[30].mxu1 %vm90_vm0, %v77_v6 }
  0xe1   :  { %v882_v8 = vpop.f32.mrb[0].mxu0  ;;  %v930_v9 = vpop.f32.mrb[0].mxu1 }
  0xe2   :  { %v355_v10 = vadd.f32 %v882_v8, %v1284_v7  ;;  %v515_v11 = vadd.f32 %v930_v9, %v1284_v7  ;;  %v349_v12 = vpop.f32.mrb[1].mxu0  ;;  %v509_v13 = vpop.f32.mrb[1].mxu1 }
  0xe3   :  { %v350_v14 = vadd.f32 %v1284_v7, %v349_v12  ;;  %v510_v15 = vadd.f32 %v1284_v7, %v509_v13 }
  0xe4   :  { %669 = vst [vmem:[%s1545_s3 + $0x8] sm:$0xff] %v355_v10  ;;  %701 = vst [vmem:[%s1545_s3 + $0x108] sm:$0xff] %v515_v11 }
  0xe5   :  { %668 = vst [vmem:[%s1545_s3] sm:$0xff] %v350_v14  ;;  %700 = vst [vmem:[%s1545_s3 + $0x100] sm:$0xff] %v510_v15  ;;  %v885_v16 = vpop.f32.mrb[2].mxu0  ;;  %v933_v17 = vpop.f32.mrb[2].mxu1 }
  0xe6   :  { %v365_v18 = vadd.f32 %v885_v16, %v1284_v7  ;;  %v525_v19 = vadd.f32 %v933_v17, %v1284_v7  ;;  %v359_v20 = vpop.f32.mrb[3].mxu0  ;;  %v519_v21 = vpop.f32.mrb[3].mxu1 }
  0xe7   :  { %v360_v22 = vadd.f32 %v1284_v7, %v359_v20  ;;  %v520_v23 = vadd.f32 %v1284_v7, %v519_v21 }
  0xe8   :  { %671 = vst [vmem:[%s1545_s3 + $0x18] sm:$0xff] %v365_v18  ;;  %703 = vst [vmem:[%s1545_s3 + $0x118] sm:$0xff] %v525_v19 }
  0xe9   :  { %670 = vst [vmem:[%s1545_s3 + $0x10] sm:$0xff] %v360_v22  ;;  %702 = vst [vmem:[%s1545_s3 + $0x110] sm:$0xff] %v520_v23  ;;  %v888_v24 = vpop.f32.mrb[4].mxu0  ;;  %v936_v25 = vpop.f32.mrb[4].mxu1 }
  0xea   :  { %v375_v26 = vadd.f32 %v888_v24, %v1284_v7  ;;  %v535_v27 = vadd.f32 %v936_v25, %v1284_v7  ;;  %v369_v28 = vpop.f32.mrb[5].mxu0  ;;  %v529_v29 = vpop.f32.mrb[5].mxu1 }
  0xeb   :  { %v370_v30 = vadd.f32 %v1284_v7, %v369_v28  ;;  %v530_v31 = vadd.f32 %v1284_v7, %v529_v29 }
  0xec   :  { %673 = vst [vmem:[%s1545_s3 + $0x28] sm:$0xff] %v375_v26  ;;  %705 = vst [vmem:[%s1545_s3 + $0x128] sm:$0xff] %v535_v27 }
  0xed   :  { %672 = vst [vmem:[%s1545_s3 + $0x20] sm:$0xff] %v370_v30  ;;  %704 = vst [vmem:[%s1545_s3 + $0x120] sm:$0xff] %v530_v31  ;;  %v891_v32 = vpop.f32.mrb[6].mxu0  ;;  %v939_v33 = vpop.f32.mrb[6].mxu1 }
  0xee   :  { %v385_v34 = vadd.f32 %v891_v32, %v1284_v7  ;;  %v545_v35 = vadd.f32 %v939_v33, %v1284_v7  ;;  %v379_v36 = vpop.f32.mrb[7].mxu0  ;;  %v539_v37 = vpop.f32.mrb[7].mxu1 }
  0xef   :  { %v380_v38 = vadd.f32 %v1284_v7, %v379_v36  ;;  %v540_v39 = vadd.f32 %v1284_v7, %v539_v37 }
  0xf0   :  { %675 = vst [vmem:[%s1545_s3 + $0x38] sm:$0xff] %v385_v34  ;;  %707 = vst [vmem:[%s1545_s3 + $0x138] sm:$0xff] %v545_v35 }
  0xf1   :  { %674 = vst [vmem:[%s1545_s3 + $0x30] sm:$0xff] %v380_v38  ;;  %706 = vst [vmem:[%s1545_s3 + $0x130] sm:$0xff] %v540_v39  ;;  %v894_v40 = vpop.f32.mrb[8].mxu0  ;;  %v942_v41 = vpop.f32.mrb[8].mxu1 }
  0xf2   :  { %v395_v42 = vadd.f32 %v894_v40, %v1284_v7  ;;  %v555_v43 = vadd.f32 %v942_v41, %v1284_v7  ;;  %v389_v44 = vpop.f32.mrb[9].mxu0  ;;  %v549_v45 = vpop.f32.mrb[9].mxu1 }
  0xf3   :  { %v390_v46 = vadd.f32 %v1284_v7, %v389_v44  ;;  %v550_v47 = vadd.f32 %v1284_v7, %v549_v45 }
  0xf4   :  { %677 = vst [vmem:[%s1545_s3 + $0x48] sm:$0xff] %v395_v42  ;;  %709 = vst [vmem:[%s1545_s3 + $0x148] sm:$0xff] %v555_v43 }
  0xf5   :  { %676 = vst [vmem:[%s1545_s3 + $0x40] sm:$0xff] %v390_v46  ;;  %708 = vst [vmem:[%s1545_s3 + $0x140] sm:$0xff] %v550_v47  ;;  %v897_v48 = vpop.f32.mrb[10].mxu0  ;;  %v945_v49 = vpop.f32.mrb[10].mxu1 }
  0xf6   :  { %v405_v50 = vadd.f32 %v897_v48, %v1284_v7  ;;  %v565_v51 = vadd.f32 %v945_v49, %v1284_v7  ;;  %v399_v52 = vpop.f32.mrb[11].mxu0  ;;  %v559_v53 = vpop.f32.mrb[11].mxu1 }
  0xf7   :  { %v400_v54 = vadd.f32 %v1284_v7, %v399_v52  ;;  %v560_v55 = vadd.f32 %v1284_v7, %v559_v53 }
  0xf8   :  { %679 = vst [vmem:[%s1545_s3 + $0x58] sm:$0xff] %v405_v50  ;;  %711 = vst [vmem:[%s1545_s3 + $0x158] sm:$0xff] %v565_v51 }
  0xf9   :  { %678 = vst [vmem:[%s1545_s3 + $0x50] sm:$0xff] %v400_v54  ;;  %710 = vst [vmem:[%s1545_s3 + $0x150] sm:$0xff] %v560_v55  ;;  %v900_v56 = vpop.f32.mrb[12].mxu0  ;;  %v948_v57 = vpop.f32.mrb[12].mxu1 }
  0xfa   :  { %v415_v58 = vadd.f32 %v900_v56, %v1284_v7  ;;  %v575_v59 = vadd.f32 %v948_v57, %v1284_v7  ;;  %v409_v60 = vpop.f32.mrb[13].mxu0  ;;  %v569_v61 = vpop.f32.mrb[13].mxu1 }
  0xfb   :  { %v410_v62 = vadd.f32 %v1284_v7, %v409_v60  ;;  %v570_v63 = vadd.f32 %v1284_v7, %v569_v61 }
  0xfc   :  { %681 = vst [vmem:[%s1545_s3 + $0x68] sm:$0xff] %v415_v58  ;;  %713 = vst [vmem:[%s1545_s3 + $0x168] sm:$0xff] %v575_v59 }
  0xfd   :  { %680 = vst [vmem:[%s1545_s3 + $0x60] sm:$0xff] %v410_v62  ;;  %712 = vst [vmem:[%s1545_s3 + $0x160] sm:$0xff] %v570_v63  ;;  %v903_v0 = vpop.f32.mrb[14].mxu0  ;;  %v951_v1 = vpop.f32.mrb[14].mxu1 }
  0xfe   :  { %v425_v2 = vadd.f32 %v903_v0, %v1284_v7  ;;  %v585_v3 = vadd.f32 %v951_v1, %v1284_v7  ;;  %v419_v4 = vpop.f32.mrb[15].mxu0  ;;  %v579_v5 = vpop.f32.mrb[15].mxu1 }
  0xff   :  { %v420_v6 = vadd.f32 %v1284_v7, %v419_v4  ;;  %v580_v8 = vadd.f32 %v1284_v7, %v579_v5 }
 0x100   :  { %683 = vst [vmem:[%s1545_s3 + $0x78] sm:$0xff] %v425_v2  ;;  %715 = vst [vmem:[%s1545_s3 + $0x178] sm:$0xff] %v585_v3 }
 0x101   :  { %682 = vst [vmem:[%s1545_s3 + $0x70] sm:$0xff] %v420_v6  ;;  %714 = vst [vmem:[%s1545_s3 + $0x170] sm:$0xff] %v580_v8  ;;  %v906_v9 = vpop.f32.mrb[16].mxu0  ;;  %v954_v10 = vpop.f32.mrb[16].mxu1 }
 0x102   :  { %v435_v11 = vadd.f32 %v906_v9, %v1284_v7  ;;  %v595_v12 = vadd.f32 %v954_v10, %v1284_v7  ;;  %v429_v13 = vpop.f32.mrb[17].mxu0  ;;  %v589_v14 = vpop.f32.mrb[17].mxu1 }
 0x103   :  { %v430_v15 = vadd.f32 %v1284_v7, %v429_v13  ;;  %v590_v16 = vadd.f32 %v1284_v7, %v589_v14 }
 0x104   :  { %685 = vst [vmem:[%s1545_s3 + $0x88] sm:$0xff] %v435_v11  ;;  %717 = vst [vmem:[%s1545_s3 + $0x188] sm:$0xff] %v595_v12 }
 0x105   :  { %684 = vst [vmem:[%s1545_s3 + $0x80] sm:$0xff] %v430_v15  ;;  %716 = vst [vmem:[%s1545_s3 + $0x180] sm:$0xff] %v590_v16  ;;  %v909_v17 = vpop.f32.mrb[18].mxu0  ;;  %v957_v18 = vpop.f32.mrb[18].mxu1 }
 0x106   :  { %v445_v19 = vadd.f32 %v909_v17, %v1284_v7  ;;  %v605_v20 = vadd.f32 %v957_v18, %v1284_v7  ;;  %v439_v21 = vpop.f32.mrb[19].mxu0  ;;  %v599_v22 = vpop.f32.mrb[19].mxu1 }
 0x107   :  { %v440_v23 = vadd.f32 %v1284_v7, %v439_v21  ;;  %v600_v24 = vadd.f32 %v1284_v7, %v599_v22 }
 0x108   :  { %687 = vst [vmem:[%s1545_s3 + $0x98] sm:$0xff] %v445_v19  ;;  %719 = vst [vmem:[%s1545_s3 + $0x198] sm:$0xff] %v605_v20 }
 0x109   :  { %686 = vst [vmem:[%s1545_s3 + $0x90] sm:$0xff] %v440_v23  ;;  %718 = vst [vmem:[%s1545_s3 + $0x190] sm:$0xff] %v600_v24  ;;  %v912_v25 = vpop.f32.mrb[20].mxu0  ;;  %v960_v26 = vpop.f32.mrb[20].mxu1 }
 0x10a   :  { %v455_v27 = vadd.f32 %v912_v25, %v1284_v7  ;;  %v615_v28 = vadd.f32 %v960_v26, %v1284_v7  ;;  %v449_v29 = vpop.f32.mrb[21].mxu0  ;;  %v609_v30 = vpop.f32.mrb[21].mxu1 }
 0x10b   :  { %v450_v31 = vadd.f32 %v1284_v7, %v449_v29  ;;  %v610_v32 = vadd.f32 %v1284_v7, %v609_v30 }
 0x10c   :  { %689 = vst [vmem:[%s1545_s3 + $0xa8] sm:$0xff] %v455_v27  ;;  %721 = vst [vmem:[%s1545_s3 + $0x1a8] sm:$0xff] %v615_v28 }
 0x10d   :  { %688 = vst [vmem:[%s1545_s3 + $0xa0] sm:$0xff] %v450_v31  ;;  %720 = vst [vmem:[%s1545_s3 + $0x1a0] sm:$0xff] %v610_v32  ;;  %v915_v33 = vpop.f32.mrb[22].mxu0  ;;  %v963_v34 = vpop.f32.mrb[22].mxu1 }
 0x10e   :  { %v465_v35 = vadd.f32 %v915_v33, %v1284_v7  ;;  %v625_v36 = vadd.f32 %v963_v34, %v1284_v7  ;;  %v459_v37 = vpop.f32.mrb[23].mxu0  ;;  %v619_v38 = vpop.f32.mrb[23].mxu1 }
 0x10f   :  { %v460_v39 = vadd.f32 %v1284_v7, %v459_v37  ;;  %v620_v40 = vadd.f32 %v1284_v7, %v619_v38 }
 0x110   :  { %691 = vst [vmem:[%s1545_s3 + $0xb8] sm:$0xff] %v465_v35  ;;  %723 = vst [vmem:[%s1545_s3 + $0x1b8] sm:$0xff] %v625_v36 }
 0x111   :  { %690 = vst [vmem:[%s1545_s3 + $0xb0] sm:$0xff] %v460_v39  ;;  %722 = vst [vmem:[%s1545_s3 + $0x1b0] sm:$0xff] %v620_v40  ;;  %v918_v41 = vpop.f32.mrb[24].mxu0  ;;  %v966_v42 = vpop.f32.mrb[24].mxu1 }
 0x112   :  { %v475_v43 = vadd.f32 %v918_v41, %v1284_v7  ;;  %v635_v44 = vadd.f32 %v966_v42, %v1284_v7  ;;  %v469_v45 = vpop.f32.mrb[25].mxu0  ;;  %v629_v46 = vpop.f32.mrb[25].mxu1 }
 0x113   :  { %v470_v47 = vadd.f32 %v1284_v7, %v469_v45  ;;  %v630_v48 = vadd.f32 %v1284_v7, %v629_v46 }
 0x114   :  { %693 = vst [vmem:[%s1545_s3 + $0xc8] sm:$0xff] %v475_v43  ;;  %725 = vst [vmem:[%s1545_s3 + $0x1c8] sm:$0xff] %v635_v44 }
 0x115   :  { %692 = vst [vmem:[%s1545_s3 + $0xc0] sm:$0xff] %v470_v47  ;;  %724 = vst [vmem:[%s1545_s3 + $0x1c0] sm:$0xff] %v630_v48  ;;  %v921_v49 = vpop.f32.mrb[26].mxu0  ;;  %v969_v50 = vpop.f32.mrb[26].mxu1 }
 0x116   :  { %v485_v51 = vadd.f32 %v921_v49, %v1284_v7  ;;  %v645_v52 = vadd.f32 %v969_v50, %v1284_v7  ;;  %v479_v53 = vpop.f32.mrb[27].mxu0  ;;  %v639_v54 = vpop.f32.mrb[27].mxu1 }
 0x117   :  { %v480_v55 = vadd.f32 %v1284_v7, %v479_v53  ;;  %v640_v56 = vadd.f32 %v1284_v7, %v639_v54 }
 0x118   :  { %695 = vst [vmem:[%s1545_s3 + $0xd8] sm:$0xff] %v485_v51  ;;  %727 = vst [vmem:[%s1545_s3 + $0x1d8] sm:$0xff] %v645_v52 }
 0x119   :  { %694 = vst [vmem:[%s1545_s3 + $0xd0] sm:$0xff] %v480_v55  ;;  %726 = vst [vmem:[%s1545_s3 + $0x1d0] sm:$0xff] %v640_v56  ;;  %v924_v57 = vpop.f32.mrb[28].mxu0  ;;  %v972_v58 = vpop.f32.mrb[28].mxu1 }
 0x11a   :  { %v495_v59 = vadd.f32 %v924_v57, %v1284_v7  ;;  %v655_v60 = vadd.f32 %v972_v58, %v1284_v7  ;;  %v489_v61 = vpop.f32.mrb[29].mxu0  ;;  %v649_v62 = vpop.f32.mrb[29].mxu1 }
 0x11b   :  { %v490_v63 = vadd.f32 %v1284_v7, %v489_v61  ;;  %v650_v0 = vadd.f32 %v1284_v7, %v649_v62 }
 0x11c   :  { %697 = vst [vmem:[%s1545_s3 + $0xe8] sm:$0xff] %v495_v59  ;;  %729 = vst [vmem:[%s1545_s3 + $0x1e8] sm:$0xff] %v655_v60 }
 0x11d   :  { %696 = vst [vmem:[%s1545_s3 + $0xe0] sm:$0xff] %v490_v63  ;;  %728 = vst [vmem:[%s1545_s3 + $0x1e0] sm:$0xff] %v650_v0  ;;  %v927_v1 = vpop.f32.mrb[30].mxu0  ;;  %v975_v2 = vpop.f32.mrb[30].mxu1 }
 0x11e   :  { %v505_v3 = vadd.f32 %v927_v1, %v1284_v7  ;;  %v665_v4 = vadd.f32 %v975_v2, %v1284_v7  ;;  %v499_v5 = vpop.f32.mrb[31].mxu0  ;;  %v659_v6 = vpop.f32.mrb[31].mxu1 }
 0x11f   :  { %v500_v8 = vadd.f32 %v1284_v7, %v499_v5  ;;  %v660_v9 = vadd.f32 %v1284_v7, %v659_v6 }
 0x120   :  { %699 = vst [vmem:[%s1545_s3 + $0xf8] sm:$0xff] %v505_v3  ;;  %731 = vst [vmem:[%s1545_s3 + $0x1f8] sm:$0xff] %v665_v4 }
 0x121   :  { %698 = vst [vmem:[%s1545_s3 + $0xf0] sm:$0xff] %v500_v8  ;;  %730 = vst [vmem:[%s1545_s3 + $0x1f0] sm:$0xff] %v660_v9 }

// kernel: hagca2_forward.21
= control target key start
LH: loop header
LB: loop body
LE: loop exit
PB: predicated region body
PF: predicated region fallthrough
CT: control target
= control target key end

     0   :  { %v1151_v0 = vmov 0.0|0.0   ;;  %vm179_vm0 = vcmask 719872   ;;  %v1152_v42 = vmov 0.0   ;;  %s2186_s1 = inlined_call_operand.vmem [shape: f32[216,128], index: 1, kind: input, shape index: {}]   ;;  %s2187_s0 = inlined_call_operand.vmem [shape: f32[512,216], index: 0, kind: input, shape index: {}]   ;;  %s2188_s2 = inlined_call_operand.vmem [shape: f32[1,128], index: 2, kind: input, shape index: {}]   ;;  %s2189_s3 = inlined_call_operand.vmem [shape: f32[512,128], index: 3, kind: input, shape index: {}]   ;;  %s2190_s4 = inlined_call_operand.vmem [shape: f32[512,128], index: 4, kind: output, shape index: {}]  }
   0x1   :  { %1082 = vmatprep.subr.bf16.mxu0 %v1151_v0  ;;  %1121 = vmatprep.subr.bf16.mxu1 %v1151_v0  ;;  %v145_v1 = vld [vmem:[%s2186_s1] sm:$0xff]  ;;  %v146_v2 = vld [vmem:[%s2186_s1 + $0x8] sm:$0xff]  ;;  %v147_v3 = vld [vmem:[%s2186_s1 + $0x10] sm:$0xff] }
   0x2   :  { %v1083_v4 = vpack.c.bf16 %v146_v2, %v145_v1  ;;  %v148_v5 = vld [vmem:[%s2186_s1 + $0x18] sm:$0xff]  ;;  %v149_v7 = vld [vmem:[%s2186_s1 + $0x20] sm:$0xff]  ;;  %v150_v8 = vld [vmem:[%s2186_s1 + $0x28] sm:$0xff] }
   0x3   :  { %v1086_v6 = vpack.c.bf16 %v148_v5, %v147_v3  ;;  %v1089_v9 = vpack.c.bf16 %v150_v8, %v149_v7  ;;  %v151_v10 = vld [vmem:[%s2186_s1 + $0x30] sm:$0xff]  ;;  %v152_v11 = vld [vmem:[%s2186_s1 + $0x38] sm:$0xff]  ;;  %v18_v12 = vld [vmem:[%s2187_s0 + $0x8] sm:$0xff] }
   0x4   :  { %1084 = vmatpush1.bf16.msra.mxu0 %v1083_v4  ;;  %1135 = vmatpush1.bf16.msra.mxu1 %v1083_v4  ;;  %v82_v13 = vld [vmem:[%s2187_s0 + $0x208] sm:$0xff]  ;;  %v1092_v14 = vpack.c.bf16 %v152_v11, %v151_v10  ;;  %v153_v15 = vld [vmem:[%s2186_s1 + $0x40] sm:$0xff]  ;;  %v155_v18 = vld [vmem:[%s2186_s1 + $0x50] sm:$0xff] }
   0x5   :  { %1085 = vmatprep.subr.bf16.mxu0 %v1151_v0  ;;  %1122 = vmatprep.subr.bf16.mxu1 %v1151_v0  ;;  %v154_v16 = vld [vmem:[%s2186_s1 + $0x48] sm:$0xff]  ;;  %v156_v19 = vld [vmem:[%s2186_s1 + $0x58] sm:$0xff]  ;;  %v157_v21 = vld [vmem:[%s2186_s1 + $0x60] sm:$0xff] }
   0x6   :  { %1018 = vmatprep.mubr.msk.f32.mxu0 %vm179_vm0, %v18_v12  ;;  %1050 = vmatprep.mubr.msk.f32.mxu1 %vm179_vm0, %v82_v13  ;;  %v1095_v17 = vpack.c.bf16 %v154_v16, %v153_v15  ;;  %v1098_v20 = vpack.c.bf16 %v156_v19, %v155_v18  ;;  %v158_v22 = vld [vmem:[%s2186_s1 + $0x68] sm:$0xff]  ;;  %v159_v24 = vld [vmem:[%s2186_s1 + $0x70] sm:$0xff]  ;;  %v160_v25 = vld [vmem:[%s2186_s1 + $0x78] sm:$0xff] }
   0x7   :  { %v1101_v23 = vpack.c.bf16 %v158_v22, %v157_v21  ;;  %v1104_v26 = vpack.c.bf16 %v160_v25, %v159_v24  ;;  %v161_v27 = vld [vmem:[%s2186_s1 + $0x80] sm:$0xff]  ;;  %v162_v28 = vld [vmem:[%s2186_s1 + $0x88] sm:$0xff]  ;;  %v163_v30 = vld [vmem:[%s2186_s1 + $0x90] sm:$0xff] }
   0x8   :  { %1087 = vmatpush1.bf16.msra.mxu0 %v1086_v6  ;;  %1136 = vmatpush1.bf16.msra.mxu1 %v1086_v6  ;;  %v1107_v29 = vpack.c.bf16 %v162_v28, %v161_v27  ;;  %v164_v31 = vld [vmem:[%s2186_s1 + $0x98] sm:$0xff]  ;;  %v165_v33 = vld [vmem:[%s2186_s1 + $0xa0] sm:$0xff]  ;;  %v166_v34 = vld [vmem:[%s2186_s1 + $0xa8] sm:$0xff] }
   0x9   :  { %1088 = vmatprep.subr.bf16.mxu0 %v1151_v0  ;;  %1123 = vmatprep.subr.bf16.mxu1 %v1151_v0  ;;  %v1110_v32 = vpack.c.bf16 %v164_v31, %v163_v30  ;;  %v1113_v35 = vpack.c.bf16 %v166_v34, %v165_v33  ;;  %v167_v36 = vld [vmem:[%s2186_s1 + $0xb0] sm:$0xff]  ;;  %v168_v37 = vld [vmem:[%s2186_s1 + $0xb8] sm:$0xff]  ;;  %v169_v39 = vld [vmem:[%s2186_s1 + $0xc0] sm:$0xff] }
   0xa   :  { %v1116_v38 = vpack.c.bf16 %v168_v37, %v167_v36  ;;  %v170_v40 = vld [vmem:[%s2186_s1 + $0xc8] sm:$0xff]  ;;  %v171_v43 = vld [vmem:[%s2186_s1 + $0xd0] sm:$0xff]  ;;  %v17_v44 = vld [vmem:[%s2187_s0] sm:$0xff] }
   0xb   :  { %v1119_v41 = vpack.c.bf16 %v170_v40, %v169_v39  ;;  %v81_v45 = vld [vmem:[%s2187_s0 + $0x200] sm:$0xff]  ;;  %v20_v46 = vld [vmem:[%s2187_s0 + $0x18] sm:$0xff]  ;;  %v19_v48 = vld [vmem:[%s2187_s0 + $0x10] sm:$0xff] }
   0xc   :  { %1090 = vmatpush1.bf16.msra.mxu0 %v1089_v9  ;;  %1137 = vmatpush1.bf16.msra.mxu1 %v1089_v9  ;;  %v84_v47 = vld [vmem:[%s2187_s0 + $0x218] sm:$0xff]  ;;  %v83_v49 = vld [vmem:[%s2187_s0 + $0x210] sm:$0xff]  ;;  %v22_v50 = vld [vmem:[%s2187_s0 + $0x28] sm:$0xff] }
   0xd   :  { %1091 = vmatprep.subr.bf16.mxu0 %v1151_v0  ;;  %1124 = vmatprep.subr.bf16.mxu1 %v1151_v0  ;;  %v86_v51 = vld [vmem:[%s2187_s0 + $0x228] sm:$0xff]  ;;  %v21_v52 = vld [vmem:[%s2187_s0 + $0x20] sm:$0xff]  ;;  %v24_v54 = vld [vmem:[%s2187_s0 + $0x38] sm:$0xff] }
   0xe   :  { %v85_v53 = vld [vmem:[%s2187_s0 + $0x220] sm:$0xff]  ;;  %v88_v55 = vld [vmem:[%s2187_s0 + $0x238] sm:$0xff]  ;;  %v23_v56 = vld [vmem:[%s2187_s0 + $0x30] sm:$0xff] }
   0xf   :  { %v87_v57 = vld [vmem:[%s2187_s0 + $0x230] sm:$0xff]  ;;  %v26_v58 = vld [vmem:[%s2187_s0 + $0x48] sm:$0xff]  ;;  %v25_v60 = vld [vmem:[%s2187_s0 + $0x40] sm:$0xff] }
  0x10   :  { %1093 = vmatpush1.bf16.msra.mxu0 %v1092_v14  ;;  %1138 = vmatpush1.bf16.msra.mxu1 %v1092_v14  ;;  %v90_v59 = vld [vmem:[%s2187_s0 + $0x248] sm:$0xff]  ;;  %v89_v61 = vld [vmem:[%s2187_s0 + $0x240] sm:$0xff]  ;;  %v28_v62 = vld [vmem:[%s2187_s0 + $0x58] sm:$0xff] }
  0x11   :  { %1094 = vmatprep.subr.bf16.mxu0 %v1151_v0  ;;  %1125 = vmatprep.subr.bf16.mxu1 %v1151_v0  ;;  %v92_v63 = vld [vmem:[%s2187_s0 + $0x258] sm:$0xff]  ;;  %v91_v1 = vld [vmem:[%s2187_s0 + $0x250] sm:$0xff]  ;;  %v30_v2 = vld [vmem:[%s2187_s0 + $0x68] sm:$0xff] }
  0x12   :  { %v94_v3 = vld [vmem:[%s2187_s0 + $0x268] sm:$0xff]  ;;  %v29_v4 = vld [vmem:[%s2187_s0 + $0x60] sm:$0xff]  ;;  %v32_v6 = vld [vmem:[%s2187_s0 + $0x78] sm:$0xff] }
  0x13   :  { %v93_v5 = vld [vmem:[%s2187_s0 + $0x260] sm:$0xff]  ;;  %v96_v7 = vld [vmem:[%s2187_s0 + $0x278] sm:$0xff]  ;;  %v31_v8 = vld [vmem:[%s2187_s0 + $0x70] sm:$0xff] }
  0x14   :  { %1096 = vmatpush1.bf16.msra.mxu0 %v1095_v17  ;;  %1139 = vmatpush1.bf16.msra.mxu1 %v1095_v17  ;;  %v95_v9 = vld [vmem:[%s2187_s0 + $0x270] sm:$0xff]  ;;  %v34_v10 = vld [vmem:[%s2187_s0 + $0x88] sm:$0xff]  ;;  %v33_v12 = vld [vmem:[%s2187_s0 + $0x80] sm:$0xff] }
  0x15   :  { %1097 = vmatprep.subr.bf16.mxu0 %v1151_v0  ;;  %1126 = vmatprep.subr.bf16.mxu1 %v1151_v0  ;;  %v98_v11 = vld [vmem:[%s2187_s0 + $0x288] sm:$0xff]  ;;  %v97_v13 = vld [vmem:[%s2187_s0 + $0x280] sm:$0xff]  ;;  %v36_v14 = vld [vmem:[%s2187_s0 + $0x98] sm:$0xff] }
  0x16   :  { %v100_v15 = vld [vmem:[%s2187_s0 + $0x298] sm:$0xff]  ;;  %v35_v16 = vld [vmem:[%s2187_s0 + $0x90] sm:$0xff]  ;;  %v38_v18 = vld [vmem:[%s2187_s0 + $0xa8] sm:$0xff] }
  0x17   :  { %v99_v17 = vld [vmem:[%s2187_s0 + $0x290] sm:$0xff]  ;;  %v102_v19 = vld [vmem:[%s2187_s0 + $0x2a8] sm:$0xff]  ;;  %v101_v21 = vld [vmem:[%s2187_s0 + $0x2a0] sm:$0xff] }
  0x18   :  { %1099 = vmatpush1.bf16.msra.mxu0 %v1098_v20  ;;  %1140 = vmatpush1.bf16.msra.mxu1 %v1098_v20  ;;  %v37_v20 = vld [vmem:[%s2187_s0 + $0xa0] sm:$0xff]  ;;  %v40_v22 = vld [vmem:[%s2187_s0 + $0xb8] sm:$0xff]  ;;  %v39_v24 = vld [vmem:[%s2187_s0 + $0xb0] sm:$0xff] }
  0x19   :  { %1100 = vmatprep.subr.bf16.mxu0 %v1151_v0  ;;  %1127 = vmatprep.subr.bf16.mxu1 %v1151_v0  ;;  %v103_v25 = vld [vmem:[%s2187_s0 + $0x2b0] sm:$0xff]  ;;  %v106_v27 = vld [vmem:[%s2187_s0 + $0x2c8] sm:$0xff]  ;;  %v41_v28 = vld [vmem:[%s2187_s0 + $0xc0] sm:$0xff] }
  0x1a   :  { %v44_v30 = vld [vmem:[%s2187_s0 + $0xd8] sm:$0xff]  ;;  %v107_v33 = vld [vmem:[%s2187_s0 + $0x2d0] sm:$0xff]  ;;  %v46_v34 = vld [vmem:[%s2187_s0 + $0xe8] sm:$0xff] }
  0x1b   :  { %v108_v31 = vld [vmem:[%s2187_s0 + $0x2d8] sm:$0xff]  ;;  %v45_v36 = vld [vmem:[%s2187_s0 + $0xe0] sm:$0xff]  ;;  %v47_v40 = vld [vmem:[%s2187_s0 + $0xf0] sm:$0xff] }
  0x1c   :  { %1102 = vmatpush1.bf16.msra.mxu0 %v1101_v23  ;;  %1141 = vmatpush1.bf16.msra.mxu1 %v1101_v23  ;;  %v104_v23 = vld [vmem:[%s2187_s0 + $0x2b8] sm:$0xff]  ;;  %v109_v37 = vld [vmem:[%s2187_s0 + $0x2e0] sm:$0xff] }
  0x1d   :  { %1103 = vmatprep.subr.bf16.mxu0 %v1151_v0  ;;  %1128 = vmatprep.subr.bf16.mxu1 %v1151_v0  ;;  %v112_v39 = vld [vmem:[%s2187_s0 + $0x2f8] sm:$0xff] }
  0x20   :  { %1105 = vmatpush1.bf16.msra.mxu0 %v1104_v26  ;;  %1142 = vmatpush1.bf16.msra.mxu1 %v1104_v26  ;;  %v42_v26 = vld [vmem:[%s2187_s0 + $0xc8] sm:$0xff] }
  0x21   :  { %1106 = vmatprep.subr.bf16.mxu0 %v1151_v0  ;;  %1129 = vmatprep.subr.bf16.mxu1 %v1151_v0 }
  0x24   :  { %1108 = vmatpush1.bf16.msra.mxu0 %v1107_v29  ;;  %1143 = vmatpush1.bf16.msra.mxu1 %v1107_v29  ;;  %v105_v29 = vld [vmem:[%s2187_s0 + $0x2c0] sm:$0xff] }
  0x25   :  { %1109 = vmatprep.subr.bf16.mxu0 %v1151_v0  ;;  %1130 = vmatprep.subr.bf16.mxu1 %v1151_v0 }
  0x28   :  { %1111 = vmatpush1.bf16.msra.mxu0 %v1110_v32  ;;  %1144 = vmatpush1.bf16.msra.mxu1 %v1110_v32  ;;  %v43_v32 = vld [vmem:[%s2187_s0 + $0xd0] sm:$0xff] }
  0x29   :  { %1112 = vmatprep.subr.bf16.mxu0 %v1151_v0  ;;  %1131 = vmatprep.subr.bf16.mxu1 %v1151_v0 }
  0x2c   :  { %1114 = vmatpush1.bf16.msra.mxu0 %v1113_v35  ;;  %1145 = vmatpush1.bf16.msra.mxu1 %v1113_v35  ;;  %v110_v35 = vld [vmem:[%s2187_s0 + $0x2e8] sm:$0xff] }
  0x2d   :  { %1115 = vmatprep.subr.bf16.mxu0 %v1151_v0  ;;  %1132 = vmatprep.subr.bf16.mxu1 %v1151_v0 }
  0x30   :  { %1117 = vmatpush1.bf16.msra.mxu0 %v1116_v38  ;;  %1146 = vmatpush1.bf16.msra.mxu1 %v1116_v38  ;;  %v48_v38 = vld [vmem:[%s2187_s0 + $0xf8] sm:$0xff] }
  0x31   :  { %1118 = vmatprep.subr.bf16.mxu0 %v1151_v0  ;;  %1133 = vmatprep.subr.bf16.mxu1 %v1151_v0  ;;  %v27_v0 = vld [vmem:[%s2187_s0 + $0x50] sm:$0xff] }
  0x34   :  { %1120 = vmatpush1.bf16.msra.mxu0 %v1119_v41  ;;  %1147 = vmatpush1.bf16.msra.mxu1 %v1119_v41  ;;  %v111_v41 = vld [vmem:[%s2187_s0 + $0x2f0] sm:$0xff] }
  0x35   :  { %424 = vmatprep.subr.mxu0 %v1152_v42  ;;  %1134 = vmatprep.subr.mxu1 %v1152_v42  ;;  %v50_v42 = vld [vmem:[%s2187_s0 + $0x108] sm:$0xff] }
  0x38   :  { %425 = vmatpush1.msra.mxu0 %v171_v43  ;;  %1148 = vmatpush1.msra.mxu1 %v171_v43  ;;  %v114_v43 = vld [vmem:[%s2187_s0 + $0x308] sm:$0xff] }
  0x39   :  { %437 = vmatmul.mubr.f32.vlgmr.msra.gmra.mrb[0].mxu0 %v17_v44  ;;  %597 = vmatmul.mubr.f32.vlgmr.msra.gmra.mrb[0].mxu1 %v81_v45  ;;  %v49_v44 = vld [vmem:[%s2187_s0 + $0x100] sm:$0xff] }
  0x3a   :  { %1019 = vmatprep.mubr.msk.f32.mxu0 %vm179_vm0, %v20_v46  ;;  %1051 = vmatprep.mubr.msk.f32.mxu1 %vm179_vm0, %v84_v47  ;;  %v113_v45 = vld [vmem:[%s2187_s0 + $0x300] sm:$0xff]  ;;  %v52_v46 = vld [vmem:[%s2187_s0 + $0x118] sm:$0xff] }
  0x3b   :  { %v116_v47 = vld [vmem:[%s2187_s0 + $0x318] sm:$0xff] }
  0x3d   :  { %442 = vmatmul.mubr.f32.gmra.mrb[2].mxu0 %v19_v48  ;;  %602 = vmatmul.mubr.f32.gmra.mrb[2].mxu1 %v83_v49  ;;  %v51_v48 = vld [vmem:[%s2187_s0 + $0x110] sm:$0xff] }
  0x3e   :  { %1020 = vmatprep.mubr.msk.f32.mxu0 %vm179_vm0, %v22_v50  ;;  %1052 = vmatprep.mubr.msk.f32.mxu1 %vm179_vm0, %v86_v51  ;;  %v115_v49 = vld [vmem:[%s2187_s0 + $0x310] sm:$0xff]  ;;  %v54_v50 = vld [vmem:[%s2187_s0 + $0x128] sm:$0xff] }
  0x3f   :  { %v118_v51 = vld [vmem:[%s2187_s0 + $0x328] sm:$0xff] }
  0x41   :  { %447 = vmatmul.mubr.f32.gmra.mrb[4].mxu0 %v21_v52  ;;  %607 = vmatmul.mubr.f32.gmra.mrb[4].mxu1 %v85_v53  ;;  %v53_v52 = vld [vmem:[%s2187_s0 + $0x120] sm:$0xff] }
  0x42   :  { %1021 = vmatprep.mubr.msk.f32.mxu0 %vm179_vm0, %v24_v54  ;;  %1053 = vmatprep.mubr.msk.f32.mxu1 %vm179_vm0, %v88_v55  ;;  %v117_v53 = vld [vmem:[%s2187_s0 + $0x320] sm:$0xff]  ;;  %v56_v54 = vld [vmem:[%s2187_s0 + $0x138] sm:$0xff] }
  0x43   :  { %v120_v55 = vld [vmem:[%s2187_s0 + $0x338] sm:$0xff] }
  0x45   :  { %452 = vmatmul.mubr.f32.gmra.mrb[6].mxu0 %v23_v56  ;;  %612 = vmatmul.mubr.f32.gmra.mrb[6].mxu1 %v87_v57  ;;  %v55_v56 = vld [vmem:[%s2187_s0 + $0x130] sm:$0xff] }
  0x46   :  { %1022 = vmatprep.mubr.msk.f32.mxu0 %vm179_vm0, %v26_v58  ;;  %1054 = vmatprep.mubr.msk.f32.mxu1 %vm179_vm0, %v90_v59  ;;  %v119_v57 = vld [vmem:[%s2187_s0 + $0x330] sm:$0xff]  ;;  %v58_v58 = vld [vmem:[%s2187_s0 + $0x148] sm:$0xff] }
  0x47   :  { %v122_v59 = vld [vmem:[%s2187_s0 + $0x348] sm:$0xff] }
  0x49   :  { %457 = vmatmul.mubr.f32.gmra.mrb[8].mxu0 %v25_v60  ;;  %617 = vmatmul.mubr.f32.gmra.mrb[8].mxu1 %v89_v61  ;;  %v57_v60 = vld [vmem:[%s2187_s0 + $0x140] sm:$0xff] }
  0x4a   :  { %1023 = vmatprep.mubr.msk.f32.mxu0 %vm179_vm0, %v28_v62  ;;  %1055 = vmatprep.mubr.msk.f32.mxu1 %vm179_vm0, %v92_v63  ;;  %v121_v61 = vld [vmem:[%s2187_s0 + $0x340] sm:$0xff]  ;;  %v60_v62 = vld [vmem:[%s2187_s0 + $0x158] sm:$0xff] }
  0x4b   :  { %v124_v63 = vld [vmem:[%s2187_s0 + $0x358] sm:$0xff] }
  0x4d   :  { %462 = vmatmul.mubr.f32.gmra.mrb[10].mxu0 %v27_v0  ;;  %622 = vmatmul.mubr.f32.gmra.mrb[10].mxu1 %v91_v1  ;;  %v59_v0 = vld [vmem:[%s2187_s0 + $0x150] sm:$0xff] }
  0x4e   :  { %1024 = vmatprep.mubr.msk.f32.mxu0 %vm179_vm0, %v30_v2  ;;  %1056 = vmatprep.mubr.msk.f32.mxu1 %vm179_vm0, %v94_v3  ;;  %v123_v1 = vld [vmem:[%s2187_s0 + $0x350] sm:$0xff]  ;;  %v62_v2 = vld [vmem:[%s2187_s0 + $0x168] sm:$0xff] }
  0x4f   :  { %v126_v3 = vld [vmem:[%s2187_s0 + $0x368] sm:$0xff] }
  0x51   :  { %467 = vmatmul.mubr.f32.gmra.mrb[12].mxu0 %v29_v4  ;;  %627 = vmatmul.mubr.f32.gmra.mrb[12].mxu1 %v93_v5  ;;  %v61_v4 = vld [vmem:[%s2187_s0 + $0x160] sm:$0xff] }
  0x52   :  { %1025 = vmatprep.mubr.msk.f32.mxu0 %vm179_vm0, %v32_v6  ;;  %1057 = vmatprep.mubr.msk.f32.mxu1 %vm179_vm0, %v96_v7  ;;  %v125_v5 = vld [vmem:[%s2187_s0 + $0x360] sm:$0xff]  ;;  %v64_v6 = vld [vmem:[%s2187_s0 + $0x178] sm:$0xff] }
  0x53   :  { %v128_v7 = vld [vmem:[%s2187_s0 + $0x378] sm:$0xff] }
  0x55   :  { %472 = vmatmul.mubr.f32.gmra.mrb[14].mxu0 %v31_v8  ;;  %632 = vmatmul.mubr.f32.gmra.mrb[14].mxu1 %v95_v9  ;;  %v63_v8 = vld [vmem:[%s2187_s0 + $0x170] sm:$0xff] }
  0x56   :  { %1026 = vmatprep.mubr.msk.f32.mxu0 %vm179_vm0, %v34_v10  ;;  %1058 = vmatprep.mubr.msk.f32.mxu1 %vm179_vm0, %v98_v11  ;;  %v127_v9 = vld [vmem:[%s2187_s0 + $0x370] sm:$0xff]  ;;  %v66_v10 = vld [vmem:[%s2187_s0 + $0x188] sm:$0xff] }
  0x57   :  { %v130_v11 = vld [vmem:[%s2187_s0 + $0x388] sm:$0xff] }
  0x59   :  { %477 = vmatmul.mubr.f32.gmra.mrb[16].mxu0 %v33_v12  ;;  %637 = vmatmul.mubr.f32.gmra.mrb[16].mxu1 %v97_v13  ;;  %v65_v12 = vld [vmem:[%s2187_s0 + $0x180] sm:$0xff] }
  0x5a   :  { %1027 = vmatprep.mubr.msk.f32.mxu0 %vm179_vm0, %v36_v14  ;;  %1059 = vmatprep.mubr.msk.f32.mxu1 %vm179_vm0, %v100_v15  ;;  %v129_v13 = vld [vmem:[%s2187_s0 + $0x380] sm:$0xff]  ;;  %v68_v14 = vld [vmem:[%s2187_s0 + $0x198] sm:$0xff] }
  0x5b   :  { %v132_v15 = vld [vmem:[%s2187_s0 + $0x398] sm:$0xff] }
  0x5d   :  { %482 = vmatmul.mubr.f32.gmra.mrb[18].mxu0 %v35_v16  ;;  %642 = vmatmul.mubr.f32.gmra.mrb[18].mxu1 %v99_v17  ;;  %v67_v16 = vld [vmem:[%s2187_s0 + $0x190] sm:$0xff] }
  0x5e   :  { %1028 = vmatprep.mubr.msk.f32.mxu0 %vm179_vm0, %v38_v18  ;;  %1060 = vmatprep.mubr.msk.f32.mxu1 %vm179_vm0, %v102_v19  ;;  %v131_v17 = vld [vmem:[%s2187_s0 + $0x390] sm:$0xff]  ;;  %v70_v18 = vld [vmem:[%s2187_s0 + $0x1a8] sm:$0xff] }
  0x5f   :  { %v134_v19 = vld [vmem:[%s2187_s0 + $0x3a8] sm:$0xff] }
  0x61   :  { %487 = vmatmul.mubr.f32.gmra.mrb[20].mxu0 %v37_v20  ;;  %647 = vmatmul.mubr.f32.gmra.mrb[20].mxu1 %v101_v21  ;;  %v69_v20 = vld [vmem:[%s2187_s0 + $0x1a0] sm:$0xff] }
  0x62   :  { %1029 = vmatprep.mubr.msk.f32.mxu0 %vm179_vm0, %v40_v22  ;;  %1061 = vmatprep.mubr.msk.f32.mxu1 %vm179_vm0, %v104_v23  ;;  %v133_v21 = vld [vmem:[%s2187_s0 + $0x3a0] sm:$0xff]  ;;  %v72_v22 = vld [vmem:[%s2187_s0 + $0x1b8] sm:$0xff] }
  0x63   :  { %v136_v23 = vld [vmem:[%s2187_s0 + $0x3b8] sm:$0xff] }
  0x65   :  { %492 = vmatmul.mubr.f32.gmra.mrb[22].mxu0 %v39_v24  ;;  %652 = vmatmul.mubr.f32.gmra.mrb[22].mxu1 %v103_v25  ;;  %v71_v24 = vld [vmem:[%s2187_s0 + $0x1b0] sm:$0xff] }
  0x66   :  { %1030 = vmatprep.mubr.msk.f32.mxu0 %vm179_vm0, %v42_v26  ;;  %1062 = vmatprep.mubr.msk.f32.mxu1 %vm179_vm0, %v106_v27  ;;  %v135_v25 = vld [vmem:[%s2187_s0 + $0x3b0] sm:$0xff]  ;;  %v74_v26 = vld [vmem:[%s2187_s0 + $0x1c8] sm:$0xff] }
  0x67   :  { %v138_v27 = vld [vmem:[%s2187_s0 + $0x3c8] sm:$0xff] }
  0x69   :  { %497 = vmatmul.mubr.f32.gmra.mrb[24].mxu0 %v41_v28  ;;  %657 = vmatmul.mubr.f32.gmra.mrb[24].mxu1 %v105_v29  ;;  %v73_v28 = vld [vmem:[%s2187_s0 + $0x1c0] sm:$0xff] }
  0x6a   :  { %1031 = vmatprep.mubr.msk.f32.mxu0 %vm179_vm0, %v44_v30  ;;  %1063 = vmatprep.mubr.msk.f32.mxu1 %vm179_vm0, %v108_v31  ;;  %v137_v29 = vld [vmem:[%s2187_s0 + $0x3c0] sm:$0xff]  ;;  %v76_v30 = vld [vmem:[%s2187_s0 + $0x1d8] sm:$0xff] }
  0x6b   :  { %v140_v31 = vld [vmem:[%s2187_s0 + $0x3d8] sm:$0xff] }
  0x6d   :  { %502 = vmatmul.mubr.f32.gmra.mrb[26].mxu0 %v43_v32  ;;  %662 = vmatmul.mubr.f32.gmra.mrb[26].mxu1 %v107_v33  ;;  %v75_v32 = vld [vmem:[%s2187_s0 + $0x1d0] sm:$0xff] }
  0x6e   :  { %1032 = vmatprep.mubr.msk.f32.mxu0 %vm179_vm0, %v46_v34  ;;  %1064 = vmatprep.mubr.msk.f32.mxu1 %vm179_vm0, %v110_v35  ;;  %v139_v33 = vld [vmem:[%s2187_s0 + $0x3d0] sm:$0xff]  ;;  %v78_v34 = vld [vmem:[%s2187_s0 + $0x1e8] sm:$0xff] }
  0x6f   :  { %v142_v35 = vld [vmem:[%s2187_s0 + $0x3e8] sm:$0xff] }
  0x71   :  { %507 = vmatmul.mubr.f32.gmra.mrb[28].mxu0 %v45_v36  ;;  %667 = vmatmul.mubr.f32.gmra.mrb[28].mxu1 %v109_v37  ;;  %v77_v36 = vld [vmem:[%s2187_s0 + $0x1e0] sm:$0xff] }
  0x72   :  { %1033 = vmatprep.mubr.msk.f32.mxu0 %vm179_vm0, %v48_v38  ;;  %1065 = vmatprep.mubr.msk.f32.mxu1 %vm179_vm0, %v112_v39  ;;  %v141_v37 = vld [vmem:[%s2187_s0 + $0x3e0] sm:$0xff]  ;;  %v80_v38 = vld [vmem:[%s2187_s0 + $0x1f8] sm:$0xff] }
  0x73   :  { %v144_v39 = vld [vmem:[%s2187_s0 + $0x3f8] sm:$0xff] }
  0x75   :  { %512 = vmatmul.mubr.f32.gmra.mrb[30].mxu0 %v47_v40  ;;  %672 = vmatmul.mubr.f32.gmra.mrb[30].mxu1 %v111_v41  ;;  %v79_v40 = vld [vmem:[%s2187_s0 + $0x1f0] sm:$0xff] }
  0x76   :  { %1034 = vmatprep.mubr.msk.f32.mxu0 %vm179_vm0, %v50_v42  ;;  %1066 = vmatprep.mubr.msk.f32.mxu1 %vm179_vm0, %v114_v43  ;;  %v143_v41 = vld [vmem:[%s2187_s0 + $0x3f0] sm:$0xff]  ;;  %v1736_v42 = vld [vmem:[%s2188_s2] ss:$0 sm:$0xff] }
  0x79   :  { %517 = vmatmul.mubr.f32.gmra.mrb[32].mxu0 %v49_v44  ;;  %677 = vmatmul.mubr.f32.gmra.mrb[32].mxu1 %v113_v45  ;;  %v757_v44 = vld [vmem:[%s2189_s3] sm:$0xff] }
  0x7a   :  { %1035 = vmatprep.mubr.msk.f32.mxu0 %vm179_vm0, %v52_v46  ;;  %1067 = vmatprep.mubr.msk.f32.mxu1 %vm179_vm0, %v116_v47  ;;  %v789_v46 = vld [vmem:[%s2189_s3 + $0x100] sm:$0xff] }
  0x7d   :  { %522 = vmatmul.mubr.f32.gmra.mrb[34].mxu0 %v51_v48  ;;  %682 = vmatmul.mubr.f32.gmra.mrb[34].mxu1 %v115_v49 }
  0x7e   :  { %1036 = vmatprep.mubr.msk.f32.mxu0 %vm179_vm0, %v54_v50  ;;  %1068 = vmatprep.mubr.msk.f32.mxu1 %vm179_vm0, %v118_v51 }
  0x81   :  { %527 = vmatmul.mubr.f32.gmra.mrb[36].mxu0 %v53_v52  ;;  %687 = vmatmul.mubr.f32.gmra.mrb[36].mxu1 %v117_v53 }
  0x82   :  { %1037 = vmatprep.mubr.msk.f32.mxu0 %vm179_vm0, %v56_v54  ;;  %1069 = vmatprep.mubr.msk.f32.mxu1 %vm179_vm0, %v120_v55  ;;  %v758_v54 = vld [vmem:[%s2189_s3 + $0x8] sm:$0xff] }
  0x85   :  { %532 = vmatmul.mubr.f32.gmra.mrb[38].mxu0 %v55_v56  ;;  %692 = vmatmul.mubr.f32.gmra.mrb[38].mxu1 %v119_v57  ;;  %v790_v56 = vld [vmem:[%s2189_s3 + $0x108] sm:$0xff] }
  0x86   :  { %1038 = vmatprep.mubr.msk.f32.mxu0 %vm179_vm0, %v58_v58  ;;  %1070 = vmatprep.mubr.msk.f32.mxu1 %vm179_vm0, %v122_v59 }
  0x89   :  { %537 = vmatmul.mubr.f32.gmra.mrb[40].mxu0 %v57_v60  ;;  %697 = vmatmul.mubr.f32.gmra.mrb[40].mxu1 %v121_v61 }
  0x8a   :  { %1039 = vmatprep.mubr.msk.f32.mxu0 %vm179_vm0, %v60_v62  ;;  %1071 = vmatprep.mubr.msk.f32.mxu1 %vm179_vm0, %v124_v63 }
  0x8d   :  { %542 = vmatmul.mubr.f32.gmra.mrb[42].mxu0 %v59_v0  ;;  %702 = vmatmul.mubr.f32.gmra.mrb[42].mxu1 %v123_v1 }
  0x8e   :  { %1040 = vmatprep.mubr.msk.f32.mxu0 %vm179_vm0, %v62_v2  ;;  %1072 = vmatprep.mubr.msk.f32.mxu1 %vm179_vm0, %v126_v3  ;;  %v759_v2 = vld [vmem:[%s2189_s3 + $0x10] sm:$0xff] }
  0x91   :  { %547 = vmatmul.mubr.f32.gmra.mrb[44].mxu0 %v61_v4  ;;  %707 = vmatmul.mubr.f32.gmra.mrb[44].mxu1 %v125_v5  ;;  %v791_v4 = vld [vmem:[%s2189_s3 + $0x110] sm:$0xff] }
  0x92   :  { %1041 = vmatprep.mubr.msk.f32.mxu0 %vm179_vm0, %v64_v6  ;;  %1073 = vmatprep.mubr.msk.f32.mxu1 %vm179_vm0, %v128_v7 }
  0x95   :  { %552 = vmatmul.mubr.f32.gmra.mrb[46].mxu0 %v63_v8  ;;  %712 = vmatmul.mubr.f32.gmra.mrb[46].mxu1 %v127_v9 }
  0x96   :  { %1042 = vmatprep.mubr.msk.f32.mxu0 %vm179_vm0, %v66_v10  ;;  %1074 = vmatprep.mubr.msk.f32.mxu1 %vm179_vm0, %v130_v11 }
  0x99   :  { %557 = vmatmul.mubr.f32.gmra.mrb[48].mxu0 %v65_v12  ;;  %717 = vmatmul.mubr.f32.gmra.mrb[48].mxu1 %v129_v13 }
  0x9a   :  { %1043 = vmatprep.mubr.msk.f32.mxu0 %vm179_vm0, %v68_v14  ;;  %1075 = vmatprep.mubr.msk.f32.mxu1 %vm179_vm0, %v132_v15  ;;  %v760_v14 = vld [vmem:[%s2189_s3 + $0x18] sm:$0xff] }
  0x9d   :  { %562 = vmatmul.mubr.f32.gmra.mrb[50].mxu0 %v67_v16  ;;  %722 = vmatmul.mubr.f32.gmra.mrb[50].mxu1 %v131_v17  ;;  %v792_v16 = vld [vmem:[%s2189_s3 + $0x118] sm:$0xff] }
  0x9e   :  { %1044 = vmatprep.mubr.msk.f32.mxu0 %vm179_vm0, %v70_v18  ;;  %1076 = vmatprep.mubr.msk.f32.mxu1 %vm179_vm0, %v134_v19 }
  0xa1   :  { %567 = vmatmul.mubr.f32.gmra.mrb[52].mxu0 %v69_v20  ;;  %727 = vmatmul.mubr.f32.gmra.mrb[52].mxu1 %v133_v21 }
  0xa2   :  { %1045 = vmatprep.mubr.msk.f32.mxu0 %vm179_vm0, %v72_v22  ;;  %1077 = vmatprep.mubr.msk.f32.mxu1 %vm179_vm0, %v136_v23 }
  0xa5   :  { %572 = vmatmul.mubr.f32.gmra.mrb[54].mxu0 %v71_v24  ;;  %732 = vmatmul.mubr.f32.gmra.mrb[54].mxu1 %v135_v25 }
  0xa6   :  { %1046 = vmatprep.mubr.msk.f32.mxu0 %vm179_vm0, %v74_v26  ;;  %1078 = vmatprep.mubr.msk.f32.mxu1 %vm179_vm0, %v138_v27  ;;  %v761_v26 = vld [vmem:[%s2189_s3 + $0x20] sm:$0xff] }
  0xa9   :  { %577 = vmatmul.mubr.f32.gmra.mrb[56].mxu0 %v73_v28  ;;  %737 = vmatmul.mubr.f32.gmra.mrb[56].mxu1 %v137_v29  ;;  %v793_v28 = vld [vmem:[%s2189_s3 + $0x120] sm:$0xff] }
  0xaa   :  { %1047 = vmatprep.mubr.msk.f32.mxu0 %vm179_vm0, %v76_v30  ;;  %1079 = vmatprep.mubr.msk.f32.mxu1 %vm179_vm0, %v140_v31 }
  0xad   :  { %582 = vmatmul.mubr.f32.gmra.mrb[58].mxu0 %v75_v32  ;;  %742 = vmatmul.mubr.f32.gmra.mrb[58].mxu1 %v139_v33 }
  0xae   :  { %1048 = vmatprep.mubr.msk.f32.mxu0 %vm179_vm0, %v78_v34  ;;  %1080 = vmatprep.mubr.msk.f32.mxu1 %vm179_vm0, %v142_v35 }
  0xb1   :  { %587 = vmatmul.mubr.f32.gmra.mrb[60].mxu0 %v77_v36  ;;  %747 = vmatmul.mubr.f32.gmra.mrb[60].mxu1 %v141_v37 }
  0xb2   :  { %1049 = vmatprep.mubr.msk.f32.mxu0 %vm179_vm0, %v80_v38  ;;  %1081 = vmatprep.mubr.msk.f32.mxu1 %vm179_vm0, %v144_v39  ;;  %v762_v38 = vld [vmem:[%s2189_s3 + $0x28] sm:$0xff] }
  0xb5   :  { %592 = vmatmul.mubr.f32.gmra.mrb[62].mxu0 %v79_v40  ;;  %752 = vmatmul.mubr.f32.gmra.mrb[62].mxu1 %v143_v41  ;;  %v794_v40 = vld [vmem:[%s2189_s3 + $0x128] sm:$0xff] }
 0x10c   :  { %v438_v43 = vpop.f32.mrb[0].mxu0  ;;  %v598_v45 = vpop.f32.mrb[0].mxu1 }
 0x10d   :  { %v439_v47 = vadd.f32 %v1736_v42, %v438_v43  ;;  %v599_v48 = vadd.f32 %v1736_v42, %v598_v45  ;;  %v440_v49 = vpop.f32.mrb[1].mxu0  ;;  %v600_v50 = vpop.f32.mrb[1].mxu1 }
 0x10f   :  { %v821_v51 = vadd.f32 %v757_v44, %v439_v47  ;;  %v853_v52 = vadd.f32 %v789_v46, %v599_v48 }
 0x110   :  { %v443_v53 = vpop.f32.mrb[2].mxu0  ;;  %v603_v55 = vpop.f32.mrb[2].mxu1 }
 0x111   :  { %v885_v57 = vmax.f32 %v821_v51, 0.0  ;;  %v917_v58 = vmax.f32 %v853_v52, 0.0  ;;  %v444_v59 = vadd.f32 %v1736_v42, %v443_v53  ;;  %v604_v60 = vadd.f32 %v1736_v42, %v603_v55  ;;  %v445_v61 = vpop.f32.mrb[3].mxu0  ;;  %v605_v62 = vpop.f32.mrb[3].mxu1  ;;  %v763_v51 = vld [vmem:[%s2189_s3 + $0x30] sm:$0xff] }
 0x112   :  { %v795_v53 = vld [vmem:[%s2189_s3 + $0x130] sm:$0xff] }
 0x113   :  { %949 = vst [vmem:[%s2190_s4] sm:$0xff] %v885_v57  ;;  %981 = vst [vmem:[%s2190_s4 + $0x100] sm:$0xff] %v917_v58  ;;  %v822_v63 = vadd.f32 %v758_v54, %v444_v59  ;;  %v854_v0 = vadd.f32 %v790_v56, %v604_v60 }
 0x114   :  { %v448_v1 = vpop.f32.mrb[4].mxu0  ;;  %v608_v3 = vpop.f32.mrb[4].mxu1 }
 0x115   :  { %v886_v5 = vmax.f32 %v822_v63, 0.0  ;;  %v918_v6 = vmax.f32 %v854_v0, 0.0  ;;  %v449_v7 = vadd.f32 %v1736_v42, %v448_v1  ;;  %v609_v8 = vadd.f32 %v1736_v42, %v608_v3  ;;  %v450_v9 = vpop.f32.mrb[5].mxu0  ;;  %v610_v10 = vpop.f32.mrb[5].mxu1  ;;  %v764_v63 = vld [vmem:[%s2189_s3 + $0x38] sm:$0xff] }
 0x116   :  { %v796_v1 = vld [vmem:[%s2189_s3 + $0x138] sm:$0xff] }
 0x117   :  { %950 = vst [vmem:[%s2190_s4 + $0x8] sm:$0xff] %v886_v5  ;;  %982 = vst [vmem:[%s2190_s4 + $0x108] sm:$0xff] %v918_v6  ;;  %v823_v11 = vadd.f32 %v759_v2, %v449_v7  ;;  %v855_v12 = vadd.f32 %v791_v4, %v609_v8 }
 0x118   :  { %v453_v13 = vpop.f32.mrb[6].mxu0  ;;  %v613_v15 = vpop.f32.mrb[6].mxu1 }
 0x119   :  { %v887_v17 = vmax.f32 %v823_v11, 0.0  ;;  %v919_v18 = vmax.f32 %v855_v12, 0.0  ;;  %v454_v19 = vadd.f32 %v1736_v42, %v453_v13  ;;  %v614_v20 = vadd.f32 %v1736_v42, %v613_v15  ;;  %v455_v21 = vpop.f32.mrb[7].mxu0  ;;  %v615_v22 = vpop.f32.mrb[7].mxu1  ;;  %v765_v11 = vld [vmem:[%s2189_s3 + $0x40] sm:$0xff] }
 0x11a   :  { %v797_v13 = vld [vmem:[%s2189_s3 + $0x140] sm:$0xff] }
 0x11b   :  { %951 = vst [vmem:[%s2190_s4 + $0x10] sm:$0xff] %v887_v17  ;;  %983 = vst [vmem:[%s2190_s4 + $0x110] sm:$0xff] %v919_v18  ;;  %v824_v23 = vadd.f32 %v760_v14, %v454_v19  ;;  %v856_v24 = vadd.f32 %v792_v16, %v614_v20 }
 0x11c   :  { %v458_v25 = vpop.f32.mrb[8].mxu0  ;;  %v618_v27 = vpop.f32.mrb[8].mxu1 }
 0x11d   :  { %v888_v29 = vmax.f32 %v824_v23, 0.0  ;;  %v920_v30 = vmax.f32 %v856_v24, 0.0  ;;  %v459_v31 = vadd.f32 %v1736_v42, %v458_v25  ;;  %v619_v32 = vadd.f32 %v1736_v42, %v618_v27  ;;  %v460_v33 = vpop.f32.mrb[9].mxu0  ;;  %v620_v34 = vpop.f32.mrb[9].mxu1  ;;  %v766_v23 = vld [vmem:[%s2189_s3 + $0x48] sm:$0xff] }
 0x11e   :  { %v798_v25 = vld [vmem:[%s2189_s3 + $0x148] sm:$0xff] }
 0x11f   :  { %952 = vst [vmem:[%s2190_s4 + $0x18] sm:$0xff] %v888_v29  ;;  %984 = vst [vmem:[%s2190_s4 + $0x118] sm:$0xff] %v920_v30  ;;  %v825_v35 = vadd.f32 %v761_v26, %v459_v31  ;;  %v857_v36 = vadd.f32 %v793_v28, %v619_v32 }
 0x120   :  { %v463_v37 = vpop.f32.mrb[10].mxu0  ;;  %v623_v39 = vpop.f32.mrb[10].mxu1 }
 0x121   :  { %v889_v41 = vmax.f32 %v825_v35, 0.0  ;;  %v921_v43 = vmax.f32 %v857_v36, 0.0  ;;  %v464_v44 = vadd.f32 %v1736_v42, %v463_v37  ;;  %v624_v45 = vadd.f32 %v1736_v42, %v623_v39  ;;  %v465_v46 = vpop.f32.mrb[11].mxu0  ;;  %v625_v47 = vpop.f32.mrb[11].mxu1  ;;  %v767_v35 = vld [vmem:[%s2189_s3 + $0x50] sm:$0xff] }
 0x122   :  { %v799_v37 = vld [vmem:[%s2189_s3 + $0x150] sm:$0xff] }
 0x123   :  { %953 = vst [vmem:[%s2190_s4 + $0x20] sm:$0xff] %v889_v41  ;;  %985 = vst [vmem:[%s2190_s4 + $0x120] sm:$0xff] %v921_v43  ;;  %v826_v48 = vadd.f32 %v762_v38, %v464_v44  ;;  %v858_v49 = vadd.f32 %v794_v40, %v624_v45 }
 0x124   :  { %v468_v50 = vpop.f32.mrb[12].mxu0  ;;  %v628_v52 = vpop.f32.mrb[12].mxu1 }
 0x125   :  { %v890_v54 = vmax.f32 %v826_v48, 0.0  ;;  %v922_v55 = vmax.f32 %v858_v49, 0.0  ;;  %v469_v56 = vadd.f32 %v1736_v42, %v468_v50  ;;  %v629_v57 = vadd.f32 %v1736_v42, %v628_v52  ;;  %v470_v58 = vpop.f32.mrb[13].mxu0  ;;  %v630_v59 = vpop.f32.mrb[13].mxu1  ;;  %v768_v48 = vld [vmem:[%s2189_s3 + $0x58] sm:$0xff] }
 0x126   :  { %v800_v50 = vld [vmem:[%s2189_s3 + $0x158] sm:$0xff] }
 0x127   :  { %954 = vst [vmem:[%s2190_s4 + $0x28] sm:$0xff] %v890_v54  ;;  %986 = vst [vmem:[%s2190_s4 + $0x128] sm:$0xff] %v922_v55  ;;  %v827_v60 = vadd.f32 %v763_v51, %v469_v56  ;;  %v859_v61 = vadd.f32 %v795_v53, %v629_v57 }
 0x128   :  { %v473_v62 = vpop.f32.mrb[14].mxu0  ;;  %v633_v0 = vpop.f32.mrb[14].mxu1 }
 0x129   :  { %v891_v2 = vmax.f32 %v827_v60, 0.0  ;;  %v923_v3 = vmax.f32 %v859_v61, 0.0  ;;  %v474_v4 = vadd.f32 %v1736_v42, %v473_v62  ;;  %v634_v5 = vadd.f32 %v1736_v42, %v633_v0  ;;  %v475_v6 = vpop.f32.mrb[15].mxu0  ;;  %v635_v7 = vpop.f32.mrb[15].mxu1  ;;  %v769_v60 = vld [vmem:[%s2189_s3 + $0x60] sm:$0xff] }
 0x12a   :  { %v801_v62 = vld [vmem:[%s2189_s3 + $0x160] sm:$0xff] }
 0x12b   :  { %955 = vst [vmem:[%s2190_s4 + $0x30] sm:$0xff] %v891_v2  ;;  %987 = vst [vmem:[%s2190_s4 + $0x130] sm:$0xff] %v923_v3  ;;  %v828_v8 = vadd.f32 %v764_v63, %v474_v4  ;;  %v860_v9 = vadd.f32 %v796_v1, %v634_v5 }
 0x12c   :  { %v478_v10 = vpop.f32.mrb[16].mxu0  ;;  %v638_v12 = vpop.f32.mrb[16].mxu1 }
 0x12d   :  { %v892_v14 = vmax.f32 %v828_v8, 0.0  ;;  %v924_v15 = vmax.f32 %v860_v9, 0.0  ;;  %v479_v16 = vadd.f32 %v1736_v42, %v478_v10  ;;  %v639_v17 = vadd.f32 %v1736_v42, %v638_v12  ;;  %v480_v18 = vpop.f32.mrb[17].mxu0  ;;  %v640_v19 = vpop.f32.mrb[17].mxu1  ;;  %v770_v8 = vld [vmem:[%s2189_s3 + $0x68] sm:$0xff] }
 0x12e   :  { %v802_v10 = vld [vmem:[%s2189_s3 + $0x168] sm:$0xff] }
 0x12f   :  { %956 = vst [vmem:[%s2190_s4 + $0x38] sm:$0xff] %v892_v14  ;;  %988 = vst [vmem:[%s2190_s4 + $0x138] sm:$0xff] %v924_v15  ;;  %v829_v20 = vadd.f32 %v765_v11, %v479_v16  ;;  %v861_v21 = vadd.f32 %v797_v13, %v639_v17 }
 0x130   :  { %v483_v22 = vpop.f32.mrb[18].mxu0  ;;  %v643_v24 = vpop.f32.mrb[18].mxu1 }
 0x131   :  { %v893_v26 = vmax.f32 %v829_v20, 0.0  ;;  %v925_v27 = vmax.f32 %v861_v21, 0.0  ;;  %v484_v28 = vadd.f32 %v1736_v42, %v483_v22  ;;  %v644_v29 = vadd.f32 %v1736_v42, %v643_v24  ;;  %v485_v30 = vpop.f32.mrb[19].mxu0  ;;  %v645_v31 = vpop.f32.mrb[19].mxu1  ;;  %v771_v20 = vld [vmem:[%s2189_s3 + $0x70] sm:$0xff] }
 0x132   :  { %v803_v22 = vld [vmem:[%s2189_s3 + $0x170] sm:$0xff] }
 0x133   :  { %957 = vst [vmem:[%s2190_s4 + $0x40] sm:$0xff] %v893_v26  ;;  %989 = vst [vmem:[%s2190_s4 + $0x140] sm:$0xff] %v925_v27  ;;  %v830_v32 = vadd.f32 %v766_v23, %v484_v28  ;;  %v862_v33 = vadd.f32 %v798_v25, %v644_v29 }
 0x134   :  { %v488_v34 = vpop.f32.mrb[20].mxu0  ;;  %v648_v36 = vpop.f32.mrb[20].mxu1 }
 0x135   :  { %v894_v38 = vmax.f32 %v830_v32, 0.0  ;;  %v926_v39 = vmax.f32 %v862_v33, 0.0  ;;  %v489_v40 = vadd.f32 %v1736_v42, %v488_v34  ;;  %v649_v41 = vadd.f32 %v1736_v42, %v648_v36  ;;  %v490_v43 = vpop.f32.mrb[21].mxu0  ;;  %v650_v44 = vpop.f32.mrb[21].mxu1  ;;  %v772_v32 = vld [vmem:[%s2189_s3 + $0x78] sm:$0xff] }
 0x136   :  { %v804_v34 = vld [vmem:[%s2189_s3 + $0x178] sm:$0xff] }
 0x137   :  { %958 = vst [vmem:[%s2190_s4 + $0x48] sm:$0xff] %v894_v38  ;;  %990 = vst [vmem:[%s2190_s4 + $0x148] sm:$0xff] %v926_v39  ;;  %v831_v45 = vadd.f32 %v767_v35, %v489_v40  ;;  %v863_v46 = vadd.f32 %v799_v37, %v649_v41 }
 0x138   :  { %v493_v47 = vpop.f32.mrb[22].mxu0  ;;  %v653_v49 = vpop.f32.mrb[22].mxu1 }
 0x139   :  { %v895_v51 = vmax.f32 %v831_v45, 0.0  ;;  %v927_v52 = vmax.f32 %v863_v46, 0.0  ;;  %v494_v53 = vadd.f32 %v1736_v42, %v493_v47  ;;  %v654_v54 = vadd.f32 %v1736_v42, %v653_v49  ;;  %v495_v55 = vpop.f32.mrb[23].mxu0  ;;  %v655_v56 = vpop.f32.mrb[23].mxu1  ;;  %v773_v45 = vld [vmem:[%s2189_s3 + $0x80] sm:$0xff] }
 0x13a   :  { %v805_v47 = vld [vmem:[%s2189_s3 + $0x180] sm:$0xff] }
 0x13b   :  { %959 = vst [vmem:[%s2190_s4 + $0x50] sm:$0xff] %v895_v51  ;;  %991 = vst [vmem:[%s2190_s4 + $0x150] sm:$0xff] %v927_v52  ;;  %v832_v57 = vadd.f32 %v768_v48, %v494_v53  ;;  %v864_v58 = vadd.f32 %v800_v50, %v654_v54 }
 0x13c   :  { %v498_v59 = vpop.f32.mrb[24].mxu0  ;;  %v658_v61 = vpop.f32.mrb[24].mxu1 }
 0x13d   :  { %v896_v63 = vmax.f32 %v832_v57, 0.0  ;;  %v928_v0 = vmax.f32 %v864_v58, 0.0  ;;  %v499_v1 = vadd.f32 %v1736_v42, %v498_v59  ;;  %v659_v2 = vadd.f32 %v1736_v42, %v658_v61  ;;  %v500_v3 = vpop.f32.mrb[25].mxu0  ;;  %v660_v4 = vpop.f32.mrb[25].mxu1  ;;  %v774_v57 = vld [vmem:[%s2189_s3 + $0x88] sm:$0xff] }
 0x13e   :  { %v806_v59 = vld [vmem:[%s2189_s3 + $0x188] sm:$0xff] }
 0x13f   :  { %960 = vst [vmem:[%s2190_s4 + $0x58] sm:$0xff] %v896_v63  ;;  %992 = vst [vmem:[%s2190_s4 + $0x158] sm:$0xff] %v928_v0  ;;  %v833_v5 = vadd.f32 %v769_v60, %v499_v1  ;;  %v865_v6 = vadd.f32 %v801_v62, %v659_v2 }
 0x140   :  { %v503_v7 = vpop.f32.mrb[26].mxu0  ;;  %v663_v9 = vpop.f32.mrb[26].mxu1 }
 0x141   :  { %v897_v11 = vmax.f32 %v833_v5, 0.0  ;;  %v929_v12 = vmax.f32 %v865_v6, 0.0  ;;  %v504_v13 = vadd.f32 %v1736_v42, %v503_v7  ;;  %v664_v14 = vadd.f32 %v1736_v42, %v663_v9  ;;  %v505_v15 = vpop.f32.mrb[27].mxu0  ;;  %v665_v16 = vpop.f32.mrb[27].mxu1  ;;  %v775_v5 = vld [vmem:[%s2189_s3 + $0x90] sm:$0xff] }
 0x142   :  { %v807_v7 = vld [vmem:[%s2189_s3 + $0x190] sm:$0xff] }
 0x143   :  { %961 = vst [vmem:[%s2190_s4 + $0x60] sm:$0xff] %v897_v11  ;;  %993 = vst [vmem:[%s2190_s4 + $0x160] sm:$0xff] %v929_v12  ;;  %v834_v17 = vadd.f32 %v770_v8, %v504_v13  ;;  %v866_v18 = vadd.f32 %v802_v10, %v664_v14 }
 0x144   :  { %v508_v19 = vpop.f32.mrb[28].mxu0  ;;  %v668_v21 = vpop.f32.mrb[28].mxu1 }
 0x145   :  { %v898_v23 = vmax.f32 %v834_v17, 0.0  ;;  %v930_v24 = vmax.f32 %v866_v18, 0.0  ;;  %v509_v25 = vadd.f32 %v1736_v42, %v508_v19  ;;  %v669_v26 = vadd.f32 %v1736_v42, %v668_v21  ;;  %v510_v27 = vpop.f32.mrb[29].mxu0  ;;  %v670_v28 = vpop.f32.mrb[29].mxu1  ;;  %v776_v17 = vld [vmem:[%s2189_s3 + $0x98] sm:$0xff] }
 0x146   :  { %v808_v19 = vld [vmem:[%s2189_s3 + $0x198] sm:$0xff] }
 0x147   :  { %962 = vst [vmem:[%s2190_s4 + $0x68] sm:$0xff] %v898_v23  ;;  %994 = vst [vmem:[%s2190_s4 + $0x168] sm:$0xff] %v930_v24  ;;  %v835_v29 = vadd.f32 %v771_v20, %v509_v25  ;;  %v867_v30 = vadd.f32 %v803_v22, %v669_v26 }
 0x148   :  { %v513_v31 = vpop.f32.mrb[30].mxu0  ;;  %v673_v33 = vpop.f32.mrb[30].mxu1 }
 0x149   :  { %v899_v35 = vmax.f32 %v835_v29, 0.0  ;;  %v931_v36 = vmax.f32 %v867_v30, 0.0  ;;  %v514_v37 = vadd.f32 %v1736_v42, %v513_v31  ;;  %v674_v38 = vadd.f32 %v1736_v42, %v673_v33  ;;  %v515_v39 = vpop.f32.mrb[31].mxu0  ;;  %v675_v40 = vpop.f32.mrb[31].mxu1  ;;  %v777_v29 = vld [vmem:[%s2189_s3 + $0xa0] sm:$0xff] }
 0x14a   :  { %v809_v31 = vld [vmem:[%s2189_s3 + $0x1a0] sm:$0xff] }
 0x14b   :  { %963 = vst [vmem:[%s2190_s4 + $0x70] sm:$0xff] %v899_v35  ;;  %995 = vst [vmem:[%s2190_s4 + $0x170] sm:$0xff] %v931_v36  ;;  %v836_v41 = vadd.f32 %v772_v32, %v514_v37  ;;  %v868_v43 = vadd.f32 %v804_v34, %v674_v38 }
 0x14c   :  { %v518_v44 = vpop.f32.mrb[32].mxu0  ;;  %v678_v46 = vpop.f32.mrb[32].mxu1 }
 0x14d   :  { %v900_v48 = vmax.f32 %v836_v41, 0.0  ;;  %v932_v49 = vmax.f32 %v868_v43, 0.0  ;;  %v519_v50 = vadd.f32 %v1736_v42, %v518_v44  ;;  %v679_v51 = vadd.f32 %v1736_v42, %v678_v46  ;;  %v520_v52 = vpop.f32.mrb[33].mxu0  ;;  %v680_v53 = vpop.f32.mrb[33].mxu1  ;;  %v778_v41 = vld [vmem:[%s2189_s3 + $0xa8] sm:$0xff] }
 0x14e   :  { %v810_v44 = vld [vmem:[%s2189_s3 + $0x1a8] sm:$0xff] }
 0x14f   :  { %964 = vst [vmem:[%s2190_s4 + $0x78] sm:$0xff] %v900_v48  ;;  %996 = vst [vmem:[%s2190_s4 + $0x178] sm:$0xff] %v932_v49  ;;  %v837_v54 = vadd.f32 %v773_v45, %v519_v50  ;;  %v869_v55 = vadd.f32 %v805_v47, %v679_v51 }
 0x150   :  { %v523_v56 = vpop.f32.mrb[34].mxu0  ;;  %v683_v58 = vpop.f32.mrb[34].mxu1 }
 0x151   :  { %v901_v60 = vmax.f32 %v837_v54, 0.0  ;;  %v933_v61 = vmax.f32 %v869_v55, 0.0  ;;  %v524_v62 = vadd.f32 %v1736_v42, %v523_v56  ;;  %v684_v63 = vadd.f32 %v1736_v42, %v683_v58  ;;  %v525_v0 = vpop.f32.mrb[35].mxu0  ;;  %v685_v1 = vpop.f32.mrb[35].mxu1  ;;  %v779_v54 = vld [vmem:[%s2189_s3 + $0xb0] sm:$0xff] }
 0x152   :  { %v811_v56 = vld [vmem:[%s2189_s3 + $0x1b0] sm:$0xff] }
 0x153   :  { %965 = vst [vmem:[%s2190_s4 + $0x80] sm:$0xff] %v901_v60  ;;  %997 = vst [vmem:[%s2190_s4 + $0x180] sm:$0xff] %v933_v61  ;;  %v838_v2 = vadd.f32 %v774_v57, %v524_v62  ;;  %v870_v3 = vadd.f32 %v806_v59, %v684_v63 }
 0x154   :  { %v528_v4 = vpop.f32.mrb[36].mxu0  ;;  %v688_v6 = vpop.f32.mrb[36].mxu1 }
 0x155   :  { %v902_v8 = vmax.f32 %v838_v2, 0.0  ;;  %v934_v9 = vmax.f32 %v870_v3, 0.0  ;;  %v529_v10 = vadd.f32 %v1736_v42, %v528_v4  ;;  %v689_v11 = vadd.f32 %v1736_v42, %v688_v6  ;;  %v530_v12 = vpop.f32.mrb[37].mxu0  ;;  %v690_v13 = vpop.f32.mrb[37].mxu1  ;;  %v780_v2 = vld [vmem:[%s2189_s3 + $0xb8] sm:$0xff] }
 0x156   :  { %v812_v4 = vld [vmem:[%s2189_s3 + $0x1b8] sm:$0xff] }
 0x157   :  { %966 = vst [vmem:[%s2190_s4 + $0x88] sm:$0xff] %v902_v8  ;;  %998 = vst [vmem:[%s2190_s4 + $0x188] sm:$0xff] %v934_v9  ;;  %v839_v14 = vadd.f32 %v775_v5, %v529_v10  ;;  %v871_v15 = vadd.f32 %v807_v7, %v689_v11 }
 0x158   :  { %v533_v16 = vpop.f32.mrb[38].mxu0  ;;  %v693_v18 = vpop.f32.mrb[38].mxu1 }
 0x159   :  { %v903_v20 = vmax.f32 %v839_v14, 0.0  ;;  %v935_v21 = vmax.f32 %v871_v15, 0.0  ;;  %v534_v22 = vadd.f32 %v1736_v42, %v533_v16  ;;  %v694_v23 = vadd.f32 %v1736_v42, %v693_v18  ;;  %v535_v24 = vpop.f32.mrb[39].mxu0  ;;  %v695_v25 = vpop.f32.mrb[39].mxu1  ;;  %v781_v14 = vld [vmem:[%s2189_s3 + $0xc0] sm:$0xff] }
 0x15a   :  { %v813_v16 = vld [vmem:[%s2189_s3 + $0x1c0] sm:$0xff] }
 0x15b   :  { %967 = vst [vmem:[%s2190_s4 + $0x90] sm:$0xff] %v903_v20  ;;  %999 = vst [vmem:[%s2190_s4 + $0x190] sm:$0xff] %v935_v21  ;;  %v840_v26 = vadd.f32 %v776_v17, %v534_v22  ;;  %v872_v27 = vadd.f32 %v808_v19, %v694_v23 }
 0x15c   :  { %v538_v28 = vpop.f32.mrb[40].mxu0  ;;  %v698_v30 = vpop.f32.mrb[40].mxu1 }
 0x15d   :  { %v904_v32 = vmax.f32 %v840_v26, 0.0  ;;  %v936_v33 = vmax.f32 %v872_v27, 0.0  ;;  %v539_v34 = vadd.f32 %v1736_v42, %v538_v28  ;;  %v699_v35 = vadd.f32 %v1736_v42, %v698_v30  ;;  %v540_v36 = vpop.f32.mrb[41].mxu0  ;;  %v700_v37 = vpop.f32.mrb[41].mxu1  ;;  %v782_v26 = vld [vmem:[%s2189_s3 + $0xc8] sm:$0xff] }
 0x15e   :  { %v814_v28 = vld [vmem:[%s2189_s3 + $0x1c8] sm:$0xff] }
 0x15f   :  { %968 = vst [vmem:[%s2190_s4 + $0x98] sm:$0xff] %v904_v32  ;;  %1000 = vst [vmem:[%s2190_s4 + $0x198] sm:$0xff] %v936_v33  ;;  %v841_v38 = vadd.f32 %v777_v29, %v539_v34  ;;  %v873_v39 = vadd.f32 %v809_v31, %v699_v35 }
 0x160   :  { %v543_v40 = vpop.f32.mrb[42].mxu0  ;;  %v703_v43 = vpop.f32.mrb[42].mxu1 }
 0x161   :  { %v905_v45 = vmax.f32 %v841_v38, 0.0  ;;  %v937_v46 = vmax.f32 %v873_v39, 0.0  ;;  %v544_v47 = vadd.f32 %v1736_v42, %v543_v40  ;;  %v704_v48 = vadd.f32 %v1736_v42, %v703_v43  ;;  %v545_v49 = vpop.f32.mrb[43].mxu0  ;;  %v705_v50 = vpop.f32.mrb[43].mxu1  ;;  %v783_v38 = vld [vmem:[%s2189_s3 + $0xd0] sm:$0xff] }
 0x162   :  { %v815_v40 = vld [vmem:[%s2189_s3 + $0x1d0] sm:$0xff] }
 0x163   :  { %969 = vst [vmem:[%s2190_s4 + $0xa0] sm:$0xff] %v905_v45  ;;  %1001 = vst [vmem:[%s2190_s4 + $0x1a0] sm:$0xff] %v937_v46  ;;  %v842_v51 = vadd.f32 %v778_v41, %v544_v47  ;;  %v874_v52 = vadd.f32 %v810_v44, %v704_v48 }
 0x164   :  { %v548_v53 = vpop.f32.mrb[44].mxu0  ;;  %v708_v55 = vpop.f32.mrb[44].mxu1 }
 0x165   :  { %v906_v57 = vmax.f32 %v842_v51, 0.0  ;;  %v938_v58 = vmax.f32 %v874_v52, 0.0  ;;  %v549_v59 = vadd.f32 %v1736_v42, %v548_v53  ;;  %v709_v60 = vadd.f32 %v1736_v42, %v708_v55  ;;  %v550_v61 = vpop.f32.mrb[45].mxu0  ;;  %v710_v62 = vpop.f32.mrb[45].mxu1  ;;  %v784_v51 = vld [vmem:[%s2189_s3 + $0xd8] sm:$0xff] }
 0x166   :  { %v816_v53 = vld [vmem:[%s2189_s3 + $0x1d8] sm:$0xff] }
 0x167   :  { %970 = vst [vmem:[%s2190_s4 + $0xa8] sm:$0xff] %v906_v57  ;;  %1002 = vst [vmem:[%s2190_s4 + $0x1a8] sm:$0xff] %v938_v58  ;;  %v843_v63 = vadd.f32 %v779_v54, %v549_v59  ;;  %v875_v0 = vadd.f32 %v811_v56, %v709_v60 }
 0x168   :  { %v553_v1 = vpop.f32.mrb[46].mxu0  ;;  %v713_v3 = vpop.f32.mrb[46].mxu1 }
 0x169   :  { %v907_v5 = vmax.f32 %v843_v63, 0.0  ;;  %v939_v6 = vmax.f32 %v875_v0, 0.0  ;;  %v554_v7 = vadd.f32 %v1736_v42, %v553_v1  ;;  %v714_v8 = vadd.f32 %v1736_v42, %v713_v3  ;;  %v555_v9 = vpop.f32.mrb[47].mxu0  ;;  %v715_v10 = vpop.f32.mrb[47].mxu1  ;;  %v785_v63 = vld [vmem:[%s2189_s3 + $0xe0] sm:$0xff] }
 0x16a   :  { %v817_v1 = vld [vmem:[%s2189_s3 + $0x1e0] sm:$0xff] }
 0x16b   :  { %971 = vst [vmem:[%s2190_s4 + $0xb0] sm:$0xff] %v907_v5  ;;  %1003 = vst [vmem:[%s2190_s4 + $0x1b0] sm:$0xff] %v939_v6  ;;  %v844_v11 = vadd.f32 %v780_v2, %v554_v7  ;;  %v876_v12 = vadd.f32 %v812_v4, %v714_v8 }
 0x16c   :  { %v558_v13 = vpop.f32.mrb[48].mxu0  ;;  %v718_v15 = vpop.f32.mrb[48].mxu1 }
 0x16d   :  { %v908_v17 = vmax.f32 %v844_v11, 0.0  ;;  %v940_v18 = vmax.f32 %v876_v12, 0.0  ;;  %v559_v19 = vadd.f32 %v1736_v42, %v558_v13  ;;  %v719_v20 = vadd.f32 %v1736_v42, %v718_v15  ;;  %v560_v21 = vpop.f32.mrb[49].mxu0  ;;  %v720_v22 = vpop.f32.mrb[49].mxu1  ;;  %v786_v11 = vld [vmem:[%s2189_s3 + $0xe8] sm:$0xff] }
 0x16e   :  { %v818_v13 = vld [vmem:[%s2189_s3 + $0x1e8] sm:$0xff] }
 0x16f   :  { %972 = vst [vmem:[%s2190_s4 + $0xb8] sm:$0xff] %v908_v17  ;;  %1004 = vst [vmem:[%s2190_s4 + $0x1b8] sm:$0xff] %v940_v18  ;;  %v845_v23 = vadd.f32 %v781_v14, %v559_v19  ;;  %v877_v24 = vadd.f32 %v813_v16, %v719_v20 }
 0x170   :  { %v563_v25 = vpop.f32.mrb[50].mxu0  ;;  %v723_v27 = vpop.f32.mrb[50].mxu1 }
 0x171   :  { %v909_v29 = vmax.f32 %v845_v23, 0.0  ;;  %v941_v30 = vmax.f32 %v877_v24, 0.0  ;;  %v564_v31 = vadd.f32 %v1736_v42, %v563_v25  ;;  %v724_v32 = vadd.f32 %v1736_v42, %v723_v27  ;;  %v565_v33 = vpop.f32.mrb[51].mxu0  ;;  %v725_v34 = vpop.f32.mrb[51].mxu1  ;;  %v787_v23 = vld [vmem:[%s2189_s3 + $0xf0] sm:$0xff] }
 0x172   :  { %v819_v25 = vld [vmem:[%s2189_s3 + $0x1f0] sm:$0xff] }
 0x173   :  { %973 = vst [vmem:[%s2190_s4 + $0xc0] sm:$0xff] %v909_v29  ;;  %1005 = vst [vmem:[%s2190_s4 + $0x1c0] sm:$0xff] %v941_v30  ;;  %v846_v35 = vadd.f32 %v782_v26, %v564_v31  ;;  %v878_v36 = vadd.f32 %v814_v28, %v724_v32 }
 0x174   :  { %v568_v37 = vpop.f32.mrb[52].mxu0  ;;  %v728_v39 = vpop.f32.mrb[52].mxu1 }
 0x175   :  { %v910_v41 = vmax.f32 %v846_v35, 0.0  ;;  %v942_v43 = vmax.f32 %v878_v36, 0.0  ;;  %v569_v44 = vadd.f32 %v1736_v42, %v568_v37  ;;  %v729_v45 = vadd.f32 %v1736_v42, %v728_v39  ;;  %v570_v46 = vpop.f32.mrb[53].mxu0  ;;  %v730_v47 = vpop.f32.mrb[53].mxu1  ;;  %v788_v35 = vld [vmem:[%s2189_s3 + $0xf8] sm:$0xff] }
 0x176   :  { %v820_v37 = vld [vmem:[%s2189_s3 + $0x1f8] sm:$0xff] }
 0x177   :  { %974 = vst [vmem:[%s2190_s4 + $0xc8] sm:$0xff] %v910_v41  ;;  %1006 = vst [vmem:[%s2190_s4 + $0x1c8] sm:$0xff] %v942_v43  ;;  %v847_v48 = vadd.f32 %v783_v38, %v569_v44  ;;  %v879_v49 = vadd.f32 %v815_v40, %v729_v45 }
 0x178   :  { %v573_v50 = vpop.f32.mrb[54].mxu0  ;;  %v733_v52 = vpop.f32.mrb[54].mxu1 }
 0x179   :  { %v911_v54 = vmax.f32 %v847_v48, 0.0  ;;  %v943_v55 = vmax.f32 %v879_v49, 0.0  ;;  %v574_v56 = vadd.f32 %v1736_v42, %v573_v50  ;;  %v734_v57 = vadd.f32 %v1736_v42, %v733_v52  ;;  %v575_v58 = vpop.f32.mrb[55].mxu0  ;;  %v735_v59 = vpop.f32.mrb[55].mxu1 }
 0x17b   :  { %975 = vst [vmem:[%s2190_s4 + $0xd0] sm:$0xff] %v911_v54  ;;  %1007 = vst [vmem:[%s2190_s4 + $0x1d0] sm:$0xff] %v943_v55  ;;  %v848_v60 = vadd.f32 %v784_v51, %v574_v56  ;;  %v880_v61 = vadd.f32 %v816_v53, %v734_v57 }
 0x17c   :  { %v578_v62 = vpop.f32.mrb[56].mxu0  ;;  %v738_v0 = vpop.f32.mrb[56].mxu1 }
 0x17d   :  { %v912_v2 = vmax.f32 %v848_v60, 0.0  ;;  %v944_v3 = vmax.f32 %v880_v61, 0.0  ;;  %v579_v4 = vadd.f32 %v1736_v42, %v578_v62  ;;  %v739_v5 = vadd.f32 %v1736_v42, %v738_v0  ;;  %v580_v6 = vpop.f32.mrb[57].mxu0  ;;  %v740_v7 = vpop.f32.mrb[57].mxu1 }
 0x17f   :  { %976 = vst [vmem:[%s2190_s4 + $0xd8] sm:$0xff] %v912_v2  ;;  %1008 = vst [vmem:[%s2190_s4 + $0x1d8] sm:$0xff] %v944_v3  ;;  %v849_v8 = vadd.f32 %v785_v63, %v579_v4  ;;  %v881_v9 = vadd.f32 %v817_v1, %v739_v5 }
 0x180   :  { %v583_v10 = vpop.f32.mrb[58].mxu0  ;;  %v743_v12 = vpop.f32.mrb[58].mxu1 }
 0x181   :  { %v913_v14 = vmax.f32 %v849_v8, 0.0  ;;  %v945_v15 = vmax.f32 %v881_v9, 0.0  ;;  %v584_v16 = vadd.f32 %v1736_v42, %v583_v10  ;;  %v744_v17 = vadd.f32 %v1736_v42, %v743_v12  ;;  %v585_v18 = vpop.f32.mrb[59].mxu0  ;;  %v745_v19 = vpop.f32.mrb[59].mxu1 }
 0x183   :  { %977 = vst [vmem:[%s2190_s4 + $0xe0] sm:$0xff] %v913_v14  ;;  %1009 = vst [vmem:[%s2190_s4 + $0x1e0] sm:$0xff] %v945_v15  ;;  %v850_v20 = vadd.f32 %v786_v11, %v584_v16  ;;  %v882_v21 = vadd.f32 %v818_v13, %v744_v17 }
 0x184   :  { %v588_v22 = vpop.f32.mrb[60].mxu0  ;;  %v748_v24 = vpop.f32.mrb[60].mxu1 }
 0x185   :  { %v914_v26 = vmax.f32 %v850_v20, 0.0  ;;  %v946_v27 = vmax.f32 %v882_v21, 0.0  ;;  %v589_v28 = vadd.f32 %v1736_v42, %v588_v22  ;;  %v749_v29 = vadd.f32 %v1736_v42, %v748_v24  ;;  %v590_v30 = vpop.f32.mrb[61].mxu0  ;;  %v750_v31 = vpop.f32.mrb[61].mxu1 }
 0x187   :  { %978 = vst [vmem:[%s2190_s4 + $0xe8] sm:$0xff] %v914_v26  ;;  %1010 = vst [vmem:[%s2190_s4 + $0x1e8] sm:$0xff] %v946_v27  ;;  %v851_v32 = vadd.f32 %v787_v23, %v589_v28  ;;  %v883_v33 = vadd.f32 %v819_v25, %v749_v29 }
 0x188   :  { %v593_v34 = vpop.f32.mrb[62].mxu0  ;;  %v753_v36 = vpop.f32.mrb[62].mxu1 }
 0x189   :  { %v915_v38 = vmax.f32 %v851_v32, 0.0  ;;  %v947_v39 = vmax.f32 %v883_v33, 0.0  ;;  %v594_v40 = vadd.f32 %v1736_v42, %v593_v34  ;;  %v754_v41 = vadd.f32 %v1736_v42, %v753_v36  ;;  %v595_v43 = vpop.f32.mrb[63].mxu0  ;;  %v755_v44 = vpop.f32.mrb[63].mxu1 }
 0x18b   :  { %979 = vst [vmem:[%s2190_s4 + $0xf0] sm:$0xff] %v915_v38  ;;  %1011 = vst [vmem:[%s2190_s4 + $0x1f0] sm:$0xff] %v947_v39  ;;  %v852_v45 = vadd.f32 %v788_v35, %v594_v40  ;;  %v884_v46 = vadd.f32 %v820_v37, %v754_v41 }
 0x18d   :  { %v916_v47 = vmax.f32 %v852_v45, 0.0  ;;  %v948_v48 = vmax.f32 %v884_v46, 0.0 }
 0x18f   :  { %980 = vst [vmem:[%s2190_s4 + $0xf8] sm:$0xff] %v916_v47  ;;  %1012 = vst [vmem:[%s2190_s4 + $0x1f8] sm:$0xff] %v948_v48 }

</bundles_post_ra>
